<compile_context>
chip_gen: v5e
topology: v5e:2x2
jax: 0.10.0
libtpu: 0.0.40
codegen_flags: <defaults>
</compile_context>

<pallas_src>
import functools
import math

import jax
import jax.numpy as jnp
from jax.experimental import pallas as pl
from jax.experimental.pallas import tpu as pltpu

F32 = jnp.float32
LANES = 128


def _round_up(x, m):
    return -(-x // m) * m


# ---------------------------------------------------------------------------
# Host-side slab packer: every tensor is placed in one lane-dense (rows, 128)
# f32 slab at an 8-row-aligned static offset -> one input DMA, zero-cost static
# ref slices in the kernel.
# ---------------------------------------------------------------------------
class _SlabPacker:
    def __init__(self):
        self._pieces = []
        self._offs = {}
        self._rows = 0

    def add(self, name, arr):
        arr = jnp.asarray(arr, F32)
        if arr.ndim == 1:
            arr = arr.reshape(1, -1)
        assert arr.ndim == 2 and arr.shape[1] <= LANES, (name, arr.shape)
        r, c = arr.shape
        rp = _round_up(r, 8)
        block = jnp.zeros((rp, LANES), F32).at[:r, :c].set(arr)
        self._offs[name] = (self._rows, r, c)
        self._pieces.append(block)
        self._rows += rp

    def finalize(self):
        return jnp.concatenate(self._pieces, axis=0), dict(self._offs)


# ---------------------------------------------------------------------------
# In-kernel helpers (traced inside the Pallas kernel only; operate on values)
# ---------------------------------------------------------------------------
def _layer_norm(x, g, b, eps=1e-5):
    mu = jnp.mean(x, axis=-1, keepdims=True)
    xc = x - mu
    var = jnp.mean(xc * xc, axis=-1, keepdims=True)
    return xc * jax.lax.rsqrt(var + eps) * g + b


def _attention(x_q, x_kv, w_qkv, b_qkv, wo, bo, mask, *, nh, self_attn):
    """Multi-head attention, batch folded into rows via a block-diag mask.

    x_q: (Mq, H), x_kv: (Mk, H)
    w_qkv: (H, 3H), b_qkv: (1, 3H), wo: (H, H), bo: (1, H)
    mask: (Mq, Mk) additive mask (causal + batch-block-diag or block-diag only).
    """
    Mq, H = x_q.shape
    Mk = x_kv.shape[0]
    dh = H // nh
    scale = 1.0 / math.sqrt(dh)

    # One fused QKV projection (contraction dim = H), per the perf review.
    qkv_q = jnp.dot(x_q, w_qkv, preferred_element_type=F32) + b_qkv
    qkv_kv = qkv_q if self_attn else (
        jnp.dot(x_kv, w_qkv, preferred_element_type=F32) + b_qkv)

    q = qkv_q[:, :H] * scale
    k = qkv_kv[:, H:2 * H]
    v = qkv_kv[:, 2 * H:3 * H]

    # Per-head views, heads leading for the batched score / PV einsums.
    qh = jnp.transpose(q.reshape(Mq, nh, dh), (1, 0, 2))    # (nh, Mq, dh)
    kh = jnp.transpose(k.reshape(Mk, nh, dh), (1, 0, 2))    # (nh, Mk, dh)
    vh = jnp.transpose(v.reshape(Mk, nh, dh), (1, 0, 2))    # (nh, Mk, dh)

    s = jnp.einsum("hqd,hkd->hqk", qh, kh, preferred_element_type=F32)
    s = s + mask[None]                                       # (nh, Mq, Mk)
    m = jnp.max(s, axis=-1, keepdims=True)
    e = jnp.exp(s - m)
    # NOTE: approx reciprocal -> softmax rows sum to 1 only to ~1e-3 rel. error.
    p = e * pl.reciprocal(jnp.sum(e, axis=-1, keepdims=True), approx=True)
    o = jnp.einsum("hqk,hkd->hqd", p, vh, preferred_element_type=F32)  # (nh,Mq,dh)

    # Fused head-output projection: re-concat heads -> one (Mq,H)@(H,H) matmul.
    oc = jnp.transpose(o, (1, 0, 2)).reshape(Mq, H)
    return jnp.dot(oc, wo, preferred_element_type=F32) + bo


def _encoder_layer(x, g, mask, *, nh):
    attn = _attention(x, x, g("wqkv"), g("bqkv"), g("wo"), g("bo"),
                      mask, nh=nh, self_attn=True)
    x = _layer_norm(x + attn, g("ln1g"), g("ln1b"))
    h = jnp.maximum(jnp.dot(x, g("w1"), preferred_element_type=F32) + g("b1"), 0.0)
    ff = jnp.dot(h, g("w2"), preferred_element_type=F32) + g("b2")
    return _layer_norm(x + ff, g("ln2g"), g("ln2b"))


def _decoder_layer(x, mem, g, mask_self, mask_cross, *, nh):
    sa = _attention(x, x, g("sa_wqkv"), g("sa_bqkv"), g("sa_wo"), g("sa_bo"),
                    mask_self, nh=nh, self_attn=True)
    x = _layer_norm(x + sa, g("ln1g"), g("ln1b"))
    ca = _attention(x, mem, g("ca_wqkv"), g("ca_bqkv"), g("ca_wo"), g("ca_bo"),
                    mask_cross, nh=nh, self_attn=False)
    x = _layer_norm(x + ca, g("ln2g"), g("ln2b"))
    h = jnp.maximum(jnp.dot(x, g("w1"), preferred_element_type=F32) + g("b1"), 0.0)
    ff = jnp.dot(h, g("w2"), preferred_element_type=F32) + g("b2")
    return _layer_norm(x + ff, g("ln3g"), g("ln3b"))


# ---------------------------------------------------------------------------
# The single fused Pallas kernel: full CausalGraphVAE forward
# ---------------------------------------------------------------------------
def _vae_forward_kernel(wslab_ref, dslab_ref, out_ref, *, offs, eps_row,
                        mu_row, lv_row, B, T, H, L, N, nh, n_enc, n_dec):
    del L, N  # not needed in-kernel (padded-lane layout makes them implicit)
    BT = B * T

    def get(name):
        off, r, c = offs[name]
        return wslab_ref[off:off + r, :c]

    def layer_get(prefix):
        return lambda k: get(prefix + k)

    out_ref[...] = jnp.zeros_like(out_ref)   # deterministic padding rows/lanes

    pos = get("pos")                          # (BT, H) positional emb, pre-tiled
    mask_self = get("mask_self")              # (BT, BT) causal + batch blockdiag
    mask_cross = get("mask_cross")            # (BT, BT) batch blockdiag only

    x_pad = dslab_ref[0:BT, :]                # (BT, 128), zeros beyond N
    eps_pad = dslab_ref[eps_row:eps_row + B, :]   # (B, 128), zeros beyond L

    # ---- encode: projection + pos emb + encoder stack (all VMEM-resident) ----
    x = (jnp.dot(x_pad, get("enc_proj_w"), preferred_element_type=F32)
         + get("enc_proj_b")) + pos                                   # (BT, H)
    for l in range(n_enc):                                            # static unroll
        x = _encoder_layer(x, layer_get(f"enc{l}_"), mask_self, nh=nh)
    memory = x                                                        # (BT, H)

    # memory[-1,:,:] in (T,B,H) convention == last time step of each batch elem.
    last = memory.reshape(B, T, H)[:, T - 1, :]                       # (B, H)

    # mu / logvar heads (weights lane-padded to 128 -> full-width rows).
    mu_p = jnp.dot(last, get("mu_w"), preferred_element_type=F32) + get("mu_b")
    lv_p = jnp.dot(last, get("logvar_w"), preferred_element_type=F32) + get("logvar_b")
    out_ref[mu_row:mu_row + B, :] = mu_p
    out_ref[lv_row:lv_row + B, :] = lv_p

    # ---- reparameterize (eps supplied from the host RNG) ----
    z_pad = mu_p + eps_pad * jnp.exp(0.5 * lv_p)                      # (B, 128)

    # ---- decode: project (B rows only), then broadcast over time ----
    z_h = (jnp.dot(z_pad, get("dec_proj_w"), preferred_element_type=F32)
           + get("dec_proj_b"))                                       # (B, H)
    tgt = jnp.broadcast_to(z_h[:, None, :], (B, T, H)).reshape(BT, H) + pos
    for l in range(n_dec):
        tgt = _decoder_layer(tgt, memory, layer_get(f"dec{l}_"),
                             mask_self, mask_cross, nh=nh)

    # Output head (weights lane-padded to 128 -> unmasked full-width store).
    out_ref[0:BT, :] = (jnp.dot(tgt, get("dec_fc_w"), preferred_element_type=F32)
                        + get("dec_fc_b"))


# ---------------------------------------------------------------------------
# Parameter initialization (deterministic, synthetic, torch-like layout)
# ---------------------------------------------------------------------------
def init_params(key, *, input_dim, hidden_dim, latent_dim, num_nodes,
                time_steps, n_layers=2):
    keys = iter(jax.random.split(key, 256))

    def nrm(shape, scale=0.1):
        return (scale * jax.random.normal(next(keys), shape)).astype(F32)

    H, L, N, T = hidden_dim, latent_dim, num_nodes, time_steps
    zeros = lambda n: jnp.zeros((n,), F32)
    ones = lambda n: jnp.ones((n,), F32)

    p = dict(
        pos_emb=nrm((T, H)),
        enc_proj_w=nrm((N, H)), enc_proj_b=zeros(H),
        mu_w=nrm((H, L)), mu_b=zeros(L),
        logvar_w=nrm((H, L)), logvar_b=zeros(L),
        dec_proj_w=nrm((L, H)), dec_proj_b=zeros(H),
        dec_fc_w=nrm((H, input_dim)), dec_fc_b=zeros(input_dim),
        adj_now=nrm((N, N)), adj_lag=nrm((N, N)),
    )

    def attn(prefix=""):
        return {prefix + "wq": nrm((H, H)), prefix + "wk": nrm((H, H)),
                prefix + "wv": nrm((H, H)),
                prefix + "bq": zeros(H), prefix + "bk": zeros(H),
                prefix + "bv": zeros(H),
                prefix + "wo": nrm((H, H)), prefix + "bo": zeros(H)}

    p["enc_layers"] = []
    for _ in range(n_layers):
        lp = attn()
        lp.update(ln1g=ones(H), ln1b=zeros(H),
                  w1=nrm((H, H)), b1=zeros(H),      # dim_feedforward == hidden_dim
                  w2=nrm((H, H)), b2=zeros(H),
                  ln2g=ones(H), ln2b=zeros(H))
        p["enc_layers"].append(lp)

    p["dec_layers"] = []
    for _ in range(n_layers):
        lp = attn("sa_")
        lp.update(attn("ca_"))
        lp.update(ln1g=ones(H), ln1b=zeros(H), ln2g=ones(H), ln2b=zeros(H),
                  w1=nrm((H, H)), b1=zeros(H),
                  w2=nrm((H, H)), b2=zeros(H),
                  ln3g=ones(H), ln3b=zeros(H))
        p["dec_layers"].append(lp)
    return p


# ---------------------------------------------------------------------------
# Host-side weight packing (done once, outside the jitted forward)
# ---------------------------------------------------------------------------
def _pack_weights(params, *, num_heads, batch_size):
    T, H = params["pos_emb"].shape
    L = params["mu_w"].shape[1]
    N = params["enc_proj_w"].shape[0]
    B = batch_size

    def pad_rows(w, rows):
        return jnp.zeros((rows, w.shape[1]), F32).at[:w.shape[0], :].set(w)

    def pad_cols(w, cols):
        w = w.reshape(1, -1) if w.ndim == 1 else w
        return jnp.zeros((w.shape[0], cols), F32).at[:, :w.shape[1]].set(w)

    pk = _SlabPacker()
    # -- globals --
    pk.add("pos", jnp.tile(params["pos_emb"], (B, 1)))                 # (B*T, H)
    causal = jnp.where(jnp.arange(T)[None, :] > jnp.arange(T)[:, None],
                       -1e9, 0.0).astype(F32)
    same = (jnp.arange(B * T)[:, None] // T) == (jnp.arange(B * T)[None, :] // T)
    pk.add("mask_self", jnp.where(same, jnp.tile(causal, (B, B)), -1e9).astype(F32))
    pk.add("mask_cross", jnp.where(same, 0.0, -1e9).astype(F32))
    # projections: contraction side padded to 128 rows (matches padded data
    # lanes), output side padded to 128 cols (lane-dense result rows).
    pk.add("enc_proj_w", pad_rows(params["enc_proj_w"], LANES))        # (128, H)
    pk.add("enc_proj_b", params["enc_proj_b"])
    pk.add("mu_w", pad_cols(params["mu_w"], LANES))                    # (H, 128)
    pk.add("mu_b", pad_cols(params["mu_b"], LANES))
    pk.add("logvar_w", pad_cols(params["logvar_w"], LANES))
    pk.add("logvar_b", pad_cols(params["logvar_b"], LANES))
    pk.add("dec_proj_w", pad_rows(params["dec_proj_w"], LANES))        # (128, H)
    pk.add("dec_proj_b", params["dec_proj_b"])
    pk.add("dec_fc_w", pad_cols(params["dec_fc_w"], LANES))            # (H, 128)
    pk.add("dec_fc_b", pad_cols(params["dec_fc_b"], LANES))

    def add_attn(out_prefix, lp, in_prefix=""):
        wqkv = jnp.concatenate([lp[in_prefix + "wq"], lp[in_prefix + "wk"],
                                lp[in_prefix + "wv"]], axis=1)         # (H, 3H)
        bqkv = jnp.concatenate([lp[in_prefix + "bq"], lp[in_prefix + "bk"],
                                lp[in_prefix + "bv"]], axis=0)         # (3H,)
        pk.add(out_prefix + "wqkv", wqkv)
        pk.add(out_prefix + "bqkv", bqkv)
        pk.add(out_prefix + "wo", lp[in_prefix + "wo"])
        pk.add(out_prefix + "bo", lp[in_prefix + "bo"])

    for l, lp in enumerate(params["enc_layers"]):
        add_attn(f"enc{l}_", lp)
        for k in ("ln1g", "ln1b", "w1", "b1", "w2", "b2", "ln2g", "ln2b"):
            pk.add(f"enc{l}_{k}", lp[k])
    for l, lp in enumerate(params["dec_layers"]):
        add_attn(f"dec{l}_sa_", lp, "sa_")
        add_attn(f"dec{l}_ca_", lp, "ca_")
        for k in ("ln1g", "ln1b", "ln2g", "ln2b", "ln3g", "ln3b",
                  "w1", "b1", "w2", "b2"):
            pk.add(f"dec{l}_{k}", lp[k])

    slab, offs = pk.finalize()
    dims = dict(B=B, T=T, H=H, L=L, N=N, nh=num_heads,
                n_enc=len(params["enc_layers"]), n_dec=len(params["dec_layers"]))
    return slab, offs, dims


# ---------------------------------------------------------------------------
# Forward pass factory: one fused pallas_call, 2 input DMAs, 1 output DMA
# ---------------------------------------------------------------------------
def make_forward(params, *, num_heads=4, batch_size=2):
    wslab, offs, dims = _pack_weights(params, num_heads=num_heads,
                                      batch_size=batch_size)
    B, T, H, L, N = dims["B"], dims["T"], dims["H"], dims["L"], dims["N"]
    BT = B * T
    eps_row = _round_up(BT, 8)
    d_rows = eps_row + _round_up(B, 8)
    mu_row = _round_up(BT, 8)
    lv_row = mu_row + _round_up(B, 8)
    out_rows = lv_row + _round_up(B, 8)

    kern = functools.partial(_vae_forward_kernel, offs=offs, eps_row=eps_row,
                             mu_row=mu_row, lv_row=lv_row, **dims)

    # Single fused kernel, no grid: whole-array VMEM blocks (total footprint
    # ~1 MiB, far below the scoped limit on every generation incl. v7x 64 MiB).
    # TODO(synk): on v7x (2 TensorCores) add grid=(B,) with
    # dimension_semantics=("parallel",) once shapes grow beyond toy sizes; at
    # these sizes a grid only adds ~0.35 us/step of serial overhead.
    call = pl.pallas_call(
        kern,
        out_shape=jax.ShapeDtypeStruct((out_rows, LANES), F32),
        in_specs=[pl.BlockSpec(memory_space=pltpu.MemorySpace.VMEM)] * 2,
        out_specs=pl.BlockSpec(memory_space=pltpu.MemorySpace.VMEM),
        compiler_params=pltpu.CompilerParams(vmem_limit_bytes=32 * 1024 * 1024),
    )

    adj_now, adj_lag = params["adj_now"], params["adj_lag"]

    @jax.jit
    def forward(weight_slab, X, time_context, key):
        # TODO(synk): TemporalCausalGraph is not defined in the provided source;
        # stand-in returns static learnable adjacency params (time_context unused).
        del time_context
        X = X.astype(F32)
        eps = jax.random.normal(key, (B, L), dtype=F32)
        dslab = jnp.zeros((d_rows, LANES), F32)
        dslab = dslab.at[:BT, :N].set(X.reshape(BT, N))
        dslab = dslab.at[eps_row:eps_row + B, :L].set(eps)
        out = call(weight_slab, dslab)
        recon = out[:BT, :N].reshape(B, T, N)
        mu = out[mu_row:mu_row + B, :L]
        logvar = out[lv_row:lv_row + B, :L]
        return recon, mu, logvar, adj_now, adj_lag

    return forward, wslab


if __name__ == "__main__":
    # small shapes consistent with the module:
    # batch=2, time_steps=8, num_nodes=input_dim=4, hidden_dim=32, latent_dim=16
    B, T, N, H, L = 2, 8, 4, 32, 16
    key = jax.random.PRNGKey(0)
    kp, kx, kt, kz = jax.random.split(key, 4)

    params = init_params(kp, input_dim=N, hidden_dim=H, latent_dim=L,
                         num_nodes=N, time_steps=T, n_layers=2)
    X = jax.random.normal(kx, (B, T, N), dtype=F32)
    time_context = jax.random.normal(kt, (B, T), dtype=F32)

    forward, wslab = make_forward(params, num_heads=4, batch_size=B)
    outs = forward(wslab, X, time_context, kz)
    outs = jax.block_until_ready(outs)
    recon_X, mu, logvar, adj_now, adj_lag = outs

    assert recon_X.shape == (B, T, N)
    assert mu.shape == (B, L) and logvar.shape == (B, L)
    assert adj_now.shape == (N, N) and adj_lag.shape == (N, N)
    assert all(bool(jnp.all(jnp.isfinite(o))) for o in outs)
    print("KERNEL_OK")
</pallas_src>

<mosaic_0001>
module attributes {stable_mosaic.version = 11 : i64} {
  func.func @_vae_forward_kernel(%arg0: memref<1400x128xf32, #tpu.memory_space<vmem>>, %arg1: memref<24x128xf32, #tpu.memory_space<vmem>>, %arg2: memref<32x128xf32, #tpu.memory_space<vmem>>) attributes {dimension_semantics = [], scalar_prefetch = 0 : i64, scratch_operands = 0 : i64, tpu.core_type = #tpu.core_type<tc>} {
    %cst = arith.constant 0.000000e+00 : f32
    %0 = vector.broadcast %cst : f32 to vector<32x128xf32>
    %c0 = arith.constant 0 : index
    %c0_0 = arith.constant 0 : index
    %1 = vector.load %arg2[%c0, %c0_0] : memref<32x128xf32, #tpu.memory_space<vmem>>, vector<32x128xf32>
    tpu.vector_store %arg2[%c0, %c0_0], %0 {strides = array<i32>} : memref<32x128xf32, #tpu.memory_space<vmem>>, vector<32x128xf32>,
    %c0_1 = arith.constant 0 : index
    %c0_2 = arith.constant 0 : index
    %2 = vector.load %arg0[%c0_1, %c0_2] : memref<1400x128xf32, #tpu.memory_space<vmem>>, vector<16x32xf32>
    %c16 = arith.constant 16 : index
    %c0_3 = arith.constant 0 : index
    %3 = vector.load %arg0[%c16, %c0_3] : memref<1400x128xf32, #tpu.memory_space<vmem>>, vector<16x16xf32>
    %c32 = arith.constant 32 : index
    %c0_4 = arith.constant 0 : index
    %4 = vector.load %arg0[%c32, %c0_4] : memref<1400x128xf32, #tpu.memory_space<vmem>>, vector<16x16xf32>
    %c0_5 = arith.constant 0 : index
    %c0_6 = arith.constant 0 : index
    %5 = vector.load %arg1[%c0_5, %c0_6] : memref<24x128xf32, #tpu.memory_space<vmem>>, vector<16x128xf32>
    %c16_7 = arith.constant 16 : index
    %c0_8 = arith.constant 0 : index
    %6 = vector.load %arg1[%c16_7, %c0_8] : memref<24x128xf32, #tpu.memory_space<vmem>>, vector<2x128xf32>
    %c48 = arith.constant 48 : index
    %c0_9 = arith.constant 0 : index
    %7 = vector.load %arg0[%c48, %c0_9] : memref<1400x128xf32, #tpu.memory_space<vmem>>, vector<128x32xf32>
    %cst_10 = arith.constant dense<0.000000e+00> : vector<16x32xf32>
    %8 = tpu.matmul %5, %7, %cst_10 {dimension_numbers = #tpu.dot_dimension_numbers<[1], [0], [0], [1], [0, 0, 1, 1], [], []>} : vector<16x128xf32>, vector<128x32xf32>, vector<16x32xf32> -> vector<16x32xf32>
    %c176 = arith.constant 176 : index
    %c0_11 = arith.constant 0 : index
    %9 = vector.load %arg0[%c176, %c0_11] : memref<1400x128xf32, #tpu.memory_space<vmem>>, vector<1x32xf32>
    %10 = vector.broadcast %9 : vector<1x32xf32> to vector<16x32xf32>
    %11 = arith.addf %8, %10 : vector<16x32xf32>
    %12 = arith.addf %11, %2 : vector<16x32xf32>
    %c440 = arith.constant 440 : index
    %c0_12 = arith.constant 0 : index
    %13 = vector.load %arg0[%c440, %c0_12] : memref<1400x128xf32, #tpu.memory_space<vmem>>, vector<32x96xf32>
    %c472 = arith.constant 472 : index
    %c0_13 = arith.constant 0 : index
    %14 = vector.load %arg0[%c472, %c0_13] : memref<1400x128xf32, #tpu.memory_space<vmem>>, vector<1x96xf32>
    %c480 = arith.constant 480 : index
    %c0_14 = arith.constant 0 : index
    %15 = vector.load %arg0[%c480, %c0_14] : memref<1400x128xf32, #tpu.memory_space<vmem>>, vector<32x32xf32>
    %c512 = arith.constant 512 : index
    %c0_15 = arith.constant 0 : index
    %16 = vector.load %arg0[%c512, %c0_15] : memref<1400x128xf32, #tpu.memory_space<vmem>>, vector<1x32xf32>
    %cst_16 = arith.constant dense<0.000000e+00> : vector<16x96xf32>
    %17 = tpu.matmul %12, %13, %cst_16 {dimension_numbers = #tpu.dot_dimension_numbers<[1], [0], [0], [1], [0, 0, 1, 1], [], []>} : vector<16x32xf32>, vector<32x96xf32>, vector<16x96xf32> -> vector<16x96xf32>
    %18 = vector.broadcast %14 : vector<1x96xf32> to vector<16x96xf32>
    %19 = arith.addf %17, %18 : vector<16x96xf32>
    %20 = vector.extract_strided_slice %19 {offsets = [0, 0], sizes = [16, 32], strides = [1, 1]} : vector<16x96xf32> to vector<16x32xf32>
    %cst_17 = arith.constant 0.353553385 : f32
    %21 = vector.broadcast %cst_17 : f32 to vector<16x32xf32>
    %22 = arith.mulf %20, %21 : vector<16x32xf32>
    %23 = vector.extract_strided_slice %19 {offsets = [0, 32], sizes = [16, 32], strides = [1, 1]} : vector<16x96xf32> to vector<16x32xf32>
    %24 = vector.extract_strided_slice %19 {offsets = [0, 64], sizes = [16, 32], strides = [1, 1]} : vector<16x96xf32> to vector<16x32xf32>
    %25 = vector.shape_cast %22 : vector<16x32xf32> to vector<16x4x8xf32>
    %26 = tpu.transpose %25, [1, 0, 2] : vector<16x4x8xf32> -> vector<4x16x8xf32>
    %27 = vector.shape_cast %23 : vector<16x32xf32> to vector<16x4x8xf32>
    %28 = tpu.transpose %27, [1, 0, 2] : vector<16x4x8xf32> -> vector<4x16x8xf32>
    %29 = vector.shape_cast %24 : vector<16x32xf32> to vector<16x4x8xf32>
    %30 = tpu.transpose %29, [1, 0, 2] : vector<16x4x8xf32> -> vector<4x16x8xf32>
    "tpu.trace_start"() <{level = 10 : i32, message = "hqd,hkd->hqk"}> : () -> ()
    %cst_18 = arith.constant dense<0.000000e+00> : vector<4x16x16xf32>
    %31 = tpu.matmul %26, %28, %cst_18 {dimension_numbers = #tpu.dot_dimension_numbers<[2], [2], [1], [1], [0, 0, 0, 1, 1, 1], [0], [0]>} : vector<4x16x8xf32>, vector<4x16x8xf32>, vector<4x16x16xf32> -> vector<4x16x16xf32>
    "tpu.trace_stop"() : () -> ()
    %32 = vector.shape_cast %3 : vector<16x16xf32> to vector<1x16x16xf32>
    %33 = vector.broadcast %32 : vector<1x16x16xf32> to vector<4x16x16xf32>
    %34 = arith.addf %31, %33 : vector<4x16x16xf32>
    %cst_19 = arith.constant dense<0xFF800000> : vector<4x16xf32>
    %35 = vector.multi_reduction <maximumf>, %34, %cst_19 [2] : vector<4x16x16xf32> to vector<4x16xf32>
    %36 = vector.shape_cast %35 : vector<4x16xf32> to vector<4x16x1xf32>
    %37 = vector.broadcast %36 : vector<4x16x1xf32> to vector<4x16x16xf32>
    %38 = arith.subf %34, %37 : vector<4x16x16xf32>
    %39 = math.exp %38 : vector<4x16x16xf32>
    %cst_20 = arith.constant dense<0.000000e+00> : vector<4x16xf32>
    %40 = vector.multi_reduction <add>, %39, %cst_20 [2] : vector<4x16x16xf32> to vector<4x16xf32>
    %41 = vector.shape_cast %40 : vector<4x16xf32> to vector<4x16x1xf32>
    %42 = tpu.reciprocal %41 {approx = true} : vector<4x16x1xf32> -> vector<4x16x1xf32>
    %43 = vector.broadcast %42 : vector<4x16x1xf32> to vector<4x16x16xf32>
    %44 = arith.mulf %39, %43 : vector<4x16x16xf32>
    "tpu.trace_start"() <{level = 10 : i32, message = "hqk,hkd->hqd"}> : () -> ()
    %cst_21 = arith.constant dense<0.000000e+00> : vector<4x16x8xf32>
    %45 = tpu.matmul %44, %30, %cst_21 {dimension_numbers = #tpu.dot_dimension_numbers<[2], [1], [1], [2], [0, 0, 0, 1, 1, 2], [0], [0]>} : vector<4x16x16xf32>, vector<4x16x8xf32>, vector<4x16x8xf32> -> vector<4x16x8xf32>
    "tpu.trace_stop"() : () -> ()
    %46 = tpu.transpose %45, [1, 0, 2] : vector<4x16x8xf32> -> vector<16x4x8xf32>
    %47 = vector.shape_cast %46 : vector<16x4x8xf32> to vector<16x32xf32>
    %cst_22 = arith.constant dense<0.000000e+00> : vector<16x32xf32>
    %48 = tpu.matmul %47, %15, %cst_22 {dimension_numbers = #tpu.dot_dimension_numbers<[1], [0], [0], [1], [0, 0, 1, 1], [], []>} : vector<16x32xf32>, vector<32x32xf32>, vector<16x32xf32> -> vector<16x32xf32>
    %49 = vector.broadcast %16 : vector<1x32xf32> to vector<16x32xf32>
    %50 = arith.addf %48, %49 : vector<16x32xf32>
    %51 = arith.addf %12, %50 : vector<16x32xf32>
    %c520 = arith.constant 520 : index
    %c0_23 = arith.constant 0 : index
    %52 = vector.load %arg0[%c520, %c0_23] : memref<1400x128xf32, #tpu.memory_space<vmem>>, vector<1x32xf32>
    %c528 = arith.constant 528 : index
    %c0_24 = arith.constant 0 : index
    %53 = vector.load %arg0[%c528, %c0_24] : memref<1400x128xf32, #tpu.memory_space<vmem>>, vector<1x32xf32>
    %cst_25 = arith.constant dense<0.000000e+00> : vector<16xf32>
    %54 = vector.multi_reduction <add>, %51, %cst_25 [1] : vector<16x32xf32> to vector<16xf32>
    %55 = vector.shape_cast %54 : vector<16xf32> to vector<16x1xf32>
    %cst_26 = arith.constant 3.200000e+01 : f32
    %56 = vector.broadcast %cst_26 : f32 to vector<16x1xf32>
    %57 = arith.divf %55, %56 : vector<16x1xf32>
    %58 = vector.broadcast %57 : vector<16x1xf32> to vector<16x32xf32>
    %59 = arith.subf %51, %58 : vector<16x32xf32>
    %60 = arith.mulf %59, %59 : vector<16x32xf32>
    %cst_27 = arith.constant dense<0.000000e+00> : vector<16xf32>
    %61 = vector.multi_reduction <add>, %60, %cst_27 [1] : vector<16x32xf32> to vector<16xf32>
    %62 = vector.shape_cast %61 : vector<16xf32> to vector<16x1xf32>
    %cst_28 = arith.constant 3.200000e+01 : f32
    %63 = vector.broadcast %cst_28 : f32 to vector<16x1xf32>
    %64 = arith.divf %62, %63 : vector<16x1xf32>
    %cst_29 = arith.constant 9.99999974E-6 : f32
    %65 = vector.broadcast %cst_29 : f32 to vector<16x1xf32>
    %66 = arith.addf %64, %65 : vector<16x1xf32>
    %67 = math.rsqrt %66 : vector<16x1xf32>
    %68 = vector.broadcast %67 : vector<16x1xf32> to vector<16x32xf32>
    %69 = arith.mulf %59, %68 : vector<16x32xf32>
    %70 = vector.broadcast %52 : vector<1x32xf32> to vector<16x32xf32>
    %71 = arith.mulf %69, %70 : vector<16x32xf32>
    %72 = vector.broadcast %53 : vector<1x32xf32> to vector<16x32xf32>
    %73 = arith.addf %71, %72 : vector<16x32xf32>
    %c536 = arith.constant 536 : index
    %c0_30 = arith.constant 0 : index
    %74 = vector.load %arg0[%c536, %c0_30] : memref<1400x128xf32, #tpu.memory_space<vmem>>, vector<32x32xf32>
    %cst_31 = arith.constant dense<0.000000e+00> : vector<16x32xf32>
    %75 = tpu.matmul %73, %74, %cst_31 {dimension_numbers = #tpu.dot_dimension_numbers<[1], [0], [0], [1], [0, 0, 1, 1], [], []>} : vector<16x32xf32>, vector<32x32xf32>, vector<16x32xf32> -> vector<16x32xf32>
    %c568 = arith.constant 568 : index
    %c0_32 = arith.constant 0 : index
    %76 = vector.load %arg0[%c568, %c0_32] : memref<1400x128xf32, #tpu.memory_space<vmem>>, vector<1x32xf32>
    %77 = vector.broadcast %76 : vector<1x32xf32> to vector<16x32xf32>
    %78 = arith.addf %75, %77 : vector<16x32xf32>
    %cst_33 = arith.constant 0.000000e+00 : f32
    %79 = vector.broadcast %cst_33 : f32 to vector<16x32xf32>
    %80 = arith.maximumf %78, %79 : vector<16x32xf32>
    %c576 = arith.constant 576 : index
    %c0_34 = arith.constant 0 : index
    %81 = vector.load %arg0[%c576, %c0_34] : memref<1400x128xf32, #tpu.memory_space<vmem>>, vector<32x32xf32>
    %cst_35 = arith.constant dense<0.000000e+00> : vector<16x32xf32>
    %82 = tpu.matmul %80, %81, %cst_35 {dimension_numbers = #tpu.dot_dimension_numbers<[1], [0], [0], [1], [0, 0, 1, 1], [], []>} : vector<16x32xf32>, vector<32x32xf32>, vector<16x32xf32> -> vector<16x32xf32>
    %c608 = arith.constant 608 : index
    %c0_36 = arith.constant 0 : index
    %83 = vector.load %arg0[%c608, %c0_36] : memref<1400x128xf32, #tpu.memory_space<vmem>>, vector<1x32xf32>
    %84 = vector.broadcast %83 : vector<1x32xf32> to vector<16x32xf32>
    %85 = arith.addf %82, %84 : vector<16x32xf32>
    %86 = arith.addf %73, %85 : vector<16x32xf32>
    %c616 = arith.constant 616 : index
    %c0_37 = arith.constant 0 : index
    %87 = vector.load %arg0[%c616, %c0_37] : memref<1400x128xf32, #tpu.memory_space<vmem>>, vector<1x32xf32>
    %c624 = arith.constant 624 : index
    %c0_38 = arith.constant 0 : index
    %88 = vector.load %arg0[%c624, %c0_38] : memref<1400x128xf32, #tpu.memory_space<vmem>>, vector<1x32xf32>
    %cst_39 = arith.constant dense<0.000000e+00> : vector<16xf32>
    %89 = vector.multi_reduction <add>, %86, %cst_39 [1] : vector<16x32xf32> to vector<16xf32>
    %90 = vector.shape_cast %89 : vector<16xf32> to vector<16x1xf32>
    %cst_40 = arith.constant 3.200000e+01 : f32
    %91 = vector.broadcast %cst_40 : f32 to vector<16x1xf32>
    %92 = arith.divf %90, %91 : vector<16x1xf32>
    %93 = vector.broadcast %92 : vector<16x1xf32> to vector<16x32xf32>
    %94 = arith.subf %86, %93 : vector<16x32xf32>
    %95 = arith.mulf %94, %94 : vector<16x32xf32>
    %cst_41 = arith.constant dense<0.000000e+00> : vector<16xf32>
    %96 = vector.multi_reduction <add>, %95, %cst_41 [1] : vector<16x32xf32> to vector<16xf32>
    %97 = vector.shape_cast %96 : vector<16xf32> to vector<16x1xf32>
    %cst_42 = arith.constant 3.200000e+01 : f32
    %98 = vector.broadcast %cst_42 : f32 to vector<16x1xf32>
    %99 = arith.divf %97, %98 : vector<16x1xf32>
    %cst_43 = arith.constant 9.99999974E-6 : f32
    %100 = vector.broadcast %cst_43 : f32 to vector<16x1xf32>
    %101 = arith.addf %99, %100 : vector<16x1xf32>
    %102 = math.rsqrt %101 : vector<16x1xf32>
    %103 = vector.broadcast %102 : vector<16x1xf32> to vector<16x32xf32>
    %104 = arith.mulf %94, %103 : vector<16x32xf32>
    %105 = vector.broadcast %87 : vector<1x32xf32> to vector<16x32xf32>
    %106 = arith.mulf %104, %105 : vector<16x32xf32>
    %107 = vector.broadcast %88 : vector<1x32xf32> to vector<16x32xf32>
    %108 = arith.addf %106, %107 : vector<16x32xf32>
    %c632 = arith.constant 632 : index
    %c0_44 = arith.constant 0 : index
    %109 = vector.load %arg0[%c632, %c0_44] : memref<1400x128xf32, #tpu.memory_space<vmem>>, vector<32x96xf32>
    %c664 = arith.constant 664 : index
    %c0_45 = arith.constant 0 : index
    %110 = vector.load %arg0[%c664, %c0_45] : memref<1400x128xf32, #tpu.memory_space<vmem>>, vector<1x96xf32>
    %c672 = arith.constant 672 : index
    %c0_46 = arith.constant 0 : index
    %111 = vector.load %arg0[%c672, %c0_46] : memref<1400x128xf32, #tpu.memory_space<vmem>>, vector<32x32xf32>
    %c704 = arith.constant 704 : index
    %c0_47 = arith.constant 0 : index
    %112 = vector.load %arg0[%c704, %c0_47] : memref<1400x128xf32, #tpu.memory_space<vmem>>, vector<1x32xf32>
    %cst_48 = arith.constant dense<0.000000e+00> : vector<16x96xf32>
    %113 = tpu.matmul %108, %109, %cst_48 {dimension_numbers = #tpu.dot_dimension_numbers<[1], [0], [0], [1], [0, 0, 1, 1], [], []>} : vector<16x32xf32>, vector<32x96xf32>, vector<16x96xf32> -> vector<16x96xf32>
    %114 = vector.broadcast %110 : vector<1x96xf32> to vector<16x96xf32>
    %115 = arith.addf %113, %114 : vector<16x96xf32>
    %116 = vector.extract_strided_slice %115 {offsets = [0, 0], sizes = [16, 32], strides = [1, 1]} : vector<16x96xf32> to vector<16x32xf32>
    %cst_49 = arith.constant 0.353553385 : f32
    %117 = vector.broadcast %cst_49 : f32 to vector<16x32xf32>
    %118 = arith.mulf %116, %117 : vector<16x32xf32>
    %119 = vector.extract_strided_slice %115 {offsets = [0, 32], sizes = [16, 32], strides = [1, 1]} : vector<16x96xf32> to vector<16x32xf32>
    %120 = vector.extract_strided_slice %115 {offsets = [0, 64], sizes = [16, 32], strides = [1, 1]} : vector<16x96xf32> to vector<16x32xf32>
    %121 = vector.shape_cast %118 : vector<16x32xf32> to vector<16x4x8xf32>
    %122 = tpu.transpose %121, [1, 0, 2] : vector<16x4x8xf32> -> vector<4x16x8xf32>
    %123 = vector.shape_cast %119 : vector<16x32xf32> to vector<16x4x8xf32>
    %124 = tpu.transpose %123, [1, 0, 2] : vector<16x4x8xf32> -> vector<4x16x8xf32>
    %125 = vector.shape_cast %120 : vector<16x32xf32> to vector<16x4x8xf32>
    %126 = tpu.transpose %125, [1, 0, 2] : vector<16x4x8xf32> -> vector<4x16x8xf32>
    "tpu.trace_start"() <{level = 10 : i32, message = "hqd,hkd->hqk"}> : () -> ()
    %cst_50 = arith.constant dense<0.000000e+00> : vector<4x16x16xf32>
    %127 = tpu.matmul %122, %124, %cst_50 {dimension_numbers = #tpu.dot_dimension_numbers<[2], [2], [1], [1], [0, 0, 0, 1, 1, 1], [0], [0]>} : vector<4x16x8xf32>, vector<4x16x8xf32>, vector<4x16x16xf32> -> vector<4x16x16xf32>
    "tpu.trace_stop"() : () -> ()
    %128 = vector.shape_cast %3 : vector<16x16xf32> to vector<1x16x16xf32>
    %129 = vector.broadcast %128 : vector<1x16x16xf32> to vector<4x16x16xf32>
    %130 = arith.addf %127, %129 : vector<4x16x16xf32>
    %cst_51 = arith.constant dense<0xFF800000> : vector<4x16xf32>
    %131 = vector.multi_reduction <maximumf>, %130, %cst_51 [2] : vector<4x16x16xf32> to vector<4x16xf32>
    %132 = vector.shape_cast %131 : vector<4x16xf32> to vector<4x16x1xf32>
    %133 = vector.broadcast %132 : vector<4x16x1xf32> to vector<4x16x16xf32>
    %134 = arith.subf %130, %133 : vector<4x16x16xf32>
    %135 = math.exp %134 : vector<4x16x16xf32>
    %cst_52 = arith.constant dense<0.000000e+00> : vector<4x16xf32>
    %136 = vector.multi_reduction <add>, %135, %cst_52 [2] : vector<4x16x16xf32> to vector<4x16xf32>
    %137 = vector.shape_cast %136 : vector<4x16xf32> to vector<4x16x1xf32>
    %138 = tpu.reciprocal %137 {approx = true} : vector<4x16x1xf32> -> vector<4x16x1xf32>
    %139 = vector.broadcast %138 : vector<4x16x1xf32> to vector<4x16x16xf32>
    %140 = arith.mulf %135, %139 : vector<4x16x16xf32>
    "tpu.trace_start"() <{level = 10 : i32, message = "hqk,hkd->hqd"}> : () -> ()
    %cst_53 = arith.constant dense<0.000000e+00> : vector<4x16x8xf32>
    %141 = tpu.matmul %140, %126, %cst_53 {dimension_numbers = #tpu.dot_dimension_numbers<[2], [1], [1], [2], [0, 0, 0, 1, 1, 2], [0], [0]>} : vector<4x16x16xf32>, vector<4x16x8xf32>, vector<4x16x8xf32> -> vector<4x16x8xf32>
    "tpu.trace_stop"() : () -> ()
    %142 = tpu.transpose %141, [1, 0, 2] : vector<4x16x8xf32> -> vector<16x4x8xf32>
    %143 = vector.shape_cast %142 : vector<16x4x8xf32> to vector<16x32xf32>
    %cst_54 = arith.constant dense<0.000000e+00> : vector<16x32xf32>
    %144 = tpu.matmul %143, %111, %cst_54 {dimension_numbers = #tpu.dot_dimension_numbers<[1], [0], [0], [1], [0, 0, 1, 1], [], []>} : vector<16x32xf32>, vector<32x32xf32>, vector<16x32xf32> -> vector<16x32xf32>
    %145 = vector.broadcast %112 : vector<1x32xf32> to vector<16x32xf32>
    %146 = arith.addf %144, %145 : vector<16x32xf32>
    %147 = arith.addf %108, %146 : vector<16x32xf32>
    %c712 = arith.constant 712 : index
    %c0_55 = arith.constant 0 : index
    %148 = vector.load %arg0[%c712, %c0_55] : memref<1400x128xf32, #tpu.memory_space<vmem>>, vector<1x32xf32>
    %c720 = arith.constant 720 : index
    %c0_56 = arith.constant 0 : index
    %149 = vector.load %arg0[%c720, %c0_56] : memref<1400x128xf32, #tpu.memory_space<vmem>>, vector<1x32xf32>
    %cst_57 = arith.constant dense<0.000000e+00> : vector<16xf32>
    %150 = vector.multi_reduction <add>, %147, %cst_57 [1] : vector<16x32xf32> to vector<16xf32>
    %151 = vector.shape_cast %150 : vector<16xf32> to vector<16x1xf32>
    %cst_58 = arith.constant 3.200000e+01 : f32
    %152 = vector.broadcast %cst_58 : f32 to vector<16x1xf32>
    %153 = arith.divf %151, %152 : vector<16x1xf32>
    %154 = vector.broadcast %153 : vector<16x1xf32> to vector<16x32xf32>
    %155 = arith.subf %147, %154 : vector<16x32xf32>
    %156 = arith.mulf %155, %155 : vector<16x32xf32>
    %cst_59 = arith.constant dense<0.000000e+00> : vector<16xf32>
    %157 = vector.multi_reduction <add>, %156, %cst_59 [1] : vector<16x32xf32> to vector<16xf32>
    %158 = vector.shape_cast %157 : vector<16xf32> to vector<16x1xf32>
    %cst_60 = arith.constant 3.200000e+01 : f32
    %159 = vector.broadcast %cst_60 : f32 to vector<16x1xf32>
    %160 = arith.divf %158, %159 : vector<16x1xf32>
    %cst_61 = arith.constant 9.99999974E-6 : f32
    %161 = vector.broadcast %cst_61 : f32 to vector<16x1xf32>
    %162 = arith.addf %160, %161 : vector<16x1xf32>
    %163 = math.rsqrt %162 : vector<16x1xf32>
    %164 = vector.broadcast %163 : vector<16x1xf32> to vector<16x32xf32>
    %165 = arith.mulf %155, %164 : vector<16x32xf32>
    %166 = vector.broadcast %148 : vector<1x32xf32> to vector<16x32xf32>
    %167 = arith.mulf %165, %166 : vector<16x32xf32>
    %168 = vector.broadcast %149 : vector<1x32xf32> to vector<16x32xf32>
    %169 = arith.addf %167, %168 : vector<16x32xf32>
    %c728 = arith.constant 728 : index
    %c0_62 = arith.constant 0 : index
    %170 = vector.load %arg0[%c728, %c0_62] : memref<1400x128xf32, #tpu.memory_space<vmem>>, vector<32x32xf32>
    %cst_63 = arith.constant dense<0.000000e+00> : vector<16x32xf32>
    %171 = tpu.matmul %169, %170, %cst_63 {dimension_numbers = #tpu.dot_dimension_numbers<[1], [0], [0], [1], [0, 0, 1, 1], [], []>} : vector<16x32xf32>, vector<32x32xf32>, vector<16x32xf32> -> vector<16x32xf32>
    %c760 = arith.constant 760 : index
    %c0_64 = arith.constant 0 : index
    %172 = vector.load %arg0[%c760, %c0_64] : memref<1400x128xf32, #tpu.memory_space<vmem>>, vector<1x32xf32>
    %173 = vector.broadcast %172 : vector<1x32xf32> to vector<16x32xf32>
    %174 = arith.addf %171, %173 : vector<16x32xf32>
    %cst_65 = arith.constant 0.000000e+00 : f32
    %175 = vector.broadcast %cst_65 : f32 to vector<16x32xf32>
    %176 = arith.maximumf %174, %175 : vector<16x32xf32>
    %c768 = arith.constant 768 : index
    %c0_66 = arith.constant 0 : index
    %177 = vector.load %arg0[%c768, %c0_66] : memref<1400x128xf32, #tpu.memory_space<vmem>>, vector<32x32xf32>
    %cst_67 = arith.constant dense<0.000000e+00> : vector<16x32xf32>
    %178 = tpu.matmul %176, %177, %cst_67 {dimension_numbers = #tpu.dot_dimension_numbers<[1], [0], [0], [1], [0, 0, 1, 1], [], []>} : vector<16x32xf32>, vector<32x32xf32>, vector<16x32xf32> -> vector<16x32xf32>
    %c800 = arith.constant 800 : index
    %c0_68 = arith.constant 0 : index
    %179 = vector.load %arg0[%c800, %c0_68] : memref<1400x128xf32, #tpu.memory_space<vmem>>, vector<1x32xf32>
    %180 = vector.broadcast %179 : vector<1x32xf32> to vector<16x32xf32>
    %181 = arith.addf %178, %180 : vector<16x32xf32>
    %182 = arith.addf %169, %181 : vector<16x32xf32>
    %c808 = arith.constant 808 : index
    %c0_69 = arith.constant 0 : index
    %183 = vector.load %arg0[%c808, %c0_69] : memref<1400x128xf32, #tpu.memory_space<vmem>>, vector<1x32xf32>
    %c816 = arith.constant 816 : index
    %c0_70 = arith.constant 0 : index
    %184 = vector.load %arg0[%c816, %c0_70] : memref<1400x128xf32, #tpu.memory_space<vmem>>, vector<1x32xf32>
    %cst_71 = arith.constant dense<0.000000e+00> : vector<16xf32>
    %185 = vector.multi_reduction <add>, %182, %cst_71 [1] : vector<16x32xf32> to vector<16xf32>
    %186 = vector.shape_cast %185 : vector<16xf32> to vector<16x1xf32>
    %cst_72 = arith.constant 3.200000e+01 : f32
    %187 = vector.broadcast %cst_72 : f32 to vector<16x1xf32>
    %188 = arith.divf %186, %187 : vector<16x1xf32>
    %189 = vector.broadcast %188 : vector<16x1xf32> to vector<16x32xf32>
    %190 = arith.subf %182, %189 : vector<16x32xf32>
    %191 = arith.mulf %190, %190 : vector<16x32xf32>
    %cst_73 = arith.constant dense<0.000000e+00> : vector<16xf32>
    %192 = vector.multi_reduction <add>, %191, %cst_73 [1] : vector<16x32xf32> to vector<16xf32>
    %193 = vector.shape_cast %192 : vector<16xf32> to vector<16x1xf32>
    %cst_74 = arith.constant 3.200000e+01 : f32
    %194 = vector.broadcast %cst_74 : f32 to vector<16x1xf32>
    %195 = arith.divf %193, %194 : vector<16x1xf32>
    %cst_75 = arith.constant 9.99999974E-6 : f32
    %196 = vector.broadcast %cst_75 : f32 to vector<16x1xf32>
    %197 = arith.addf %195, %196 : vector<16x1xf32>
    %198 = math.rsqrt %197 : vector<16x1xf32>
    %199 = vector.broadcast %198 : vector<16x1xf32> to vector<16x32xf32>
    %200 = arith.mulf %190, %199 : vector<16x32xf32>
    %201 = vector.broadcast %183 : vector<1x32xf32> to vector<16x32xf32>
    %202 = arith.mulf %200, %201 : vector<16x32xf32>
    %203 = vector.broadcast %184 : vector<1x32xf32> to vector<16x32xf32>
    %204 = arith.addf %202, %203 : vector<16x32xf32>
    %205 = vector.shape_cast %204 : vector<16x32xf32> to vector<2x8x32xf32>
    %206 = vector.extract_strided_slice %205 {offsets = [0, 7, 0], sizes = [2, 1, 32], strides = [1, 1, 1]} : vector<2x8x32xf32> to vector<2x1x32xf32>
    %207 = vector.shape_cast %206 : vector<2x1x32xf32> to vector<2x32xf32>
    %c184 = arith.constant 184 : index
    %c0_76 = arith.constant 0 : index
    %208 = vector.load %arg0[%c184, %c0_76] : memref<1400x128xf32, #tpu.memory_space<vmem>>, vector<32x128xf32>
    %cst_77 = arith.constant dense<0.000000e+00> : vector<2x128xf32>
    %209 = tpu.matmul %207, %208, %cst_77 {dimension_numbers = #tpu.dot_dimension_numbers<[1], [0], [0], [1], [0, 0, 1, 1], [], []>} : vector<2x32xf32>, vector<32x128xf32>, vector<2x128xf32> -> vector<2x128xf32>
    %c216 = arith.constant 216 : index
    %c0_78 = arith.constant 0 : index
    %210 = vector.load %arg0[%c216, %c0_78] : memref<1400x128xf32, #tpu.memory_space<vmem>>, vector<1x128xf32>
    %211 = vector.broadcast %210 : vector<1x128xf32> to vector<2x128xf32>
    %212 = arith.addf %209, %211 : vector<2x128xf32>
    %c224 = arith.constant 224 : index
    %c0_79 = arith.constant 0 : index
    %213 = vector.load %arg0[%c224, %c0_79] : memref<1400x128xf32, #tpu.memory_space<vmem>>, vector<32x128xf32>
    %cst_80 = arith.constant dense<0.000000e+00> : vector<2x128xf32>
    %214 = tpu.matmul %207, %213, %cst_80 {dimension_numbers = #tpu.dot_dimension_numbers<[1], [0], [0], [1], [0, 0, 1, 1], [], []>} : vector<2x32xf32>, vector<32x128xf32>, vector<2x128xf32> -> vector<2x128xf32>
    %c256 = arith.constant 256 : index
    %c0_81 = arith.constant 0 : index
    %215 = vector.load %arg0[%c256, %c0_81] : memref<1400x128xf32, #tpu.memory_space<vmem>>, vector<1x128xf32>
    %216 = vector.broadcast %215 : vector<1x128xf32> to vector<2x128xf32>
    %217 = arith.addf %214, %216 : vector<2x128xf32>
    %c16_82 = arith.constant 16 : index
    %c0_83 = arith.constant 0 : index
    %218 = vector.load %arg2[%c16_82, %c0_83] : memref<32x128xf32, #tpu.memory_space<vmem>>, vector<2x128xf32>
    tpu.vector_store %arg2[%c16_82, %c0_83], %212 {strides = array<i32>} : memref<32x128xf32, #tpu.memory_space<vmem>>, vector<2x128xf32>,
    %c24 = arith.constant 24 : index
    %c0_84 = arith.constant 0 : index
    %219 = vector.load %arg2[%c24, %c0_84] : memref<32x128xf32, #tpu.memory_space<vmem>>, vector<2x128xf32>
    tpu.vector_store %arg2[%c24, %c0_84], %217 {strides = array<i32>} : memref<32x128xf32, #tpu.memory_space<vmem>>, vector<2x128xf32>,
    %cst_85 = arith.constant 5.000000e-01 : f32
    %220 = vector.broadcast %cst_85 : f32 to vector<2x128xf32>
    %221 = arith.mulf %220, %217 : vector<2x128xf32>
    %222 = math.exp %221 : vector<2x128xf32>
    %223 = arith.mulf %6, %222 : vector<2x128xf32>
    %224 = arith.addf %212, %223 : vector<2x128xf32>
    %c264 = arith.constant 264 : index
    %c0_86 = arith.constant 0 : index
    %225 = vector.load %arg0[%c264, %c0_86] : memref<1400x128xf32, #tpu.memory_space<vmem>>, vector<128x32xf32>
    %cst_87 = arith.constant dense<0.000000e+00> : vector<2x32xf32>
    %226 = tpu.matmul %224, %225, %cst_87 {dimension_numbers = #tpu.dot_dimension_numbers<[1], [0], [0], [1], [0, 0, 1, 1], [], []>} : vector<2x128xf32>, vector<128x32xf32>, vector<2x32xf32> -> vector<2x32xf32>
    %c392 = arith.constant 392 : index
    %c0_88 = arith.constant 0 : index
    %227 = vector.load %arg0[%c392, %c0_88] : memref<1400x128xf32, #tpu.memory_space<vmem>>, vector<1x32xf32>
    %228 = vector.broadcast %227 : vector<1x32xf32> to vector<2x32xf32>
    %229 = arith.addf %226, %228 : vector<2x32xf32>
    %230 = vector.shape_cast %229 : vector<2x32xf32> to vector<2x1x32xf32>
    %231 = vector.shape_cast %230 : vector<2x1x32xf32> to vector<2x1x32xf32>
    %232 = vector.broadcast %231 : vector<2x1x32xf32> to vector<2x8x32xf32>
    %233 = vector.shape_cast %232 : vector<2x8x32xf32> to vector<16x32xf32>
    %234 = arith.addf %233, %2 : vector<16x32xf32>
    %c824 = arith.constant 824 : index
    %c0_89 = arith.constant 0 : index
    %235 = vector.load %arg0[%c824, %c0_89] : memref<1400x128xf32, #tpu.memory_space<vmem>>, vector<32x96xf32>
    %c856 = arith.constant 856 : index
    %c0_90 = arith.constant 0 : index
    %236 = vector.load %arg0[%c856, %c0_90] : memref<1400x128xf32, #tpu.memory_space<vmem>>, vector<1x96xf32>
    %c864 = arith.constant 864 : index
    %c0_91 = arith.constant 0 : index
    %237 = vector.load %arg0[%c864, %c0_91] : memref<1400x128xf32, #tpu.memory_space<vmem>>, vector<32x32xf32>
    %c896 = arith.constant 896 : index
    %c0_92 = arith.constant 0 : index
    %238 = vector.load %arg0[%c896, %c0_92] : memref<1400x128xf32, #tpu.memory_space<vmem>>, vector<1x32xf32>
    %cst_93 = arith.constant dense<0.000000e+00> : vector<16x96xf32>
    %239 = tpu.matmul %234, %235, %cst_93 {dimension_numbers = #tpu.dot_dimension_numbers<[1], [0], [0], [1], [0, 0, 1, 1], [], []>} : vector<16x32xf32>, vector<32x96xf32>, vector<16x96xf32> -> vector<16x96xf32>
    %240 = vector.broadcast %236 : vector<1x96xf32> to vector<16x96xf32>
    %241 = arith.addf %239, %240 : vector<16x96xf32>
    %242 = vector.extract_strided_slice %241 {offsets = [0, 0], sizes = [16, 32], strides = [1, 1]} : vector<16x96xf32> to vector<16x32xf32>
    %cst_94 = arith.constant 0.353553385 : f32
    %243 = vector.broadcast %cst_94 : f32 to vector<16x32xf32>
    %244 = arith.mulf %242, %243 : vector<16x32xf32>
    %245 = vector.extract_strided_slice %241 {offsets = [0, 32], sizes = [16, 32], strides = [1, 1]} : vector<16x96xf32> to vector<16x32xf32>
    %246 = vector.extract_strided_slice %241 {offsets = [0, 64], sizes = [16, 32], strides = [1, 1]} : vector<16x96xf32> to vector<16x32xf32>
    %247 = vector.shape_cast %244 : vector<16x32xf32> to vector<16x4x8xf32>
    %248 = tpu.transpose %247, [1, 0, 2] : vector<16x4x8xf32> -> vector<4x16x8xf32>
    %249 = vector.shape_cast %245 : vector<16x32xf32> to vector<16x4x8xf32>
    %250 = tpu.transpose %249, [1, 0, 2] : vector<16x4x8xf32> -> vector<4x16x8xf32>
    %251 = vector.shape_cast %246 : vector<16x32xf32> to vector<16x4x8xf32>
    %252 = tpu.transpose %251, [1, 0, 2] : vector<16x4x8xf32> -> vector<4x16x8xf32>
    "tpu.trace_start"() <{level = 10 : i32, message = "hqd,hkd->hqk"}> : () -> ()
    %cst_95 = arith.constant dense<0.000000e+00> : vector<4x16x16xf32>
    %253 = tpu.matmul %248, %250, %cst_95 {dimension_numbers = #tpu.dot_dimension_numbers<[2], [2], [1], [1], [0, 0, 0, 1, 1, 1], [0], [0]>} : vector<4x16x8xf32>, vector<4x16x8xf32>, vector<4x16x16xf32> -> vector<4x16x16xf32>
    "tpu.trace_stop"() : () -> ()
    %254 = vector.shape_cast %3 : vector<16x16xf32> to vector<1x16x16xf32>
    %255 = vector.broadcast %254 : vector<1x16x16xf32> to vector<4x16x16xf32>
    %256 = arith.addf %253, %255 : vector<4x16x16xf32>
    %cst_96 = arith.constant dense<0xFF800000> : vector<4x16xf32>
    %257 = vector.multi_reduction <maximumf>, %256, %cst_96 [2] : vector<4x16x16xf32> to vector<4x16xf32>
    %258 = vector.shape_cast %257 : vector<4x16xf32> to vector<4x16x1xf32>
    %259 = vector.broadcast %258 : vector<4x16x1xf32> to vector<4x16x16xf32>
    %260 = arith.subf %256, %259 : vector<4x16x16xf32>
    %261 = math.exp %260 : vector<4x16x16xf32>
    %cst_97 = arith.constant dense<0.000000e+00> : vector<4x16xf32>
    %262 = vector.multi_reduction <add>, %261, %cst_97 [2] : vector<4x16x16xf32> to vector<4x16xf32>
    %263 = vector.shape_cast %262 : vector<4x16xf32> to vector<4x16x1xf32>
    %264 = tpu.reciprocal %263 {approx = true} : vector<4x16x1xf32> -> vector<4x16x1xf32>
    %265 = vector.broadcast %264 : vector<4x16x1xf32> to vector<4x16x16xf32>
    %266 = arith.mulf %261, %265 : vector<4x16x16xf32>
    "tpu.trace_start"() <{level = 10 : i32, message = "hqk,hkd->hqd"}> : () -> ()
    %cst_98 = arith.constant dense<0.000000e+00> : vector<4x16x8xf32>
    %267 = tpu.matmul %266, %252, %cst_98 {dimension_numbers = #tpu.dot_dimension_numbers<[2], [1], [1], [2], [0, 0, 0, 1, 1, 2], [0], [0]>} : vector<4x16x16xf32>, vector<4x16x8xf32>, vector<4x16x8xf32> -> vector<4x16x8xf32>
    "tpu.trace_stop"() : () -> ()
    %268 = tpu.transpose %267, [1, 0, 2] : vector<4x16x8xf32> -> vector<16x4x8xf32>
    %269 = vector.shape_cast %268 : vector<16x4x8xf32> to vector<16x32xf32>
    %cst_99 = arith.constant dense<0.000000e+00> : vector<16x32xf32>
    %270 = tpu.matmul %269, %237, %cst_99 {dimension_numbers = #tpu.dot_dimension_numbers<[1], [0], [0], [1], [0, 0, 1, 1], [], []>} : vector<16x32xf32>, vector<32x32xf32>, vector<16x32xf32> -> vector<16x32xf32>
    %271 = vector.broadcast %238 : vector<1x32xf32> to vector<16x32xf32>
    %272 = arith.addf %270, %271 : vector<16x32xf32>
    %273 = arith.addf %234, %272 : vector<16x32xf32>
    %c984 = arith.constant 984 : index
    %c0_100 = arith.constant 0 : index
    %274 = vector.load %arg0[%c984, %c0_100] : memref<1400x128xf32, #tpu.memory_space<vmem>>, vector<1x32xf32>
    %c992 = arith.constant 992 : index
    %c0_101 = arith.constant 0 : index
    %275 = vector.load %arg0[%c992, %c0_101] : memref<1400x128xf32, #tpu.memory_space<vmem>>, vector<1x32xf32>
    %cst_102 = arith.constant dense<0.000000e+00> : vector<16xf32>
    %276 = vector.multi_reduction <add>, %273, %cst_102 [1] : vector<16x32xf32> to vector<16xf32>
    %277 = vector.shape_cast %276 : vector<16xf32> to vector<16x1xf32>
    %cst_103 = arith.constant 3.200000e+01 : f32
    %278 = vector.broadcast %cst_103 : f32 to vector<16x1xf32>
    %279 = arith.divf %277, %278 : vector<16x1xf32>
    %280 = vector.broadcast %279 : vector<16x1xf32> to vector<16x32xf32>
    %281 = arith.subf %273, %280 : vector<16x32xf32>
    %282 = arith.mulf %281, %281 : vector<16x32xf32>
    %cst_104 = arith.constant dense<0.000000e+00> : vector<16xf32>
    %283 = vector.multi_reduction <add>, %282, %cst_104 [1] : vector<16x32xf32> to vector<16xf32>
    %284 = vector.shape_cast %283 : vector<16xf32> to vector<16x1xf32>
    %cst_105 = arith.constant 3.200000e+01 : f32
    %285 = vector.broadcast %cst_105 : f32 to vector<16x1xf32>
    %286 = arith.divf %284, %285 : vector<16x1xf32>
    %cst_106 = arith.constant 9.99999974E-6 : f32
    %287 = vector.broadcast %cst_106 : f32 to vector<16x1xf32>
    %288 = arith.addf %286, %287 : vector<16x1xf32>
    %289 = math.rsqrt %288 : vector<16x1xf32>
    %290 = vector.broadcast %289 : vector<16x1xf32> to vector<16x32xf32>
    %291 = arith.mulf %281, %290 : vector<16x32xf32>
    %292 = vector.broadcast %274 : vector<1x32xf32> to vector<16x32xf32>
    %293 = arith.mulf %291, %292 : vector<16x32xf32>
    %294 = vector.broadcast %275 : vector<1x32xf32> to vector<16x32xf32>
    %295 = arith.addf %293, %294 : vector<16x32xf32>
    %c904 = arith.constant 904 : index
    %c0_107 = arith.constant 0 : index
    %296 = vector.load %arg0[%c904, %c0_107] : memref<1400x128xf32, #tpu.memory_space<vmem>>, vector<32x96xf32>
    %c936 = arith.constant 936 : index
    %c0_108 = arith.constant 0 : index
    %297 = vector.load %arg0[%c936, %c0_108] : memref<1400x128xf32, #tpu.memory_space<vmem>>, vector<1x96xf32>
    %c944 = arith.constant 944 : index
    %c0_109 = arith.constant 0 : index
    %298 = vector.load %arg0[%c944, %c0_109] : memref<1400x128xf32, #tpu.memory_space<vmem>>, vector<32x32xf32>
    %c976 = arith.constant 976 : index
    %c0_110 = arith.constant 0 : index
    %299 = vector.load %arg0[%c976, %c0_110] : memref<1400x128xf32, #tpu.memory_space<vmem>>, vector<1x32xf32>
    %cst_111 = arith.constant dense<0.000000e+00> : vector<16x96xf32>
    %300 = tpu.matmul %295, %296, %cst_111 {dimension_numbers = #tpu.dot_dimension_numbers<[1], [0], [0], [1], [0, 0, 1, 1], [], []>} : vector<16x32xf32>, vector<32x96xf32>, vector<16x96xf32> -> vector<16x96xf32>
    %301 = vector.broadcast %297 : vector<1x96xf32> to vector<16x96xf32>
    %302 = arith.addf %300, %301 : vector<16x96xf32>
    %cst_112 = arith.constant dense<0.000000e+00> : vector<16x96xf32>
    %303 = tpu.matmul %204, %296, %cst_112 {dimension_numbers = #tpu.dot_dimension_numbers<[1], [0], [0], [1], [0, 0, 1, 1], [], []>} : vector<16x32xf32>, vector<32x96xf32>, vector<16x96xf32> -> vector<16x96xf32>
    %304 = vector.broadcast %297 : vector<1x96xf32> to vector<16x96xf32>
    %305 = arith.addf %303, %304 : vector<16x96xf32>
    %306 = vector.extract_strided_slice %302 {offsets = [0, 0], sizes = [16, 32], strides = [1, 1]} : vector<16x96xf32> to vector<16x32xf32>
    %cst_113 = arith.constant 0.353553385 : f32
    %307 = vector.broadcast %cst_113 : f32 to vector<16x32xf32>
    %308 = arith.mulf %306, %307 : vector<16x32xf32>
    %309 = vector.extract_strided_slice %305 {offsets = [0, 32], sizes = [16, 32], strides = [1, 1]} : vector<16x96xf32> to vector<16x32xf32>
    %310 = vector.extract_strided_slice %305 {offsets = [0, 64], sizes = [16, 32], strides = [1, 1]} : vector<16x96xf32> to vector<16x32xf32>
    %311 = vector.shape_cast %308 : vector<16x32xf32> to vector<16x4x8xf32>
    %312 = tpu.transpose %311, [1, 0, 2] : vector<16x4x8xf32> -> vector<4x16x8xf32>
    %313 = vector.shape_cast %309 : vector<16x32xf32> to vector<16x4x8xf32>
    %314 = tpu.transpose %313, [1, 0, 2] : vector<16x4x8xf32> -> vector<4x16x8xf32>
    %315 = vector.shape_cast %310 : vector<16x32xf32> to vector<16x4x8xf32>
    %316 = tpu.transpose %315, [1, 0, 2] : vector<16x4x8xf32> -> vector<4x16x8xf32>
    "tpu.trace_start"() <{level = 10 : i32, message = "hqd,hkd->hqk"}> : () -> ()
    %cst_114 = arith.constant dense<0.000000e+00> : vector<4x16x16xf32>
    %317 = tpu.matmul %312, %314, %cst_114 {dimension_numbers = #tpu.dot_dimension_numbers<[2], [2], [1], [1], [0, 0, 0, 1, 1, 1], [0], [0]>} : vector<4x16x8xf32>, vector<4x16x8xf32>, vector<4x16x16xf32> -> vector<4x16x16xf32>
    "tpu.trace_stop"() : () -> ()
    %318 = vector.shape_cast %4 : vector<16x16xf32> to vector<1x16x16xf32>
    %319 = vector.broadcast %318 : vector<1x16x16xf32> to vector<4x16x16xf32>
    %320 = arith.addf %317, %319 : vector<4x16x16xf32>
    %cst_115 = arith.constant dense<0xFF800000> : vector<4x16xf32>
    %321 = vector.multi_reduction <maximumf>, %320, %cst_115 [2] : vector<4x16x16xf32> to vector<4x16xf32>
    %322 = vector.shape_cast %321 : vector<4x16xf32> to vector<4x16x1xf32>
    %323 = vector.broadcast %322 : vector<4x16x1xf32> to vector<4x16x16xf32>
    %324 = arith.subf %320, %323 : vector<4x16x16xf32>
    %325 = math.exp %324 : vector<4x16x16xf32>
    %cst_116 = arith.constant dense<0.000000e+00> : vector<4x16xf32>
    %326 = vector.multi_reduction <add>, %325, %cst_116 [2] : vector<4x16x16xf32> to vector<4x16xf32>
    %327 = vector.shape_cast %326 : vector<4x16xf32> to vector<4x16x1xf32>
    %328 = tpu.reciprocal %327 {approx = true} : vector<4x16x1xf32> -> vector<4x16x1xf32>
    %329 = vector.broadcast %328 : vector<4x16x1xf32> to vector<4x16x16xf32>
    %330 = arith.mulf %325, %329 : vector<4x16x16xf32>
    "tpu.trace_start"() <{level = 10 : i32, message = "hqk,hkd->hqd"}> : () -> ()
    %cst_117 = arith.constant dense<0.000000e+00> : vector<4x16x8xf32>
    %331 = tpu.matmul %330, %316, %cst_117 {dimension_numbers = #tpu.dot_dimension_numbers<[2], [1], [1], [2], [0, 0, 0, 1, 1, 2], [0], [0]>} : vector<4x16x16xf32>, vector<4x16x8xf32>, vector<4x16x8xf32> -> vector<4x16x8xf32>
    "tpu.trace_stop"() : () -> ()
    %332 = tpu.transpose %331, [1, 0, 2] : vector<4x16x8xf32> -> vector<16x4x8xf32>
    %333 = vector.shape_cast %332 : vector<16x4x8xf32> to vector<16x32xf32>
    %cst_118 = arith.constant dense<0.000000e+00> : vector<16x32xf32>
    %334 = tpu.matmul %333, %298, %cst_118 {dimension_numbers = #tpu.dot_dimension_numbers<[1], [0], [0], [1], [0, 0, 1, 1], [], []>} : vector<16x32xf32>, vector<32x32xf32>, vector<16x32xf32> -> vector<16x32xf32>
    %335 = vector.broadcast %299 : vector<1x32xf32> to vector<16x32xf32>
    %336 = arith.addf %334, %335 : vector<16x32xf32>
    %337 = arith.addf %295, %336 : vector<16x32xf32>
    %c1000 = arith.constant 1000 : index
    %c0_119 = arith.constant 0 : index
    %338 = vector.load %arg0[%c1000, %c0_119] : memref<1400x128xf32, #tpu.memory_space<vmem>>, vector<1x32xf32>
    %c1008 = arith.constant 1008 : index
    %c0_120 = arith.constant 0 : index
    %339 = vector.load %arg0[%c1008, %c0_120] : memref<1400x128xf32, #tpu.memory_space<vmem>>, vector<1x32xf32>
    %cst_121 = arith.constant dense<0.000000e+00> : vector<16xf32>
    %340 = vector.multi_reduction <add>, %337, %cst_121 [1] : vector<16x32xf32> to vector<16xf32>
    %341 = vector.shape_cast %340 : vector<16xf32> to vector<16x1xf32>
    %cst_122 = arith.constant 3.200000e+01 : f32
    %342 = vector.broadcast %cst_122 : f32 to vector<16x1xf32>
    %343 = arith.divf %341, %342 : vector<16x1xf32>
    %344 = vector.broadcast %343 : vector<16x1xf32> to vector<16x32xf32>
    %345 = arith.subf %337, %344 : vector<16x32xf32>
    %346 = arith.mulf %345, %345 : vector<16x32xf32>
    %cst_123 = arith.constant dense<0.000000e+00> : vector<16xf32>
    %347 = vector.multi_reduction <add>, %346, %cst_123 [1] : vector<16x32xf32> to vector<16xf32>
    %348 = vector.shape_cast %347 : vector<16xf32> to vector<16x1xf32>
    %cst_124 = arith.constant 3.200000e+01 : f32
    %349 = vector.broadcast %cst_124 : f32 to vector<16x1xf32>
    %350 = arith.divf %348, %349 : vector<16x1xf32>
    %cst_125 = arith.constant 9.99999974E-6 : f32
    %351 = vector.broadcast %cst_125 : f32 to vector<16x1xf32>
    %352 = arith.addf %350, %351 : vector<16x1xf32>
    %353 = math.rsqrt %352 : vector<16x1xf32>
    %354 = vector.broadcast %353 : vector<16x1xf32> to vector<16x32xf32>
    %355 = arith.mulf %345, %354 : vector<16x32xf32>
    %356 = vector.broadcast %338 : vector<1x32xf32> to vector<16x32xf32>
    %357 = arith.mulf %355, %356 : vector<16x32xf32>
    %358 = vector.broadcast %339 : vector<1x32xf32> to vector<16x32xf32>
    %359 = arith.addf %357, %358 : vector<16x32xf32>
    %c1032 = arith.constant 1032 : index
    %c0_126 = arith.constant 0 : index
    %360 = vector.load %arg0[%c1032, %c0_126] : memref<1400x128xf32, #tpu.memory_space<vmem>>, vector<32x32xf32>
    %cst_127 = arith.constant dense<0.000000e+00> : vector<16x32xf32>
    %361 = tpu.matmul %359, %360, %cst_127 {dimension_numbers = #tpu.dot_dimension_numbers<[1], [0], [0], [1], [0, 0, 1, 1], [], []>} : vector<16x32xf32>, vector<32x32xf32>, vector<16x32xf32> -> vector<16x32xf32>
    %c1064 = arith.constant 1064 : index
    %c0_128 = arith.constant 0 : index
    %362 = vector.load %arg0[%c1064, %c0_128] : memref<1400x128xf32, #tpu.memory_space<vmem>>, vector<1x32xf32>
    %363 = vector.broadcast %362 : vector<1x32xf32> to vector<16x32xf32>
    %364 = arith.addf %361, %363 : vector<16x32xf32>
    %cst_129 = arith.constant 0.000000e+00 : f32
    %365 = vector.broadcast %cst_129 : f32 to vector<16x32xf32>
    %366 = arith.maximumf %364, %365 : vector<16x32xf32>
    %c1072 = arith.constant 1072 : index
    %c0_130 = arith.constant 0 : index
    %367 = vector.load %arg0[%c1072, %c0_130] : memref<1400x128xf32, #tpu.memory_space<vmem>>, vector<32x32xf32>
    %cst_131 = arith.constant dense<0.000000e+00> : vector<16x32xf32>
    %368 = tpu.matmul %366, %367, %cst_131 {dimension_numbers = #tpu.dot_dimension_numbers<[1], [0], [0], [1], [0, 0, 1, 1], [], []>} : vector<16x32xf32>, vector<32x32xf32>, vector<16x32xf32> -> vector<16x32xf32>
    %c1104 = arith.constant 1104 : index
    %c0_132 = arith.constant 0 : index
    %369 = vector.load %arg0[%c1104, %c0_132] : memref<1400x128xf32, #tpu.memory_space<vmem>>, vector<1x32xf32>
    %370 = vector.broadcast %369 : vector<1x32xf32> to vector<16x32xf32>
    %371 = arith.addf %368, %370 : vector<16x32xf32>
    %372 = arith.addf %359, %371 : vector<16x32xf32>
    %c1016 = arith.constant 1016 : index
    %c0_133 = arith.constant 0 : index
    %373 = vector.load %arg0[%c1016, %c0_133] : memref<1400x128xf32, #tpu.memory_space<vmem>>, vector<1x32xf32>
    %c1024 = arith.constant 1024 : index
    %c0_134 = arith.constant 0 : index
    %374 = vector.load %arg0[%c1024, %c0_134] : memref<1400x128xf32, #tpu.memory_space<vmem>>, vector<1x32xf32>
    %cst_135 = arith.constant dense<0.000000e+00> : vector<16xf32>
    %375 = vector.multi_reduction <add>, %372, %cst_135 [1] : vector<16x32xf32> to vector<16xf32>
    %376 = vector.shape_cast %375 : vector<16xf32> to vector<16x1xf32>
    %cst_136 = arith.constant 3.200000e+01 : f32
    %377 = vector.broadcast %cst_136 : f32 to vector<16x1xf32>
    %378 = arith.divf %376, %377 : vector<16x1xf32>
    %379 = vector.broadcast %378 : vector<16x1xf32> to vector<16x32xf32>
    %380 = arith.subf %372, %379 : vector<16x32xf32>
    %381 = arith.mulf %380, %380 : vector<16x32xf32>
    %cst_137 = arith.constant dense<0.000000e+00> : vector<16xf32>
    %382 = vector.multi_reduction <add>, %381, %cst_137 [1] : vector<16x32xf32> to vector<16xf32>
    %383 = vector.shape_cast %382 : vector<16xf32> to vector<16x1xf32>
    %cst_138 = arith.constant 3.200000e+01 : f32
    %384 = vector.broadcast %cst_138 : f32 to vector<16x1xf32>
    %385 = arith.divf %383, %384 : vector<16x1xf32>
    %cst_139 = arith.constant 9.99999974E-6 : f32
    %386 = vector.broadcast %cst_139 : f32 to vector<16x1xf32>
    %387 = arith.addf %385, %386 : vector<16x1xf32>
    %388 = math.rsqrt %387 : vector<16x1xf32>
    %389 = vector.broadcast %388 : vector<16x1xf32> to vector<16x32xf32>
    %390 = arith.mulf %380, %389 : vector<16x32xf32>
    %391 = vector.broadcast %373 : vector<1x32xf32> to vector<16x32xf32>
    %392 = arith.mulf %390, %391 : vector<16x32xf32>
    %393 = vector.broadcast %374 : vector<1x32xf32> to vector<16x32xf32>
    %394 = arith.addf %392, %393 : vector<16x32xf32>
    %c1112 = arith.constant 1112 : index
    %c0_140 = arith.constant 0 : index
    %395 = vector.load %arg0[%c1112, %c0_140] : memref<1400x128xf32, #tpu.memory_space<vmem>>, vector<32x96xf32>
    %c1144 = arith.constant 1144 : index
    %c0_141 = arith.constant 0 : index
    %396 = vector.load %arg0[%c1144, %c0_141] : memref<1400x128xf32, #tpu.memory_space<vmem>>, vector<1x96xf32>
    %c1152 = arith.constant 1152 : index
    %c0_142 = arith.constant 0 : index
    %397 = vector.load %arg0[%c1152, %c0_142] : memref<1400x128xf32, #tpu.memory_space<vmem>>, vector<32x32xf32>
    %c1184 = arith.constant 1184 : index
    %c0_143 = arith.constant 0 : index
    %398 = vector.load %arg0[%c1184, %c0_143] : memref<1400x128xf32, #tpu.memory_space<vmem>>, vector<1x32xf32>
    %cst_144 = arith.constant dense<0.000000e+00> : vector<16x96xf32>
    %399 = tpu.matmul %394, %395, %cst_144 {dimension_numbers = #tpu.dot_dimension_numbers<[1], [0], [0], [1], [0, 0, 1, 1], [], []>} : vector<16x32xf32>, vector<32x96xf32>, vector<16x96xf32> -> vector<16x96xf32>
    %400 = vector.broadcast %396 : vector<1x96xf32> to vector<16x96xf32>
    %401 = arith.addf %399, %400 : vector<16x96xf32>
    %402 = vector.extract_strided_slice %401 {offsets = [0, 0], sizes = [16, 32], strides = [1, 1]} : vector<16x96xf32> to vector<16x32xf32>
    %cst_145 = arith.constant 0.353553385 : f32
    %403 = vector.broadcast %cst_145 : f32 to vector<16x32xf32>
    %404 = arith.mulf %402, %403 : vector<16x32xf32>
    %405 = vector.extract_strided_slice %401 {offsets = [0, 32], sizes = [16, 32], strides = [1, 1]} : vector<16x96xf32> to vector<16x32xf32>
    %406 = vector.extract_strided_slice %401 {offsets = [0, 64], sizes = [16, 32], strides = [1, 1]} : vector<16x96xf32> to vector<16x32xf32>
    %407 = vector.shape_cast %404 : vector<16x32xf32> to vector<16x4x8xf32>
    %408 = tpu.transpose %407, [1, 0, 2] : vector<16x4x8xf32> -> vector<4x16x8xf32>
    %409 = vector.shape_cast %405 : vector<16x32xf32> to vector<16x4x8xf32>
    %410 = tpu.transpose %409, [1, 0, 2] : vector<16x4x8xf32> -> vector<4x16x8xf32>
    %411 = vector.shape_cast %406 : vector<16x32xf32> to vector<16x4x8xf32>
    %412 = tpu.transpose %411, [1, 0, 2] : vector<16x4x8xf32> -> vector<4x16x8xf32>
    "tpu.trace_start"() <{level = 10 : i32, message = "hqd,hkd->hqk"}> : () -> ()
    %cst_146 = arith.constant dense<0.000000e+00> : vector<4x16x16xf32>
    %413 = tpu.matmul %408, %410, %cst_146 {dimension_numbers = #tpu.dot_dimension_numbers<[2], [2], [1], [1], [0, 0, 0, 1, 1, 1], [0], [0]>} : vector<4x16x8xf32>, vector<4x16x8xf32>, vector<4x16x16xf32> -> vector<4x16x16xf32>
    "tpu.trace_stop"() : () -> ()
    %414 = vector.shape_cast %3 : vector<16x16xf32> to vector<1x16x16xf32>
    %415 = vector.broadcast %414 : vector<1x16x16xf32> to vector<4x16x16xf32>
    %416 = arith.addf %413, %415 : vector<4x16x16xf32>
    %cst_147 = arith.constant dense<0xFF800000> : vector<4x16xf32>
    %417 = vector.multi_reduction <maximumf>, %416, %cst_147 [2] : vector<4x16x16xf32> to vector<4x16xf32>
    %418 = vector.shape_cast %417 : vector<4x16xf32> to vector<4x16x1xf32>
    %419 = vector.broadcast %418 : vector<4x16x1xf32> to vector<4x16x16xf32>
    %420 = arith.subf %416, %419 : vector<4x16x16xf32>
    %421 = math.exp %420 : vector<4x16x16xf32>
    %cst_148 = arith.constant dense<0.000000e+00> : vector<4x16xf32>
    %422 = vector.multi_reduction <add>, %421, %cst_148 [2] : vector<4x16x16xf32> to vector<4x16xf32>
    %423 = vector.shape_cast %422 : vector<4x16xf32> to vector<4x16x1xf32>
    %424 = tpu.reciprocal %423 {approx = true} : vector<4x16x1xf32> -> vector<4x16x1xf32>
    %425 = vector.broadcast %424 : vector<4x16x1xf32> to vector<4x16x16xf32>
    %426 = arith.mulf %421, %425 : vector<4x16x16xf32>
    "tpu.trace_start"() <{level = 10 : i32, message = "hqk,hkd->hqd"}> : () -> ()
    %cst_149 = arith.constant dense<0.000000e+00> : vector<4x16x8xf32>
    %427 = tpu.matmul %426, %412, %cst_149 {dimension_numbers = #tpu.dot_dimension_numbers<[2], [1], [1], [2], [0, 0, 0, 1, 1, 2], [0], [0]>} : vector<4x16x16xf32>, vector<4x16x8xf32>, vector<4x16x8xf32> -> vector<4x16x8xf32>
    "tpu.trace_stop"() : () -> ()
    %428 = tpu.transpose %427, [1, 0, 2] : vector<4x16x8xf32> -> vector<16x4x8xf32>
    %429 = vector.shape_cast %428 : vector<16x4x8xf32> to vector<16x32xf32>
    %cst_150 = arith.constant dense<0.000000e+00> : vector<16x32xf32>
    %430 = tpu.matmul %429, %397, %cst_150 {dimension_numbers = #tpu.dot_dimension_numbers<[1], [0], [0], [1], [0, 0, 1, 1], [], []>} : vector<16x32xf32>, vector<32x32xf32>, vector<16x32xf32> -> vector<16x32xf32>
    %431 = vector.broadcast %398 : vector<1x32xf32> to vector<16x32xf32>
    %432 = arith.addf %430, %431 : vector<16x32xf32>
    %433 = arith.addf %394, %432 : vector<16x32xf32>
    %c1272 = arith.constant 1272 : index
    %c0_151 = arith.constant 0 : index
    %434 = vector.load %arg0[%c1272, %c0_151] : memref<1400x128xf32, #tpu.memory_space<vmem>>, vector<1x32xf32>
    %c1280 = arith.constant 1280 : index
    %c0_152 = arith.constant 0 : index
    %435 = vector.load %arg0[%c1280, %c0_152] : memref<1400x128xf32, #tpu.memory_space<vmem>>, vector<1x32xf32>
    %cst_153 = arith.constant dense<0.000000e+00> : vector<16xf32>
    %436 = vector.multi_reduction <add>, %433, %cst_153 [1] : vector<16x32xf32> to vector<16xf32>
    %437 = vector.shape_cast %436 : vector<16xf32> to vector<16x1xf32>
    %cst_154 = arith.constant 3.200000e+01 : f32
    %438 = vector.broadcast %cst_154 : f32 to vector<16x1xf32>
    %439 = arith.divf %437, %438 : vector<16x1xf32>
    %440 = vector.broadcast %439 : vector<16x1xf32> to vector<16x32xf32>
    %441 = arith.subf %433, %440 : vector<16x32xf32>
    %442 = arith.mulf %441, %441 : vector<16x32xf32>
    %cst_155 = arith.constant dense<0.000000e+00> : vector<16xf32>
    %443 = vector.multi_reduction <add>, %442, %cst_155 [1] : vector<16x32xf32> to vector<16xf32>
    %444 = vector.shape_cast %443 : vector<16xf32> to vector<16x1xf32>
    %cst_156 = arith.constant 3.200000e+01 : f32
    %445 = vector.broadcast %cst_156 : f32 to vector<16x1xf32>
    %446 = arith.divf %444, %445 : vector<16x1xf32>
    %cst_157 = arith.constant 9.99999974E-6 : f32
    %447 = vector.broadcast %cst_157 : f32 to vector<16x1xf32>
    %448 = arith.addf %446, %447 : vector<16x1xf32>
    %449 = math.rsqrt %448 : vector<16x1xf32>
    %450 = vector.broadcast %449 : vector<16x1xf32> to vector<16x32xf32>
    %451 = arith.mulf %441, %450 : vector<16x32xf32>
    %452 = vector.broadcast %434 : vector<1x32xf32> to vector<16x32xf32>
    %453 = arith.mulf %451, %452 : vector<16x32xf32>
    %454 = vector.broadcast %435 : vector<1x32xf32> to vector<16x32xf32>
    %455 = arith.addf %453, %454 : vector<16x32xf32>
    %c1192 = arith.constant 1192 : index
    %c0_158 = arith.constant 0 : index
    %456 = vector.load %arg0[%c1192, %c0_158] : memref<1400x128xf32, #tpu.memory_space<vmem>>, vector<32x96xf32>
    %c1224 = arith.constant 1224 : index
    %c0_159 = arith.constant 0 : index
    %457 = vector.load %arg0[%c1224, %c0_159] : memref<1400x128xf32, #tpu.memory_space<vmem>>, vector<1x96xf32>
    %c1232 = arith.constant 1232 : index
    %c0_160 = arith.constant 0 : index
    %458 = vector.load %arg0[%c1232, %c0_160] : memref<1400x128xf32, #tpu.memory_space<vmem>>, vector<32x32xf32>
    %c1264 = arith.constant 1264 : index
    %c0_161 = arith.constant 0 : index
    %459 = vector.load %arg0[%c1264, %c0_161] : memref<1400x128xf32, #tpu.memory_space<vmem>>, vector<1x32xf32>
    %cst_162 = arith.constant dense<0.000000e+00> : vector<16x96xf32>
    %460 = tpu.matmul %455, %456, %cst_162 {dimension_numbers = #tpu.dot_dimension_numbers<[1], [0], [0], [1], [0, 0, 1, 1], [], []>} : vector<16x32xf32>, vector<32x96xf32>, vector<16x96xf32> -> vector<16x96xf32>
    %461 = vector.broadcast %457 : vector<1x96xf32> to vector<16x96xf32>
    %462 = arith.addf %460, %461 : vector<16x96xf32>
    %cst_163 = arith.constant dense<0.000000e+00> : vector<16x96xf32>
    %463 = tpu.matmul %204, %456, %cst_163 {dimension_numbers = #tpu.dot_dimension_numbers<[1], [0], [0], [1], [0, 0, 1, 1], [], []>} : vector<16x32xf32>, vector<32x96xf32>, vector<16x96xf32> -> vector<16x96xf32>
    %464 = vector.broadcast %457 : vector<1x96xf32> to vector<16x96xf32>
    %465 = arith.addf %463, %464 : vector<16x96xf32>
    %466 = vector.extract_strided_slice %462 {offsets = [0, 0], sizes = [16, 32], strides = [1, 1]} : vector<16x96xf32> to vector<16x32xf32>
    %cst_164 = arith.constant 0.353553385 : f32
    %467 = vector.broadcast %cst_164 : f32 to vector<16x32xf32>
    %468 = arith.mulf %466, %467 : vector<16x32xf32>
    %469 = vector.extract_strided_slice %465 {offsets = [0, 32], sizes = [16, 32], strides = [1, 1]} : vector<16x96xf32> to vector<16x32xf32>
    %470 = vector.extract_strided_slice %465 {offsets = [0, 64], sizes = [16, 32], strides = [1, 1]} : vector<16x96xf32> to vector<16x32xf32>
    %471 = vector.shape_cast %468 : vector<16x32xf32> to vector<16x4x8xf32>
    %472 = tpu.transpose %471, [1, 0, 2] : vector<16x4x8xf32> -> vector<4x16x8xf32>
    %473 = vector.shape_cast %469 : vector<16x32xf32> to vector<16x4x8xf32>
    %474 = tpu.transpose %473, [1, 0, 2] : vector<16x4x8xf32> -> vector<4x16x8xf32>
    %475 = vector.shape_cast %470 : vector<16x32xf32> to vector<16x4x8xf32>
    %476 = tpu.transpose %475, [1, 0, 2] : vector<16x4x8xf32> -> vector<4x16x8xf32>
    "tpu.trace_start"() <{level = 10 : i32, message = "hqd,hkd->hqk"}> : () -> ()
    %cst_165 = arith.constant dense<0.000000e+00> : vector<4x16x16xf32>
    %477 = tpu.matmul %472, %474, %cst_165 {dimension_numbers = #tpu.dot_dimension_numbers<[2], [2], [1], [1], [0, 0, 0, 1, 1, 1], [0], [0]>} : vector<4x16x8xf32>, vector<4x16x8xf32>, vector<4x16x16xf32> -> vector<4x16x16xf32>
    "tpu.trace_stop"() : () -> ()
    %478 = vector.shape_cast %4 : vector<16x16xf32> to vector<1x16x16xf32>
    %479 = vector.broadcast %478 : vector<1x16x16xf32> to vector<4x16x16xf32>
    %480 = arith.addf %477, %479 : vector<4x16x16xf32>
    %cst_166 = arith.constant dense<0xFF800000> : vector<4x16xf32>
    %481 = vector.multi_reduction <maximumf>, %480, %cst_166 [2] : vector<4x16x16xf32> to vector<4x16xf32>
    %482 = vector.shape_cast %481 : vector<4x16xf32> to vector<4x16x1xf32>
    %483 = vector.broadcast %482 : vector<4x16x1xf32> to vector<4x16x16xf32>
    %484 = arith.subf %480, %483 : vector<4x16x16xf32>
    %485 = math.exp %484 : vector<4x16x16xf32>
    %cst_167 = arith.constant dense<0.000000e+00> : vector<4x16xf32>
    %486 = vector.multi_reduction <add>, %485, %cst_167 [2] : vector<4x16x16xf32> to vector<4x16xf32>
    %487 = vector.shape_cast %486 : vector<4x16xf32> to vector<4x16x1xf32>
    %488 = tpu.reciprocal %487 {approx = true} : vector<4x16x1xf32> -> vector<4x16x1xf32>
    %489 = vector.broadcast %488 : vector<4x16x1xf32> to vector<4x16x16xf32>
    %490 = arith.mulf %485, %489 : vector<4x16x16xf32>
    "tpu.trace_start"() <{level = 10 : i32, message = "hqk,hkd->hqd"}> : () -> ()
    %cst_168 = arith.constant dense<0.000000e+00> : vector<4x16x8xf32>
    %491 = tpu.matmul %490, %476, %cst_168 {dimension_numbers = #tpu.dot_dimension_numbers<[2], [1], [1], [2], [0, 0, 0, 1, 1, 2], [0], [0]>} : vector<4x16x16xf32>, vector<4x16x8xf32>, vector<4x16x8xf32> -> vector<4x16x8xf32>
    "tpu.trace_stop"() : () -> ()
    %492 = tpu.transpose %491, [1, 0, 2] : vector<4x16x8xf32> -> vector<16x4x8xf32>
    %493 = vector.shape_cast %492 : vector<16x4x8xf32> to vector<16x32xf32>
    %cst_169 = arith.constant dense<0.000000e+00> : vector<16x32xf32>
    %494 = tpu.matmul %493, %458, %cst_169 {dimension_numbers = #tpu.dot_dimension_numbers<[1], [0], [0], [1], [0, 0, 1, 1], [], []>} : vector<16x32xf32>, vector<32x32xf32>, vector<16x32xf32> -> vector<16x32xf32>
    %495 = vector.broadcast %459 : vector<1x32xf32> to vector<16x32xf32>
    %496 = arith.addf %494, %495 : vector<16x32xf32>
    %497 = arith.addf %455, %496 : vector<16x32xf32>
    %c1288 = arith.constant 1288 : index
    %c0_170 = arith.constant 0 : index
    %498 = vector.load %arg0[%c1288, %c0_170] : memref<1400x128xf32, #tpu.memory_space<vmem>>, vector<1x32xf32>
    %c1296 = arith.constant 1296 : index
    %c0_171 = arith.constant 0 : index
    %499 = vector.load %arg0[%c1296, %c0_171] : memref<1400x128xf32, #tpu.memory_space<vmem>>, vector<1x32xf32>
    %cst_172 = arith.constant dense<0.000000e+00> : vector<16xf32>
    %500 = vector.multi_reduction <add>, %497, %cst_172 [1] : vector<16x32xf32> to vector<16xf32>
    %501 = vector.shape_cast %500 : vector<16xf32> to vector<16x1xf32>
    %cst_173 = arith.constant 3.200000e+01 : f32
    %502 = vector.broadcast %cst_173 : f32 to vector<16x1xf32>
    %503 = arith.divf %501, %502 : vector<16x1xf32>
    %504 = vector.broadcast %503 : vector<16x1xf32> to vector<16x32xf32>
    %505 = arith.subf %497, %504 : vector<16x32xf32>
    %506 = arith.mulf %505, %505 : vector<16x32xf32>
    %cst_174 = arith.constant dense<0.000000e+00> : vector<16xf32>
    %507 = vector.multi_reduction <add>, %506, %cst_174 [1] : vector<16x32xf32> to vector<16xf32>
    %508 = vector.shape_cast %507 : vector<16xf32> to vector<16x1xf32>
    %cst_175 = arith.constant 3.200000e+01 : f32
    %509 = vector.broadcast %cst_175 : f32 to vector<16x1xf32>
    %510 = arith.divf %508, %509 : vector<16x1xf32>
    %cst_176 = arith.constant 9.99999974E-6 : f32
    %511 = vector.broadcast %cst_176 : f32 to vector<16x1xf32>
    %512 = arith.addf %510, %511 : vector<16x1xf32>
    %513 = math.rsqrt %512 : vector<16x1xf32>
    %514 = vector.broadcast %513 : vector<16x1xf32> to vector<16x32xf32>
    %515 = arith.mulf %505, %514 : vector<16x32xf32>
    %516 = vector.broadcast %498 : vector<1x32xf32> to vector<16x32xf32>
    %517 = arith.mulf %515, %516 : vector<16x32xf32>
    %518 = vector.broadcast %499 : vector<1x32xf32> to vector<16x32xf32>
    %519 = arith.addf %517, %518 : vector<16x32xf32>
    %c1320 = arith.constant 1320 : index
    %c0_177 = arith.constant 0 : index
    %520 = vector.load %arg0[%c1320, %c0_177] : memref<1400x128xf32, #tpu.memory_space<vmem>>, vector<32x32xf32>
    %cst_178 = arith.constant dense<0.000000e+00> : vector<16x32xf32>
    %521 = tpu.matmul %519, %520, %cst_178 {dimension_numbers = #tpu.dot_dimension_numbers<[1], [0], [0], [1], [0, 0, 1, 1], [], []>} : vector<16x32xf32>, vector<32x32xf32>, vector<16x32xf32> -> vector<16x32xf32>
    %c1352 = arith.constant 1352 : index
    %c0_179 = arith.constant 0 : index
    %522 = vector.load %arg0[%c1352, %c0_179] : memref<1400x128xf32, #tpu.memory_space<vmem>>, vector<1x32xf32>
    %523 = vector.broadcast %522 : vector<1x32xf32> to vector<16x32xf32>
    %524 = arith.addf %521, %523 : vector<16x32xf32>
    %cst_180 = arith.constant 0.000000e+00 : f32
    %525 = vector.broadcast %cst_180 : f32 to vector<16x32xf32>
    %526 = arith.maximumf %524, %525 : vector<16x32xf32>
    %c1360 = arith.constant 1360 : index
    %c0_181 = arith.constant 0 : index
    %527 = vector.load %arg0[%c1360, %c0_181] : memref<1400x128xf32, #tpu.memory_space<vmem>>, vector<32x32xf32>
    %cst_182 = arith.constant dense<0.000000e+00> : vector<16x32xf32>
    %528 = tpu.matmul %526, %527, %cst_182 {dimension_numbers = #tpu.dot_dimension_numbers<[1], [0], [0], [1], [0, 0, 1, 1], [], []>} : vector<16x32xf32>, vector<32x32xf32>, vector<16x32xf32> -> vector<16x32xf32>
    %c1392 = arith.constant 1392 : index
    %c0_183 = arith.constant 0 : index
    %529 = vector.load %arg0[%c1392, %c0_183] : memref<1400x128xf32, #tpu.memory_space<vmem>>, vector<1x32xf32>
    %530 = vector.broadcast %529 : vector<1x32xf32> to vector<16x32xf32>
    %531 = arith.addf %528, %530 : vector<16x32xf32>
    %532 = arith.addf %519, %531 : vector<16x32xf32>
    %c1304 = arith.constant 1304 : index
    %c0_184 = arith.constant 0 : index
    %533 = vector.load %arg0[%c1304, %c0_184] : memref<1400x128xf32, #tpu.memory_space<vmem>>, vector<1x32xf32>
    %c1312 = arith.constant 1312 : index
    %c0_185 = arith.constant 0 : index
    %534 = vector.load %arg0[%c1312, %c0_185] : memref<1400x128xf32, #tpu.memory_space<vmem>>, vector<1x32xf32>
    %cst_186 = arith.constant dense<0.000000e+00> : vector<16xf32>
    %535 = vector.multi_reduction <add>, %532, %cst_186 [1] : vector<16x32xf32> to vector<16xf32>
    %536 = vector.shape_cast %535 : vector<16xf32> to vector<16x1xf32>
    %cst_187 = arith.constant 3.200000e+01 : f32
    %537 = vector.broadcast %cst_187 : f32 to vector<16x1xf32>
    %538 = arith.divf %536, %537 : vector<16x1xf32>
    %539 = vector.broadcast %538 : vector<16x1xf32> to vector<16x32xf32>
    %540 = arith.subf %532, %539 : vector<16x32xf32>
    %541 = arith.mulf %540, %540 : vector<16x32xf32>
    %cst_188 = arith.constant dense<0.000000e+00> : vector<16xf32>
    %542 = vector.multi_reduction <add>, %541, %cst_188 [1] : vector<16x32xf32> to vector<16xf32>
    %543 = vector.shape_cast %542 : vector<16xf32> to vector<16x1xf32>
    %cst_189 = arith.constant 3.200000e+01 : f32
    %544 = vector.broadcast %cst_189 : f32 to vector<16x1xf32>
    %545 = arith.divf %543, %544 : vector<16x1xf32>
    %cst_190 = arith.constant 9.99999974E-6 : f32
    %546 = vector.broadcast %cst_190 : f32 to vector<16x1xf32>
    %547 = arith.addf %545, %546 : vector<16x1xf32>
    %548 = math.rsqrt %547 : vector<16x1xf32>
    %549 = vector.broadcast %548 : vector<16x1xf32> to vector<16x32xf32>
    %550 = arith.mulf %540, %549 : vector<16x32xf32>
    %551 = vector.broadcast %533 : vector<1x32xf32> to vector<16x32xf32>
    %552 = arith.mulf %550, %551 : vector<16x32xf32>
    %553 = vector.broadcast %534 : vector<1x32xf32> to vector<16x32xf32>
    %554 = arith.addf %552, %553 : vector<16x32xf32>
    %c400 = arith.constant 400 : index
    %c0_191 = arith.constant 0 : index
    %555 = vector.load %arg0[%c400, %c0_191] : memref<1400x128xf32, #tpu.memory_space<vmem>>, vector<32x128xf32>
    %cst_192 = arith.constant dense<0.000000e+00> : vector<16x128xf32>
    %556 = tpu.matmul %554, %555, %cst_192 {dimension_numbers = #tpu.dot_dimension_numbers<[1], [0], [0], [1], [0, 0, 1, 1], [], []>} : vector<16x32xf32>, vector<32x128xf32>, vector<16x128xf32> -> vector<16x128xf32>
    %c432 = arith.constant 432 : index
    %c0_193 = arith.constant 0 : index
    %557 = vector.load %arg0[%c432, %c0_193] : memref<1400x128xf32, #tpu.memory_space<vmem>>, vector<1x128xf32>
    %558 = vector.broadcast %557 : vector<1x128xf32> to vector<16x128xf32>
    %559 = arith.addf %556, %558 : vector<16x128xf32>
    %c0_194 = arith.constant 0 : index
    %c0_195 = arith.constant 0 : index
    %560 = vector.load %arg2[%c0_194, %c0_195] : memref<32x128xf32, #tpu.memory_space<vmem>>, vector<16x128xf32>
    tpu.vector_store %arg2[%c0_194, %c0_195], %559 {strides = array<i32>} : memref<32x128xf32, #tpu.memory_space<vmem>>, vector<16x128xf32>,
    return
  }
}

</mosaic_0001>

<bundles_post_ra>
// kernel: forward.1
= control target key start
LH: loop header
LB: loop body
LE: loop exit
PB: predicated region body
PF: predicated region fallthrough
CT: control target
= control target key end

     0   :  { %7 = vsyncpa [#allocation3], 0  ;;  %s10223_s12 = smov [#allocation2]   ;;  %s10224_s14 = smov 128   ;;  %s13634_s0 = inlined_call_operand.hbm [shape: f32[1400,128], index: 0, kind: input, shape index: {}]   ;;  %s13635_s1 = inlined_call_operand.vmem [shape: f32[24,128], index: 1, kind: input, shape index: {}]   ;;  %s13636_s2 = inlined_call_operand.vmem [shape: f32[32,128], index: 2, kind: output, shape index: {}]  }
   0x1   :  { %s12_s11 = sshll.u32 %s13634_s0, 4  ;;  %s14_s13 = sshll.u32 %s10223_s12, 4  ;;  %s13_s11 = int_to_ptr.hbm [resolvable:$true] %s12_s11  ;;  %s15_s13 = int_to_ptr.vmem [resolvable:$true] %s14_s13 }
   0x2   :  { %s10225_s15 = smov 8  }
   0x3   :  { %20 = dma.hbm_to_vmem [thread:$0]  %s13_s11, 22400, %s15_s13, [#allocation3], %s10224_s14, %s10224_s14, %s10225_s15  }
   0x4   :  { %10221 = dma.done.wait [#allocation3], 22400  }
   0x5   :  { %10222 = vsyncadd [#allocation3], 4294944896  ;;  %v55_v0 = vld [vmem:[#allocation2 + $0xa8] sm:$0xff]  ;;  %v54_v1 = vld [vmem:[#allocation2 + $0xa0] sm:$0xff]  ;;  %vm94_vm0 = vcmask 261120   ;;  %s10226_s19 = smov 112  }
   0x6   :  { %58 = vmatpush.msra.mxu0 %v55_v0  ;;  %v53_v2 = vld [vmem:[#allocation2 + $0x98] sm:$0xff]  ;;  %v52_v3 = vld [vmem:[#allocation2 + $0x90] sm:$0xff]  ;;  %v51_v4 = vld [vmem:[#allocation2 + $0x88] sm:$0xff]  ;;  %s10227_s20 = smov 104   ;;  %s10228_s21 = smov 120   ;;  %vm147_vm1 = vcmask 1047556  }
   0x7   :  { %v50_v5 = vld [vmem:[#allocation2 + $0x80] sm:$0xff]  ;;  %v49_v6 = vld [vmem:[#allocation2 + $0x78] sm:$0xff]  ;;  %v86_v7 = vld [vmem:[#allocation2 + $0x1d0] sm:$0xff]  ;;  %s10229_s22 = smov 96   ;;  %s10230_s23 = smov 64   ;;  %vm869_vm2 = vcmask 64512  }
   0x8   :  { %59 = vmatpush.msra.mxu0 %v54_v1  ;;  %113 = vmatpush.msra.mxu1 %v86_v7  ;;  %v48_v8 = vld [vmem:[#allocation2 + $0x70] sm:$0xff]  ;;  %v47_v9 = vld [vmem:[#allocation2 + $0x68] sm:$0xff]  ;;  %v46_v10 = vld [vmem:[#allocation2 + $0x60] sm:$0xff]  ;;  %v10231_v49 = vmov 1983009808   ;;  %vm1010_vm3 = vcmask 130048  }
   0x9   :  { %9768 = vmatpush.msra.mxu3 %v86_v7  ;;  %v45_v11 = vld [vmem:[#allocation2 + $0x58] sm:$0xff]  ;;  %v44_v12 = vld [vmem:[#allocation2 + $0x50] sm:$0xff]  ;;  %v43_v13 = vld [vmem:[#allocation2 + $0x48] sm:$0xff]  ;;  %v152_v50 = vunpack.c.l.s4 %v10231_v49  ;;  %v10232_v56 = vmov 1934713408   ;;  %s10233_s24 = smov 16  }
   0xa   :  { %60 = vmatpush.msra.mxu0 %v53_v2  ;;  %v42_v14 = vld [vmem:[#allocation2 + $0x40] sm:$0xff]  ;;  %v41_v15 = vld [vmem:[#allocation2 + $0x38] sm:$0xff]  ;;  %v40_v16 = vld [vmem:[#allocation2 + $0x30] sm:$0xff]  ;;  %v176_v57 = vunpack.c.l.s4 %v10232_v56  ;;  %s10234_s25 = smov 24   ;;  %vm1463_vm4 = vcmask 195584  }
   0xb   :  { %v37_v17 = vld [vmem:[%s13635_s1] sm:$0xff]  ;;  %v38_v18 = vld [vmem:[%s13635_s1 + $0x8] sm:$0xff]  ;;  %v83_v21 = vld [vmem:[#allocation2 + $0x1b8] sm:$0xff]  ;;  %v10322_v53 = vunpack.c.0.s8 %v152_v50 }
   0xc   :  { %61 = vmatpush.msra.mxu0 %v52_v3  ;;  %v85_v19 = vld [vmem:[#allocation2 + $0x1c8] sm:$0xff]  ;;  %v84_v20 = vld [vmem:[#allocation2 + $0x1c0] sm:$0xff]  ;;  %v9906_v22 = vld [vmem:[#allocation2 + $0xb0] ss:$0 sm:$0xff]  ;;  %v10327_v62 = vunpack.c.0.s8 %v176_v57 }
   0xd   :  { %114 = vmatpush.msra.mxu1 %v85_v19  ;;  %9769 = vmatpush.msra.mxu3 %v85_v19  ;;  %v31_v23 = vld [vmem:[#allocation2] sm:$0xff]  ;;  %v32_v27 = vld [vmem:[#allocation2 + $0x8] sm:$0xff]  ;;  %v9907_v31 = vld [vmem:[#allocation2 + $0x1d8] ss:$0 sm:$0xff] }
   0xe   :  { %62 = vmatpush.msra.mxu0 %v51_v4 }
   0xf   :  { %115 = vmatpush.msra.mxu1 %v84_v20  ;;  %9770 = vmatpush.msra.mxu3 %v84_v20 }
  0x10   :  { %63 = vmatpush.msra.mxu0 %v50_v5 }
  0x11   :  { %116 = vmatpush.msra.mxu1 %v83_v21  ;;  %9771 = vmatpush.msra.mxu3 %v83_v21 }
  0x12   :  { %64 = vmatpush.msra.mxu0 %v49_v6 }
  0x14   :  { %65 = vmatpush.msra.mxu0 %v48_v8 }
  0x16   :  { %66 = vmatpush.msra.mxu0 %v47_v9 }
  0x18   :  { %67 = vmatpush.msra.mxu0 %v46_v10 }
  0x1a   :  { %68 = vmatpush.msra.mxu0 %v45_v11 }
  0x1c   :  { %69 = vmatpush.msra.mxu0 %v44_v12 }
  0x1e   :  { %70 = vmatpush.msra.mxu0 %v43_v13 }
  0x20   :  { %71 = vmatpush.msra.mxu0 %v42_v14 }
  0x22   :  { %72 = vmatpush.msra.mxu0 %v41_v15 }
  0x24   :  { %73 = vmatpush.msra.mxu0 %v40_v16 }
  0x25   :  { %74 = vmatmul.f32.vlgmr.msra.gmra.mxu0 %v37_v17 }
  0x2d   :  { %77 = vmatmul.f32.gmra.mxu0 %v38_v18 }
  0xa2   :  { %v75_v24 = vpop.f32.mrf.mxu0 }
  0xa3   :  { %v76_v25 = vadd.f32 %v9906_v22, %v75_v24 }
  0xa5   :  { %v10262_v26 = vadd.f32 %v76_v25, %v31_v23 }
  0xa7   :  { %9576 = vmatmul.msk.f32.vlgmr.msra.gmra.mxu1 %vm94_vm0, %v10262_v26 }
  0xaa   :  { %v78_v28 = vpop.f32.mrf.mxu0 }
  0xab   :  { %v79_v29 = vadd.f32 %v9906_v22, %v78_v28 }
  0xad   :  { %v10266_v30 = vadd.f32 %v79_v29, %v32_v27 }
  0xaf   :  { %9577 = vmatmul.msk.f32.vlgmr.msra.gmra.mxu3 %vm94_vm0, %v10266_v30 }
 0x124   :  { %v118_v32 = vpop.f32.mrf.mxu1 }
 0x125   :  { %v119_v33 = vadd.f32 %v9907_v31, %v118_v32 }
 0x127   :  { %373 = vrot.lane.b32.xlu2 %v119_v33, %s10226_s19  ;;  %v10282_v38 = vmul.f32 0.35355338, %v119_v33 }
 0x12f   :  { %377 = vrot.lane.b32.xlu2 %v119_v33, %s10227_s20 }
 0x132   :  { %v121_v34 = vpop.f32.mrf.mxu3 }
 0x133   :  { %v122_v35 = vadd.f32 %v9907_v31, %v121_v34  ;;  %v149_v34 = vrot.slane %v10282_v38, 4 }
 0x135   :  { %379 = vrot.lane.b32.xlu1 %v122_v35, %s10227_s20  ;;  %371 = vrot.lane.b32.xlu0 %v122_v35, %s10228_s21  ;;  %v9786_v36 = vpack.i.bf16 %v119_v33, %v122_v35  ;;  %v10290_v40 = vmul.f32 0.35355338, %v122_v35 }
 0x13d   :  { %375 = vrot.lane.b32.xlu0 %v122_v35, %s10226_s19  ;;  %369 = vrot.lane.b32.xlu1 %v119_v33, %s10228_s21 }
 0x145   :  { %381 = vrot.lane.b32.xlu0 %v119_v33, %s10229_s22 }
 0x14d   :  { %383 = vrot.lane.b32.xlu0 %v122_v35, %s10229_s22 }
 0x181   :  { %v10278_v37 = vpop.permute.xlu2 %373 }
 0x182   :  { %389 = vrot.lane.b32.xlu0 %v10278_v37, %s10229_s22 }
 0x189   :  { %v10284_v39 = vpop.permute.xlu2 %377 }
 0x18a   :  { %393 = vrot.lane.b32.xlu1 %v10284_v39, %s10229_s22  ;;  %134 = vrot.lane.b32.xlu0 %v10282_v38, %s10226_s19 }
 0x192   :  { %136 = vrot.lane.b32.xlu0 %v10290_v40, %s10226_s19 }
 0x19a   :  { %9787 = vrot.lane.b32.xlu0 %v9786_v36, %s10230_s23 }
 0x1a7   :  { %v10295_v41 = vpop.permute.xlu1 %379  ;;  %v10297_v42 = vpop.permute.xlu0 %371 }
 0x1a8   :  { %387 = vrot.lane.b32.xlu1 %v10297_v42, %s10229_s22 }
 0x1af   :  { %v10301_v43 = vpop.permute.xlu1 %369  ;;  %v10307_v44 = vpop.permute.xlu0 %375 }
 0x1b0   :  { %395 = vrot.lane.b32.xlu1 %v10295_v41, %s10229_s22  ;;  %385 = vrot.lane.b32.xlu2 %v10301_v43, %s10229_s22 }
 0x1b7   :  { %v382_v45 = vpop.permute.xlu0 %381 }
 0x1b8   :  { %391 = vrot.lane.b32.xlu2 %v10307_v44, %s10229_s22  ;;  %140 = vrot.lane.b32.xlu1 %v10282_v38, %s10227_s20  ;;  %v407_v51 = vrot.slane %v382_v45, 4 }
 0x1bf   :  { %v10319_v46 = vpop.permute.xlu0 %383 }
 0x1c0   :  { %142 = vrot.lane.b32.xlu1 %v10290_v40, %s10227_s20  ;;  %128 = vrot.lane.b32.xlu2 %v10282_v38, %s10228_s21 }
 0x1c8   :  { %130 = vrot.lane.b32.xlu2 %v10290_v40, %s10228_s21 }
 0x1f4   :  { %v390_v47 = vpop.permute.xlu0 %389 }
 0x1f5   :  { %v405_v48 = vrot.slane %v390_v47, 4  ;;  %v408_v55 = vsel %vm147_vm1, %v390_v47, %v407_v51 }
 0x1f6   :  { %v416_v60 = vperm.slane %v408_v55, %v10322_v53 }
 0x1f7   :  { %v406_v52 = vsel %vm147_vm1, %v405_v48, %v382_v45 }
 0x1f8   :  { %v412_v58 = vperm.slane %v406_v52, %v10322_v53  ;;  %v443_v4 = vrot.slane %v416_v60, 4 }
 0x1fa   :  { %v431_v1 = vrot.slane %v412_v58, 4 }
 0x1fc   :  { %v394_v54 = vpop.permute.xlu1 %393  ;;  %v135_v8 = vpop.permute.xlu0 %134 }
 0x1fd   :  { %v417_v59 = vrot.slane %v394_v54, 4  ;;  %v146_v33 = vrot.slane %v135_v8, 4  ;;  %v150_v55 = vsel %vm147_vm1, %v135_v8, %v149_v34 }
 0x1ff   :  { %v148_v57 = vsel %vm147_vm1, %v146_v33, %v10282_v38 }
 0x200   :  { %v10370_v38 = vperm.slane %v148_v57, %v10322_v53 }
 0x204   :  { %v137_v45 = vpop.permute.xlu0 %136 }
 0x20a   :  { %v386_v61 = vpop.permute.xlu2 %385 }
 0x20b   :  { %v418_v63 = vsel %vm147_vm1, %v417_v59, %v386_v61  ;;  %v419_v0 = vrot.slane %v386_v61, 4 }
 0x20c   :  { %v424_v2 = vperm.slane %v418_v63, %v10322_v53 }
 0x20d   :  { %v420_v3 = vsel %vm147_vm1, %v394_v54, %v419_v0  ;;  %v463_v54 = vrot.slane %v10319_v46, 4 }
 0x20e   :  { %v428_v5 = vperm.slane %v420_v3, %v10322_v53  ;;  %v429_v6 = vrot.slane %v424_v2, 4  ;;  %v432_v7 = vsel %vm147_vm1, %v424_v2, %v431_v1  ;;  %v10364_v1 = vperm.slane %v150_v55, %v10322_v53 }
 0x20f   :  { %v440_v9 = vperm.slane %v432_v7, %v10327_v62  ;;  %v205_v2 = vrot.slane %v10290_v40, 4 }
 0x210   :  { %v430_v10 = vsel %vm147_vm1, %v429_v6, %v412_v58  ;;  %v441_v11 = vrot.slane %v428_v5, 4  ;;  %v444_v12 = vsel %vm147_vm1, %v428_v5, %v443_v4  ;;  %v203_v58 = vrot.slane %v137_v45, 4 }
 0x211   :  { %v436_v13 = vperm.slane %v430_v10, %v10327_v62  ;;  %v452_v14 = vperm.slane %v444_v12, %v10327_v62  ;;  %v455_v15 = vrot.slane %v440_v9, 4  ;;  %v206_v6 = vsel %vm147_vm1, %v137_v45, %v205_v2 }
 0x212   :  { %v442_v16 = vsel %vm147_vm1, %v441_v11, %v416_v60  ;;  %v392_v21 = vpop.permute.xlu2 %391 }
 0x213   :  { %v448_v17 = vperm.slane %v442_v16, %v10327_v62  ;;  %v453_v18 = vrot.slane %v436_v13, 4  ;;  %v456_v19 = vsel %vm147_vm1, 0.0, %v455_v15  ;;  %v459_v20 = vrot.slane %v452_v14, 4 }
 0x214   :  { %v522_v22 = vrot.slane %v456_v19, 4  ;;  %v517_v28 = vsel %vm147_vm1, %v455_v15, %v436_v13  ;;  %v461_v47 = vrot.slane %v392_v21, 4  ;;  %v464_v61 = vsel %vm147_vm1, %v392_v21, %v463_v54 }
 0x215   :  { %v457_v23 = vrot.slane %v448_v17, 4  ;;  %v460_v24 = vsel %vm147_vm1, 0.0, %v459_v20  ;;  %v454_v25 = vsel %vm147_vm1, 0.0, %v453_v18  ;;  %v528_v35 = vsel %vm147_vm1, %v459_v20, %v448_v17 }
 0x216   :  { %v533_v27 = vrot.slane %v460_v24, 4  ;;  %v523_v29 = vsel %vm147_vm1, %v522_v22, %v454_v25  ;;  %v521_v48 = vperm.slane %v517_v28, %v10322_v53  ;;  %v532_v49 = vperm.slane %v528_v35, %v10322_v53 }
 0x217   :  { %v458_v31 = vsel %vm147_vm1, 0.0, %v457_v23  ;;  %v527_v32 = vperm.slane %v523_v29, %v10322_v53  ;;  %v462_v60 = vsel %vm147_vm1, %v461_v47, %v10319_v46  ;;  %v204_v46 = vsel %vm147_vm1, %v203_v58, %v10290_v40 }
 0x218   :  { %v534_v36 = vsel %vm147_vm1, %v533_v27, %v458_v31  ;;  %v553_v56 = vrot.slane %v532_v49, 4  ;;  %v541_v0 = vrot.slane %v521_v48, 4  ;;  %v468_v7 = vperm.slane %v462_v60, %v10322_v53 }
 0x219   :  { %v538_v50 = vperm.slane %v534_v36, %v10322_v53  ;;  %v539_v52 = vrot.slane %v527_v32, 4  ;;  %v472_v8 = vperm.slane %v464_v61, %v10322_v53  ;;  %v185_v13 = vrot.slane %v10364_v1, 4 }
 0x21a   :  { %v388_v51 = vpop.permute.xlu1 %387  ;;  %v10361_v63 = vpop.permute.xlu2 %128  ;;  %v542_v10 = vsel %vm147_vm1, %v527_v32, %v541_v0  ;;  %v10386_v40 = vperm.slane %v204_v46, %v10322_v53  ;;  %v10389_v16 = vperm.slane %v206_v6, %v10322_v53  ;;  %v173_v19 = vrot.slane %v10370_v38, 4 }
 0x21b   :  { %v551_v59 = vrot.slane %v538_v50, 4  ;;  %v554_v3 = vsel %vm147_vm1, %v538_v50, %v553_v56  ;;  %v540_v4 = vsel %vm147_vm1, %v539_v52, %v521_v48  ;;  %v475_v9 = vrot.slane %v388_v51, 4 }
 0x21c   :  { %v10380_v11 = vperm.slane %v554_v3, %v10327_v62  ;;  %v546_v12 = vperm.slane %v540_v4, %v10327_v62  ;;  %v499_v20 = vrot.slane %v472_v8, 4  ;;  %v10395_v22 = vperm.slane %v542_v10, %v10327_v62 }
 0x21d   :  { %v552_v5 = vsel %vm147_vm1, %v551_v59, %v532_v49  ;;  %v487_v23 = vrot.slane %v468_v7, 4  ;;  %v229_v33 = vrot.slane %v10386_v40, 4  ;;  %v241_v34 = vrot.slane %v10389_v16, 4 }
 0x21e   :  { %v558_v15 = vperm.slane %v552_v5, %v10327_v62  ;;  %v567_v25 = vrot.slane %v10380_v11, 4  ;;  %v565_v27 = vrot.slane %v546_v12, 4  ;;  %v161_v35 = vrot.slane %v10361_v63, 4 }
 0x21f   :  { %v569_v50 = vrot.slane %v10395_v22, 4 }
 0x220   :  { %v563_v32 = vrot.slane %v558_v15, 4  ;;  %v10411_v55 = vsel %vm147_vm1, %v558_v15, %v565_v27  ;;  %v10416_v59 = vsel %vm147_vm1, %v567_v25, %v10395_v22 }
 0x222   :  { %v396_v14 = vpop.permute.xlu1 %395  ;;  %v131_v45 = vpop.permute.xlu2 %130  ;;  %v10419_v60 = vsel %vm147_vm1, %v563_v32, %v546_v12 }
 0x223   :  { %v473_v17 = vrot.slane %v396_v14, 4  ;;  %v476_v18 = vsel %vm147_vm1, %v396_v14, %v475_v9  ;;  %v217_v57 = vrot.slane %v131_v45, 4 }
 0x224   :  { %v484_v21 = vperm.slane %v476_v18, %v10322_v53 }
 0x225   :  { %v474_v24 = vsel %vm147_vm1, %v473_v17, %v388_v51 }
 0x226   :  { %v480_v28 = vperm.slane %v474_v24, %v10322_v53  ;;  %v497_v29 = vrot.slane %v484_v21, 4  ;;  %v500_v31 = vsel %vm147_vm1, %v484_v21, %v499_v20 }
 0x227   :  { %v508_v36 = vperm.slane %v500_v31, %v10327_v62 }
 0x228   :  { %v485_v47 = vrot.slane %v480_v28, 4  ;;  %v488_v48 = vsel %vm147_vm1, %v480_v28, %v487_v23  ;;  %v498_v49 = vsel %vm147_vm1, %v497_v29, %v472_v8 }
 0x229   :  { %v496_v51 = vperm.slane %v488_v48, %v10327_v62  ;;  %v504_v52 = vperm.slane %v498_v49, %v10327_v62  ;;  %v515_v54 = vrot.slane %v508_v36, 4 }
 0x22a   :  { %v486_v56 = vsel %vm147_vm1, %v485_v47, %v468_v7  ;;  %v141_v58 = vpop.permute.xlu1 %140 }
 0x22b   :  { %v492_v61 = vperm.slane %v486_v56, %v10327_v62  ;;  %v511_v0 = vrot.slane %v496_v51, 4  ;;  %v513_v2 = vrot.slane %v504_v52, 4  ;;  %v516_v3 = vsel %vm147_vm1, 0.0, %v515_v54 }
 0x22c   :  { %v582_v4 = vsel %vm147_vm1, %v515_v54, %v504_v52  ;;  %v587_v5 = vrot.slane %v516_v3, 4  ;;  %v159_v46 = vrot.slane %v141_v58, 4  ;;  %v162_v6 = vsel %vm147_vm1, %v141_v58, %v161_v35 }
 0x22d   :  { %v512_v7 = vsel %vm147_vm1, 0.0, %v511_v0  ;;  %v514_v8 = vsel %vm147_vm1, 0.0, %v513_v2  ;;  %v170_v9 = vperm.slane %v162_v6, %v10322_v53  ;;  %v509_v10 = vrot.slane %v492_v61, 4 }
 0x22e   :  { %v160_v12 = vsel %vm147_vm1, %v159_v46, %v10361_v63  ;;  %v571_v14 = vsel %vm147_vm1, %v511_v0, %v492_v61  ;;  %v576_v15 = vrot.slane %v512_v7, 4  ;;  %v10432_v17 = vperm.slane %v582_v4, %v10322_v53 }
 0x22f   :  { %v166_v18 = vperm.slane %v160_v12, %v10322_v53  ;;  %v183_v20 = vrot.slane %v170_v9, 4  ;;  %v186_v21 = vsel %vm147_vm1, %v170_v9, %v185_v13  ;;  %v510_v23 = vsel %vm147_vm1, 0.0, %v509_v10 }
 0x230   :  { %v194_v24 = vperm.slane %v186_v21, %v10327_v62  ;;  %v575_v25 = vperm.slane %v571_v14, %v10322_v53  ;;  %v577_v27 = vsel %vm147_vm1, %v576_v15, %v510_v23  ;;  %v588_v63 = vsel %vm147_vm1, %v587_v5, %v514_v8 }
 0x231   :  { %v171_v28 = vrot.slane %v166_v18, 4  ;;  %v174_v29 = vsel %vm147_vm1, %v166_v18, %v173_v19  ;;  %v184_v31 = vsel %vm147_vm1, %v183_v20, %v10364_v1  ;;  %v581_v32 = vperm.slane %v577_v27, %v10322_v53 }
 0x232   :  { %v182_v13 = vperm.slane %v174_v29, %v10327_v62  ;;  %v190_v35 = vperm.slane %v184_v31, %v10327_v62  ;;  %v201_v36 = vrot.slane %v194_v24, 4  ;;  %v143_v47 = vpop.permute.xlu1 %142  ;;  %v592_v48 = vperm.slane %v588_v63, %v10322_v53 }
 0x233   :  { %v172_v49 = vsel %vm147_vm1, %v171_v28, %v10370_v38  ;;  %v215_v51 = vrot.slane %v143_v47, 4  ;;  %v218_v52 = vsel %vm147_vm1, %v143_v47, %v217_v57  ;;  %v595_v19 = vrot.slane %v575_v25, 4 }
 0x234   :  { %v178_v54 = vperm.slane %v172_v49, %v10327_v62  ;;  %v197_v1 = vrot.slane %v182_v13, 4  ;;  %v199_v56 = vrot.slane %v190_v35, 4  ;;  %v202_v58 = vsel %vm147_vm1, 0.0, %v201_v36 }
 0x235   :  { %v270_v61 = vsel %vm147_vm1, %v201_v36, %v190_v35  ;;  %v275_v0 = vrot.slane %v202_v58, 4  ;;  %v216_v2 = vsel %vm147_vm1, %v215_v51, %v131_v45  ;;  %v226_v3 = vperm.slane %v218_v52, %v10322_v53 }
 0x236   :  { %v195_v4 = vrot.slane %v178_v54, 4  ;;  %v198_v38 = vsel %vm147_vm1, 0.0, %v197_v1  ;;  %v200_v57 = vsel %vm147_vm1, 0.0, %v199_v56  ;;  %v10459_v5 = vperm.slane %v270_v61, %v10322_v53 }
 0x237   :  { %v264_v46 = vrot.slane %v198_v38, 4  ;;  %v222_v6 = vperm.slane %v216_v2, %v10322_v53  ;;  %v239_v7 = vrot.slane %v226_v3, 4  ;;  %v242_v8 = vsel %vm147_vm1, %v226_v3, %v241_v34 }
 0x238   :  { %v250_v45 = vperm.slane %v242_v8, %v10327_v62  ;;  %v596_v9 = vsel %vm147_vm1, %v581_v32, %v595_v19  ;;  %v607_v10 = vrot.slane %v10432_v17, 4  ;;  %v593_v12 = vrot.slane %v581_v32, 4 }
 0x239   :  { %v227_v14 = vrot.slane %v222_v6, 4  ;;  %v230_v15 = vsel %vm147_vm1, %v222_v6, %v229_v33  ;;  %v240_v18 = vsel %vm147_vm1, %v239_v7, %v10389_v16  ;;  %v604_v20 = vperm.slane %v596_v9, %v10327_v62 }
 0x23a   :  { %v238_v21 = vperm.slane %v230_v15, %v10327_v62  ;;  %v246_v34 = vperm.slane %v240_v18, %v10327_v62  ;;  %v257_v23 = vrot.slane %v250_v45, 4  ;;  %v608_v24 = vsel %vm147_vm1, %v592_v48, %v607_v10 }
 0x23b   :  { %v228_v27 = vsel %vm147_vm1, %v227_v14, %v10386_v40  ;;  %v616_v63 = vperm.slane %v608_v24, %v10327_v62  ;;  %v594_v28 = vsel %vm147_vm1, %v593_v12, %v575_v25  ;;  %v605_v33 = vrot.slane %v592_v48, 4 }
 0x23c   :  { %v234_v29 = vperm.slane %v228_v27, %v10327_v62  ;;  %v253_v16 = vrot.slane %v238_v21, 4  ;;  %v255_v31 = vrot.slane %v246_v34, 4  ;;  %v258_v32 = vsel %vm147_vm1, 0.0, %v257_v23 }
 0x23d   :  { %v324_v13 = vsel %vm147_vm1, %v257_v23, %v246_v34  ;;  %v329_v35 = vrot.slane %v258_v32, 4  ;;  %v621_v36 = vrot.slane %v616_v63, 4  ;;  %v600_v47 = vperm.slane %v594_v28, %v10327_v62 }
 0x23e   :  { %v254_v49 = vsel %vm147_vm1, 0.0, %v253_v16  ;;  %v256_v40 = vsel %vm147_vm1, 0.0, %v255_v31  ;;  %v606_v25 = vsel %vm147_vm1, %v605_v33, %v10432_v17  ;;  %v623_v48 = vrot.slane %v604_v20, 4 }
 0x23f   :  { %v622_v51 = vsel %vm147_vm1, %v621_v36, %v604_v20  ;;  %v612_v52 = vperm.slane %v606_v25, %v10327_v62  ;;  %v619_v19 = vrot.slane %v600_v47, 4  ;;  %v196_v56 = vsel %vm147_vm1, 0.0, %v195_v4 }
 0x240   :  { %9586 = vmatpush.xpose.msk.msrb.mxu1 %vm869_vm2, %v622_v51  ;;  %v624_v58 = vsel %vm147_vm1, %v616_v63, %v623_v48  ;;  %v259_v61 = vsel %vm147_vm1, %v197_v1, %v178_v54  ;;  %v265_v2 = vsel %vm147_vm1, %v264_v46, %v196_v56  ;;  %v276_v3 = vsel %vm147_vm1, %v275_v0, %v200_v57 }
 0x241   :  { %v617_v38 = vrot.slane %v612_v52, 4  ;;  %v620_v17 = vsel %vm147_vm1, %v612_v52, %v619_v19  ;;  %v263_v6 = vperm.slane %v259_v61, %v10322_v53  ;;  %v269_v7 = vperm.slane %v265_v2, %v10322_v53 }
 0x242   :  { %9582 = vmatpush.xpose.msk.msrb.mxu3 %vm869_vm2, %v620_v17  ;;  %v280_v4 = vperm.slane %v276_v3, %v10322_v53  ;;  %v295_v8 = vrot.slane %v10459_v5, 4  ;;  %v251_v45 = vrot.slane %v234_v29, 4  ;;  %v313_v54 = vsel %vm147_vm1, %v253_v16, %v234_v29 }
 0x243   :  { %v618_v1 = vsel %vm147_vm1, %v617_v38, %v600_v47  ;;  %v283_v46 = vrot.slane %v263_v6, 4  ;;  %v281_v0 = vrot.slane %v269_v7, 4  ;;  %v317_v57 = vperm.slane %v313_v54, %v10322_v53 }
 0x244   :  { %9578 = vmatpush.xpose.msk.msra.mxu2 %vm869_vm2, %v618_v1  ;;  %9587 = vmatpush.xpose.msk.msrb.mxu1 %vm869_vm2, %v10416_v59  ;;  %v296_v9 = vsel %vm147_vm1, %v280_v4, %v295_v8  ;;  %v293_v10 = vrot.slane %v280_v4, 4  ;;  %v252_v12 = vsel %vm147_vm1, 0.0, %v251_v45  ;;  %v318_v14 = vrot.slane %v254_v49, 4 }
 0x245   :  { %v284_v15 = vsel %vm147_vm1, %v269_v7, %v283_v46  ;;  %v304_v18 = vperm.slane %v296_v9, %v10327_v62  ;;  %v282_v20 = vsel %vm147_vm1, %v281_v0, %v263_v6  ;;  %v328_v21 = vperm.slane %v324_v13, %v10322_v53  ;;  %v33_v7 = vld [vmem:[#allocation2 + $0x10] sm:$0xff] }
 0x246   :  { %9583 = vmatpush.xpose.msk.msrb.mxu3 %vm869_vm2, %v10411_v55  ;;  %v292_v34 = vperm.slane %v284_v15, %v10327_v62  ;;  %v288_v59 = vperm.slane %v282_v20, %v10327_v62  ;;  %v294_v23 = vsel %vm147_vm1, %v293_v10, %v10459_v5  ;;  %v319_v24 = vsel %vm147_vm1, %v318_v14, %v252_v12  ;;  %v34_v10 = vld [vmem:[#allocation2 + $0x18] sm:$0xff] }
 0x247   :  { %v309_v27 = vrot.slane %v304_v18, 4  ;;  %v300_v63 = vperm.slane %v294_v23, %v10327_v62  ;;  %v323_v28 = vperm.slane %v319_v24, %v10322_v53  ;;  %v330_v33 = vsel %vm147_vm1, %v329_v35, %v256_v40 }
 0x248   :  { %9579 = vmatpush.xpose.msk.msra.mxu2 %vm869_vm2, %v10419_v60  ;;  %v307_v55 = vrot.slane %v288_v59, 4  ;;  %v334_v29 = vperm.slane %v330_v33, %v10322_v53  ;;  %v337_v16 = vrot.slane %v317_v57, 4  ;;  %v349_v31 = vrot.slane %v328_v21, 4 }
 0x249   :  { %v310_v5 = vsel %vm147_vm1, %v309_v27, %v292_v34  ;;  %v305_v32 = vrot.slane %v300_v63, 4  ;;  %v335_v13 = vrot.slane %v323_v28, 4  ;;  %v570_v51 = vsel %vm147_vm1, %v10380_v11, %v569_v50 }
 0x24a   :  { %9588 = vmatmul.msk.f32.vlgmr.msrb.gmra.mxu1 %vm869_vm2, %v310_v5  ;;  %v308_v36 = vsel %vm147_vm1, %v300_v63, %v307_v55  ;;  %v338_v35 = vsel %vm147_vm1, %v323_v28, %v337_v16  ;;  %v350_v47 = vsel %vm147_vm1, %v334_v29, %v349_v31  ;;  %v347_v60 = vrot.slane %v334_v29, 4  ;;  %v10575_v5 = vpop.permute.xlu0 %9787 }
 0x24b   :  { %v306_v49 = vsel %vm147_vm1, %v305_v32, %v288_v59  ;;  %9584 = vmatmul.msk.f32.vlgmr.msrb.gmra.mxu3 %vm869_vm2, %v308_v36  ;;  %v346_v40 = vperm.slane %v338_v35, %v10327_v62  ;;  %v358_v25 = vperm.slane %v350_v47, %v10327_v62  ;;  %v336_v48 = vsel %vm147_vm1, %v335_v13, %v317_v57 }
 0x24c   :  { %9590 = vmatpush.xpose.msk.msrb.mxu2 %vm869_vm2, %v624_v58  ;;  %v342_v52 = vperm.slane %v336_v48, %v10327_v62  ;;  %v348_v19 = vsel %vm147_vm1, %v347_v60, %v328_v21  ;;  %v311_v11 = vrot.slane %v292_v34, 4  ;;  %v9801_v29 = vpack.i.bf16 %v10284_v39, %v10295_v41 }
 0x24d   :  { %9580 = vmatmul.msk.f32.vlgmr.msra.gmra.mxu2 %vm869_vm2, %v306_v49  ;;  %v363_v56 = vrot.slane %v358_v25, 4  ;;  %v354_v58 = vperm.slane %v348_v19, %v10327_v62  ;;  %v365_v17 = vrot.slane %v346_v40, 4  ;;  %v9796_v16 = vpack.i.bf16 %v10278_v37, %v10301_v43 }
 0x24e   :  { %v361_v61 = vrot.slane %v342_v52, 4  ;;  %v312_v50 = vsel %vm147_vm1, %v304_v18, %v311_v11  ;;  %v9791_v31 = vpack.i.bf16 %v10307_v44, %v10297_v42 }
 0x24f   :  { %v364_v2 = vsel %vm147_vm1, %v363_v56, %v346_v40  ;;  %v359_v3 = vrot.slane %v354_v58, 4  ;;  %v366_v6 = vsel %vm147_vm1, %v358_v25, %v365_v17 }
 0x250   :  { %9591 = vmatpush.xpose.msk.msrb.mxu2 %vm869_vm2, %v570_v51  ;;  %v362_v38 = vsel %vm147_vm1, %v354_v58, %v361_v61 }
 0x251   :  { %v360_v22 = vsel %vm147_vm1, %v359_v3, %v342_v52 }
 0x252   :  { %9589 = vmatmul.msk.f32.gmra.mxu1 %vm869_vm2, %v364_v2 }
 0x253   :  { %9585 = vmatmul.msk.f32.gmra.mxu3 %vm869_vm2, %v362_v38 }
 0x255   :  { %9581 = vmatmul.msk.f32.gmra.mxu2 %vm869_vm2, %v360_v22 }
 0x25d   :  { %9592 = vmatmul.msk.f32.vlgmr.msrb.gmra.mxu2 %vm869_vm2, %v312_v50 }
 0x265   :  { %9593 = vmatmul.msk.f32.gmra.mxu2 %vm869_vm2, %v366_v6 }
 0x2c7   :  { %v969_v4 = vpop.f32.mrf.mxu1 }
 0x2c8   :  { %v970_v8 = vadd.f32 %v969_v4, %v33_v7 }
 0x2ca   :  { %v1023_v45 = vsel %vm1010_vm3, %v970_v8, -inf }
 0x2cb   :  { %1024 = vmax.xlane.f32.xlu1 %v1023_v45 }
 0x2ce   :  { %v934_v54 = vpop.f32.mrf.mxu3 }
 0x2cf   :  { %v935_v46 = vadd.f32 %v934_v54, %v33_v7  ;;  %v972_v12 = vpop.f32.mrf.mxu1  ;;  %v9790_v54 = vunpack.i.h.bf16 %v10575_v5 }
 0x2d0   :  { %v899_v1 = vpop.f32.mrf.mxu2  ;;  %v973_v14 = vadd.f32 %v972_v12, %v34_v10 }
 0x2d1   :  { %v900_v0 = vadd.f32 %v899_v1, %v33_v7  ;;  %v1017_v57 = vsel %vm1010_vm3, %v935_v46, -inf }
 0x2d2   :  { %1018 = vmax.xlane.f32.xlu0 %v1017_v57  ;;  %v1026_v20 = vsel %vm1010_vm3, %v973_v14, -inf }
 0x2d3   :  { %v1011_v9 = vsel %vm1010_vm3, %v900_v0, -inf }
 0x2d4   :  { %1012 = vmax.xlane.f32.xlu2 %v1011_v9  ;;  %v651_v9 = vrot.slane %v9790_v54, 4 }
 0x2d6   :  { %v937_v34 = vpop.f32.mrf.mxu3 }
 0x2d7   :  { %v938_v59 = vadd.f32 %v937_v34, %v34_v10 }
 0x2d8   :  { %v902_v15 = vpop.f32.mrf.mxu2 }
 0x2d9   :  { %v903_v18 = vadd.f32 %v902_v15, %v34_v10  ;;  %v1020_v24 = vsel %vm1010_vm3, %v938_v59, -inf }
 0x2db   :  { %v1014_v21 = vsel %vm1010_vm3, %v903_v18, -inf }
 0x2dc   :  { %1027 = vmax.xlane.f32.xlu2 %v1026_v20  ;;  %1015 = vmax.xlane.f32.xlu0 %v1014_v21 }
 0x2e0   :  { %v1004_v23 = vpop.f32.mrf.mxu2 }
 0x2e1   :  { %v1005_v27 = vadd.f32 %v1004_v23, %v33_v7 }
 0x2e3   :  { %v1029_v55 = vsel %vm1010_vm3, %v1005_v27, -inf }
 0x2e4   :  { %1021 = vmax.xlane.f32.xlu2 %v1020_v24 }
 0x2e8   :  { %v1007_v63 = vpop.f32.mrf.mxu2 }
 0x2e9   :  { %v1008_v28 = vadd.f32 %v1007_v63, %v34_v10 }
 0x2eb   :  { %v1032_v33 = vsel %vm1010_vm3, %v1008_v28, -inf }
 0x2ec   :  { %1033 = vmax.xlane.f32.xlu1 %v1032_v33  ;;  %1030 = vmax.xlane.f32.xlu2 %v1029_v55 }
 0x2f0   :  { %9802 = vrot.lane.b32.xlu0 %v9801_v29, %s10230_s23 }
 0x304   :  { %9797 = vrot.lane.b32.xlu2 %v9796_v16, %s10230_s23 }
 0x305   :  { %9792 = vrot.lane.b32.xlu1 %v9791_v31, %s10230_s23 }
 0x33e   :  { %v1025_v32 = vpop.xlane.xlu1 %1024 }
 0x33f   :  { %v1039_v13 = vsub.f32 %v970_v8, %v1025_v32 }
 0x341   :  { %v1051_v36 = vmul.f32 1.442695, %v1039_v13 }
 0x343   :  { %9951 = vpow2.f32 %v1051_v36 }
 0x345   :  { %v1019_v35 = vpop.xlane.xlu0 %1018 }
 0x346   :  { %v1037_v41 = vsub.f32 %v935_v46, %v1019_v35 }
 0x347   :  { %v1013_v39 = vpop.xlane.xlu2 %1012 }
 0x348   :  { %v1035_v47 = vsub.f32 %v900_v0, %v1013_v39  ;;  %v1047_v60 = vmul.f32 1.442695, %v1037_v41 }
 0x349   :  { %v10577_v49 = vpop.eup %9951 }
 0x34a   :  { %v1043_v37 = vmul.f32 1.442695, %v1035_v47  ;;  %9953 = vpow2.f32 %v1047_v60  ;;  %v1071_v42 = vsel %vm1010_vm3, %v10577_v49, 0.0 }
 0x34b   :  { %1072 = vadd.xlane.f32.xlu2 %v1071_v42 }
 0x34c   :  { %9955 = vpow2.f32 %v1043_v37 }
 0x34f   :  { %v1028_v43 = vpop.xlane.xlu2 %1027  ;;  %v1016_v44 = vpop.xlane.xlu0 %1015 }
 0x350   :  { %v1036_v40 = vsub.f32 %v903_v18, %v1016_v44  ;;  %v10581_v25 = vpop.eup %9953  ;;  %v1040_v19 = vsub.f32 %v973_v14, %v1028_v43  ;;  %v9789_v43 = vunpack.i.l.bf16 %v10575_v5 }
 0x351   :  { %v1065_v52 = vsel %vm1010_vm3, %v10581_v25, 0.0 }
 0x352   :  { %v10583_v48 = vpop.eup %9955  ;;  %v1045_v51 = vmul.f32 1.442695, %v1036_v40  ;;  %v1053_v58 = vmul.f32 1.442695, %v1040_v19 }
 0x353   :  { %v1059_v56 = vsel %vm1010_vm3, %v10583_v48, 0.0  ;;  %1066 = vadd.xlane.f32.xlu2 %v1065_v52 }
 0x354   :  { %1060 = vadd.xlane.f32.xlu1 %v1059_v56  ;;  %9957 = vpow2.f32 %v1045_v51 }
 0x355   :  { %9959 = vpow2.f32 %v1053_v58 }
 0x357   :  { %v1022_v61 = vpop.xlane.xlu2 %1021 }
 0x358   :  { %v1038_v3 = vsub.f32 %v938_v59, %v1022_v61 }
 0x35a   :  { %v10589_v2 = vpop.eup %9957  ;;  %v1049_v22 = vmul.f32 1.442695, %v1038_v3  ;;  %v707_v3 = vrot.slane %v9789_v43, 4 }
 0x35b   :  { %v1062_v38 = vsel %vm1010_vm3, %v10589_v2, 0.0  ;;  %v10593_v6 = vpop.eup %9959 }
 0x35c   :  { %1063 = vadd.xlane.f32.xlu0 %v1062_v38  ;;  %9961 = vpow2.f32 %v1049_v22  ;;  %v1074_v1 = vsel %vm1010_vm3, %v10593_v6, 0.0 }
 0x35f   :  { %v1034_v11 = vpop.xlane.xlu1 %1033  ;;  %v1031_v50 = vpop.xlane.xlu2 %1030 }
 0x360   :  { %v1041_v17 = vsub.f32 %v1005_v27, %v1031_v50  ;;  %v1042_v7 = vsub.f32 %v1008_v28, %v1034_v11 }
 0x362   :  { %v1055_v4 = vmul.f32 1.442695, %v1041_v17  ;;  %v10595_v8 = vpop.permute.xlu0 %9802  ;;  %v1057_v46 = vmul.f32 1.442695, %v1042_v7  ;;  %v10601_v14 = vpop.eup %9961 }
 0x363   :  { %v9805_v45 = vunpack.i.h.bf16 %v10595_v8  ;;  %v1068_v28 = vsel %vm1010_vm3, %v10601_v14, 0.0  ;;  %v9804_v44 = vunpack.i.l.bf16 %v10595_v8 }
 0x364   :  { %9963 = vpow2.f32 %v1055_v4  ;;  %1075 = vadd.xlane.f32.xlu0 %v1074_v1 }
 0x365   :  { %v661_v0 = vrot.slane %v9805_v45, 4  ;;  %9965 = vpow2.f32 %v1057_v46  ;;  %v717_v38 = vrot.slane %v9804_v44, 4 }
 0x367   :  { %v9798_v57 = vpop.permute.xlu2 %9797 }
 0x368   :  { %v9800_v10 = vunpack.i.h.bf16 %v9798_v57  ;;  %v9799_v12 = vunpack.i.l.bf16 %v9798_v57 }
 0x36a   :  { %v649_v15 = vrot.slane %v9800_v10, 4  ;;  %v652_v18 = vsel %vm147_vm1, %v9800_v10, %v651_v9  ;;  %v662_v20 = vsel %vm147_vm1, %v661_v0, %v9799_v12  ;;  %v663_v21 = vrot.slane %v9799_v12, 4  ;;  %v10605_v34 = vpop.eup %9963 }
 0x36b   :  { %v660_v59 = vperm.slane %v652_v18, %v10322_v53  ;;  %v668_v23 = vperm.slane %v662_v20, %v10322_v53  ;;  %v1077_v63 = vsel %vm1010_vm3, %v10605_v34, 0.0  ;;  %v10617_v31 = vpop.eup %9965 }
 0x36c   :  { %v650_v24 = vsel %vm147_vm1, %v649_v15, %v9790_v54  ;;  %v664_v27 = vsel %vm147_vm1, %v9805_v45, %v663_v21  ;;  %1078 = vadd.xlane.f32.xlu1 %v1077_v63  ;;  %1069 = vadd.xlane.f32.xlu0 %v1068_v28  ;;  %v1080_v40 = vsel %vm1010_vm3, %v10617_v31, 0.0 }
 0x36d   :  { %v656_v33 = vperm.slane %v650_v24, %v10322_v53  ;;  %v687_v55 = vrot.slane %v660_v59, 4  ;;  %v672_v29 = vperm.slane %v664_v27, %v10322_v53  ;;  %v673_v16 = vrot.slane %v668_v23, 4 }
 0x36f   :  { %v675_v32 = vrot.slane %v656_v33, 4  ;;  %v685_v13 = vrot.slane %v672_v29, 4  ;;  %v688_v36 = vsel %vm147_vm1, %v672_v29, %v687_v55  ;;  %v674_v39 = vsel %vm147_vm1, %v673_v16, %v656_v33 }
 0x370   :  { %v696_v35 = vperm.slane %v688_v36, %v10327_v62  ;;  %v680_v51 = vperm.slane %v674_v39, %v10327_v62 }
 0x371   :  { %v676_v41 = vsel %vm147_vm1, %v668_v23, %v675_v32  ;;  %v686_v47 = vsel %vm147_vm1, %v685_v13, %v660_v59 }
 0x372   :  { %v684_v60 = vperm.slane %v676_v41, %v10327_v62  ;;  %v692_v37 = vperm.slane %v686_v47, %v10327_v62  ;;  %v703_v42 = vrot.slane %v696_v35, 4  ;;  %v697_v17 = vrot.slane %v680_v51, 4 }
 0x374   :  { %v699_v52 = vrot.slane %v684_v60, 4  ;;  %v701_v19 = vrot.slane %v692_v37, 4  ;;  %v704_v56 = vsel %vm147_vm1, 0.0, %v703_v42  ;;  %1081 = vadd.xlane.f32.xlu1 %v1080_v40  ;;  %v772_v61 = vsel %vm147_vm1, %v703_v42, %v692_v37 }
 0x375   :  { %v777_v5 = vrot.slane %v704_v56, 4  ;;  %v776_v8 = vperm.slane %v772_v61, %v10322_v53  ;;  %v698_v15 = vsel %vm147_vm1, 0.0, %v697_v17 }
 0x376   :  { %v700_v58 = vsel %vm147_vm1, 0.0, %v699_v52  ;;  %v702_v7 = vsel %vm147_vm1, 0.0, %v701_v19  ;;  %v761_v23 = vsel %vm147_vm1, %v699_v52, %v680_v51 }
 0x377   :  { %v9793_v22 = vpop.permute.xlu1 %9792  ;;  %v766_v4 = vrot.slane %v700_v58, 4  ;;  %v778_v9 = vsel %vm147_vm1, %v777_v5, %v702_v7  ;;  %v797_v63 = vrot.slane %v776_v8, 4  ;;  %v765_v35 = vperm.slane %v761_v23, %v10322_v53 }
 0x378   :  { %v9795_v11 = vunpack.i.h.bf16 %v9793_v22  ;;  %v9794_v50 = vunpack.i.l.bf16 %v9793_v22  ;;  %v782_v27 = vperm.slane %v778_v9, %v10322_v53 }
 0x379   :  { %v767_v24 = vsel %vm147_vm1, %v766_v4, %v698_v15  ;;  %v785_v56 = vrot.slane %v765_v35, 4 }
 0x37a   :  { %v705_v45 = vrot.slane %v9795_v11, 4  ;;  %v708_v54 = vsel %vm147_vm1, %v9795_v11, %v707_v3  ;;  %v718_v1 = vsel %vm147_vm1, %v717_v38, %v9794_v50  ;;  %v719_v46 = vrot.slane %v9794_v50, 4 }
 0x37b   :  { %v716_v0 = vperm.slane %v708_v54, %v10322_v53  ;;  %v724_v57 = vperm.slane %v718_v1, %v10322_v53  ;;  %v771_v39 = vperm.slane %v767_v24, %v10322_v53  ;;  %v798_v37 = vsel %vm147_vm1, %v782_v27, %v797_v63 }
 0x37c   :  { %v706_v10 = vsel %vm147_vm1, %v705_v45, %v9789_v43  ;;  %v720_v12 = vsel %vm147_vm1, %v9804_v44, %v719_v46  ;;  %v795_v42 = vrot.slane %v782_v27, 4  ;;  %v806_v17 = vperm.slane %v798_v37, %v10327_v62 }
 0x37d   :  { %v712_v18 = vperm.slane %v706_v10, %v10322_v53  ;;  %v743_v20 = vrot.slane %v716_v0, 4  ;;  %v728_v21 = vperm.slane %v720_v12, %v10322_v53  ;;  %v729_v59 = vrot.slane %v724_v57, 4 }
 0x37e   :  { %v783_v58 = vrot.slane %v771_v39, 4  ;;  %v796_v54 = vsel %vm147_vm1, %v795_v42, %v776_v8 }
 0x37f   :  { %v731_v28 = vrot.slane %v712_v18, 4  ;;  %v730_v33 = vsel %vm147_vm1, %v729_v59, %v712_v18  ;;  %v741_v55 = vrot.slane %v728_v21, 4  ;;  %v744_v29 = vsel %vm147_vm1, %v728_v21, %v743_v20 }
 0x380   :  { %v736_v16 = vperm.slane %v730_v33, %v10327_v62  ;;  %v752_v32 = vperm.slane %v744_v29, %v10327_v62  ;;  %v784_v12 = vsel %vm147_vm1, %v783_v58, %v765_v35  ;;  %v811_v18 = vrot.slane %v806_v17, 4 }
 0x381   :  { %v732_v13 = vsel %vm147_vm1, %v724_v57, %v731_v28  ;;  %v742_v36 = vsel %vm147_vm1, %v741_v55, %v716_v0  ;;  %v786_v0 = vsel %vm147_vm1, %v771_v39, %v785_v56  ;;  %v802_v20 = vperm.slane %v796_v54, %v10327_v62 }
 0x382   :  { %v740_v41 = vperm.slane %v732_v13, %v10327_v62  ;;  %v748_v47 = vperm.slane %v742_v36, %v10327_v62  ;;  %v759_v60 = vrot.slane %v752_v32, 4  ;;  %v753_v43 = vrot.slane %v736_v16, 4 }
 0x383   :  { %v794_v23 = vperm.slane %v786_v0, %v10327_v62  ;;  %v790_v28 = vperm.slane %v784_v12, %v10327_v62  ;;  %v807_v32 = vrot.slane %v802_v20, 4 }
 0x384   :  { %v755_v44 = vrot.slane %v740_v41, 4  ;;  %v757_v40 = vrot.slane %v748_v47, 4  ;;  %v760_v51 = vsel %vm147_vm1, 0.0, %v759_v60  ;;  %v826_v19 = vsel %vm147_vm1, %v759_v60, %v748_v47 }
 0x385   :  { %v831_v52 = vrot.slane %v760_v51, 4  ;;  %v830_v22 = vperm.slane %v826_v19, %v10322_v53  ;;  %v754_v7 = vsel %vm147_vm1, 0.0, %v753_v43  ;;  %v812_v35 = vsel %vm147_vm1, %v811_v18, %v794_v23 }
 0x386   :  { %v756_v61 = vsel %vm147_vm1, 0.0, %v755_v44  ;;  %v758_v3 = vsel %vm147_vm1, 0.0, %v757_v40  ;;  %v815_v38 = vsel %vm147_vm1, %v755_v44, %v736_v16  ;;  %v809_v41 = vrot.slane %v790_v28, 4 }
 0x387   :  { %v820_v5 = vrot.slane %v756_v61, 4  ;;  %v819_v11 = vperm.slane %v815_v38, %v10322_v53  ;;  %v832_v50 = vsel %vm147_vm1, %v831_v52, %v758_v3  ;;  %v851_v45 = vrot.slane %v830_v22, 4 }
 0x388   :  { %v836_v4 = vperm.slane %v832_v50, %v10322_v53  ;;  %v813_v47 = vrot.slane %v794_v23, 4  ;;  %v808_v60 = vsel %vm147_vm1, %v807_v32, %v790_v28  ;;  %v810_v43 = vsel %vm147_vm1, %v802_v20, %v809_v41 }
 0x389   :  { %v821_v1 = vsel %vm147_vm1, %v820_v5, %v754_v7  ;;  %v839_v46 = vrot.slane %v819_v11, 4 }
 0x38a   :  { %v825_v57 = vperm.slane %v821_v1, %v10322_v53  ;;  %v852_v9 = vsel %vm147_vm1, %v836_v4, %v851_v45  ;;  %v849_v10 = vrot.slane %v836_v4, 4  ;;  %v814_v44 = vsel %vm147_vm1, %v806_v17, %v813_v47 }
 0x38b   :  { %v860_v15 = vperm.slane %v852_v9, %v10327_v62 }
 0x38c   :  { %v840_v21 = vsel %vm147_vm1, %v825_v57, %v839_v46  ;;  %v837_v8 = vrot.slane %v825_v57, 4  ;;  %v850_v59 = vsel %vm147_vm1, %v849_v10, %v830_v22 }
 0x38d   :  { %v848_v24 = vperm.slane %v840_v21, %v10327_v62  ;;  %v865_v27 = vrot.slane %v860_v15, 4  ;;  %v856_v63 = vperm.slane %v850_v59, %v10327_v62 }
 0x38e   :  { %v838_v33 = vsel %vm147_vm1, %v837_v8, %v819_v11 }
 0x38f   :  { %v866_v55 = vsel %vm147_vm1, %v865_v27, %v848_v24  ;;  %v844_v29 = vperm.slane %v838_v33, %v10327_v62  ;;  %v861_v16 = vrot.slane %v856_v63, 4  ;;  %v867_v13 = vrot.slane %v848_v24, 4 }
 0x390   :  { %1177 = vmatpush.msra.mxu2 %v866_v55 }
 0x391   :  { %v862_v36 = vsel %vm147_vm1, %v861_v16, %v844_v29  ;;  %v863_v39 = vrot.slane %v844_v29, 4  ;;  %v868_v42 = vsel %vm147_vm1, %v860_v15, %v867_v13 }
 0x392   :  { %1119 = vmatpush.msra.mxu3 %v862_v36  ;;  %1178 = vmatpush.msra.mxu2 %v812_v35 }
 0x393   :  { %v864_v37 = vsel %vm147_vm1, %v856_v63, %v863_v39 }
 0x394   :  { %1120 = vmatpush.msra.mxu3 %v808_v60  ;;  %1148 = vmatpush.msra.mxu1 %v864_v37 }
 0x396   :  { %1206 = vmatpush.msrb.mxu3 %v868_v42  ;;  %1149 = vmatpush.msra.mxu1 %v810_v43 }
 0x398   :  { %1207 = vmatpush.msrb.mxu3 %v814_v44 }
 0x3be   :  { %v1073_v40 = vpop.xlane.xlu2 %1072 }
 0x3bf   :  { %9967 = vrcp.f32 %v1073_v40 }
 0x3c5   :  { %v9968_v51 = vpop.eup %9967 }
 0x3c6   :  { %v1095_v52 = vmul.f32 %v9968_v51, %v10577_v49  ;;  %v1067_v56 = vpop.xlane.xlu2 %1066 }
 0x3c7   :  { %v1061_v19 = vpop.xlane.xlu1 %1060 }
 0x3c8   :  { %9969 = vrcp.f32 %v1061_v19  ;;  %9598 = vmatmul.msk.f32.vlgmr.msra.gmra.mxu2 %vm1010_vm3, %v1095_v52 }
 0x3c9   :  { %9971 = vrcp.f32 %v1067_v56 }
 0x3ce   :  { %v9970_v58 = vpop.eup %9969 }
 0x3cf   :  { %v9972_v61 = vpop.eup %9971  ;;  %v1091_v3 = vmul.f32 %v9970_v58, %v10583_v48  ;;  %v1064_v22 = vpop.xlane.xlu0 %1063 }
 0x3d0   :  { %v1093_v38 = vmul.f32 %v9972_v61, %v10581_v25  ;;  %9973 = vrcp.f32 %v1064_v22 }
 0x3d1   :  { %9594 = vmatmul.msk.f32.vlgmr.msra.gmra.mxu3 %vm1010_vm3, %v1091_v3 }
 0x3d2   :  { %9596 = vmatmul.msk.f32.vlgmr.msra.gmra.mxu1 %vm1010_vm3, %v1093_v38 }
 0x3d6   :  { %v9974_v5 = vpop.eup %9973 }
 0x3d7   :  { %v1076_v49 = vpop.xlane.xlu0 %1075  ;;  %v1092_v11 = vmul.f32 %v9974_v5, %v10589_v2 }
 0x3d8   :  { %9975 = vrcp.f32 %v1076_v49 }
 0x3d9   :  { %9595 = vmatmul.msk.f32.gmra.mxu3 %vm1010_vm3, %v1092_v11 }
 0x3de   :  { %v9976_v50 = vpop.eup %9975 }
 0x3df   :  { %v1079_v17 = vpop.xlane.xlu1 %1078  ;;  %v1070_v7 = vpop.xlane.xlu0 %1069  ;;  %v1096_v48 = vmul.f32 %v9976_v50, %v10593_v6 }
 0x3e0   :  { %9977 = vrcp.f32 %v1079_v17 }
 0x3e1   :  { %9979 = vrcp.f32 %v1070_v7  ;;  %9599 = vmatmul.msk.f32.gmra.mxu2 %vm1010_vm3, %v1096_v48 }
 0x3e6   :  { %v9978_v25 = vpop.eup %9977 }
 0x3e7   :  { %v9980_v4 = vpop.eup %9979  ;;  %v1097_v45 = vmul.f32 %v9978_v25, %v10605_v34  ;;  %v1082_v54 = vpop.xlane.xlu1 %1081 }
 0x3e8   :  { %9981 = vrcp.f32 %v1082_v54  ;;  %v1094_v2 = vmul.f32 %v9980_v4, %v10601_v14 }
 0x3e9   :  { %9600 = vmatmul.msk.f32.vlgmr.msrb.gmra.mxu3 %vm1010_vm3, %v1097_v45 }
 0x3ea   :  { %9597 = vmatmul.msk.f32.gmra.mxu1 %vm1010_vm3, %v1094_v2 }
 0x3ee   :  { %v9982_v1 = vpop.eup %9981 }
 0x3ef   :  { %v1098_v46 = vmul.f32 %v9982_v1, %v10617_v31 }
 0x3f1   :  { %9601 = vmatmul.msk.f32.gmra.mxu3 %vm1010_vm3, %v1098_v46 }
 0x44b   :  { %v1180_v0 = vpop.f32.mrf.mxu2 }
 0x44c   :  { %v1215_v10 = vrot.slane %v1180_v0, 4 }
 0x44f   :  { %v1151_v15 = vpop.f32.mrf.mxu1 }
 0x450   :  { %v1229_v8 = vrot.slane %v1151_v15, 4 }
 0x454   :  { %v1122_v6 = vpop.f32.mrf.mxu3 }
 0x455   :  { %v1217_v57 = vrot.slane %v1122_v6, 4  ;;  %v1216_v14 = vsel %vm147_vm1, %v1215_v10, %v1122_v6 }
 0x456   :  { %v1222_v31 = vperm.slane %v1216_v14, %v10322_v53 }
 0x457   :  { %v1218_v34 = vsel %vm147_vm1, %v1180_v0, %v1217_v57 }
 0x458   :  { %v1226_v20 = vperm.slane %v1218_v34, %v10322_v53  ;;  %v1241_v55 = vrot.slane %v1222_v31, 4 }
 0x45a   :  { %v1253_v28 = vrot.slane %v1226_v20, 4 }
 0x45c   :  { %v1125_v9 = vpop.f32.mrf.mxu3 }
 0x45d   :  { %v1273_v21 = vrot.slane %v1125_v9, 4 }
 0x464   :  { %v1183_v12 = vpop.f32.mrf.mxu2 }
 0x465   :  { %v1271_v18 = vrot.slane %v1183_v12, 4  ;;  %v1274_v59 = vsel %vm147_vm1, %v1183_v12, %v1273_v21 }
 0x466   :  { %v1282_v29 = vperm.slane %v1274_v59, %v10322_v53 }
 0x467   :  { %v1272_v24 = vsel %vm147_vm1, %v1271_v18, %v1125_v9  ;;  %v1154_v39 = vpop.f32.mrf.mxu1 }
 0x468   :  { %v1278_v32 = vperm.slane %v1272_v24, %v10322_v53  ;;  %v1309_v51 = vrot.slane %v1282_v29, 4  ;;  %v1285_v52 = vrot.slane %v1154_v39, 4 }
 0x46a   :  { %v1297_v40 = vrot.slane %v1278_v32, 4 }
 0x46c   :  { %v1209_v23 = vpop.f32.mrf.mxu3 }
 0x46d   :  { %v1227_v27 = vrot.slane %v1209_v23, 4  ;;  %v1230_v63 = vsel %vm147_vm1, %v1209_v23, %v1229_v8 }
 0x46e   :  { %v1238_v33 = vperm.slane %v1230_v63, %v10322_v53 }
 0x46f   :  { %v1228_v16 = vsel %vm147_vm1, %v1227_v27, %v1151_v15 }
 0x470   :  { %v1234_v13 = vperm.slane %v1228_v16, %v10322_v53  ;;  %v1251_v36 = vrot.slane %v1238_v33, 4  ;;  %v1254_v35 = vsel %vm147_vm1, %v1238_v33, %v1253_v28 }
 0x471   :  { %v1262_v41 = vperm.slane %v1254_v35, %v10327_v62 }
 0x472   :  { %v1239_v47 = vrot.slane %v1234_v13, 4  ;;  %v1242_v60 = vsel %vm147_vm1, %v1234_v13, %v1241_v55  ;;  %v1252_v37 = vsel %vm147_vm1, %v1251_v36, %v1226_v20 }
 0x473   :  { %v1250_v42 = vperm.slane %v1242_v60, %v10327_v62  ;;  %v1258_v43 = vperm.slane %v1252_v37, %v10327_v62  ;;  %v1269_v44 = vrot.slane %v1262_v41, 4 }
 0x474   :  { %v1240_v19 = vsel %vm147_vm1, %v1239_v47, %v1222_v31  ;;  %v1212_v56 = vpop.f32.mrf.mxu3 }
 0x475   :  { %v1246_v58 = vperm.slane %v1240_v19, %v10327_v62  ;;  %v1265_v61 = vrot.slane %v1250_v42, 4  ;;  %v1267_v3 = vrot.slane %v1258_v43, 4  ;;  %v1270_v38 = vsel %vm147_vm1, 0.0, %v1269_v44 }
 0x476   :  { %v1338_v22 = vsel %vm147_vm1, %v1269_v44, %v1258_v43  ;;  %v1343_v5 = vrot.slane %v1270_v38, 4  ;;  %v1283_v49 = vrot.slane %v1212_v56, 4  ;;  %v1286_v11 = vsel %vm147_vm1, %v1212_v56, %v1285_v52 }
 0x477   :  { %v1266_v50 = vsel %vm147_vm1, 0.0, %v1265_v61  ;;  %v1268_v17 = vsel %vm147_vm1, 0.0, %v1267_v3  ;;  %v1294_v7 = vperm.slane %v1286_v11, %v10322_v53  ;;  %v1263_v48 = vrot.slane %v1246_v58, 4 }
 0x478   :  { %v1284_v25 = vsel %vm147_vm1, %v1283_v49, %v1154_v39  ;;  %v1327_v4 = vsel %vm147_vm1, %v1265_v61, %v1246_v58  ;;  %v1332_v45 = vrot.slane %v1266_v50, 4  ;;  %v1342_v54 = vperm.slane %v1338_v22, %v10322_v53 }
 0x479   :  { %v1290_v2 = vperm.slane %v1284_v25, %v10322_v53  ;;  %v1307_v1 = vrot.slane %v1294_v7, 4  ;;  %v1310_v46 = vsel %vm147_vm1, %v1294_v7, %v1309_v51  ;;  %v1264_v6 = vsel %vm147_vm1, 0.0, %v1263_v48 }
 0x47a   :  { %v1318_v0 = vperm.slane %v1310_v46, %v10327_v62  ;;  %v1331_v57 = vperm.slane %v1327_v4, %v10322_v53  ;;  %v1333_v9 = vsel %vm147_vm1, %v1332_v45, %v1264_v6  ;;  %v1344_v10 = vsel %vm147_vm1, %v1343_v5, %v1268_v17 }
 0x47b   :  { %v1295_v12 = vrot.slane %v1290_v2, 4  ;;  %v1298_v34 = vsel %vm147_vm1, %v1290_v2, %v1297_v40  ;;  %v1308_v15 = vsel %vm147_vm1, %v1307_v1, %v1282_v29  ;;  %v1337_v14 = vperm.slane %v1333_v9, %v10322_v53 }
 0x47c   :  { %v1306_v18 = vperm.slane %v1298_v34, %v10327_v62  ;;  %v1314_v20 = vperm.slane %v1308_v15, %v10327_v62  ;;  %v1325_v21 = vrot.slane %v1318_v0, 4  ;;  %v1348_v8 = vperm.slane %v1344_v10, %v10322_v53 }
 0x47d   :  { %v1296_v31 = vsel %vm147_vm1, %v1295_v12, %v1278_v32  ;;  %v1351_v59 = vrot.slane %v1331_v57, 4  ;;  %v1363_v23 = vrot.slane %v1342_v54, 4  ;;  %v1349_v24 = vrot.slane %v1337_v14, 4 }
 0x47e   :  { %v1302_v27 = vperm.slane %v1296_v31, %v10327_v62  ;;  %v1321_v63 = vrot.slane %v1306_v18, 4  ;;  %v1323_v28 = vrot.slane %v1314_v20, 4  ;;  %v1326_v33 = vsel %vm147_vm1, 0.0, %v1325_v21  ;;  %v90_v31 = vld [vmem:[#allocation2 + $0x1f0] sm:$0xff] }
 0x47f   :  { %v1397_v55 = vrot.slane %v1326_v33, 4  ;;  %v1352_v29 = vsel %vm147_vm1, %v1337_v14, %v1351_v59  ;;  %v1364_v16 = vsel %vm147_vm1, %v1348_v8, %v1363_v23  ;;  %v1350_v13 = vsel %vm147_vm1, %v1349_v24, %v1331_v57  ;;  %v89_v59 = vld [vmem:[#allocation2 + $0x1e8] sm:$0xff]  ;;  %v88_v23 = vld [vmem:[#allocation2 + $0x1e0] sm:$0xff] }
 0x480   :  { %v1319_v36 = vrot.slane %v1302_v27, 4  ;;  %v1322_v35 = vsel %vm147_vm1, 0.0, %v1321_v63  ;;  %v1360_v32 = vperm.slane %v1352_v29, %v10327_v62  ;;  %v1372_v39 = vperm.slane %v1364_v16, %v10327_v62 }
 0x481   :  { %v1386_v41 = vrot.slane %v1322_v35, 4  ;;  %v1356_v47 = vperm.slane %v1350_v13, %v10327_v62  ;;  %v1361_v60 = vrot.slane %v1348_v8, 4  ;;  %v1324_v37 = vsel %vm147_vm1, 0.0, %v1323_v28  ;;  %v91_v8 = vld [vmem:[#allocation2 + $0x1f8] sm:$0xff] }
 0x482   :  { %v1377_v42 = vrot.slane %v1372_v39, 4  ;;  %v1379_v43 = vrot.slane %v1360_v32, 4  ;;  %v1320_v44 = vsel %vm147_vm1, 0.0, %v1319_v36  ;;  %v1381_v40 = vsel %vm147_vm1, %v1321_v63, %v1302_v27  ;;  %1485 = vmatpush.msrb.mxu0 %v91_v8 }
 0x483   :  { %v1362_v51 = vsel %vm147_vm1, %v1361_v60, %v1342_v54  ;;  %v1375_v52 = vrot.slane %v1356_v47, 4  ;;  %v1385_v19 = vperm.slane %v1381_v40, %v10322_v53  ;;  %v1387_v56 = vsel %vm147_vm1, %v1386_v41, %v1320_v44 }
 0x484   :  { %v1378_v58 = vsel %vm147_vm1, %v1377_v42, %v1360_v32  ;;  %v1380_v61 = vsel %vm147_vm1, %v1372_v39, %v1379_v43  ;;  %v1368_v3 = vperm.slane %v1362_v51, %v10327_v62  ;;  %v1391_v38 = vperm.slane %v1387_v56, %v10322_v53  ;;  %1486 = vmatpush.msrb.mxu0 %v90_v31  ;;  %v9908_v39 = vld [vmem:[#allocation2 + $0x200] ss:$0 sm:$0xff] }
 0x485   :  { %1445 = vrot.lane.b32.xlu1 %v1378_v58, %s10233_s24  ;;  %1453 = vrot.lane.b32.xlu0 %v1380_v61, %s10234_s25  ;;  %v1392_v22 = vsel %vm147_vm1, %v1325_v21, %v1314_v20  ;;  %v1398_v5 = vsel %vm147_vm1, %v1397_v55, %v1324_v37  ;;  %v1405_v49 = vrot.slane %v1385_v19, 4  ;;  %v10235_v51 = vmov 32.0  }
 0x486   :  { %v1373_v11 = vrot.slane %v1368_v3, 4  ;;  %v1376_v50 = vsel %vm147_vm1, %v1368_v3, %v1375_v52  ;;  %v1396_v17 = vperm.slane %v1392_v22, %v10322_v53  ;;  %v1402_v7 = vperm.slane %v1398_v5, %v10322_v53  ;;  %1487 = vmatpush.msrb.mxu0 %v89_v59  ;;  %v9910_v59 = vld [vmem:[#allocation2 + $0x210] ss:$0 sm:$0xff] }
 0x487   :  { %1437 = vrot.lane.b32.xlu2 %v1376_v50, %s10225_s15  ;;  %v1406_v48 = vsel %vm147_vm1, %v1391_v38, %v1405_v49  ;;  %v1403_v25 = vrot.slane %v1391_v38, 4  ;;  %9983 = vrcp.f32 %v10235_v51 }
 0x488   :  { %v1414_v4 = vperm.slane %v1406_v48, %v10327_v62  ;;  %v1417_v45 = vrot.slane %v1396_v17, 4  ;;  %v1415_v54 = vrot.slane %v1402_v7, 4  ;;  %v1374_v2 = vsel %vm147_vm1, %v1373_v11, %v1356_v47  ;;  %1488 = vmatpush.msrb.mxu0 %v88_v23  ;;  %v1560_v48 = vld [vmem:[#allocation2 + $0x230] sm:$0xff] }
 0x489   :  { %v1404_v1 = vsel %vm147_vm1, %v1403_v25, %v1385_v19  ;;  %1581 = vmatpush.msrb.mxu1 %v1560_v48  ;;  %v1559_v25 = vld [vmem:[#allocation2 + $0x228] sm:$0xff] }
 0x48a   :  { %v1418_v46 = vsel %vm147_vm1, %v1402_v7, %v1417_v45  ;;  %v1433_v6 = vrot.slane %v1414_v4, 4  ;;  %v1410_v0 = vperm.slane %v1404_v1, %v10327_v62  ;;  %v1416_v57 = vsel %vm147_vm1, %v1415_v54, %v1396_v17  ;;  %v1557_v45 = vld [vmem:[#allocation2 + $0x218] sm:$0xff] }
 0x48b   :  { %v1426_v9 = vperm.slane %v1418_v46, %v10327_v62  ;;  %v1422_v10 = vperm.slane %v1416_v57, %v10327_v62  ;;  %1582 = vmatpush.msrb.mxu1 %v1559_v25  ;;  %v1597_v46 = vld [vmem:[#allocation2 + $0x258] sm:$0xff]  ;;  %v1686_v25 = vld [vmem:[#allocation2 + $0x290] sm:$0xff] }
 0x48c   :  { %v1429_v12 = vrot.slane %v1410_v0, 4  ;;  %1618 = vmatpush.msrb.mxu2 %v1597_v46  ;;  %1712 = vmatpush.msra.mxu3 %v1686_v25 }
 0x48d   :  { %v1434_v34 = vsel %vm147_vm1, %v1426_v9, %v1433_v6  ;;  %v1431_v15 = vrot.slane %v1426_v9, 4  ;;  %v1427_v14 = vrot.slane %v1422_v10, 4  ;;  %v9984_v52 = vpop.eup %9983 }
 0x48e   :  { %1455 = vrot.lane.b32.xlu1 %v1434_v34, %s10234_s25  ;;  %v1430_v18 = vsel %vm147_vm1, %v1422_v10, %v1429_v12  ;;  %v1507_v19 = vmul.f32 32.0, %v9984_v52  ;;  %vm1511_vm5 = vweird.f32 %v9984_v52 }
 0x48f   :  { %v1432_v20 = vsel %vm147_vm1, %v1431_v15, %v1414_v4  ;;  %1439 = vrot.lane.b32.xlu2 %v1430_v18, %s10225_s15  ;;  %v1428_v21 = vsel %vm147_vm1, %v1427_v14, %v1410_v0  ;;  %v1558_v4 = vld [vmem:[#allocation2 + $0x220] sm:$0xff]  ;;  %v9909_v18 = vld [vmem:[#allocation2 + $0x208] ss:$0 sm:$0xff] }
 0x490   :  { %1447 = vrot.lane.b32.xlu0 %v1432_v20, %s10233_s24  ;;  %v1508_v56 = vsub.f32 1.0, %v1507_v19  ;;  %1583 = vmatpush.msrb.mxu1 %v1558_v4  ;;  %v1685_v4 = vld [vmem:[#allocation2 + $0x288] sm:$0xff] }
 0x491   :  { %1713 = vmatpush.msra.mxu3 %v1685_v4 }
 0x492   :  { %v1509_v58 = vmul.f32 %v9984_v52, %v1508_v56  ;;  %1584 = vmatpush.msrb.mxu1 %v1557_v45  ;;  %v1684_v45 = vld [vmem:[#allocation2 + $0x280] sm:$0xff] }
 0x493   :  { %1714 = vmatpush.msra.mxu3 %v1684_v45 }
 0x494   :  { %v1510_v61 = vadd.f32 %v9984_v52, %v1509_v58 }
 0x496   :  { %v10809_v3 = vsel %vm1511_vm5, %v9984_v52, %v1510_v61 }
 0x4e1   :  { %v1438_v24 = vpop.permute.xlu2 %1437 }
 0x4e2   :  { %v1459_v27 = vsel %vm869_vm2, %v1374_v2, %v1438_v24 }
 0x4e9   :  { %v1440_v29 = vpop.permute.xlu2 %1439 }
 0x4ea   :  { %v1460_v13 = vsel %vm869_vm2, %v1428_v21, %v1440_v29 }
 0x4f7   :  { %v1446_v63 = vpop.permute.xlu1 %1445  ;;  %v1454_v28 = vpop.permute.xlu0 %1453 }
 0x4f8   :  { %v1461_v33 = vsel %vm1010_vm3, %v1459_v27, %v1446_v63 }
 0x4f9   :  { %v1464_v55 = vsel %vm1463_vm4, %v1461_v33, %v1454_v28 }
 0x4fa   :  { %9602 = vmatmul.msk.f32.vlgmr.msrb.gmra.mxu0 %vm94_vm0, %v1464_v55 }
 0x500   :  { %v1456_v16 = vpop.permute.xlu1 %1455 }
 0x502   :  { %v1448_v36 = vpop.permute.xlu0 %1447 }
 0x503   :  { %v1462_v35 = vsel %vm1010_vm3, %v1460_v13, %v1448_v36  ;;  %v1596_v36 = vld [vmem:[#allocation2 + $0x250] sm:$0xff] }
 0x504   :  { %v1465_v32 = vsel %vm1463_vm4, %v1462_v35, %v1456_v16  ;;  %v1595_v35 = vld [vmem:[#allocation2 + $0x248] sm:$0xff]  ;;  %1619 = vmatpush.msrb.mxu2 %v1596_v36 }
 0x505   :  { %9603 = vmatmul.msk.f32.gmra.mxu0 %vm94_vm0, %v1465_v32  ;;  %v1594_v32 = vld [vmem:[#allocation2 + $0x240] sm:$0xff] }
 0x506   :  { %1620 = vmatpush.msrb.mxu2 %v1595_v35  ;;  %v9915_v35 = vld [vmem:[#allocation2 + $0x298] ss:$0 sm:$0xff] }
 0x508   :  { %1621 = vmatpush.msrb.mxu2 %v1594_v32 }
 0x577   :  { %v1490_v41 = vpop.f32.mrf.mxu0 }
 0x578   :  { %v1491_v47 = vadd.f32 %v9908_v39, %v1490_v41 }
 0x57a   :  { %v1496_v60 = vadd.f32 %v1491_v47, %v10262_v26 }
 0x57c   :  { %v1500_v37 = vsel %vm94_vm0, %v1496_v60, 0.0 }
 0x57d   :  { %1501 = vadd.xlane.f32.xlu2 %v1500_v37 }
 0x582   :  { %v1493_v42 = vpop.f32.mrf.mxu0 }
 0x583   :  { %v1494_v43 = vadd.f32 %v9908_v39, %v1493_v42  ;;  %v9911_v39 = vld [vmem:[#allocation2 + $0x238] ss:$0 sm:$0xff] }
 0x585   :  { %v1497_v44 = vadd.f32 %v1494_v43, %v10266_v30 }
 0x587   :  { %v1503_v40 = vsel %vm94_vm0, %v1497_v44, 0.0 }
 0x588   :  { %1504 = vadd.xlane.f32.xlu0 %v1503_v40 }
 0x5f0   :  { %v1502_v26 = vpop.xlane.xlu2 %1501 }
 0x5f1   :  { %v1513_v38 = vmul.f32 %v10809_v3, %v1502_v26 }
 0x5f3   :  { %v1515_v22 = vsub.f32 %v1496_v60, %v1513_v38 }
 0x5f5   :  { %v1517_v5 = vmul.f32 %v1515_v22, %v1515_v22 }
 0x5f7   :  { %v1519_v30 = vsel %vm94_vm0, %v1517_v5, 0.0 }
 0x5f8   :  { %1520 = vadd.xlane.f32.xlu1 %v1519_v30 }
 0x5fb   :  { %v1505_v49 = vpop.xlane.xlu0 %1504 }
 0x5fc   :  { %v1514_v11 = vmul.f32 %v10809_v3, %v1505_v49 }
 0x5fe   :  { %v1516_v50 = vsub.f32 %v1497_v44, %v1514_v11  ;;  %v9912_v44 = vld [vmem:[#allocation2 + $0x260] ss:$0 sm:$0xff] }
 0x600   :  { %v1518_v17 = vmul.f32 %v1516_v50, %v1516_v50 }
 0x602   :  { %v1522_v7 = vsel %vm94_vm0, %v1518_v17, 0.0 }
 0x603   :  { %1523 = vadd.xlane.f32.xlu2 %v1522_v7 }
 0x66b   :  { %v1521_v54 = vpop.xlane.xlu1 %1520 }
 0x66c   :  { %v1525_v2 = vmul.f32 %v1521_v54, %v10809_v3  ;;  %v1683_v54 = vld [vmem:[#allocation2 + $0x278] sm:$0xff] }
 0x66d   :  { %1715 = vmatpush.msra.mxu3 %v1683_v54 }
 0x66e   :  { %v1527_v1 = vadd.f32 1e-05, %v1525_v2 }
 0x670   :  { %9985 = vrsqrt.f32 %v1527_v1  ;;  %vm1535_vm7 = vweird.f32 %v1527_v1 }
 0x676   :  { %v9986_v6 = vpop.eup %9985  ;;  %v1524_v0 = vpop.xlane.xlu2 %1523 }
 0x677   :  { %v1530_v57 = vmul.f32 %v9986_v6, %v1527_v1  ;;  %v1526_v9 = vmul.f32 %v1524_v0, %v10809_v3  ;;  %vm1536_vm6 = vweird.f32 %v9986_v6 }
 0x678   :  { %vm1537_vm8 = vmor %vm1535_vm7, %vm1536_vm6 }
 0x679   :  { %v1531_v10 = vmul.f32 %v9986_v6, %v1530_v57  ;;  %v1528_v12 = vadd.f32 1e-05, %v1526_v9 }
 0x67b   :  { %v1532_v34 = vmul.f32 0.5, %v1531_v10  ;;  %9987 = vrsqrt.f32 %v1528_v12  ;;  %vm1545_vm10 = vweird.f32 %v1528_v12 }
 0x67d   :  { %v1533_v15 = vsub.f32 1.5, %v1532_v34 }
 0x67f   :  { %v1534_v14 = vmul.f32 %v9986_v6, %v1533_v15 }
 0x681   :  { %v9988_v20 = vpop.eup %9987  ;;  %v1538_v21 = vsel %vm1537_vm8, %v9986_v6, %v1534_v14 }
 0x682   :  { %v1549_v8 = vmul.f32 %v1538_v21, %v1515_v22  ;;  %v1540_v31 = vmul.f32 %v9988_v20, %v1528_v12  ;;  %vm1546_vm9 = vweird.f32 %v9988_v20 }
 0x683   :  { %vm1547_vm11 = vmor %vm1545_vm10, %vm1546_vm9 }
 0x684   :  { %v1552_v23 = vmul.f32 %v9909_v18, %v1549_v8  ;;  %v1541_v24 = vmul.f32 %v9988_v20, %v1540_v31 }
 0x686   :  { %v1542_v27 = vmul.f32 0.5, %v1541_v24  ;;  %v1555_v63 = vadd.f32 %v9910_v59, %v1552_v23 }
 0x688   :  { %v1543_v28 = vsub.f32 1.5, %v1542_v27  ;;  %9604 = vmatmul.msk.f32.vlgmr.msrb.gmra.mxu1 %vm94_vm0, %v1555_v63 }
 0x68a   :  { %v1544_v33 = vmul.f32 %v9988_v20, %v1543_v28 }
 0x68c   :  { %v1548_v55 = vsel %vm1547_vm11, %v9988_v20, %v1544_v33 }
 0x68d   :  { %v1550_v29 = vmul.f32 %v1548_v55, %v1516_v50 }
 0x68f   :  { %v1553_v16 = vmul.f32 %v9909_v18, %v1550_v29  ;;  %v9913_v18 = vld [vmem:[#allocation2 + $0x268] ss:$0 sm:$0xff] }
 0x691   :  { %v1556_v13 = vadd.f32 %v9910_v59, %v1553_v16  ;;  %v9914_v59 = vld [vmem:[#allocation2 + $0x270] ss:$0 sm:$0xff] }
 0x693   :  { %9605 = vmatmul.msk.f32.gmra.mxu1 %vm94_vm0, %v1556_v13 }
 0x705   :  { %v1586_v41 = vpop.f32.mrf.mxu1 }
 0x706   :  { %v1587_v47 = vadd.f32 %v9911_v39, %v1586_v41 }
 0x708   :  { %v1592_v60 = vmax.f32 %v1587_v47, 0.0 }
 0x70a   :  { %9606 = vmatmul.msk.f32.vlgmr.msrb.gmra.mxu2 %vm94_vm0, %v1592_v60 }
 0x710   :  { %v1589_v37 = vpop.f32.mrf.mxu1 }
 0x711   :  { %v1590_v42 = vadd.f32 %v9911_v39, %v1589_v37 }
 0x713   :  { %v1593_v43 = vmax.f32 %v1590_v42, 0.0 }
 0x715   :  { %9607 = vmatmul.msk.f32.gmra.mxu2 %vm94_vm0, %v1593_v43 }
 0x78d   :  { %v1623_v40 = vpop.f32.mrf.mxu2 }
 0x78e   :  { %v1624_v51 = vadd.f32 %v9912_v44, %v1623_v40 }
 0x790   :  { %v1629_v52 = vadd.f32 %v1624_v51, %v1555_v63 }
 0x792   :  { %v1633_v19 = vsel %vm94_vm0, %v1629_v52, 0.0 }
 0x793   :  { %1634 = vadd.xlane.f32.xlu0 %v1633_v19 }
 0x798   :  { %v1626_v56 = vpop.f32.mrf.mxu2 }
 0x799   :  { %v1627_v58 = vadd.f32 %v9912_v44, %v1626_v56 }
 0x79b   :  { %v1630_v61 = vadd.f32 %v1627_v58, %v1556_v13 }
 0x79d   :  { %v1636_v26 = vsel %vm94_vm0, %v1630_v61, 0.0 }
 0x79e   :  { %1637 = vadd.xlane.f32.xlu1 %v1636_v26 }
 0x806   :  { %v1635_v38 = vpop.xlane.xlu0 %1634 }
 0x807   :  { %v1639_v22 = vmul.f32 %v1635_v38, %v10809_v3 }
 0x809   :  { %v1641_v5 = vsub.f32 %v1629_v52, %v1639_v22 }
 0x80b   :  { %v1643_v30 = vmul.f32 %v1641_v5, %v1641_v5 }
 0x80d   :  { %v1645_v49 = vsel %vm94_vm0, %v1643_v30, 0.0 }
 0x80e   :  { %1646 = vadd.xlane.f32.xlu2 %v1645_v49 }
 0x811   :  { %v1638_v11 = vpop.xlane.xlu1 %1637 }
 0x812   :  { %v1640_v50 = vmul.f32 %v1638_v11, %v10809_v3 }
 0x814   :  { %v1642_v17 = vsub.f32 %v1630_v61, %v1640_v50 }
 0x816   :  { %v1644_v7 = vmul.f32 %v1642_v17, %v1642_v17 }
 0x818   :  { %v1648_v48 = vsel %vm94_vm0, %v1644_v7, 0.0 }
 0x819   :  { %1649 = vadd.xlane.f32.xlu0 %v1648_v48 }
 0x881   :  { %v1647_v2 = vpop.xlane.xlu2 %1646 }
 0x882   :  { %v1651_v1 = vmul.f32 %v1647_v2, %v10809_v3 }
 0x884   :  { %v1653_v46 = vadd.f32 1e-05, %v1651_v1 }
 0x886   :  { %9989 = vrsqrt.f32 %v1653_v46  ;;  %vm1661_vm13 = vweird.f32 %v1653_v46 }
 0x88c   :  { %v9990_v6 = vpop.eup %9989  ;;  %v1650_v0 = vpop.xlane.xlu0 %1649 }
 0x88d   :  { %v1656_v57 = vmul.f32 %v9990_v6, %v1653_v46  ;;  %v1652_v9 = vmul.f32 %v1650_v0, %v10809_v3  ;;  %vm1662_vm12 = vweird.f32 %v9990_v6 }
 0x88e   :  { %vm1663_vm14 = vmor %vm1661_vm13, %vm1662_vm12 }
 0x88f   :  { %v1657_v10 = vmul.f32 %v9990_v6, %v1656_v57  ;;  %v1654_v12 = vadd.f32 1e-05, %v1652_v9 }
 0x891   :  { %v1658_v34 = vmul.f32 0.5, %v1657_v10  ;;  %9991 = vrsqrt.f32 %v1654_v12  ;;  %vm1671_vm5 = vweird.f32 %v1654_v12 }
 0x893   :  { %v1659_v15 = vsub.f32 1.5, %v1658_v34 }
 0x895   :  { %v1660_v14 = vmul.f32 %v9990_v6, %v1659_v15 }
 0x897   :  { %v9992_v20 = vpop.eup %9991  ;;  %v1664_v21 = vsel %vm1663_vm14, %v9990_v6, %v1660_v14 }
 0x898   :  { %v1675_v8 = vmul.f32 %v1664_v21, %v1641_v5  ;;  %v1666_v31 = vmul.f32 %v9992_v20, %v1654_v12  ;;  %vm1672_vm15 = vweird.f32 %v9992_v20 }
 0x899   :  { %vm1673_vm6 = vmor %vm1671_vm5, %vm1672_vm15 }
 0x89a   :  { %v1678_v23 = vmul.f32 %v9913_v18, %v1675_v8  ;;  %v1667_v24 = vmul.f32 %v9992_v20, %v1666_v31 }
 0x89c   :  { %v1668_v27 = vmul.f32 0.5, %v1667_v24  ;;  %v10829_v63 = vadd.f32 %v9914_v59, %v1678_v23 }
 0x89e   :  { %v1669_v28 = vsub.f32 1.5, %v1668_v27  ;;  %9608 = vmatmul.msk.f32.vlgmr.msra.gmra.mxu3 %vm94_vm0, %v10829_v63 }
 0x8a0   :  { %v1670_v33 = vmul.f32 %v9992_v20, %v1669_v28 }
 0x8a2   :  { %v1674_v55 = vsel %vm1673_vm6, %v9992_v20, %v1670_v33 }
 0x8a3   :  { %v1676_v29 = vmul.f32 %v1674_v55, %v1642_v17 }
 0x8a5   :  { %v1679_v16 = vmul.f32 %v9913_v18, %v1676_v29 }
 0x8a7   :  { %v10833_v13 = vadd.f32 %v9914_v59, %v1679_v16 }
 0x8a9   :  { %9609 = vmatmul.msk.f32.gmra.mxu3 %vm94_vm0, %v10833_v13 }
 0x921   :  { %v1717_v36 = vpop.f32.mrf.mxu3 }
 0x922   :  { %v1718_v39 = vadd.f32 %v9915_v35, %v1717_v36 }
 0x924   :  { %v10867_v51 = vmul.f32 0.35355338, %v1718_v39 }
 0x926   :  { %v1747_v9 = vrot.slane %v10867_v51, 4 }
 0x92c   :  { %v1720_v32 = vpop.f32.mrf.mxu3 }
 0x92d   :  { %v1721_v41 = vadd.f32 %v9915_v35, %v1720_v32 }
 0x92f   :  { %1977 = vrot.lane.b32.xlu0 %v1721_v41, %s10227_s20  ;;  %1973 = vrot.lane.b32.xlu2 %v1721_v41, %s10226_s19  ;;  %v9806_v47 = vpack.i.bf16 %v1718_v39, %v1721_v41  ;;  %v10875_v52 = vmul.f32 0.35355338, %v1721_v41 }
 0x930   :  { %1969 = vrot.lane.b32.xlu1 %v1721_v41, %s10228_s21 }
 0x937   :  { %1971 = vrot.lane.b32.xlu0 %v1718_v39, %s10226_s19  ;;  %1975 = vrot.lane.b32.xlu2 %v1718_v39, %s10227_s20 }
 0x938   :  { %1967 = vrot.lane.b32.xlu1 %v1718_v39, %s10228_s21 }
 0x940   :  { %1979 = vrot.lane.b32.xlu1 %v1718_v39, %s10229_s22 }
 0x948   :  { %1981 = vrot.lane.b32.xlu1 %v1721_v41, %s10229_s22 }
 0x989   :  { %v10845_v60 = vpop.permute.xlu2 %1973 }
 0x991   :  { %v10847_v37 = vpop.permute.xlu2 %1975 }
 0x992   :  { %1991 = vrot.lane.b32.xlu0 %v10847_v37, %s10229_s22 }
 0x9a1   :  { %v10851_v42 = vpop.permute.xlu0 %1977 }
 0x9a2   :  { %v10853_v43 = vpop.permute.xlu1 %1969 }
 0x9a3   :  { %1985 = vrot.lane.b32.xlu0 %v10853_v43, %s10229_s22 }
 0x9a9   :  { %v10857_v44 = vpop.permute.xlu0 %1971 }
 0x9aa   :  { %v10859_v40 = vpop.permute.xlu1 %1967  ;;  %1987 = vrot.lane.b32.xlu1 %v10857_v44, %s10229_s22 }
 0x9ab   :  { %1993 = vrot.lane.b32.xlu0 %v10851_v42, %s10229_s22  ;;  %1983 = vrot.lane.b32.xlu2 %v10859_v40, %s10229_s22 }
 0x9b2   :  { %1733 = vrot.lane.b32.xlu1 %v10867_v51, %s10226_s19  ;;  %v1980_v56 = vpop.permute.xlu1 %1979 }
 0x9b3   :  { %1739 = vrot.lane.b32.xlu0 %v10867_v51, %s10227_s20  ;;  %1989 = vrot.lane.b32.xlu2 %v10845_v60, %s10229_s22  ;;  %v2005_v25 = vrot.slane %v1980_v56, 4 }
 0x9ba   :  { %1735 = vrot.lane.b32.xlu1 %v10875_v52, %s10226_s19  ;;  %v1982_v26 = vpop.permute.xlu1 %1981 }
 0x9bb   :  { %1727 = vrot.lane.b32.xlu2 %v10867_v51, %s10228_s21  ;;  %1741 = vrot.lane.b32.xlu0 %v10875_v52, %s10227_s20  ;;  %v2061_v30 = vrot.slane %v1982_v26, 4 }
 0x9c3   :  { %9807 = vrot.lane.b32.xlu0 %v9806_v47, %s10230_s23  ;;  %1729 = vrot.lane.b32.xlu2 %v10875_v52, %s10228_s21 }
 0xa04   :  { %v1992_v58 = vpop.permute.xlu0 %1991 }
 0xa05   :  { %v1984_v19 = vpop.permute.xlu2 %1983  ;;  %v2015_v22 = vrot.slane %v1992_v58, 4 }
 0xa06   :  { %v2017_v38 = vrot.slane %v1984_v19, 4 }
 0xa07   :  { %v2016_v50 = vsel %vm147_vm1, %v2015_v22, %v1984_v19 }
 0xa08   :  { %v2018_v11 = vsel %vm147_vm1, %v1992_v58, %v2017_v38  ;;  %v2022_v4 = vperm.slane %v2016_v50, %v10322_v53 }
 0xa09   :  { %v2026_v7 = vperm.slane %v2018_v11, %v10322_v53 }
 0xa0a   :  { %v2027_v14 = vrot.slane %v2022_v4, 4 }
 0xa0b   :  { %v2039_v10 = vrot.slane %v2026_v7, 4 }
 0xa0d   :  { %v1990_v61 = vpop.permute.xlu2 %1989 }
 0xa0e   :  { %v2059_v49 = vrot.slane %v1990_v61, 4  ;;  %v2062_v17 = vsel %vm147_vm1, %v1990_v61, %v2061_v30 }
 0xa0f   :  { %v2070_v45 = vperm.slane %v2062_v17, %v10322_v53 }
 0xa10   :  { %v2060_v48 = vsel %vm147_vm1, %v2059_v49, %v1982_v26 }
 0xa11   :  { %v2066_v46 = vperm.slane %v2060_v48, %v10322_v53  ;;  %v2097_v18 = vrot.slane %v2070_v45, 4 }
 0xa13   :  { %v2085_v24 = vrot.slane %v2066_v46, 4 }
 0xa15   :  { %v1986_v5 = vpop.permute.xlu0 %1985  ;;  %v10893_v2 = vpop.permute.xlu2 %1727 }
 0xa16   :  { %v2073_v54 = vrot.slane %v1986_v5, 4  ;;  %v1759_v48 = vrot.slane %v10893_v2, 4 }
 0xa1c   :  { %v1988_v1 = vpop.permute.xlu1 %1987 }
 0xa1d   :  { %v1994_v6 = vpop.permute.xlu0 %1993  ;;  %v2003_v0 = vrot.slane %v1988_v1, 4  ;;  %v2006_v57 = vsel %vm147_vm1, %v1988_v1, %v2005_v25 }
 0xa1e   :  { %v2071_v12 = vrot.slane %v1994_v6, 4  ;;  %v2074_v34 = vsel %vm147_vm1, %v1994_v6, %v2073_v54  ;;  %v2014_v15 = vperm.slane %v2006_v57, %v10322_v53 }
 0xa1f   :  { %v2082_v20 = vperm.slane %v2074_v34, %v10322_v53  ;;  %v2004_v21 = vsel %vm147_vm1, %v2003_v0, %v1980_v56 }
 0xa20   :  { %v2072_v8 = vsel %vm147_vm1, %v2071_v12, %v1986_v5  ;;  %v2010_v31 = vperm.slane %v2004_v21, %v10322_v53  ;;  %v2040_v59 = vsel %vm147_vm1, %v2039_v10, %v2014_v15  ;;  %v2041_v23 = vrot.slane %v2014_v15, 4 }
 0xa21   :  { %v2078_v27 = vperm.slane %v2072_v8, %v10322_v53  ;;  %v2095_v28 = vrot.slane %v2082_v20, 4  ;;  %v2098_v33 = vsel %vm147_vm1, %v2082_v20, %v2097_v18  ;;  %v2046_v41 = vperm.slane %v2040_v59, %v10327_v62 }
 0xa22   :  { %v2106_v55 = vperm.slane %v2098_v33, %v10327_v62  ;;  %v2028_v29 = vsel %vm147_vm1, %v2027_v14, %v2010_v31  ;;  %v2029_v16 = vrot.slane %v2010_v31, 4  ;;  %v2042_v36 = vsel %vm147_vm1, %v2026_v7, %v2041_v23  ;;  %v1730_v7 = vpop.permute.xlu2 %1729 }
 0xa23   :  { %v2083_v35 = vrot.slane %v2078_v27, 4  ;;  %v2086_v32 = vsel %vm147_vm1, %v2078_v27, %v2085_v24  ;;  %v2096_v39 = vsel %vm147_vm1, %v2095_v28, %v2070_v45  ;;  %v10918_v38 = vperm.slane %v2028_v29, %v10327_v62 }
 0xa24   :  { %v2094_v47 = vperm.slane %v2086_v32, %v10327_v62  ;;  %v2102_v19 = vperm.slane %v2096_v39, %v10327_v62  ;;  %v2113_v56 = vrot.slane %v2106_v55, 4  ;;  %v2030_v58 = vsel %vm147_vm1, %v2022_v4, %v2029_v16  ;;  %v1734_v61 = vpop.permute.xlu1 %1733 }
 0xa25   :  { %v2084_v26 = vsel %vm147_vm1, %v2083_v35, %v2066_v46  ;;  %v2038_v22 = vperm.slane %v2030_v58, %v10327_v62  ;;  %v2050_v5 = vperm.slane %v2042_v36, %v10327_v62  ;;  %v1740_v30 = vpop.permute.xlu0 %1739  ;;  %v1803_v45 = vrot.slane %v10875_v52, 4 }
 0xa26   :  { %v2090_v49 = vperm.slane %v2084_v26, %v10327_v62  ;;  %v2109_v11 = vrot.slane %v2094_v47, 4  ;;  %v2111_v50 = vrot.slane %v2102_v19, 4  ;;  %v2114_v17 = vsel %vm147_vm1, 0.0, %v2113_v56 }
 0xa27   :  { %v2180_v25 = vsel %vm147_vm1, %v2113_v56, %v2102_v19  ;;  %v2185_v4 = vrot.slane %v2114_v17, 4  ;;  %v10931_v46 = vrot.slane %v2038_v22, 4  ;;  %v2055_v6 = vrot.slane %v2046_v41, 4 }
 0xa28   :  { %v10928_v54 = vsel %vm147_vm1, 0.0, %v2109_v11  ;;  %v2112_v1 = vsel %vm147_vm1, 0.0, %v2111_v50  ;;  %v2107_v0 = vrot.slane %v2090_v49, 4  ;;  %v10934_v57 = vperm.slane %v2180_v25, %v10322_v53 }
 0xa29   :  { %v2051_v10 = vrot.slane %v10918_v38, 4  ;;  %v1815_v12 = vrot.slane %v1730_v7, 4  ;;  %v2057_v34 = vrot.slane %v2050_v5, 4  ;;  %v1757_v15 = vrot.slane %v1740_v30, 4 }
 0xa2a   :  { %v1760_v14 = vsel %vm147_vm1, %v1740_v30, %v1759_v48  ;;  %v1745_v18 = vrot.slane %v1734_v61, 4  ;;  %v2174_v20 = vrot.slane %v10928_v54, 4  ;;  %v10940_v21 = vsel %vm147_vm1, %v2185_v4, %v2112_v1 }
 0xa2b   :  { %v1768_v8 = vperm.slane %v1760_v14, %v10322_v53  ;;  %v1748_v31 = vsel %vm147_vm1, %v1734_v61, %v1747_v9  ;;  %v10946_v59 = vsel %vm147_vm1, 0.0, %v10931_v46  ;;  %v2056_v23 = vsel %vm147_vm1, 0.0, %v2055_v6 }
 0xa2c   :  { %v1758_v24 = vsel %vm147_vm1, %v1757_v15, %v10893_v2  ;;  %v1746_v27 = vsel %vm147_vm1, %v1745_v18, %v10867_v51  ;;  %v1736_v28 = vpop.permute.xlu1 %1735  ;;  %v2058_v33 = vsel %vm147_vm1, 0.0, %v2057_v34  ;;  %v2108_v9 = vsel %vm147_vm1, 0.0, %v2107_v0 }
 0xa2d   :  { %v1764_v55 = vperm.slane %v1758_v24, %v10322_v53  ;;  %v1781_v29 = vrot.slane %v1768_v8, 4  ;;  %v1742_v16 = vpop.permute.xlu0 %1741  ;;  %v1752_v36 = vperm.slane %v1746_v27, %v10322_v53  ;;  %v1756_v35 = vperm.slane %v1748_v31, %v10322_v53 }
 0xa2e   :  { %v1813_v32 = vrot.slane %v1742_v16, 4  ;;  %v1816_v39 = vsel %vm147_vm1, %v1742_v16, %v1815_v12  ;;  %v2126_v2 = vsel %vm147_vm1, %v2057_v34, %v2046_v41  ;;  %v1801_v19 = vrot.slane %v1736_v28, 4 }
 0xa2f   :  { %v1769_v47 = vrot.slane %v1764_v55, 4  ;;  %v1824_v51 = vperm.slane %v1816_v39, %v10322_v53  ;;  %v1771_v56 = vrot.slane %v1752_v36, 4  ;;  %v1782_v58 = vsel %vm147_vm1, %v1781_v29, %v1756_v35 }
 0xa30   :  { %v1783_v61 = vrot.slane %v1756_v35, 4  ;;  %v1814_v26 = vsel %vm147_vm1, %v1813_v32, %v1730_v7  ;;  %v2131_v22 = vrot.slane %v2058_v33, 4  ;;  %v1788_v30 = vperm.slane %v1782_v58, %v10327_v62 }
 0xa31   :  { %v1770_v5 = vsel %vm147_vm1, %v1769_v47, %v1752_v36  ;;  %v1820_v50 = vperm.slane %v1814_v26, %v10322_v53  ;;  %v1772_v17 = vsel %vm147_vm1, %v1764_v55, %v1771_v56  ;;  %v1802_v25 = vsel %vm147_vm1, %v1801_v19, %v10875_v52 }
 0xa32   :  { %v10968_v41 = vperm.slane %v1770_v5, %v10327_v62  ;;  %v1784_v48 = vsel %vm147_vm1, %v1768_v8, %v1783_v61  ;;  %v1780_v4 = vperm.slane %v1772_v17, %v10327_v62  ;;  %v2169_v1 = vsel %vm147_vm1, %v2109_v11, %v2090_v49 }
 0xa33   :  { %v1792_v7 = vperm.slane %v1784_v48, %v10327_v62  ;;  %v1825_v54 = vrot.slane %v1820_v50, 4  ;;  %v10977_v6 = vperm.slane %v2126_v2, %v10322_v53  ;;  %v1837_v0 = vrot.slane %v1824_v51, 4 }
 0xa34   :  { %v1804_v12 = vsel %vm147_vm1, %v1736_v28, %v1803_v45  ;;  %v1808_v34 = vperm.slane %v1802_v25, %v10322_v53  ;;  %v10981_v15 = vrot.slane %v1780_v4, 4  ;;  %v1797_v14 = vrot.slane %v1788_v30, 4 }
 0xa35   :  { %v1799_v18 = vrot.slane %v1792_v7, 4  ;;  %v1812_v52 = vperm.slane %v1804_v12, %v10322_v53  ;;  %v10985_v8 = vsel %vm147_vm1, %v2131_v22, %v2056_v23  ;;  %v1793_v31 = vrot.slane %v10968_v41, 4 }
 0xa36   :  { %v1826_v49 = vsel %vm147_vm1, %v1825_v54, %v1808_v34  ;;  %v1827_v11 = vrot.slane %v1808_v34, 4  ;;  %v10991_v24 = vsel %vm147_vm1, 0.0, %v10981_v15  ;;  %v2175_v28 = vsel %vm147_vm1, %v2174_v20, %v2108_v9 }
 0xa37   :  { %v1800_v45 = vsel %vm147_vm1, 0.0, %v1799_v18  ;;  %v1868_v27 = vsel %vm147_vm1, %v1799_v18, %v1788_v30  ;;  %v10998_v23 = vperm.slane %v1826_v49, %v10327_v62  ;;  %v2173_v29 = vperm.slane %v2169_v1, %v10322_v53 }
 0xa38   :  { %v1873_v33 = vrot.slane %v1800_v45, 4  ;;  %v1828_v55 = vsel %vm147_vm1, %v1820_v50, %v1827_v11  ;;  %v1798_v16 = vsel %vm147_vm1, 0.0, %v1797_v14  ;;  %v11003_v36 = vperm.slane %v1868_v27, %v10322_v53 }
 0xa39   :  { %v1838_v35 = vsel %vm147_vm1, %v1837_v0, %v1812_v52  ;;  %v1839_v32 = vrot.slane %v1812_v52, 4  ;;  %v1794_v39 = vsel %vm147_vm1, 0.0, %v1793_v31  ;;  %v1862_v20 = vrot.slane %v10991_v24, 4 }
 0xa3a   :  { %v1844_v9 = vperm.slane %v1838_v35, %v10327_v62  ;;  %v2179_v2 = vperm.slane %v2175_v28, %v10322_v53  ;;  %v1874_v47 = vsel %vm147_vm1, %v1873_v33, %v1798_v16  ;;  %v1836_v19 = vperm.slane %v1828_v55, %v10327_v62 }
 0xa3b   :  { %v1840_v56 = vsel %vm147_vm1, %v1824_v51, %v1839_v32  ;;  %v2190_v58 = vperm.slane %v10940_v21, %v10322_v53  ;;  %v1849_v26 = vrot.slane %v10998_v23, 4  ;;  %v2193_v22 = vrot.slane %v2173_v29, 4 }
 0xa3c   :  { %v1848_v61 = vperm.slane %v1840_v56, %v10327_v62  ;;  %v2205_v5 = vrot.slane %v10934_v57, 4  ;;  %v1893_v30 = vrot.slane %v11003_v36, 4  ;;  %v1853_v50 = vrot.slane %v1844_v9, 4 }
 0xa3d   :  { %v2191_v17 = vrot.slane %v2179_v2, 4  ;;  %v2203_v48 = vrot.slane %v2190_v58, 4  ;;  %v11020_v25 = vperm.slane %v1874_v47, %v10322_v53  ;;  %v2194_v51 = vsel %vm147_vm1, %v2179_v2, %v2193_v22 }
 0xa3e   :  { %v1855_v4 = vrot.slane %v1848_v61, 4  ;;  %v2206_v21 = vsel %vm147_vm1, %v2190_v58, %v2205_v5  ;;  %v2202_v7 = vperm.slane %v2194_v51, %v10327_v62  ;;  %v11035_v52 = vrot.slane %v1836_v19, 4 }
 0xa3f   :  { %v2214_v54 = vperm.slane %v2206_v21, %v10327_v62  ;;  %v2192_v1 = vsel %vm147_vm1, %v2191_v17, %v2173_v29  ;;  %v2204_v0 = vsel %vm147_vm1, %v2203_v48, %v10934_v57  ;;  %v11038_v31 = vsel %vm147_vm1, 0.0, %v1853_v50 }
 0xa40   :  { %v11030_v12 = vsel %vm147_vm1, 0.0, %v1855_v4  ;;  %v1922_v34 = vsel %vm147_vm1, %v1855_v4, %v1844_v9  ;;  %v2198_v14 = vperm.slane %v2192_v1, %v10327_v62  ;;  %v2210_v18 = vperm.slane %v2204_v0, %v10327_v62 }
 0xa41   :  { %v2219_v49 = vrot.slane %v2214_v54, 4  ;;  %v2221_v11 = vrot.slane %v2202_v7, 4  ;;  %v11041_v24 = vperm.slane %v1922_v34, %v10322_v53  ;;  %v1927_v57 = vrot.slane %v11030_v12, 4 }
 0xa42   :  { %v2215_v45 = vrot.slane %v2210_v18, 4  ;;  %v2217_v27 = vrot.slane %v2198_v14, 4  ;;  %v2052_v55 = vsel %vm147_vm1, 0.0, %v2051_v10  ;;  %v2115_v29 = vsel %vm147_vm1, %v10931_v46, %v10918_v38 }
 0xa43   :  { %v2220_v28 = vsel %vm147_vm1, %v2219_v49, %v2202_v7  ;;  %v2222_v33 = vsel %vm147_vm1, %v2214_v54, %v2221_v11  ;;  %v2119_v32 = vperm.slane %v2115_v29, %v10322_v53  ;;  %v2120_v9 = vrot.slane %v10946_v59, 4 }
 0xa44   :  { %9618 = vmatpush.xpose.msk.msra.mxu2 %vm869_vm2, %v2220_v28  ;;  %v2216_v16 = vsel %vm147_vm1, %v2215_v45, %v2198_v14  ;;  %9622 = vmatpush.xpose.msk.msrb.mxu3 %vm869_vm2, %v2222_v33  ;;  %v2218_v35 = vsel %vm147_vm1, %v2210_v18, %v2217_v27  ;;  %v2136_v10 = vperm.slane %v10985_v8, %v10322_v53  ;;  %v2151_v38 = vrot.slane %v10977_v6, 4 }
 0xa45   :  { %9610 = vmatpush.xpose.msk.msra.mxu0 %vm869_vm2, %v2216_v16  ;;  %9614 = vmatpush.xpose.msk.msra.mxu1 %vm869_vm2, %v2218_v35  ;;  %v1857_v46 = vsel %vm147_vm1, %v10981_v15, %v10968_v41  ;;  %v1863_v2 = vsel %vm147_vm1, %v1862_v20, %v1794_v39  ;;  %v2121_v47 = vsel %vm147_vm1, %v2120_v9, %v2052_v55  ;;  %v2139_v19 = vrot.slane %v2119_v32, 4 }
 0xa46   :  { %v1861_v59 = vperm.slane %v1857_v46, %v10322_v53  ;;  %v1867_v56 = vperm.slane %v1863_v2, %v10322_v53  ;;  %v2125_v58 = vperm.slane %v2121_v47, %v10322_v53  ;;  %v2152_v61 = vsel %vm147_vm1, %v2136_v10, %v2151_v38 }
 0xa47   :  { %v2149_v8 = vrot.slane %v2136_v10, 4  ;;  %v1894_v22 = vsel %vm147_vm1, %v11020_v25, %v1893_v30  ;;  %v2160_v5 = vperm.slane %v2152_v61, %v10327_v62  ;;  %v1891_v48 = vrot.slane %v11020_v25, 4 }
 0xa48   :  { %v1881_v41 = vrot.slane %v1861_v59, 4  ;;  %v1902_v15 = vperm.slane %v1894_v22, %v10327_v62  ;;  %v1879_v39 = vrot.slane %v1867_v56, 4  ;;  %v2140_v20 = vsel %vm147_vm1, %v2125_v58, %v2139_v19 }
 0xa49   :  { %v2137_v50 = vrot.slane %v2125_v58, 4  ;;  %v2150_v17 = vsel %vm147_vm1, %v2149_v8, %v10977_v6  ;;  %v2148_v4 = vperm.slane %v2140_v20, %v10327_v62  ;;  %v2165_v51 = vrot.slane %v2160_v5, 4 }
 0xa4a   :  { %v2156_v21 = vperm.slane %v2150_v17, %v10327_v62  ;;  %v1882_v30 = vsel %vm147_vm1, %v1867_v56, %v1881_v41  ;;  %v1907_v1 = vrot.slane %v1902_v15, 4  ;;  %v1880_v0 = vsel %vm147_vm1, %v1879_v39, %v1861_v59 }
 0xa4b   :  { %v2138_v7 = vsel %vm147_vm1, %v2137_v50, %v2119_v32  ;;  %v1890_v54 = vperm.slane %v1882_v30, %v10327_v62  ;;  %v2166_v34 = vsel %vm147_vm1, %v2165_v51, %v2148_v4  ;;  %v2167_v25 = vrot.slane %v2148_v4, 4  ;;  %v10187_v30 = vld [vmem:[#allocation2 + $0x10] sm:$0xff] }
 0xa4c   :  { %v2144_v6 = vperm.slane %v2138_v7, %v10327_v62  ;;  %v2161_v14 = vrot.slane %v2156_v21, 4  ;;  %9619 = vmatpush.xpose.msk.msra.mxu2 %vm869_vm2, %v2166_v34  ;;  %v1886_v49 = vperm.slane %v1880_v0, %v10327_v62  ;;  %v1892_v11 = vsel %vm147_vm1, %v1891_v48, %v11003_v36 }
 0xa4d   :  { %v1908_v18 = vsel %vm147_vm1, %v1907_v1, %v1890_v54  ;;  %v1909_v45 = vrot.slane %v1890_v54, 4  ;;  %v2168_v28 = vsel %vm147_vm1, %v2160_v5, %v2167_v25  ;;  %v1898_v55 = vperm.slane %v1892_v11, %v10327_v62 }
 0xa4e   :  { %v2162_v27 = vsel %vm147_vm1, %v2161_v14, %v2144_v6  ;;  %v2163_v33 = vrot.slane %v2144_v6, 4  ;;  %9623 = vmatpush.xpose.msk.msrb.mxu3 %vm869_vm2, %v2168_v28  ;;  %v1905_v16 = vrot.slane %v1886_v49, 4  ;;  %v1850_v35 = vsel %vm147_vm1, 0.0, %v1849_v26 }
 0xa4f   :  { %9611 = vmatpush.xpose.msk.msra.mxu0 %vm869_vm2, %v2162_v27  ;;  %v1910_v29 = vsel %vm147_vm1, %v1902_v15, %v1909_v45  ;;  %v1852_v36 = vsel %vm147_vm1, 0.0, %v11035_v52  ;;  %9620 = vmatmul.msk.f32.vlgmr.msra.gmra.mxu2 %vm869_vm2, %v1908_v18  ;;  %v1903_v9 = vrot.slane %v1898_v55, 4  ;;  %v1911_v10 = vsel %vm147_vm1, %v11035_v52, %v10998_v23  ;;  %v10188_v45 = vld [vmem:[#allocation2 + $0x18] sm:$0xff] }
 0xa50   :  { %v2164_v32 = vsel %vm147_vm1, %v2156_v21, %v2163_v33  ;;  %v1916_v38 = vrot.slane %v1852_v36, 4  ;;  %v1906_v46 = vsel %vm147_vm1, %v1898_v55, %v1905_v16  ;;  %v1915_v2 = vperm.slane %v1911_v10, %v10322_v53 }
 0xa51   :  { %9615 = vmatpush.xpose.msk.msra.mxu1 %vm869_vm2, %v2164_v32  ;;  %v1928_v26 = vsel %vm147_vm1, %v1927_v57, %v11038_v31  ;;  %v1947_v47 = vrot.slane %v11041_v24, 4  ;;  %v1904_v19 = vsel %vm147_vm1, %v1903_v9, %v1886_v49  ;;  %9624 = vmatmul.msk.f32.vlgmr.msrb.gmra.mxu3 %vm869_vm2, %v1910_v29 }
 0xa52   :  { %v1917_v23 = vsel %vm147_vm1, %v1916_v38, %v1850_v35  ;;  %v1932_v52 = vperm.slane %v1928_v26, %v10322_v53  ;;  %9612 = vmatmul.msk.f32.vlgmr.msra.gmra.mxu0 %vm869_vm2, %v1904_v19  ;;  %v1935_v56 = vrot.slane %v1915_v2, 4  ;;  %v9811_v26 = vpack.i.bf16 %v10845_v60, %v10853_v43 }
 0xa53   :  { %v1921_v59 = vperm.slane %v1917_v23, %v10322_v53 }
 0xa54   :  { %9616 = vmatmul.msk.f32.vlgmr.msra.gmra.mxu1 %vm869_vm2, %v1906_v46  ;;  %v1948_v12 = vsel %vm147_vm1, %v1932_v52, %v1947_v47  ;;  %v1945_v31 = vrot.slane %v1932_v52, 4  ;;  %v9821_v46 = vpack.i.bf16 %v10847_v37, %v10851_v42  ;;  %v11158_v47 = vpop.permute.xlu0 %9807 }
 0xa55   :  { %v1936_v57 = vsel %vm147_vm1, %v1921_v59, %v1935_v56  ;;  %v1956_v58 = vperm.slane %v1948_v12, %v10327_v62  ;;  %v1933_v61 = vrot.slane %v1921_v59, 4 }
 0xa56   :  { %v1944_v8 = vperm.slane %v1936_v57, %v10327_v62  ;;  %v1946_v22 = vsel %vm147_vm1, %v1945_v31, %v11041_v24 }
 0xa57   :  { %v1961_v5 = vrot.slane %v1956_v58, 4  ;;  %v1934_v41 = vsel %vm147_vm1, %v1933_v61, %v1915_v2  ;;  %v1952_v15 = vperm.slane %v1946_v22, %v10327_v62  ;;  %v9816_v2 = vpack.i.bf16 %v10857_v44, %v10859_v40 }
 0xa58   :  { %v1940_v39 = vperm.slane %v1934_v41, %v10327_v62  ;;  %v1963_v20 = vrot.slane %v1944_v8, 4 }
 0xa59   :  { %v1962_v50 = vsel %vm147_vm1, %v1961_v5, %v1944_v8  ;;  %v1957_v17 = vrot.slane %v1952_v15, 4 }
 0xa5a   :  { %9621 = vmatmul.msk.f32.gmra.mxu2 %vm869_vm2, %v1962_v50  ;;  %v1964_v48 = vsel %vm147_vm1, %v1956_v58, %v1963_v20  ;;  %v1959_v4 = vrot.slane %v1940_v39, 4 }
 0xa5b   :  { %v1958_v51 = vsel %vm147_vm1, %v1957_v17, %v1940_v39  ;;  %9625 = vmatmul.msk.f32.gmra.mxu3 %vm869_vm2, %v1964_v48 }
 0xa5c   :  { %9613 = vmatmul.msk.f32.gmra.mxu0 %vm869_vm2, %v1958_v51  ;;  %v1960_v24 = vsel %vm147_vm1, %v1952_v15, %v1959_v4 }
 0xa5d   :  { %9617 = vmatmul.msk.f32.gmra.mxu1 %vm869_vm2, %v1960_v24 }
 0xacf   :  { %v2496_v21 = vpop.f32.mrf.mxu0 }
 0xad0   :  { %v2497_v7 = vadd.f32 %v10187_v30, %v2496_v21 }
 0xad1   :  { %v2531_v54 = vpop.f32.mrf.mxu1 }
 0xad2   :  { %v2532_v1 = vadd.f32 %v10187_v30, %v2531_v54  ;;  %v2566_v0 = vpop.f32.mrf.mxu2  ;;  %v2607_v34 = vsel %vm1010_vm3, %v2497_v7, -inf }
 0xad3   :  { %v2567_v6 = vadd.f32 %v10187_v30, %v2566_v0  ;;  %2608 = vmax.xlane.f32.xlu0 %v2607_v34 }
 0xad4   :  { %v2613_v14 = vsel %vm1010_vm3, %v2532_v1, -inf  ;;  %v2601_v25 = vpop.f32.mrf.mxu3 }
 0xad5   :  { %2614 = vmax.xlane.f32.xlu1 %v2613_v14  ;;  %v2619_v18 = vsel %vm1010_vm3, %v2567_v6, -inf  ;;  %v2602_v49 = vadd.f32 %v10187_v30, %v2601_v25  ;;  %v9809_v30 = vunpack.i.l.bf16 %v11158_v47 }
 0xad6   :  { %2620 = vmax.xlane.f32.xlu2 %v2619_v18 }
 0xad7   :  { %v2625_v28 = vsel %vm1010_vm3, %v2602_v49, -inf  ;;  %v2305_v34 = vrot.slane %v9809_v30, 4 }
 0xad9   :  { %v2499_v11 = vpop.f32.mrf.mxu0 }
 0xada   :  { %v2500_v27 = vadd.f32 %v10188_v45, %v2499_v11  ;;  %v2534_v33 = vpop.f32.mrf.mxu1 }
 0xadb   :  { %v2535_v36 = vadd.f32 %v10188_v45, %v2534_v33 }
 0xadc   :  { %v2610_v29 = vsel %vm1010_vm3, %v2500_v27, -inf }
 0xadd   :  { %2626 = vmax.xlane.f32.xlu1 %v2625_v28  ;;  %v2569_v16 = vpop.f32.mrf.mxu2  ;;  %v2616_v10 = vsel %vm1010_vm3, %v2535_v36, -inf }
 0xade   :  { %v2604_v55 = vpop.f32.mrf.mxu3  ;;  %2611 = vmax.xlane.f32.xlu2 %v2610_v29  ;;  %v2570_v9 = vadd.f32 %v10188_v45, %v2569_v16 }
 0xadf   :  { %v2605_v35 = vadd.f32 %v10188_v45, %v2604_v55 }
 0xae0   :  { %v2622_v38 = vsel %vm1010_vm3, %v2570_v9, -inf }
 0xae1   :  { %v2628_v32 = vsel %vm1010_vm3, %v2605_v35, -inf }
 0xae2   :  { %2629 = vmax.xlane.f32.xlu0 %v2628_v32 }
 0xae5   :  { %2617 = vmax.xlane.f32.xlu1 %v2616_v10 }
 0xae6   :  { %2623 = vmax.xlane.f32.xlu2 %v2622_v38 }
 0xaf6   :  { %9822 = vrot.lane.b32.xlu0 %v9821_v46, %s10230_s23 }
 0xafe   :  { %9817 = vrot.lane.b32.xlu1 %v9816_v2, %s10230_s23  ;;  %9812 = vrot.lane.b32.xlu2 %v9811_v26, %s10230_s23  ;;  %v9810_v2 = vunpack.i.h.bf16 %v11158_v47 }
 0xb46   :  { %v2609_v19 = vpop.xlane.xlu0 %2608 }
 0xb47   :  { %v2631_v23 = vsub.f32 %v2497_v7, %v2609_v19 }
 0xb48   :  { %v2615_v52 = vpop.xlane.xlu1 %2614 }
 0xb49   :  { %v2639_v59 = vmul.f32 1.442695, %v2631_v23  ;;  %v2621_v56 = vpop.xlane.xlu2 %2620  ;;  %v2633_v43 = vsub.f32 %v2532_v1, %v2615_v52 }
 0xb4a   :  { %v2635_v37 = vsub.f32 %v2567_v6, %v2621_v56 }
 0xb4b   :  { %9993 = vpow2.f32 %v2639_v59  ;;  %v2643_v5 = vmul.f32 1.442695, %v2633_v43 }
 0xb4c   :  { %v2647_v42 = vmul.f32 1.442695, %v2635_v37 }
 0xb4e   :  { %9995 = vpow2.f32 %v2647_v42 }
 0xb50   :  { %v2627_v12 = vpop.xlane.xlu1 %2626 }
 0xb51   :  { %v2637_v44 = vsub.f32 %v2602_v49, %v2627_v12  ;;  %v11160_v40 = vpop.eup %9993  ;;  %v2612_v60 = vpop.xlane.xlu2 %2611 }
 0xb52   :  { %v2632_v57 = vsub.f32 %v2500_v27, %v2612_v60  ;;  %v2655_v58 = vsel %vm1010_vm3, %v11160_v40, 0.0 }
 0xb53   :  { %v2651_v31 = vmul.f32 1.442695, %v2637_v44  ;;  %2656 = vadd.xlane.f32.xlu1 %v2655_v58 }
 0xb54   :  { %v11164_v61 = vpop.eup %9995  ;;  %v2641_v8 = vmul.f32 1.442695, %v2632_v57 }
 0xb55   :  { %9997 = vpow2.f32 %v2651_v31  ;;  %v2667_v22 = vsel %vm1010_vm3, %v11164_v61, 0.0  ;;  %v2630_v15 = vpop.xlane.xlu0 %2629 }
 0xb56   :  { %9999 = vpow2.f32 %v2641_v8  ;;  %2668 = vadd.xlane.f32.xlu2 %v2667_v22  ;;  %v2638_v48 = vsub.f32 %v2605_v35, %v2630_v15  ;;  %v2249_v8 = vrot.slane %v9810_v2, 4 }
 0xb57   :  { %10001 = vpow2.f32 %v2643_v5 }
 0xb58   :  { %v2618_v41 = vpop.xlane.xlu1 %2617  ;;  %v2653_v54 = vmul.f32 1.442695, %v2638_v48 }
 0xb59   :  { %v2624_v39 = vpop.xlane.xlu2 %2623  ;;  %v2634_v50 = vsub.f32 %v2535_v36, %v2618_v41 }
 0xb5a   :  { %v2636_v17 = vsub.f32 %v2570_v9, %v2624_v39 }
 0xb5b   :  { %v11168_v20 = vpop.eup %9997  ;;  %v2645_v7 = vmul.f32 1.442695, %v2634_v50 }
 0xb5c   :  { %v2673_v4 = vsel %vm1010_vm3, %v11168_v20, 0.0  ;;  %v11172_v51 = vpop.eup %9999  ;;  %v2649_v24 = vmul.f32 1.442695, %v2636_v17 }
 0xb5d   :  { %2674 = vadd.xlane.f32.xlu0 %v2673_v4  ;;  %v2658_v21 = vsel %vm1010_vm3, %v11172_v51, 0.0  ;;  %v11177_v1 = vpop.eup %10001 }
 0xb5e   :  { %10003 = vpow2.f32 %v2649_v24  ;;  %2659 = vadd.xlane.f32.xlu1 %v2658_v21  ;;  %v2661_v14 = vsel %vm1010_vm3, %v11177_v1, 0.0 }
 0xb5f   :  { %10005 = vpow2.f32 %v2645_v7 }
 0xb60   :  { %10007 = vpow2.f32 %v2653_v54 }
 0xb61   :  { %v9813_v0 = vpop.permute.xlu2 %9812 }
 0xb62   :  { %v9815_v6 = vunpack.i.h.bf16 %v9813_v0  ;;  %v9814_v11 = vunpack.i.l.bf16 %v9813_v0 }
 0xb64   :  { %v11181_v25 = vpop.eup %10003  ;;  %v2303_v18 = vrot.slane %v9815_v6, 4  ;;  %v2306_v49 = vsel %vm147_vm1, %v9815_v6, %v2305_v34  ;;  %v2317_v29 = vrot.slane %v9814_v11, 4 }
 0xb65   :  { %2662 = vadd.xlane.f32.xlu0 %v2661_v14  ;;  %v2670_v45 = vsel %vm1010_vm3, %v11181_v25, 0.0  ;;  %v2314_v28 = vperm.slane %v2306_v49, %v10322_v53  ;;  %v11188_v55 = vpop.eup %10005 }
 0xb66   :  { %v2304_v27 = vsel %vm147_vm1, %v2303_v18, %v9809_v30  ;;  %2671 = vadd.xlane.f32.xlu2 %v2670_v45  ;;  %v11190_v35 = vpop.eup %10007  ;;  %v2664_v46 = vsel %vm1010_vm3, %v11188_v55, 0.0 }
 0xb67   :  { %v2310_v36 = vperm.slane %v2304_v27, %v10322_v53  ;;  %v2341_v10 = vrot.slane %v2314_v28, 4  ;;  %v2676_v23 = vsel %vm1010_vm3, %v11190_v35, 0.0 }
 0xb68   :  { %v9823_v33 = vpop.permute.xlu0 %9822 }
 0xb69   :  { %v9824_v16 = vunpack.i.l.bf16 %v9823_v33  ;;  %v9825_v26 = vunpack.i.h.bf16 %v9823_v33  ;;  %v2329_v52 = vrot.slane %v2310_v36, 4 }
 0xb6b   :  { %v2315_v32 = vrot.slane %v9824_v16, 4  ;;  %v2318_v9 = vsel %vm147_vm1, %v9824_v16, %v2317_v29  ;;  %v2259_v22 = vrot.slane %v9825_v26, 4 }
 0xb6c   :  { %v2326_v38 = vperm.slane %v2318_v9, %v10322_v53 }
 0xb6d   :  { %v2316_v19 = vsel %vm147_vm1, %v2315_v32, %v9814_v11  ;;  %2665 = vadd.xlane.f32.xlu0 %v2664_v46 }
 0xb6e   :  { %v2322_v59 = vperm.slane %v2316_v19, %v10322_v53  ;;  %v2339_v56 = vrot.slane %v2326_v38, 4  ;;  %v2342_v37 = vsel %vm147_vm1, %v2326_v38, %v2341_v10  ;;  %2677 = vadd.xlane.f32.xlu2 %v2676_v23 }
 0xb6f   :  { %v2350_v42 = vperm.slane %v2342_v37, %v10327_v62 }
 0xb70   :  { %v2327_v12 = vrot.slane %v2322_v59, 4  ;;  %v2330_v44 = vsel %vm147_vm1, %v2322_v59, %v2329_v52  ;;  %v2340_v47 = vsel %vm147_vm1, %v2339_v56, %v2314_v28  ;;  %v9818_v60 = vpop.permute.xlu1 %9817 }
 0xb71   :  { %v2338_v43 = vperm.slane %v2330_v44, %v10327_v62  ;;  %v2346_v31 = vperm.slane %v2340_v47, %v10327_v62  ;;  %v2357_v57 = vrot.slane %v2350_v42, 4  ;;  %v9820_v58 = vunpack.i.h.bf16 %v9818_v60 }
 0xb72   :  { %v2328_v5 = vsel %vm147_vm1, %v2327_v12, %v2310_v36  ;;  %v9819_v41 = vunpack.i.l.bf16 %v9818_v60 }
 0xb73   :  { %v2334_v15 = vperm.slane %v2328_v5, %v10327_v62  ;;  %v2353_v39 = vrot.slane %v2338_v43, 4  ;;  %v2355_v50 = vrot.slane %v2346_v31, 4  ;;  %v2358_v17 = vsel %vm147_vm1, 0.0, %v2357_v57 }
 0xb74   :  { %v2429_v48 = vrot.slane %v2358_v17, 4  ;;  %v2247_v4 = vrot.slane %v9820_v58, 4  ;;  %v2250_v24 = vsel %vm147_vm1, %v9820_v58, %v2249_v8  ;;  %v2260_v21 = vsel %vm147_vm1, %v2259_v22, %v9819_v41 }
 0xb75   :  { %v2354_v30 = vsel %vm147_vm1, 0.0, %v2353_v39  ;;  %v2258_v7 = vperm.slane %v2250_v24, %v10322_v53  ;;  %v2261_v54 = vrot.slane %v9819_v41, 4  ;;  %v2266_v0 = vperm.slane %v2260_v21, %v10322_v53 }
 0xb76   :  { %v2248_v34 = vsel %vm147_vm1, %v2247_v4, %v9810_v2  ;;  %v2351_v6 = vrot.slane %v2334_v15, 4  ;;  %v2356_v14 = vsel %vm147_vm1, 0.0, %v2355_v50  ;;  %v2413_v18 = vsel %vm147_vm1, %v2353_v39, %v2334_v15 }
 0xb77   :  { %v2254_v49 = vperm.slane %v2248_v34, %v10322_v53  ;;  %v2285_v11 = vrot.slane %v2258_v7, 4  ;;  %v2262_v45 = vsel %vm147_vm1, %v9825_v26, %v2261_v54  ;;  %v2271_v27 = vrot.slane %v2266_v0, 4 }
 0xb78   :  { %v2270_v28 = vperm.slane %v2262_v45, %v10322_v53  ;;  %v2352_v33 = vsel %vm147_vm1, 0.0, %v2351_v6  ;;  %v2417_v29 = vperm.slane %v2413_v18, %v10322_v53  ;;  %v2418_v16 = vrot.slane %v2354_v30, 4 }
 0xb79   :  { %v2273_v36 = vrot.slane %v2254_v49, 4  ;;  %v2272_v32 = vsel %vm147_vm1, %v2271_v27, %v2254_v49  ;;  %v2424_v9 = vsel %vm147_vm1, %v2357_v57, %v2346_v31  ;;  %v2430_v10 = vsel %vm147_vm1, %v2429_v48, %v2356_v14 }
 0xb7a   :  { %v2278_v38 = vperm.slane %v2272_v32, %v10327_v62  ;;  %v2283_v46 = vrot.slane %v2270_v28, 4  ;;  %v2286_v2 = vsel %vm147_vm1, %v2270_v28, %v2285_v11  ;;  %v2419_v26 = vsel %vm147_vm1, %v2418_v16, %v2352_v33 }
 0xb7b   :  { %v2274_v19 = vsel %vm147_vm1, %v2266_v0, %v2273_v36  ;;  %v2294_v23 = vperm.slane %v2286_v2, %v10327_v62  ;;  %v2423_v52 = vperm.slane %v2419_v26, %v10322_v53  ;;  %v2428_v59 = vperm.slane %v2424_v9, %v10322_v53 }
 0xb7c   :  { %v2282_v56 = vperm.slane %v2274_v19, %v10327_v62  ;;  %v2284_v37 = vsel %vm147_vm1, %v2283_v46, %v2258_v7  ;;  %v2434_v42 = vperm.slane %v2430_v10, %v10322_v53  ;;  %v2437_v12 = vrot.slane %v2417_v29, 4 }
 0xb7d   :  { %v2290_v44 = vperm.slane %v2284_v37, %v10327_v62  ;;  %v2301_v47 = vrot.slane %v2294_v23, 4  ;;  %v2449_v60 = vrot.slane %v2428_v59, 4  ;;  %v2435_v43 = vrot.slane %v2423_v52, 4 }
 0xb7e   :  { %v2297_v31 = vrot.slane %v2282_v56, 4  ;;  %v2438_v57 = vsel %vm147_vm1, %v2423_v52, %v2437_v12  ;;  %v2447_v58 = vrot.slane %v2434_v42, 4  ;;  %v2295_v8 = vrot.slane %v2278_v38, 4 }
 0xb7f   :  { %v2299_v22 = vrot.slane %v2290_v44, 4  ;;  %v2302_v5 = vsel %vm147_vm1, 0.0, %v2301_v47  ;;  %v2446_v41 = vperm.slane %v2438_v57, %v10327_v62  ;;  %v2450_v15 = vsel %vm147_vm1, %v2434_v42, %v2449_v60 }
 0xb80   :  { %v2298_v39 = vsel %vm147_vm1, 0.0, %v2297_v31  ;;  %v2458_v50 = vperm.slane %v2450_v15, %v10327_v62  ;;  %v2436_v17 = vsel %vm147_vm1, %v2435_v43, %v2417_v29  ;;  %v2448_v48 = vsel %vm147_vm1, %v2447_v58, %v2428_v59 }
 0xb81   :  { %v2442_v4 = vperm.slane %v2436_v17, %v10327_v62  ;;  %v2454_v24 = vperm.slane %v2448_v48, %v10327_v62  ;;  %v2465_v21 = vrot.slane %v2446_v41, 4  ;;  %v2296_v30 = vsel %vm147_vm1, 0.0, %v2295_v8 }
 0xb82   :  { %v2463_v7 = vrot.slane %v2458_v50, 4  ;;  %v2300_v54 = vsel %vm147_vm1, 0.0, %v2299_v22  ;;  %v2359_v0 = vsel %vm147_vm1, %v2297_v31, %v2278_v38  ;;  %v2364_v34 = vrot.slane %v2298_v39, 4 }
 0xb83   :  { %v2459_v6 = vrot.slane %v2454_v24, 4  ;;  %v2466_v14 = vsel %vm147_vm1, %v2458_v50, %v2465_v21  ;;  %v2461_v18 = vrot.slane %v2442_v4, 4  ;;  %v2363_v49 = vperm.slane %v2359_v0, %v10322_v53 }
 0xb84   :  { %v2464_v11 = vsel %vm147_vm1, %v2463_v7, %v2446_v41  ;;  %2802 = vmatpush.msra.mxu3 %v2466_v14  ;;  %v2365_v45 = vsel %vm147_vm1, %v2364_v34, %v2296_v30  ;;  %v2370_v27 = vsel %vm147_vm1, %v2301_v47, %v2290_v44  ;;  %v2375_v28 = vrot.slane %v2302_v5, 4 }
 0xb85   :  { %2773 = vmatpush.msrb.mxu2 %v2464_v11  ;;  %v2460_v33 = vsel %vm147_vm1, %v2459_v6, %v2442_v4  ;;  %v2462_v29 = vsel %vm147_vm1, %v2454_v24, %v2461_v18  ;;  %v2369_v16 = vperm.slane %v2365_v45, %v10322_v53  ;;  %v2374_v36 = vperm.slane %v2370_v27, %v10322_v53 }
 0xb86   :  { %2715 = vmatpush.msrb.mxu0 %v2460_v33  ;;  %2744 = vmatpush.msrb.mxu1 %v2462_v29  ;;  %v2376_v32 = vsel %vm147_vm1, %v2375_v28, %v2300_v54  ;;  %v2383_v9 = vrot.slane %v2363_v49, 4 }
 0xb87   :  { %v2380_v10 = vperm.slane %v2376_v32, %v10322_v53  ;;  %v2395_v38 = vrot.slane %v2374_v36, 4  ;;  %v2381_v46 = vrot.slane %v2369_v16, 4 }
 0xb88   :  { %v2384_v2 = vsel %vm147_vm1, %v2369_v16, %v2383_v9 }
 0xb89   :  { %v2392_v26 = vperm.slane %v2384_v2, %v10327_v62  ;;  %v2396_v19 = vsel %vm147_vm1, %v2380_v10, %v2395_v38  ;;  %v2382_v23 = vsel %vm147_vm1, %v2381_v46, %v2363_v49  ;;  %v2393_v52 = vrot.slane %v2380_v10, 4 }
 0xb8a   :  { %v2404_v59 = vperm.slane %v2396_v19, %v10327_v62  ;;  %v2388_v56 = vperm.slane %v2382_v23, %v10327_v62 }
 0xb8b   :  { %v2394_v37 = vsel %vm147_vm1, %v2393_v52, %v2374_v36  ;;  %v2411_v42 = vrot.slane %v2392_v26, 4 }
 0xb8c   :  { %v2409_v12 = vrot.slane %v2404_v59, 4  ;;  %v2400_v44 = vperm.slane %v2394_v37, %v10327_v62  ;;  %v2407_v47 = vrot.slane %v2388_v56, 4 }
 0xb8d   :  { %v2412_v60 = vsel %vm147_vm1, %v2404_v59, %v2411_v42 }
 0xb8e   :  { %v2410_v43 = vsel %vm147_vm1, %v2409_v12, %v2392_v26  ;;  %v2405_v31 = vrot.slane %v2400_v44, 4  ;;  %2803 = vmatpush.msra.mxu3 %v2412_v60  ;;  %v2408_v57 = vsel %vm147_vm1, %v2400_v44, %v2407_v47 }
 0xb8f   :  { %2774 = vmatpush.msrb.mxu2 %v2410_v43  ;;  %2745 = vmatpush.msrb.mxu1 %v2408_v57 }
 0xb90   :  { %v2406_v58 = vsel %vm147_vm1, %v2405_v31, %v2388_v56 }
 0xb91   :  { %2716 = vmatpush.msrb.mxu0 %v2406_v58 }
 0xbc6   :  { %v2657_v8 = vpop.xlane.xlu1 %2656 }
 0xbc7   :  { %10009 = vrcp.f32 %v2657_v8 }
 0xbc9   :  { %v2669_v22 = vpop.xlane.xlu2 %2668 }
 0xbca   :  { %10011 = vrcp.f32 %v2669_v22 }
 0xbcd   :  { %v10010_v5 = vpop.eup %10009 }
 0xbce   :  { %v2687_v41 = vmul.f32 %v10010_v5, %v11160_v40 }
 0xbd0   :  { %v2675_v15 = vpop.xlane.xlu0 %2674  ;;  %v10012_v39 = vpop.eup %10011  ;;  %9626 = vmatmul.msk.f32.vlgmr.msrb.gmra.mxu0 %vm1010_vm3, %v2687_v41 }
 0xbd1   :  { %10013 = vrcp.f32 %v2675_v15  ;;  %v2691_v50 = vmul.f32 %v10012_v39, %v11164_v61  ;;  %v2660_v17 = vpop.xlane.xlu1 %2659 }
 0xbd2   :  { %10015 = vrcp.f32 %v2660_v17 }
 0xbd3   :  { %9630 = vmatmul.msk.f32.vlgmr.msrb.gmra.mxu2 %vm1010_vm3, %v2691_v50 }
 0xbd7   :  { %v10014_v48 = vpop.eup %10013 }
 0xbd8   :  { %v2693_v4 = vmul.f32 %v10014_v48, %v11168_v20  ;;  %v2663_v24 = vpop.xlane.xlu0 %2662  ;;  %v10016_v21 = vpop.eup %10015 }
 0xbd9   :  { %10017 = vrcp.f32 %v2663_v24  ;;  %v2672_v30 = vpop.xlane.xlu2 %2671  ;;  %v2688_v40 = vmul.f32 %v10016_v21, %v11172_v51 }
 0xbda   :  { %9632 = vmatmul.msk.f32.vlgmr.msra.gmra.mxu3 %vm1010_vm3, %v2693_v4  ;;  %10019 = vrcp.f32 %v2672_v30 }
 0xbdb   :  { %9627 = vmatmul.msk.f32.gmra.mxu0 %vm1010_vm3, %v2688_v40 }
 0xbdf   :  { %v10018_v7 = vpop.eup %10017 }
 0xbe0   :  { %v2689_v61 = vmul.f32 %v10018_v7, %v11177_v1  ;;  %v2666_v54 = vpop.xlane.xlu0 %2665  ;;  %v10020_v0 = vpop.eup %10019 }
 0xbe1   :  { %10021 = vrcp.f32 %v2666_v54  ;;  %v2678_v34 = vpop.xlane.xlu2 %2677  ;;  %v2692_v20 = vmul.f32 %v10020_v0, %v11181_v25 }
 0xbe2   :  { %9628 = vmatmul.msk.f32.vlgmr.msrb.gmra.mxu1 %vm1010_vm3, %v2689_v61  ;;  %10023 = vrcp.f32 %v2678_v34 }
 0xbe3   :  { %9631 = vmatmul.msk.f32.gmra.mxu2 %vm1010_vm3, %v2692_v20 }
 0xbe7   :  { %v10022_v6 = vpop.eup %10021 }
 0xbe8   :  { %v2690_v51 = vmul.f32 %v10022_v6, %v11188_v55  ;;  %v10024_v14 = vpop.eup %10023 }
 0xbe9   :  { %v2694_v18 = vmul.f32 %v10024_v14, %v11190_v35 }
 0xbea   :  { %9629 = vmatmul.msk.f32.gmra.mxu1 %vm1010_vm3, %v2690_v51 }
 0xbeb   :  { %9633 = vmatmul.msk.f32.gmra.mxu3 %vm1010_vm3, %v2694_v18 }
 0xc4d   :  { %v2718_v1 = vpop.f32.mrf.mxu0 }
 0xc4e   :  { %v2813_v45 = vrot.slane %v2718_v1, 4 }
 0xc56   :  { %v2776_v49 = vpop.f32.mrf.mxu2 }
 0xc57   :  { %v2811_v11 = vrot.slane %v2776_v49, 4  ;;  %v2814_v25 = vsel %vm147_vm1, %v2776_v49, %v2813_v45 }
 0xc58   :  { %v2822_v55 = vperm.slane %v2814_v25, %v10322_v53  ;;  %v2721_v19 = vpop.f32.mrf.mxu0 }
 0xc59   :  { %v2812_v27 = vsel %vm147_vm1, %v2811_v11, %v2718_v1  ;;  %v2869_v44 = vrot.slane %v2721_v19, 4 }
 0xc5a   :  { %v2818_v28 = vperm.slane %v2812_v27, %v10322_v53  ;;  %v2849_v38 = vrot.slane %v2822_v55, 4 }
 0xc5c   :  { %v2837_v32 = vrot.slane %v2818_v28, 4 }
 0xc5d   :  { %v2805_v33 = vpop.f32.mrf.mxu3 }
 0xc5e   :  { %v2823_v29 = vrot.slane %v2805_v33, 4 }
 0xc5f   :  { %v2747_v16 = vpop.f32.mrf.mxu1 }
 0xc60   :  { %v2824_v36 = vsel %vm147_vm1, %v2823_v29, %v2747_v16  ;;  %v2825_v35 = vrot.slane %v2747_v16, 4 }
 0xc61   :  { %v2830_v9 = vperm.slane %v2824_v36, %v10322_v53 }
 0xc62   :  { %v2826_v10 = vsel %vm147_vm1, %v2805_v33, %v2825_v35 }
 0xc63   :  { %v2834_v46 = vperm.slane %v2826_v10, %v10322_v53  ;;  %v2835_v2 = vrot.slane %v2830_v9, 4  ;;  %v2838_v26 = vsel %vm147_vm1, %v2830_v9, %v2837_v32 }
 0xc64   :  { %v2846_v23 = vperm.slane %v2838_v26, %v10327_v62 }
 0xc65   :  { %v2836_v52 = vsel %vm147_vm1, %v2835_v2, %v2818_v28  ;;  %v2847_v59 = vrot.slane %v2834_v46, 4  ;;  %v2850_v56 = vsel %vm147_vm1, %v2834_v46, %v2849_v38 }
 0xc66   :  { %v2842_v37 = vperm.slane %v2836_v52, %v10327_v62  ;;  %v2858_v42 = vperm.slane %v2850_v56, %v10327_v62  ;;  %v2861_v12 = vrot.slane %v2846_v23, 4  ;;  %v2779_v60 = vpop.f32.mrf.mxu2 }
 0xc67   :  { %v2848_v47 = vsel %vm147_vm1, %v2847_v59, %v2822_v55  ;;  %v2867_v5 = vrot.slane %v2779_v60, 4  ;;  %v2870_v39 = vsel %vm147_vm1, %v2779_v60, %v2869_v44  ;;  %v2750_v17 = vpop.f32.mrf.mxu1 }
 0xc68   :  { %v2854_v43 = vperm.slane %v2848_v47, %v10327_v62  ;;  %v2859_v31 = vrot.slane %v2842_v37, 4  ;;  %v2862_v57 = vsel %vm147_vm1, 0.0, %v2861_v12  ;;  %v2865_v58 = vrot.slane %v2858_v42, 4 }
 0xc69   :  { %v2923_v8 = vsel %vm147_vm1, %v2861_v12, %v2842_v37  ;;  %v2928_v22 = vrot.slane %v2862_v57, 4  ;;  %v2868_v48 = vsel %vm147_vm1, %v2867_v5, %v2721_v19  ;;  %v2878_v21 = vperm.slane %v2870_v39, %v10322_v53 }
 0xc6a   :  { %v2860_v41 = vsel %vm147_vm1, 0.0, %v2859_v31  ;;  %v2866_v15 = vsel %vm147_vm1, 0.0, %v2865_v58  ;;  %v2863_v50 = vrot.slane %v2854_v43, 4  ;;  %v2927_v4 = vperm.slane %v2923_v8, %v10322_v53 }
 0xc6b   :  { %v2929_v24 = vsel %vm147_vm1, %v2928_v22, %v2860_v41  ;;  %v2934_v7 = vsel %vm147_vm1, %v2865_v58, %v2854_v43  ;;  %v2874_v61 = vperm.slane %v2868_v48, %v10322_v53  ;;  %v2939_v0 = vrot.slane %v2866_v15, 4 }
 0xc6c   :  { %v2864_v30 = vsel %vm147_vm1, 0.0, %v2863_v50  ;;  %v2933_v40 = vperm.slane %v2929_v24, %v10322_v53  ;;  %v2938_v54 = vperm.slane %v2934_v7, %v10322_v53  ;;  %v2947_v34 = vrot.slane %v2927_v4, 4 }
 0xc6d   :  { %v2881_v20 = vrot.slane %v2750_v17, 4  ;;  %v2940_v14 = vsel %vm147_vm1, %v2939_v0, %v2864_v30  ;;  %v2893_v25 = vrot.slane %v2874_v61, 4  ;;  %v2905_v28 = vrot.slane %v2878_v21, 4 }
 0xc6e   :  { %v2945_v6 = vrot.slane %v2933_v40, 4  ;;  %v2808_v51 = vpop.f32.mrf.mxu3  ;;  %v2948_v18 = vsel %vm147_vm1, %v2933_v40, %v2947_v34  ;;  %v2959_v1 = vrot.slane %v2938_v54, 4  ;;  %v2944_v45 = vperm.slane %v2940_v14, %v10322_v53 }
 0xc6f   :  { %v2879_v49 = vrot.slane %v2808_v51, 4  ;;  %v2882_v11 = vsel %vm147_vm1, %v2808_v51, %v2881_v20  ;;  %v2956_v27 = vperm.slane %v2948_v18, %v10327_v62 }
 0xc70   :  { %v2890_v33 = vperm.slane %v2882_v11, %v10322_v53  ;;  %v2946_v29 = vsel %vm147_vm1, %v2945_v6, %v2927_v4  ;;  %v2960_v16 = vsel %vm147_vm1, %v2944_v45, %v2959_v1  ;;  %v2957_v2 = vrot.slane %v2944_v45, 4 }
 0xc71   :  { %v2880_v55 = vsel %vm147_vm1, %v2879_v49, %v2750_v17  ;;  %v2975_v36 = vrot.slane %v2956_v27, 4  ;;  %v2952_v35 = vperm.slane %v2946_v29, %v10327_v62  ;;  %v2968_v38 = vperm.slane %v2960_v16, %v10327_v62 }
 0xc72   :  { %v2886_v32 = vperm.slane %v2880_v55, %v10322_v53  ;;  %v2903_v9 = vrot.slane %v2890_v33, 4  ;;  %v2906_v10 = vsel %vm147_vm1, %v2890_v33, %v2905_v28  ;;  %v2958_v44 = vsel %vm147_vm1, %v2957_v2, %v2938_v54 }
 0xc73   :  { %v2914_v46 = vperm.slane %v2906_v10, %v10327_v62  ;;  %v2976_v52 = vsel %vm147_vm1, %v2968_v38, %v2975_v36  ;;  %v2973_v42 = vrot.slane %v2968_v38, 4  ;;  %v2971_v47 = vrot.slane %v2952_v35, 4  ;;  %v1690_v10 = vld [vmem:[#allocation2 + $0x2b0] sm:$0xff]  ;;  %v1689_v38 = vld [vmem:[#allocation2 + $0x2a8] sm:$0xff] }
 0xc74   :  { %v2891_v26 = vrot.slane %v2886_v32, 4  ;;  %v2894_v19 = vsel %vm147_vm1, %v2886_v32, %v2893_v25  ;;  %v2904_v23 = vsel %vm147_vm1, %v2903_v9, %v2878_v21  ;;  %3049 = vrot.lane.b32.xlu0 %v2976_v52, %s10234_s25  ;;  %v2964_v5 = vperm.slane %v2958_v44, %v10327_v62  ;;  %v1691_v9 = vld [vmem:[#allocation2 + $0x2b8] sm:$0xff] }
 0xc75   :  { %v2902_v59 = vperm.slane %v2894_v19, %v10327_v62  ;;  %v2910_v56 = vperm.slane %v2904_v23, %v10327_v62  ;;  %v2921_v37 = vrot.slane %v2914_v46, 4  ;;  %v2974_v22 = vsel %vm147_vm1, %v2973_v42, %v2956_v27  ;;  %3080 = vmatpush.msra.mxu0 %v1691_v9  ;;  %v1688_v46 = vld [vmem:[#allocation2 + $0x2a0] sm:$0xff] }
 0xc76   :  { %v2892_v12 = vsel %vm147_vm1, %v2891_v26, %v2874_v61  ;;  %3041 = vrot.lane.b32.xlu1 %v2974_v22, %s10233_s24  ;;  %v2969_v17 = vrot.slane %v2964_v5, 4  ;;  %v2972_v48 = vsel %vm147_vm1, %v2964_v5, %v2971_v47 }
 0xc77   :  { %v2898_v60 = vperm.slane %v2892_v12, %v10327_v62  ;;  %v2917_v43 = vrot.slane %v2902_v59, 4  ;;  %v2919_v31 = vrot.slane %v2910_v56, 4  ;;  %v2922_v57 = vsel %vm147_vm1, 0.0, %v2921_v37  ;;  %3033 = vrot.lane.b32.xlu2 %v2972_v48, %s10225_s15  ;;  %3081 = vmatpush.msra.mxu0 %v1690_v10 }
 0xc78   :  { %v2988_v58 = vsel %vm147_vm1, %v2921_v37, %v2910_v56  ;;  %v2993_v8 = vrot.slane %v2922_v57, 4  ;;  %v2970_v0 = vsel %vm147_vm1, %v2969_v17, %v2952_v35 }
 0xc79   :  { %v2918_v41 = vsel %vm147_vm1, 0.0, %v2917_v43  ;;  %v2920_v15 = vsel %vm147_vm1, 0.0, %v2919_v31  ;;  %v2915_v39 = vrot.slane %v2898_v60, 4  ;;  %v2977_v50 = vsel %vm147_vm1, %v2917_v43, %v2898_v60  ;;  %3082 = vmatpush.msra.mxu0 %v1689_v38  ;;  %v9916_v60 = vld [vmem:[#allocation2 + $0x2c0] ss:$0 sm:$0xff] }
 0xc7a   :  { %v2981_v4 = vperm.slane %v2977_v50, %v10322_v53  ;;  %v2982_v24 = vrot.slane %v2918_v41, 4  ;;  %v2992_v30 = vperm.slane %v2988_v58, %v10322_v53  ;;  %v2994_v40 = vsel %vm147_vm1, %v2993_v8, %v2920_v15 }
 0xc7b   :  { %v2916_v21 = vsel %vm147_vm1, 0.0, %v2915_v39  ;;  %v2998_v61 = vperm.slane %v2994_v40, %v10322_v53  ;;  %3083 = vmatpush.msra.mxu0 %v1688_v46  ;;  %v3147_v40 = vld [vmem:[#allocation2 + $0x2e8] sm:$0xff] }
 0xc7c   :  { %v2983_v7 = vsel %vm147_vm1, %v2982_v24, %v2916_v21  ;;  %v3001_v54 = vrot.slane %v2981_v4, 4  ;;  %v3013_v20 = vrot.slane %v2992_v30, 4 }
 0xc7d   :  { %v2987_v34 = vperm.slane %v2983_v7, %v10322_v53  ;;  %v3011_v6 = vrot.slane %v2998_v61, 4  ;;  %v3146_v7 = vld [vmem:[#allocation2 + $0x2e0] sm:$0xff] }
 0xc7e   :  { %v3014_v14 = vsel %vm147_vm1, %v2998_v61, %v3013_v20  ;;  %v3145_v61 = vld [vmem:[#allocation2 + $0x2d8] sm:$0xff] }
 0xc7f   :  { %v3002_v51 = vsel %vm147_vm1, %v2987_v34, %v3001_v54  ;;  %v2999_v18 = vrot.slane %v2987_v34, 4  ;;  %v3022_v49 = vperm.slane %v3014_v14, %v10327_v62  ;;  %v3012_v11 = vsel %vm147_vm1, %v3011_v6, %v2992_v30  ;;  %v3185_v20 = vld [vmem:[#allocation2 + $0x318] sm:$0xff] }
 0xc80   :  { %v3010_v1 = vperm.slane %v3002_v51, %v10327_v62  ;;  %v3018_v27 = vperm.slane %v3012_v11, %v10327_v62  ;;  %3206 = vmatpush.msra.mxu2 %v3185_v20  ;;  %v3273_v20 = vld [vmem:[#allocation2 + $0xc8] sm:$0xff] }
 0xc81   :  { %v3000_v45 = vsel %vm147_vm1, %v2999_v18, %v2981_v4  ;;  %v3027_v25 = vrot.slane %v3022_v49, 4 }
 0xc82   :  { %v3029_v28 = vrot.slane %v3010_v1, 4  ;;  %v3006_v33 = vperm.slane %v3000_v45, %v10327_v62  ;;  %v3023_v29 = vrot.slane %v3018_v27, 4 }
 0xc83   :  { %v3028_v55 = vsel %vm147_vm1, %v3027_v25, %v3010_v1  ;;  %v9917_v25 = vld [vmem:[#allocation2 + $0x2c8] ss:$0 sm:$0xff] }
 0xc84   :  { %v3030_v16 = vsel %vm147_vm1, %v3022_v49, %v3029_v28  ;;  %v3025_v36 = vrot.slane %v3006_v33, 4  ;;  %3043 = vrot.lane.b32.xlu0 %v3028_v55, %s10233_s24  ;;  %v3024_v35 = vsel %vm147_vm1, %v3023_v29, %v3006_v33  ;;  %v9918_v55 = vld [vmem:[#allocation2 + $0x2d0] ss:$0 sm:$0xff] }
 0xc85   :  { %3051 = vrot.lane.b32.xlu1 %v3030_v16, %s10234_s25 }
 0xc86   :  { %v3026_v32 = vsel %vm147_vm1, %v3018_v27, %v3025_v36 }
 0xc87   :  { %3035 = vrot.lane.b32.xlu2 %v3026_v32, %s10225_s15 }
 0xcd1   :  { %v3034_v2 = vpop.permute.xlu2 %3033 }
 0xcd2   :  { %v3055_v26 = vsel %vm869_vm2, %v2970_v0, %v3034_v2 }
 0xce1   :  { %v3036_v56 = vpop.permute.xlu2 %3035 }
 0xce2   :  { %v3056_v37 = vsel %vm869_vm2, %v3024_v35, %v3036_v56  ;;  %v9919_v56 = vld [vmem:[#allocation2 + $0x2f8] ss:$0 sm:$0xff] }
 0xce6   :  { %v3050_v23 = vpop.permute.xlu0 %3049 }
 0xce8   :  { %v3042_v19 = vpop.permute.xlu1 %3041 }
 0xce9   :  { %v3057_v52 = vsel %vm1010_vm3, %v3055_v26, %v3042_v19 }
 0xcea   :  { %v3059_v59 = vsel %vm1463_vm4, %v3057_v52, %v3050_v23  ;;  %v3184_v23 = vld [vmem:[#allocation2 + $0x310] sm:$0xff]  ;;  %v3183_v52 = vld [vmem:[#allocation2 + $0x308] sm:$0xff] }
 0xceb   :  { %9634 = vmatmul.msk.f32.vlgmr.msra.gmra.mxu0 %vm94_vm0, %v3059_v59  ;;  %3207 = vmatpush.msra.mxu2 %v3184_v23  ;;  %v3182_v59 = vld [vmem:[#allocation2 + $0x300] sm:$0xff] }
 0xced   :  { %3208 = vmatpush.msra.mxu2 %v3183_v52  ;;  %v9921_v52 = vld [vmem:[#allocation2 + $0x328] ss:$0 sm:$0xff] }
 0xcef   :  { %3209 = vmatpush.msra.mxu2 %v3182_v59 }
 0xcf6   :  { %v3044_v42 = vpop.permute.xlu0 %3043 }
 0xcf7   :  { %v3052_v12 = vpop.permute.xlu1 %3051  ;;  %v3058_v44 = vsel %vm1010_vm3, %v3056_v37, %v3044_v42 }
 0xcf8   :  { %v3060_v47 = vsel %vm1463_vm4, %v3058_v44, %v3052_v12 }
 0xcf9   :  { %9635 = vmatmul.msk.f32.gmra.mxu0 %vm94_vm0, %v3060_v47 }
 0xd68   :  { %v3085_v43 = vpop.f32.mrf.mxu0 }
 0xd69   :  { %v3086_v31 = vadd.f32 %v9916_v60, %v3085_v43  ;;  %v9920_v43 = vld [vmem:[#allocation2 + $0x320] ss:$0 sm:$0xff] }
 0xd6b   :  { %v3091_v57 = vadd.f32 %v3086_v31, %v10829_v63 }
 0xd6d   :  { %v3095_v58 = vsel %vm94_vm0, %v3091_v57, 0.0 }
 0xd6e   :  { %3096 = vadd.xlane.f32.xlu2 %v3095_v58 }
 0xd76   :  { %v3088_v8 = vpop.f32.mrf.mxu0 }
 0xd77   :  { %v3089_v22 = vadd.f32 %v9916_v60, %v3088_v8 }
 0xd79   :  { %v3092_v5 = vadd.f32 %v3089_v22, %v10833_v13  ;;  %v3148_v13 = vld [vmem:[#allocation2 + $0x2f0] sm:$0xff] }
 0xd7a   :  { %3169 = vmatpush.msra.mxu1 %v3148_v13 }
 0xd7b   :  { %v3098_v41 = vsel %vm94_vm0, %v3092_v5, 0.0 }
 0xd7c   :  { %3099 = vadd.xlane.f32.xlu0 %v3098_v41  ;;  %3170 = vmatpush.msra.mxu1 %v3147_v40 }
 0xd7e   :  { %3171 = vmatpush.msra.mxu1 %v3146_v7 }
 0xd80   :  { %3172 = vmatpush.msra.mxu1 %v3145_v61 }
 0xde1   :  { %v3097_v15 = vpop.xlane.xlu2 %3096 }
 0xde2   :  { %v3101_v39 = vmul.f32 %v3097_v15, %v10809_v3 }
 0xde4   :  { %v3103_v50 = vsub.f32 %v3091_v57, %v3101_v39 }
 0xde6   :  { %v3105_v17 = vmul.f32 %v3103_v50, %v3103_v50 }
 0xde8   :  { %v3107_v48 = vsel %vm94_vm0, %v3105_v17, 0.0 }
 0xde9   :  { %3108 = vadd.xlane.f32.xlu1 %v3107_v48 }
 0xdef   :  { %v3100_v4 = vpop.xlane.xlu0 %3099 }
 0xdf0   :  { %v3102_v63 = vmul.f32 %v3100_v4, %v10809_v3 }
 0xdf2   :  { %v3104_v24 = vsub.f32 %v3092_v5, %v3102_v63 }
 0xdf4   :  { %v3106_v21 = vmul.f32 %v3104_v24, %v3104_v24 }
 0xdf6   :  { %v3110_v30 = vsel %vm94_vm0, %v3106_v21, 0.0 }
 0xdf7   :  { %3111 = vadd.xlane.f32.xlu2 %v3110_v30 }
 0xe5c   :  { %v3109_v54 = vpop.xlane.xlu1 %3108 }
 0xe5d   :  { %v3113_v0 = vmul.f32 %v3109_v54, %v10809_v3  ;;  %v3308_v54 = vld [vmem:[#allocation2 + $0xf8] sm:$0xff] }
 0xe5e   :  { %3323 = vmatpush.msrb.mxu0 %v3308_v54  ;;  %v39_v54 = vld [vmem:[%s13635_s1 + $0x10] sm:$0x3] }
 0xe5f   :  { %v3115_v34 = vadd.f32 1e-05, %v3113_v0  ;;  %v3274_v0 = vld [vmem:[#allocation2 + $0xd0] sm:$0xff] }
 0xe60   :  { %3297 = vmatpush.msrb.mxu3 %v3274_v0 }
 0xe61   :  { %10025 = vrsqrt.f32 %v3115_v34  ;;  %vm3123_vm8 = vweird.f32 %v3115_v34 }
 0xe62   :  { %3298 = vmatpush.msrb.mxu3 %v3273_v20 }
 0xe67   :  { %v10026_v6 = vpop.eup %10025 }
 0xe68   :  { %v3118_v51 = vmul.f32 %v10026_v6, %v3115_v34  ;;  %vm3124_vm7 = vweird.f32 %v10026_v6  ;;  %v3307_v34 = vld [vmem:[#allocation2 + $0xf0] sm:$0xff] }
 0xe69   :  { %vm3125_vm9 = vmor %vm3123_vm8, %vm3124_vm7  ;;  %3324 = vmatpush.msrb.mxu0 %v3307_v34  ;;  %vm3281_vm8 = vcmask 1041409  }
 0xe6a   :  { %v3112_v14 = vpop.xlane.xlu2 %3111  ;;  %v3119_v1 = vmul.f32 %v10026_v6, %v3118_v51  ;;  %v3306_v51 = vld [vmem:[#allocation2 + $0xe8] sm:$0xff] }
 0xe6b   :  { %v3114_v18 = vmul.f32 %v3112_v14, %v10809_v3  ;;  %v3271_v14 = vld [vmem:[#allocation2 + $0xb8] sm:$0xff]  ;;  %3325 = vmatpush.msrb.mxu0 %v3306_v51  ;;  %v3386_v51 = vld [vmem:[#allocation2 + $0x348] sm:$0xff] }
 0xe6c   :  { %v3120_v11 = vmul.f32 0.5, %v3119_v1 }
 0xe6d   :  { %v3116_v49 = vadd.f32 1e-05, %v3114_v18  ;;  %v3305_v18 = vld [vmem:[#allocation2 + $0xe0] sm:$0xff] }
 0xe6e   :  { %v3121_v45 = vsub.f32 1.5, %v3120_v11  ;;  %3326 = vmatpush.msrb.mxu0 %v3305_v18  ;;  %v3384_v18 = vld [vmem:[#allocation2 + $0x338] sm:$0xff] }
 0xe6f   :  { %10027 = vrsqrt.f32 %v3116_v49  ;;  %vm3133_vm11 = vweird.f32 %v3116_v49 }
 0xe70   :  { %v3122_v27 = vmul.f32 %v10026_v6, %v3121_v45  ;;  %v3353_v45 = vld [vmem:[#allocation2 + $0x180] sm:$0xff] }
 0xe71   :  { %3356 = vmatpush.msrb.mxu1 %v3353_v45 }
 0xe72   :  { %v3126_v28 = vsel %vm3125_vm9, %v10026_v6, %v3122_v27  ;;  %v3272_v6 = vld [vmem:[#allocation2 + $0xc0] sm:$0xff]  ;;  %v3352_v27 = vld [vmem:[#allocation2 + $0x178] sm:$0xff] }
 0xe73   :  { %v3137_v29 = vmul.f32 %v3126_v28, %v3103_v50  ;;  %3299 = vmatpush.msrb.mxu3 %v3272_v6  ;;  %v10236_v28 = vmov 0.0   ;;  %3357 = vmatpush.msrb.mxu1 %v3352_v27  ;;  %v3387_v6 = vld [vmem:[#allocation2 + $0x350] sm:$0xff] }
 0xe74   :  { %30 = vst [vmem:[%s13636_s2 + $0x18] sm:$0xff] %v10236_v28 }
 0xe75   :  { %v10028_v33 = vpop.eup %10027  ;;  %v3140_v36 = vmul.f32 %v9917_v25, %v3137_v29  ;;  %3300 = vmatpush.msrb.mxu3 %v3271_v14  ;;  %v3351_v29 = vld [vmem:[#allocation2 + $0x170] sm:$0xff]  ;;  %29 = vst [vmem:[%s13636_s2 + $0x10] sm:$0xff] %v10236_v28  ;;  %v3385_v14 = vld [vmem:[#allocation2 + $0x340] sm:$0xff] }
 0xe76   :  { %v3128_v16 = vmul.f32 %v10028_v33, %v3116_v49  ;;  %vm3134_vm10 = vweird.f32 %v10028_v33  ;;  %3358 = vmatpush.msrb.mxu1 %v3351_v29  ;;  %v10190_v29 = vld [vmem:[#allocation2 + $0x8] sm:$0xff] }
 0xe77   :  { %v3143_v32 = vadd.f32 %v9918_v55, %v3140_v36  ;;  %vm3135_vm12 = vmor %vm3133_vm11, %vm3134_vm10  ;;  %v3350_v36 = vld [vmem:[#allocation2 + $0x168] sm:$0xff]  ;;  %3413 = vmatpush.msra.mxu3 %v3387_v6 }
 0xe78   :  { %v3129_v35 = vmul.f32 %v10028_v33, %v3128_v16  ;;  %3359 = vmatpush.msrb.mxu1 %v3350_v36  ;;  %v9926_v36 = vld [vmem:[#allocation2 + $0x358] ss:$0 sm:$0xff] }
 0xe79   :  { %9636 = vmatmul.msk.f32.vlgmr.msra.gmra.mxu1 %vm94_vm0, %v3143_v32  ;;  %3414 = vmatpush.msra.mxu3 %v3386_v51 }
 0xe7a   :  { %v3130_v9 = vmul.f32 0.5, %v3129_v35 }
 0xe7b   :  { %3415 = vmatpush.msra.mxu3 %v3385_v14 }
 0xe7c   :  { %v3131_v10 = vsub.f32 1.5, %v3130_v9  ;;  %v3348_v9 = vld [vmem:[#allocation2 + $0x158] sm:$0xff] }
 0xe7d   :  { %3416 = vmatpush.msra.mxu3 %v3384_v18 }
 0xe7e   :  { %v3132_v38 = vmul.f32 %v10028_v33, %v3131_v10 }
 0xe80   :  { %v3136_v46 = vsel %vm3135_vm12, %v10028_v33, %v3132_v38  ;;  %v3347_v38 = vld [vmem:[#allocation2 + $0x150] sm:$0xff] }
 0xe81   :  { %v3138_v2 = vmul.f32 %v3136_v46, %v3104_v24 }
 0xe83   :  { %v3141_v26 = vmul.f32 %v9917_v25, %v3138_v2 }
 0xe85   :  { %v3144_v19 = vadd.f32 %v9918_v55, %v3141_v26 }
 0xe87   :  { %9637 = vmatmul.msk.f32.gmra.mxu1 %vm94_vm0, %v3144_v19 }
 0xef6   :  { %v3174_v37 = vpop.f32.mrf.mxu1 }
 0xef7   :  { %v3175_v42 = vadd.f32 %v9919_v56, %v3174_v37 }
 0xef9   :  { %v3180_v12 = vmax.f32 %v3175_v42, 0.0 }
 0xefb   :  { %9638 = vmatmul.msk.f32.vlgmr.msra.gmra.mxu2 %vm94_vm0, %v3180_v12  ;;  %v9922_v12 = vld [vmem:[#allocation2 + $0x330] ss:$0 sm:$0xff] }
 0xf04   :  { %v3177_v44 = vpop.f32.mrf.mxu1 }
 0xf05   :  { %v3178_v47 = vadd.f32 %v9919_v56, %v3177_v44 }
 0xf07   :  { %v3181_v60 = vmax.f32 %v3178_v47, 0.0 }
 0xf09   :  { %9639 = vmatmul.msk.f32.gmra.mxu2 %vm94_vm0, %v3181_v60 }
 0xf7e   :  { %v3211_v31 = vpop.f32.mrf.mxu2 }
 0xf7f   :  { %v3212_v57 = vadd.f32 %v9920_v43, %v3211_v31 }
 0xf81   :  { %v3217_v58 = vadd.f32 %v3212_v57, %v3143_v32  ;;  %v3349_v32 = vld [vmem:[#allocation2 + $0x160] sm:$0xff] }
 0xf82   :  { %3360 = vmatpush.msrb.mxu1 %v3349_v32 }
 0xf83   :  { %v3221_v8 = vsel %vm94_vm0, %v3217_v58, 0.0 }
 0xf84   :  { %3222 = vadd.xlane.f32.xlu0 %v3221_v8  ;;  %3361 = vmatpush.msrb.mxu1 %v3348_v9 }
 0xf86   :  { %3362 = vmatpush.msrb.mxu1 %v3347_v38 }
 0xf8c   :  { %v3214_v22 = vpop.f32.mrf.mxu2 }
 0xf8d   :  { %v3215_v5 = vadd.f32 %v9920_v43, %v3214_v22  ;;  %v3346_v22 = vld [vmem:[#allocation2 + $0x148] sm:$0xff] }
 0xf8e   :  { %3363 = vmatpush.msrb.mxu1 %v3346_v22 }
 0xf8f   :  { %v3218_v41 = vadd.f32 %v3215_v5, %v3144_v19  ;;  %v3345_v5 = vld [vmem:[#allocation2 + $0x140] sm:$0xff] }
 0xf90   :  { %3364 = vmatpush.msrb.mxu1 %v3345_v5 }
 0xf91   :  { %v3224_v15 = vsel %vm94_vm0, %v3218_v41, 0.0 }
 0xf92   :  { %3225 = vadd.xlane.f32.xlu1 %v3224_v15  ;;  %v3343_v15 = vld [vmem:[#allocation2 + $0x130] sm:$0xff] }
 0xff7   :  { %v3223_v39 = vpop.xlane.xlu0 %3222 }
 0xff8   :  { %v3227_v50 = vmul.f32 %v3223_v39, %v10809_v3  ;;  %v3342_v39 = vld [vmem:[#allocation2 + $0x128] sm:$0xff] }
 0xffa   :  { %v11401_v17 = vsub.f32 %v3217_v58, %v3227_v50  ;;  %v3341_v50 = vld [vmem:[#allocation2 + $0x120] sm:$0xff] }
 0xffc   :  { %v3231_v48 = vmul.f32 %v11401_v17, %v11401_v17 }
 0xffe   :  { %v3233_v4 = vsel %vm94_vm0, %v3231_v48, 0.0  ;;  %v3339_v48 = vld [vmem:[#allocation2 + $0x110] sm:$0xff] }
 0xfff   :  { %3234 = vadd.xlane.f32.xlu2 %v3233_v4  ;;  %v3338_v4 = vld [vmem:[#allocation2 + $0x108] sm:$0xff] }
0x1005   :  { %v3226_v63 = vpop.xlane.xlu1 %3225 }
0x1006   :  { %v3228_v24 = vmul.f32 %v3226_v63, %v10809_v3  ;;  %v9923_v63 = vld [vmem:[#allocation2 + $0x100] ss:$0 sm:$0xff] }
0x1008   :  { %v11407_v21 = vsub.f32 %v3218_v41, %v3228_v24  ;;  %v3344_v41 = vld [vmem:[#allocation2 + $0x138] sm:$0xff] }
0x1009   :  { %3365 = vmatpush.msrb.mxu1 %v3344_v41 }
0x100a   :  { %v3232_v30 = vmul.f32 %v11407_v21, %v11407_v21 }
0x100b   :  { %3366 = vmatpush.msrb.mxu1 %v3343_v15 }
0x100c   :  { %v3236_v13 = vsel %vm94_vm0, %v3232_v30, 0.0 }
0x100d   :  { %3237 = vadd.xlane.f32.xlu0 %v3236_v13  ;;  %3367 = vmatpush.msrb.mxu1 %v3342_v39  ;;  %v9924_v13 = vld [vmem:[#allocation2 + $0xd8] ss:$0 sm:$0xff] }
0x100f   :  { %3368 = vmatpush.msrb.mxu1 %v3341_v50 }
0x1072   :  { %v3235_v40 = vpop.xlane.xlu2 %3234 }
0x1073   :  { %v3239_v7 = vmul.f32 %v3235_v40, %v10809_v3 }
0x1075   :  { %v3241_v61 = vadd.f32 1e-05, %v3239_v7 }
0x1077   :  { %10029 = vrsqrt.f32 %v3241_v61  ;;  %vm3249_vm14 = vweird.f32 %v3241_v61 }
0x107d   :  { %v10030_v1 = vpop.eup %10029 }
0x107e   :  { %v3244_v49 = vmul.f32 %v10030_v1, %v3241_v61  ;;  %vm3250_vm13 = vweird.f32 %v10030_v1 }
0x107f   :  { %vm3251_vm15 = vmor %vm3249_vm14, %vm3250_vm13 }
0x1080   :  { %v3238_v11 = vpop.xlane.xlu0 %3237  ;;  %v3245_v33 = vmul.f32 %v10030_v1, %v3244_v49 }
0x1081   :  { %v3240_v25 = vmul.f32 %v3238_v11, %v10809_v3 }
0x1082   :  { %v3246_v16 = vmul.f32 0.5, %v3245_v33 }
0x1083   :  { %v3242_v55 = vadd.f32 1e-05, %v3240_v25  ;;  %v10189_v25 = vld [vmem:[#allocation2] sm:$0xff] }
0x1084   :  { %v3247_v35 = vsub.f32 1.5, %v3246_v16 }
0x1085   :  { %10031 = vrsqrt.f32 %v3242_v55  ;;  %vm3259_vm6 = vweird.f32 %v3242_v55 }
0x1086   :  { %v3248_v10 = vmul.f32 %v10030_v1, %v3247_v35 }
0x1088   :  { %v3252_v26 = vsel %vm3251_vm15, %v10030_v1, %v3248_v10  ;;  %v9925_v1 = vld [vmem:[#allocation2 + $0x188] ss:$0 sm:$0xff] }
0x1089   :  { %v3263_v59 = vmul.f32 %v3252_v26, %v11401_v17  ;;  %v3340_v17 = vld [vmem:[#allocation2 + $0x118] sm:$0xff] }
0x108a   :  { %3369 = vmatpush.msrb.mxu1 %v3340_v17 }
0x108b   :  { %v10032_v46 = vpop.eup %10031  ;;  %v3266_v42 = vmul.f32 %v9921_v52, %v3263_v59 }
0x108c   :  { %v3254_v2 = vmul.f32 %v10032_v46, %v3242_v55  ;;  %vm3260_vm5 = vweird.f32 %v10032_v46  ;;  %3370 = vmatpush.msrb.mxu1 %v3339_v48 }
0x108d   :  { %vm3261_vm7 = vmor %vm3259_vm6, %vm3260_vm5  ;;  %v11422_v43 = vadd.f32 %v9922_v12, %v3266_v42 }
0x108e   :  { %v3255_v19 = vmul.f32 %v10032_v46, %v3254_v2  ;;  %3371 = vmatpush.msrb.mxu1 %v3338_v4 }
0x108f   :  { %v3279_v57 = vrot.slane %v11422_v43, 7 }
0x1090   :  { %v3256_v23 = vmul.f32 0.5, %v3255_v19 }
0x1092   :  { %v3257_v56 = vsub.f32 1.5, %v3256_v23 }
0x1094   :  { %v3258_v37 = vmul.f32 %v10032_v46, %v3257_v56 }
0x1096   :  { %v3262_v44 = vsel %vm3261_vm7, %v10032_v46, %v3258_v37 }
0x1097   :  { %v3264_v47 = vmul.f32 %v3262_v44, %v11407_v21 }
0x1099   :  { %v3267_v60 = vmul.f32 %v9921_v52, %v3264_v47 }
0x109b   :  { %v11424_v31 = vadd.f32 %v9922_v12, %v3267_v60 }
0x109d   :  { %v3280_v58 = vrot.slane %v11424_v31, 6 }
0x109f   :  { %v3282_v8 = vsel %vm3281_vm8, %v3280_v58, %v3279_v57 }
0x10a0   :  { %9640 = vmatmul.msk.f32.vlgmr.msrb.gmra.mxu3 %vm94_vm0, %v3282_v8  ;;  %9641 = vmatmul.msk.f32.vlgmr.msrb.gmra.mxu0 %vm94_vm0, %v3282_v8 }
0x111d   :  { %v3328_v24 = vpop.f32.mrf.mxu0 }
0x111e   :  { %v3329_v21 = vadd.f32 %v9923_v63, %v3328_v24 }
0x1120   :  { %3332 = vst [vmem:[%s13636_s2 + $0x18] sm:$0x3] %v3329_v21  ;;  %v3333_v30 = vmul.f32 0.5, %v3329_v21 }
0x1122   :  { %v3334_v40 = vmul.f32 1.442695, %v3333_v30 }
0x1123   :  { %v3302_v7 = vpop.f32.mrf.mxu3 }
0x1124   :  { %10033 = vpow2.f32 %v3334_v40  ;;  %v3303_v61 = vadd.f32 %v9924_v13, %v3302_v7 }
0x1126   :  { %3331 = vst [vmem:[%s13636_s2 + $0x10] sm:$0x3] %v3303_v61 }
0x112a   :  { %v10034_v0 = vpop.eup %10033 }
0x112b   :  { %v3336_v34 = vmul.f32 %v10034_v0, %v39_v54 }
0x112d   :  { %v3337_v20 = vadd.f32 %v3336_v34, %v3303_v61 }
0x112f   :  { %3372 = vmatmul.f32.vlgmr.msrb.gmra.mxu1 %v3337_v20 }
0x11ac   :  { %v3373_v49 = vpop.f32.mrf.mxu1 }
0x11ad   :  { %v3374_v11 = vadd.f32 %v9925_v1, %v3373_v49 }
0x11af   :  { %v3378_v45 = vperm.slane %v3374_v11, 0  ;;  %v3377_v27 = vrot.slane %v3374_v11, 1 }
0x11b1   :  { %v11439_v28 = vadd.f32 %v10189_v25, %v3378_v45  ;;  %v3379_v33 = vperm.slane %v3377_v27, 0 }
0x11b3   :  { %9642 = vmatmul.msk.f32.vlgmr.msra.gmra.mxu3 %vm94_vm0, %v11439_v28  ;;  %v11443_v55 = vadd.f32 %v10190_v29, %v3379_v33 }
0x11bb   :  { %9643 = vmatmul.msk.f32.gmra.mxu3 %vm94_vm0, %v11443_v55 }
0x1236   :  { %v3418_v16 = vpop.f32.mrf.mxu3 }
0x1237   :  { %v3419_v32 = vadd.f32 %v9926_v36, %v3418_v16 }
0x1239   :  { %v11477_v52 = vmul.f32 0.35355338, %v3419_v32 }
0x123e   :  { %v3421_v35 = vpop.f32.mrf.mxu3 }
0x123f   :  { %v3422_v9 = vadd.f32 %v9926_v36, %v3421_v35 }
0x1241   :  { %3678 = vrot.lane.b32.xlu0 %v3422_v9, %s10227_s20  ;;  %3674 = vrot.lane.b32.xlu2 %v3422_v9, %s10226_s19  ;;  %v9826_v10 = vpack.i.bf16 %v3419_v32, %v3422_v9  ;;  %v11485_v59 = vmul.f32 0.35355338, %v3422_v9 }
0x1242   :  { %3670 = vrot.lane.b32.xlu1 %v3422_v9, %s10228_s21 }
0x1249   :  { %3672 = vrot.lane.b32.xlu0 %v3419_v32, %s10226_s19  ;;  %3676 = vrot.lane.b32.xlu2 %v3419_v32, %s10227_s20 }
0x124a   :  { %3668 = vrot.lane.b32.xlu1 %v3419_v32, %s10228_s21 }
0x1252   :  { %3680 = vrot.lane.b32.xlu1 %v3419_v32, %s10229_s22 }
0x125a   :  { %3682 = vrot.lane.b32.xlu1 %v3422_v9, %s10229_s22 }
0x129b   :  { %v11455_v38 = vpop.permute.xlu2 %3674 }
0x12a3   :  { %v11457_v46 = vpop.permute.xlu2 %3676 }
0x12a4   :  { %3692 = vrot.lane.b32.xlu0 %v11457_v46, %s10229_s22 }
0x12b3   :  { %v11461_v2 = vpop.permute.xlu0 %3678 }
0x12b4   :  { %v11463_v26 = vpop.permute.xlu1 %3670 }
0x12b5   :  { %3686 = vrot.lane.b32.xlu0 %v11463_v26, %s10229_s22 }
0x12bb   :  { %v11467_v19 = vpop.permute.xlu0 %3672 }
0x12bc   :  { %v11469_v23 = vpop.permute.xlu1 %3668  ;;  %3688 = vrot.lane.b32.xlu1 %v11467_v19, %s10229_s22 }
0x12bd   :  { %3694 = vrot.lane.b32.xlu0 %v11461_v2, %s10229_s22  ;;  %3684 = vrot.lane.b32.xlu2 %v11469_v23, %s10229_s22 }
0x12c4   :  { %3434 = vrot.lane.b32.xlu1 %v11477_v52, %s10226_s19  ;;  %v3681_v37 = vpop.permute.xlu1 %3680 }
0x12c5   :  { %3440 = vrot.lane.b32.xlu0 %v11477_v52, %s10227_s20  ;;  %3690 = vrot.lane.b32.xlu2 %v11455_v38, %s10229_s22  ;;  %v3706_v50 = vrot.slane %v3681_v37, 4 }
0x12cc   :  { %3436 = vrot.lane.b32.xlu1 %v11485_v59, %s10226_s19  ;;  %v3683_v44 = vpop.permute.xlu1 %3682 }
0x12cd   :  { %3428 = vrot.lane.b32.xlu2 %v11477_v52, %s10228_s21  ;;  %3442 = vrot.lane.b32.xlu0 %v11485_v59, %s10227_s20  ;;  %v3762_v8 = vrot.slane %v3683_v44, 4 }
0x12d5   :  { %9827 = vrot.lane.b32.xlu0 %v9826_v10, %s10230_s23  ;;  %3430 = vrot.lane.b32.xlu2 %v11485_v59, %s10228_s21 }
0x1316   :  { %v3693_v42 = vpop.permute.xlu0 %3692 }
0x1317   :  { %v3685_v56 = vpop.permute.xlu2 %3684  ;;  %v3716_v47 = vrot.slane %v3693_v42, 4 }
0x1318   :  { %v3718_v60 = vrot.slane %v3685_v56, 4 }
0x1319   :  { %v3717_v22 = vsel %vm147_vm1, %v3716_v47, %v3685_v56 }
0x131a   :  { %v3719_v5 = vsel %vm147_vm1, %v3693_v42, %v3718_v60  ;;  %v3723_v39 = vperm.slane %v3717_v22, %v10322_v53 }
0x131b   :  { %v3727_v17 = vperm.slane %v3719_v5, %v10322_v53 }
0x131c   :  { %v3728_v7 = vrot.slane %v3723_v39, 4 }
0x131d   :  { %v3740_v34 = vrot.slane %v3727_v17, 4 }
0x131f   :  { %v3691_v12 = vpop.permute.xlu2 %3690 }
0x1320   :  { %v3760_v57 = vrot.slane %v3691_v12, 4  ;;  %v3763_v41 = vsel %vm147_vm1, %v3691_v12, %v3762_v8 }
0x1321   :  { %v3771_v48 = vperm.slane %v3763_v41, %v10322_v53 }
0x1322   :  { %v3761_v15 = vsel %vm147_vm1, %v3760_v57, %v3683_v44 }
0x1323   :  { %v3767_v63 = vperm.slane %v3761_v15, %v10322_v53  ;;  %v3798_v20 = vrot.slane %v3771_v48, 4 }
0x1325   :  { %v3786_v14 = vrot.slane %v3767_v63, 4 }
0x1327   :  { %v3687_v58 = vpop.permute.xlu0 %3686  ;;  %v11503_v4 = vpop.permute.xlu2 %3428 }
0x1328   :  { %v3774_v24 = vrot.slane %v3687_v58, 4 }
0x132e   :  { %v3689_v21 = vpop.permute.xlu1 %3688 }
0x132f   :  { %v3695_v30 = vpop.permute.xlu0 %3694  ;;  %v3704_v13 = vrot.slane %v3689_v21, 4  ;;  %v3707_v40 = vsel %vm147_vm1, %v3689_v21, %v3706_v50  ;;  %v3460_v50 = vrot.slane %v11503_v4, 4 }
0x1330   :  { %v3772_v61 = vrot.slane %v3695_v30, 4  ;;  %v3775_v54 = vsel %vm147_vm1, %v3695_v30, %v3774_v24  ;;  %v3715_v0 = vperm.slane %v3707_v40, %v10322_v53 }
0x1331   :  { %v3783_v6 = vperm.slane %v3775_v54, %v10322_v53  ;;  %v3705_v51 = vsel %vm147_vm1, %v3704_v13, %v3681_v37 }
0x1332   :  { %v3773_v18 = vsel %vm147_vm1, %v3772_v61, %v3687_v58  ;;  %v3711_v1 = vperm.slane %v3705_v51, %v10322_v53  ;;  %v3742_v49 = vrot.slane %v3715_v0, 4  ;;  %v3741_v25 = vsel %vm147_vm1, %v3740_v34, %v3715_v0  ;;  %v3431_v58 = vpop.permute.xlu2 %3430 }
0x1333   :  { %v3779_v11 = vperm.slane %v3773_v18, %v10322_v53  ;;  %v3796_v45 = vrot.slane %v3783_v6, 4  ;;  %v3799_v27 = vsel %vm147_vm1, %v3783_v6, %v3798_v20  ;;  %v11530_v57 = vperm.slane %v3741_v25, %v10327_v62 }
0x1334   :  { %v3807_v33 = vperm.slane %v3799_v27, %v10327_v62  ;;  %v3729_v29 = vsel %vm147_vm1, %v3728_v7, %v3711_v1  ;;  %v3730_v16 = vrot.slane %v3711_v1, 4  ;;  %v3743_v36 = vsel %vm147_vm1, %v3727_v17, %v3742_v49 }
0x1335   :  { %v3784_v35 = vrot.slane %v3779_v11, 4  ;;  %v3787_v32 = vsel %vm147_vm1, %v3779_v11, %v3786_v14  ;;  %v3797_v9 = vsel %vm147_vm1, %v3796_v45, %v3771_v48  ;;  %v11522_v10 = vperm.slane %v3729_v29, %v10327_v62 }
0x1336   :  { %v3795_v56 = vperm.slane %v3787_v32, %v10327_v62  ;;  %v3803_v37 = vperm.slane %v3797_v9, %v10327_v62  ;;  %v3814_v42 = vrot.slane %v3807_v33, 4  ;;  %v3731_v12 = vsel %vm147_vm1, %v3723_v39, %v3730_v16  ;;  %v3435_v44 = vpop.permute.xlu1 %3434 }
0x1337   :  { %v3785_v47 = vsel %vm147_vm1, %v3784_v35, %v3767_v63  ;;  %v3739_v60 = vperm.slane %v3731_v12, %v10327_v62  ;;  %v3441_v8 = vpop.permute.xlu0 %3440  ;;  %v3751_v39 = vperm.slane %v3743_v36, %v10327_v62  ;;  %v3448_v17 = vrot.slane %v11477_v52, 4 }
0x1338   :  { %v3791_v22 = vperm.slane %v3785_v47, %v10327_v62  ;;  %v3810_v5 = vrot.slane %v3795_v56, 4  ;;  %v3812_v41 = vrot.slane %v3803_v37, 4  ;;  %v3815_v15 = vsel %vm147_vm1, 0.0, %v3814_v42 }
0x1339   :  { %v3504_v48 = vrot.slane %v11485_v59, 4  ;;  %v3881_v63 = vsel %vm147_vm1, %v3814_v42, %v3803_v37  ;;  %v3886_v24 = vrot.slane %v3815_v15, 4  ;;  %v3752_v21 = vrot.slane %v11522_v10, 4 }
0x133a   :  { %v3516_v30 = vrot.slane %v3431_v58, 4  ;;  %v3808_v13 = vrot.slane %v3791_v22, 4  ;;  %v3811_v40 = vsel %vm147_vm1, 0.0, %v3810_v5  ;;  %v3813_v7 = vsel %vm147_vm1, 0.0, %v3812_v41 }
0x133b   :  { %v11542_v61 = vrot.slane %v3739_v60, 4  ;;  %v3756_v54 = vrot.slane %v11530_v57, 4  ;;  %v3458_v0 = vrot.slane %v3441_v8, 4  ;;  %v3461_v34 = vsel %vm147_vm1, %v3441_v8, %v3460_v50 }
0x133c   :  { %v3446_v20 = vrot.slane %v3435_v44, 4  ;;  %v11547_v6 = vperm.slane %v3881_v63, %v10322_v53  ;;  %v3758_v51 = vrot.slane %v3751_v39, 4  ;;  %v3469_v14 = vperm.slane %v3461_v34, %v10322_v53 }
0x133d   :  { %v3449_v18 = vsel %vm147_vm1, %v3435_v44, %v3448_v17  ;;  %v3875_v1 = vrot.slane %v3811_v40, 4  ;;  %v11552_v49 = vsel %vm147_vm1, %v3886_v24, %v3813_v7  ;;  %v3459_v11 = vsel %vm147_vm1, %v3458_v0, %v11503_v4 }
0x133e   :  { %v3447_v45 = vsel %vm147_vm1, %v3446_v20, %v11477_v52  ;;  %v3437_v27 = vpop.permute.xlu1 %3436  ;;  %v11560_v25 = vsel %vm147_vm1, 0.0, %v11542_v61  ;;  %v3465_v33 = vperm.slane %v3459_v11, %v10322_v53  ;;  %v3482_v29 = vrot.slane %v3469_v14, 4 }
0x133f   :  { %v3443_v16 = vpop.permute.xlu0 %3442  ;;  %v3809_v36 = vsel %vm147_vm1, 0.0, %v3808_v13  ;;  %v3453_v35 = vperm.slane %v3447_v45, %v10322_v53  ;;  %v3457_v32 = vperm.slane %v3449_v18, %v10322_v53  ;;  %v3759_v52 = vsel %vm147_vm1, 0.0, %v3758_v51 }
0x1340   :  { %v3514_v9 = vrot.slane %v3443_v16, 4  ;;  %v3517_v4 = vsel %vm147_vm1, %v3443_v16, %v3516_v30  ;;  %v3827_v56 = vsel %vm147_vm1, %v3758_v51, %v11530_v57  ;;  %v3470_v37 = vrot.slane %v3465_v33, 4 }
0x1341   :  { %v3502_v42 = vrot.slane %v3437_v27, 4  ;;  %v3472_v12 = vrot.slane %v3453_v35, 4  ;;  %v3483_v44 = vsel %vm147_vm1, %v3482_v29, %v3457_v32  ;;  %v3484_v47 = vrot.slane %v3457_v32, 4 }
0x1342   :  { %v3515_v60 = vsel %vm147_vm1, %v3514_v9, %v3431_v58  ;;  %v3471_v8 = vsel %vm147_vm1, %v3470_v37, %v3453_v35  ;;  %v3489_v41 = vperm.slane %v3483_v44, %v10327_v62  ;;  %v3525_v50 = vperm.slane %v3517_v4, %v10322_v53 }
0x1343   :  { %v3521_v15 = vperm.slane %v3515_v60, %v10322_v53  ;;  %v3473_v39 = vsel %vm147_vm1, %v3465_v33, %v3472_v12  ;;  %v11578_v57 = vperm.slane %v3471_v8, %v10327_v62  ;;  %v3485_v17 = vsel %vm147_vm1, %v3469_v14, %v3484_v47 }
0x1344   :  { %v3503_v63 = vsel %vm147_vm1, %v3502_v42, %v11485_v59  ;;  %v3832_v24 = vrot.slane %v3759_v52, 4  ;;  %v3481_v58 = vperm.slane %v3473_v39, %v10327_v62  ;;  %v3493_v30 = vperm.slane %v3485_v17, %v10327_v62 }
0x1345   :  { %v3526_v13 = vrot.slane %v3521_v15, 4  ;;  %v3498_v40 = vrot.slane %v3489_v41, 4  ;;  %v3505_v7 = vsel %vm147_vm1, %v3437_v27, %v3504_v48  ;;  %v3509_v0 = vperm.slane %v3503_v63, %v10322_v53 }
0x1346   :  { %v3870_v34 = vsel %vm147_vm1, %v3810_v5, %v3791_v22  ;;  %v11588_v20 = vrot.slane %v3481_v58, 4  ;;  %v3500_v51 = vrot.slane %v3493_v30, 4  ;;  %v3538_v14 = vrot.slane %v3525_v50, 4 }
0x1347   :  { %v3513_v18 = vperm.slane %v3505_v7, %v10322_v53  ;;  %v3757_v59 = vsel %vm147_vm1, 0.0, %v3756_v54  ;;  %v11593_v11 = vperm.slane %v3827_v56, %v10322_v53  ;;  %v3494_v45 = vrot.slane %v11578_v57, 4 }
0x1348   :  { %v3528_v33 = vrot.slane %v3509_v0, 4  ;;  %v3833_v48 = vsel %vm147_vm1, %v3832_v24, %v3757_v59  ;;  %v3501_v27 = vsel %vm147_vm1, 0.0, %v3500_v51  ;;  %v3527_v22 = vsel %vm147_vm1, %v3526_v13, %v3509_v0 }
0x1349   :  { %v3876_v5 = vsel %vm147_vm1, %v3875_v1, %v3809_v36  ;;  %v11602_v29 = vsel %vm147_vm1, 0.0, %v11588_v20  ;;  %v3499_v54 = vsel %vm147_vm1, 0.0, %v3498_v40  ;;  %v3569_v16 = vsel %vm147_vm1, %v3500_v51, %v3489_v41 }
0x134a   :  { %v3874_v35 = vperm.slane %v3870_v34, %v10322_v53  ;;  %v3574_v32 = vrot.slane %v3501_v27, 4  ;;  %v3529_v9 = vsel %vm147_vm1, %v3521_v15, %v3528_v33  ;;  %v3539_v4 = vsel %vm147_vm1, %v3538_v14, %v3513_v18 }
0x134b   :  { %v3540_v52 = vrot.slane %v3513_v18, 4  ;;  %v3495_v56 = vsel %vm147_vm1, 0.0, %v3494_v45  ;;  %v11611_v1 = vperm.slane %v3527_v22, %v10327_v62  ;;  %v3545_v36 = vperm.slane %v3539_v4, %v10327_v62 }
0x134c   :  { %v3880_v37 = vperm.slane %v3876_v5, %v10322_v53  ;;  %v3563_v42 = vrot.slane %v11602_v29, 4  ;;  %v11617_v12 = vperm.slane %v3569_v16, %v10322_v53  ;;  %v3891_v47 = vperm.slane %v11552_v49, %v10322_v53 }
0x134d   :  { %v3541_v44 = vsel %vm147_vm1, %v3525_v50, %v3540_v52  ;;  %v3537_v60 = vperm.slane %v3529_v9, %v10327_v62  ;;  %v3894_v41 = vrot.slane %v3874_v35, 4  ;;  %v3906_v15 = vrot.slane %v11547_v6, 4 }
0x134e   :  { %v3549_v8 = vperm.slane %v3541_v44, %v10327_v62  ;;  %v3575_v39 = vsel %vm147_vm1, %v3574_v32, %v3499_v54  ;;  %v3554_v17 = vrot.slane %v3545_v36, 4  ;;  %v3892_v63 = vrot.slane %v3880_v37, 4 }
0x134f   :  { %v3904_v24 = vrot.slane %v3891_v47, 4  ;;  %v3550_v58 = vrot.slane %v11611_v1, 4  ;;  %v3895_v50 = vsel %vm147_vm1, %v3880_v37, %v3894_v41  ;;  %v3907_v13 = vsel %vm147_vm1, %v3891_v47, %v3906_v15 }
0x1350   :  { %v3556_v30 = vrot.slane %v3549_v8, 4  ;;  %v11630_v49 = vperm.slane %v3895_v50, %v10327_v62  ;;  %v3915_v40 = vperm.slane %v3907_v13, %v10327_v62  ;;  %v3893_v7 = vsel %vm147_vm1, %v3892_v63, %v3874_v35 }
0x1351   :  { %v3905_v0 = vsel %vm147_vm1, %v3904_v24, %v11547_v6  ;;  %v11637_v34 = vperm.slane %v3575_v39, %v10322_v53  ;;  %v3594_v51 = vrot.slane %v11617_v12, 4  ;;  %v3899_v14 = vperm.slane %v3893_v7, %v10327_v62 }
0x1352   :  { %v3911_v18 = vperm.slane %v3905_v0, %v10327_v62  ;;  %v11642_v59 = vrot.slane %v3537_v60, 4  ;;  %v11645_v45 = vsel %vm147_vm1, 0.0, %v3554_v17  ;;  %v11648_v33 = vsel %vm147_vm1, 0.0, %v3556_v30 }
0x1353   :  { %v3920_v27 = vrot.slane %v3915_v40, 4  ;;  %v3623_v6 = vsel %vm147_vm1, %v3556_v30, %v3545_v36  ;;  %v3918_v5 = vrot.slane %v3899_v14, 4  ;;  %v3753_v29 = vsel %vm147_vm1, 0.0, %v3752_v21 }
0x1354   :  { %v3916_v22 = vrot.slane %v3911_v18, 4  ;;  %v3816_v16 = vsel %vm147_vm1, %v11542_v61, %v11522_v10  ;;  %v3821_v35 = vrot.slane %v11560_v25, 4  ;;  %v3837_v32 = vperm.slane %v3833_v48, %v10322_v53 }
0x1355   :  { %v3921_v54 = vsel %vm147_vm1, %v3920_v27, %v11630_v49  ;;  %v3919_v4 = vsel %vm147_vm1, %v3911_v18, %v3918_v5  ;;  %v3820_v52 = vperm.slane %v3816_v16, %v10322_v53  ;;  %v3852_v21 = vrot.slane %v11593_v11, 4 }
0x1356   :  { %9652 = vmatpush.xpose.msk.msrb.mxu3 %vm869_vm2, %v3921_v54  ;;  %v3917_v9 = vsel %vm147_vm1, %v3916_v22, %v3899_v14  ;;  %v11667_v36 = vperm.slane %v3623_v6, %v10322_v53  ;;  %9648 = vmatpush.xpose.msk.msrb.mxu2 %vm869_vm2, %v3919_v4  ;;  %v3822_v10 = vsel %vm147_vm1, %v3821_v35, %v3753_v29  ;;  %v3850_v61 = vrot.slane %v3837_v32, 4 }
0x1357   :  { %9644 = vmatpush.xpose.msk.msra.mxu0 %vm869_vm2, %v3917_v9  ;;  %v3558_v25 = vsel %vm147_vm1, %v11588_v20, %v11578_v57  ;;  %v3826_v48 = vperm.slane %v3822_v10, %v10322_v53  ;;  %v3840_v37 = vrot.slane %v3820_v52, 4  ;;  %v3853_v44 = vsel %vm147_vm1, %v3837_v32, %v3852_v21 }
0x1358   :  { %v3562_v47 = vperm.slane %v3558_v25, %v10322_v53  ;;  %v3861_v60 = vperm.slane %v3853_v44, %v10327_v62  ;;  %v3851_v8 = vsel %vm147_vm1, %v3850_v61, %v11593_v11  ;;  %v3922_v41 = vrot.slane %v11630_v49, 4 }
0x1359   :  { %v3564_v15 = vsel %vm147_vm1, %v3563_v42, %v3495_v56  ;;  %v3841_v39 = vsel %vm147_vm1, %v3826_v48, %v3840_v37  ;;  %v3838_v17 = vrot.slane %v3826_v48, 4  ;;  %v3857_v57 = vperm.slane %v3851_v8, %v10327_v62 }
0x135a   :  { %v3568_v20 = vperm.slane %v3564_v15, %v10322_v53  ;;  %v3849_v63 = vperm.slane %v3841_v39, %v10327_v62  ;;  %v3866_v24 = vrot.slane %v3861_v60, 4  ;;  %v3582_v30 = vrot.slane %v3562_v47, 4 }
0x135b   :  { %v3595_v50 = vsel %vm147_vm1, %v11637_v34, %v3594_v51  ;;  %v3839_v11 = vsel %vm147_vm1, %v3838_v17, %v3820_v52  ;;  %v3862_v13 = vrot.slane %v3857_v57, 4  ;;  %v3628_v42 = vrot.slane %v11648_v33, 4 }
0x135c   :  { %v11691_v49 = vperm.slane %v3595_v50, %v10327_v62  ;;  %v3580_v56 = vrot.slane %v3568_v20, 4  ;;  %v3867_v7 = vsel %vm147_vm1, %v3866_v24, %v3849_v63  ;;  %v3845_v0 = vperm.slane %v3839_v11, %v10327_v62 }
0x135d   :  { %v3583_v14 = vsel %vm147_vm1, %v3568_v20, %v3582_v30  ;;  %9653 = vmatpush.xpose.msk.msrb.mxu3 %vm869_vm2, %v3867_v7  ;;  %v3592_v6 = vrot.slane %v11637_v34, 4  ;;  %v3923_v33 = vsel %vm147_vm1, %v3915_v40, %v3922_v41  ;;  %v3868_v16 = vrot.slane %v3849_v63, 4 }
0x135e   :  { %v3591_v18 = vperm.slane %v3583_v14, %v10327_v62  ;;  %v3608_v51 = vrot.slane %v11691_v49, 4  ;;  %v3581_v27 = vsel %vm147_vm1, %v3580_v56, %v3562_v47  ;;  %v3863_v22 = vsel %vm147_vm1, %v3862_v13, %v3845_v0 }
0x135f   :  { %v3864_v5 = vrot.slane %v3845_v0, 4  ;;  %v3587_v29 = vperm.slane %v3581_v27, %v10327_v62  ;;  %9645 = vmatpush.xpose.msk.msra.mxu0 %vm869_vm2, %v3863_v22  ;;  %v3593_v35 = vsel %vm147_vm1, %v3592_v6, %v11617_v12  ;;  %v3553_v32 = vsel %vm147_vm1, 0.0, %v11642_v59 }
0x1360   :  { %v3609_v54 = vsel %vm147_vm1, %v3608_v51, %v3591_v18  ;;  %v3599_v40 = vperm.slane %v3593_v35, %v10327_v62  ;;  %v3612_v4 = vsel %vm147_vm1, %v11642_v59, %v11611_v1  ;;  %v3617_v52 = vrot.slane %v3553_v32, 4  ;;  %v10191_v51 = vld [vmem:[#allocation2 + $0x10] sm:$0xff] }
0x1361   :  { %v3865_v34 = vsel %vm147_vm1, %v3857_v57, %v3864_v5  ;;  %9654 = vmatmul.msk.f32.vlgmr.msrb.gmra.mxu3 %vm869_vm2, %v3609_v54  ;;  %v3606_v9 = vrot.slane %v3587_v29, 4  ;;  %v3616_v12 = vperm.slane %v3612_v4, %v10322_v53  ;;  %v3629_v21 = vsel %vm147_vm1, %v3628_v42, %v11645_v45 }
0x1362   :  { %9649 = vmatpush.xpose.msk.msrb.mxu2 %vm869_vm2, %v3865_v34  ;;  %v3648_v10 = vrot.slane %v11667_v36, 4  ;;  %v3604_v61 = vrot.slane %v3599_v40, 4  ;;  %v3551_v48 = vsel %vm147_vm1, 0.0, %v3550_v58  ;;  %v3633_v37 = vperm.slane %v3629_v21, %v10322_v53 }
0x1363   :  { %9656 = vmatpush.xpose.msk.msrb.mxu0 %vm869_vm2, %v3923_v33  ;;  %v3607_v25 = vsel %vm147_vm1, %v3599_v40, %v3606_v9  ;;  %v3869_v59 = vsel %vm147_vm1, %v3861_v60, %v3868_v16  ;;  %v3618_v44 = vsel %vm147_vm1, %v3617_v52, %v3551_v48  ;;  %v3636_v47 = vrot.slane %v3616_v12, 4  ;;  %v10192_v16 = vld [vmem:[#allocation2 + $0x18] sm:$0xff] }
0x1364   :  { %v3605_v45 = vsel %vm147_vm1, %v3604_v61, %v3587_v29  ;;  %v3622_v8 = vperm.slane %v3618_v44, %v10322_v53  ;;  %v3649_v41 = vsel %vm147_vm1, %v3633_v37, %v3648_v10  ;;  %v3646_v1 = vrot.slane %v3633_v37, 4 }
0x1365   :  { %9650 = vmatmul.msk.f32.vlgmr.msrb.gmra.mxu2 %vm869_vm2, %v3607_v25  ;;  %9646 = vmatmul.msk.f32.vlgmr.msra.gmra.mxu0 %vm869_vm2, %v3605_v45  ;;  %v3657_v58 = vperm.slane %v3649_v41, %v10327_v62  ;;  %v3610_v56 = vrot.slane %v3591_v18, 4  ;;  %v9836_v44 = vpack.i.bf16 %v11467_v19, %v11469_v23  ;;  %v11772_v45 = vpop.permute.xlu0 %9827 }
0x1366   :  { %v3637_v60 = vsel %vm147_vm1, %v3622_v8, %v3636_v47  ;;  %v3634_v15 = vrot.slane %v3622_v8, 4  ;;  %v3647_v39 = vsel %vm147_vm1, %v3646_v1, %v11667_v36  ;;  %v9831_v47 = vpack.i.bf16 %v11455_v38, %v11463_v26 }
0x1367   :  { %9657 = vmatpush.xpose.msk.msrb.mxu0 %vm869_vm2, %v3869_v59  ;;  %v3645_v17 = vperm.slane %v3637_v60, %v10327_v62  ;;  %v3662_v57 = vrot.slane %v3657_v58, 4  ;;  %v3653_v20 = vperm.slane %v3647_v39, %v10327_v62  ;;  %v3611_v42 = vsel %vm147_vm1, %v11691_v49, %v3610_v56 }
0x1368   :  { %v3635_v63 = vsel %vm147_vm1, %v3634_v15, %v3616_v12  ;;  %v9841_v59 = vpack.i.bf16 %v11457_v46, %v11461_v2 }
0x1369   :  { %v3663_v24 = vsel %vm147_vm1, %v3662_v57, %v3645_v17  ;;  %v3641_v30 = vperm.slane %v3635_v63, %v10327_v62  ;;  %v3658_v50 = vrot.slane %v3653_v20, 4  ;;  %v3664_v7 = vrot.slane %v3645_v17, 4 }
0x136a   :  { %9655 = vmatmul.msk.f32.gmra.mxu3 %vm869_vm2, %v3663_v24 }
0x136b   :  { %v3659_v11 = vsel %vm147_vm1, %v3658_v50, %v3641_v30  ;;  %v3660_v13 = vrot.slane %v3641_v30, 4  ;;  %v3665_v0 = vsel %vm147_vm1, %v3657_v58, %v3664_v7 }
0x136d   :  { %9647 = vmatmul.msk.f32.gmra.mxu0 %vm869_vm2, %v3659_v11  ;;  %v3661_v36 = vsel %vm147_vm1, %v3653_v20, %v3660_v13 }
0x136e   :  { %9651 = vmatmul.msk.f32.gmra.mxu2 %vm869_vm2, %v3661_v36 }
0x1375   :  { %9658 = vmatmul.msk.f32.vlgmr.msrb.gmra.mxu0 %vm869_vm2, %v3611_v42 }
0x137d   :  { %9659 = vmatmul.msk.f32.gmra.mxu0 %vm869_vm2, %v3665_v0 }
0x13e2   :  { %v4197_v14 = vpop.f32.mrf.mxu0 }
0x13e3   :  { %v4198_v27 = vadd.f32 %v10191_v51, %v4197_v14 }
0x13e4   :  { %v4267_v6 = vpop.f32.mrf.mxu3 }
0x13e5   :  { %v4268_v22 = vadd.f32 %v10191_v51, %v4267_v6  ;;  %v4308_v33 = vsel %vm1010_vm3, %v4198_v27, -inf }
0x13e6   :  { %4309 = vmax.xlane.f32.xlu1 %v4308_v33 }
0x13e7   :  { %v4320_v18 = vsel %vm1010_vm3, %v4268_v22, -inf }
0x13e8   :  { %v4232_v5 = vpop.f32.mrf.mxu2  ;;  %4321 = vmax.xlane.f32.xlu2 %v4320_v18 }
0x13e9   :  { %v4233_v49 = vadd.f32 %v10191_v51, %v4232_v5  ;;  %v9829_v5 = vunpack.i.l.bf16 %v11772_v45 }
0x13ea   :  { %v4200_v29 = vpop.f32.mrf.mxu0 }
0x13eb   :  { %v4314_v54 = vsel %vm1010_vm3, %v4233_v49, -inf  ;;  %v4201_v35 = vadd.f32 %v10192_v16, %v4200_v29 }
0x13ec   :  { %4315 = vmax.xlane.f32.xlu0 %v4314_v54 }
0x13ed   :  { %v4270_v32 = vpop.f32.mrf.mxu3  ;;  %v4311_v34 = vsel %vm1010_vm3, %v4201_v35, -inf }
0x13ee   :  { %v4271_v40 = vadd.f32 %v10192_v16, %v4270_v32  ;;  %4312 = vmax.xlane.f32.xlu1 %v4311_v34 }
0x13f0   :  { %v4323_v52 = vsel %vm1010_vm3, %v4271_v40, -inf }
0x13f1   :  { %v4235_v9 = vpop.f32.mrf.mxu2 }
0x13f2   :  { %v4236_v4 = vadd.f32 %v10192_v16, %v4235_v9  ;;  %v4302_v12 = vpop.f32.mrf.mxu0 }
0x13f3   :  { %v4303_v21 = vadd.f32 %v10191_v51, %v4302_v12 }
0x13f4   :  { %4324 = vmax.xlane.f32.xlu0 %v4323_v52  ;;  %v4317_v10 = vsel %vm1010_vm3, %v4236_v4, -inf }
0x13f5   :  { %v4326_v61 = vsel %vm1010_vm3, %v4303_v21, -inf }
0x13f6   :  { %4327 = vmax.xlane.f32.xlu2 %v4326_v61  ;;  %4318 = vmax.xlane.f32.xlu1 %v4317_v10 }
0x13fa   :  { %v4305_v25 = vpop.f32.mrf.mxu0 }
0x13fb   :  { %v4306_v48 = vadd.f32 %v10192_v16, %v4305_v25  ;;  %v4006_v16 = vrot.slane %v9829_v5, 4 }
0x13fd   :  { %v4329_v37 = vsel %vm1010_vm3, %v4306_v48, -inf }
0x13fe   :  { %4330 = vmax.xlane.f32.xlu2 %v4329_v37  ;;  %v9830_v37 = vunpack.i.h.bf16 %v11772_v45 }
0x1408   :  { %9842 = vrot.lane.b32.xlu0 %v9841_v59, %s10230_s23 }
0x140f   :  { %9837 = vrot.lane.b32.xlu1 %v9836_v44, %s10230_s23 }
0x1416   :  { %9832 = vrot.lane.b32.xlu2 %v9831_v47, %s10230_s23 }
0x1459   :  { %v4310_v8 = vpop.xlane.xlu1 %4309 }
0x145a   :  { %v4332_v41 = vsub.f32 %v4198_v27, %v4310_v8 }
0x145b   :  { %v4322_v1 = vpop.xlane.xlu2 %4321 }
0x145c   :  { %v4336_v58 = vsub.f32 %v4268_v22, %v4322_v1  ;;  %v4340_v60 = vmul.f32 1.442695, %v4332_v41 }
0x145e   :  { %v4348_v46 = vmul.f32 1.442695, %v4336_v58  ;;  %10035 = vpow2.f32 %v4340_v60 }
0x145f   :  { %v4316_v2 = vpop.xlane.xlu0 %4315 }
0x1460   :  { %10037 = vpow2.f32 %v4348_v46  ;;  %v4334_v63 = vsub.f32 %v4233_v49, %v4316_v2 }
0x1461   :  { %v4313_v15 = vpop.xlane.xlu1 %4312 }
0x1462   :  { %v4333_v19 = vsub.f32 %v4201_v35, %v4313_v15  ;;  %v4344_v7 = vmul.f32 1.442695, %v4334_v63 }
0x1464   :  { %v11774_v23 = vpop.eup %10035  ;;  %v4342_v39 = vmul.f32 1.442695, %v4333_v19 }
0x1465   :  { %v4356_v38 = vsel %vm1010_vm3, %v11774_v23, 0.0 }
0x1466   :  { %v11776_v17 = vpop.eup %10037  ;;  %10039 = vpow2.f32 %v4342_v39  ;;  %4357 = vadd.xlane.f32.xlu0 %v4356_v38 }
0x1467   :  { %v4325_v26 = vpop.xlane.xlu0 %4324  ;;  %v4368_v57 = vsel %vm1010_vm3, %v11776_v17, 0.0 }
0x1468   :  { %v4337_v20 = vsub.f32 %v4271_v40, %v4325_v26  ;;  %4369 = vadd.xlane.f32.xlu2 %v4368_v57  ;;  %v3950_v57 = vrot.slane %v9830_v37, 4 }
0x1469   :  { %v4328_v30 = vpop.xlane.xlu2 %4327  ;;  %v4319_v50 = vpop.xlane.xlu1 %4318 }
0x146a   :  { %v4350_v24 = vmul.f32 1.442695, %v4337_v20  ;;  %v4338_v11 = vsub.f32 %v4303_v21, %v4328_v30  ;;  %v4335_v13 = vsub.f32 %v4236_v4, %v4319_v50 }
0x146c   :  { %10041 = vpow2.f32 %v4350_v24  ;;  %v11782_v36 = vpop.eup %10039  ;;  %v4352_v56 = vmul.f32 1.442695, %v4338_v11  ;;  %v4346_v42 = vmul.f32 1.442695, %v4335_v13 }
0x146d   :  { %v4359_v0 = vsel %vm1010_vm3, %v11782_v36, 0.0 }
0x146e   :  { %10043 = vpow2.f32 %v4352_v56  ;;  %4360 = vadd.xlane.f32.xlu0 %v4359_v0 }
0x146f   :  { %10045 = vpow2.f32 %v4346_v42 }
0x1470   :  { %10047 = vpow2.f32 %v4344_v7 }
0x1471   :  { %v4331_v51 = vpop.xlane.xlu2 %4330 }
0x1472   :  { %v11786_v14 = vpop.eup %10041  ;;  %v4339_v27 = vsub.f32 %v4306_v48, %v4331_v51 }
0x1473   :  { %v4371_v6 = vsel %vm1010_vm3, %v11786_v14, 0.0 }
0x1474   :  { %4372 = vadd.xlane.f32.xlu1 %v4371_v6  ;;  %v11790_v22 = vpop.eup %10043  ;;  %v4354_v33 = vmul.f32 1.442695, %v4339_v27 }
0x1475   :  { %v11792_v18 = vpop.eup %10045  ;;  %v4374_v49 = vsel %vm1010_vm3, %v11790_v22, 0.0 }
0x1476   :  { %10049 = vpow2.f32 %v4354_v33  ;;  %4375 = vadd.xlane.f32.xlu2 %v4374_v49  ;;  %v4365_v29 = vsel %vm1010_vm3, %v11792_v18, 0.0  ;;  %v11799_v54 = vpop.eup %10047 }
0x1477   :  { %4366 = vadd.xlane.f32.xlu0 %v4365_v29  ;;  %v4362_v4 = vsel %vm1010_vm3, %v11799_v54, 0.0 }
0x1479   :  { %v9833_v35 = vpop.permute.xlu2 %9832 }
0x147a   :  { %v9843_v32 = vpop.permute.xlu0 %9842  ;;  %v9835_v34 = vunpack.i.h.bf16 %v9833_v35  ;;  %v9834_v40 = vunpack.i.l.bf16 %v9833_v35 }
0x147b   :  { %v9844_v9 = vunpack.i.l.bf16 %v9843_v32  ;;  %v9845_v44 = vunpack.i.h.bf16 %v9843_v32 }
0x147c   :  { %4363 = vadd.xlane.f32.xlu1 %v4362_v4  ;;  %v11803_v12 = vpop.eup %10049  ;;  %v4004_v52 = vrot.slane %v9835_v34, 4  ;;  %v4007_v21 = vsel %vm147_vm1, %v9835_v34, %v4006_v16  ;;  %v4018_v10 = vrot.slane %v9834_v40, 4 }
0x147d   :  { %v4015_v61 = vperm.slane %v4007_v21, %v10322_v53  ;;  %v4016_v25 = vrot.slane %v9844_v9, 4  ;;  %v4377_v48 = vsel %vm1010_vm3, %v11803_v12, 0.0  ;;  %v3960_v20 = vrot.slane %v9845_v44, 4 }
0x147e   :  { %v4005_v59 = vsel %vm147_vm1, %v4004_v52, %v9829_v5  ;;  %v4019_v47 = vsel %vm147_vm1, %v9844_v9, %v4018_v10  ;;  %4378 = vadd.xlane.f32.xlu2 %v4377_v48 }
0x147f   :  { %v4011_v8 = vperm.slane %v4005_v59, %v10322_v53  ;;  %v4042_v41 = vrot.slane %v4015_v61, 4  ;;  %v4017_v1 = vsel %vm147_vm1, %v4016_v25, %v9834_v40  ;;  %v4027_v58 = vperm.slane %v4019_v47, %v10322_v53 }
0x1480   :  { %v4023_v60 = vperm.slane %v4017_v1, %v10322_v53 }
0x1481   :  { %v4030_v46 = vrot.slane %v4011_v8, 4  ;;  %v4040_v2 = vrot.slane %v4027_v58, 4  ;;  %v4043_v15 = vsel %vm147_vm1, %v4027_v58, %v4042_v41  ;;  %v9838_v45 = vpop.permute.xlu1 %9837 }
0x1482   :  { %v4028_v19 = vrot.slane %v4023_v60, 4  ;;  %v4051_v39 = vperm.slane %v4043_v15, %v10327_v62  ;;  %v9840_v38 = vunpack.i.h.bf16 %v9838_v45  ;;  %v9839_v26 = vunpack.i.l.bf16 %v9838_v45 }
0x1483   :  { %v4031_v63 = vsel %vm147_vm1, %v4023_v60, %v4030_v46  ;;  %v4041_v24 = vsel %vm147_vm1, %v4040_v2, %v4015_v61 }
0x1484   :  { %v4029_v30 = vsel %vm147_vm1, %v4028_v19, %v4011_v8  ;;  %v4039_v50 = vperm.slane %v4031_v63, %v10327_v62  ;;  %v4047_v11 = vperm.slane %v4041_v24, %v10327_v62  ;;  %v4058_v13 = vrot.slane %v4051_v39, 4 }
0x1485   :  { %v4035_v56 = vperm.slane %v4029_v30, %v10327_v62  ;;  %v3948_v42 = vrot.slane %v9840_v38, 4  ;;  %v3951_v7 = vsel %vm147_vm1, %v9840_v38, %v3950_v57  ;;  %v3961_v0 = vsel %vm147_vm1, %v3960_v20, %v9839_v26 }
0x1486   :  { %v4054_v51 = vrot.slane %v4039_v50, 4  ;;  %v4056_v27 = vrot.slane %v4047_v11, 4  ;;  %v4059_v6 = vsel %vm147_vm1, 0.0, %v4058_v13  ;;  %v3959_v33 = vperm.slane %v3951_v7, %v10322_v53 }
0x1487   :  { %v4130_v5 = vrot.slane %v4059_v6, 4  ;;  %v3949_v49 = vsel %vm147_vm1, %v3948_v42, %v9830_v37  ;;  %v3962_v29 = vrot.slane %v9839_v26, 4  ;;  %v3967_v16 = vperm.slane %v3961_v0, %v10322_v53 }
0x1488   :  { %v4055_v35 = vsel %vm147_vm1, 0.0, %v4054_v51  ;;  %v3955_v32 = vperm.slane %v3949_v49, %v10322_v53  ;;  %v3986_v34 = vrot.slane %v3959_v33, 4  ;;  %v4052_v40 = vrot.slane %v4035_v56, 4 }
0x1489   :  { %v3963_v9 = vsel %vm147_vm1, %v9845_v44, %v3962_v29  ;;  %v3972_v4 = vrot.slane %v3967_v16, 4  ;;  %v4057_v52 = vsel %vm147_vm1, 0.0, %v4056_v27  ;;  %v4114_v21 = vsel %vm147_vm1, %v4054_v51, %v4035_v56 }
0x148a   :  { %v3974_v10 = vrot.slane %v3955_v32, 4  ;;  %v3971_v61 = vperm.slane %v3963_v9, %v10322_v53  ;;  %v4053_v25 = vsel %vm147_vm1, 0.0, %v4052_v40  ;;  %v4118_v48 = vperm.slane %v4114_v21, %v10322_v53 }
0x148b   :  { %v3973_v37 = vsel %vm147_vm1, %v3972_v4, %v3955_v32  ;;  %v4119_v59 = vrot.slane %v4055_v35, 4  ;;  %v4125_v47 = vsel %vm147_vm1, %v4058_v13, %v4047_v11  ;;  %v4131_v8 = vsel %vm147_vm1, %v4130_v5, %v4057_v52 }
0x148c   :  { %v3975_v44 = vsel %vm147_vm1, %v3967_v16, %v3974_v10  ;;  %v3979_v41 = vperm.slane %v3973_v37, %v10327_v62  ;;  %v3984_v1 = vrot.slane %v3971_v61, 4  ;;  %v3987_v58 = vsel %vm147_vm1, %v3971_v61, %v3986_v34 }
0x148d   :  { %v3983_v60 = vperm.slane %v3975_v44, %v10327_v62  ;;  %v3995_v46 = vperm.slane %v3987_v58, %v10327_v62  ;;  %v4120_v2 = vsel %vm147_vm1, %v4119_v59, %v4053_v25  ;;  %v4129_v15 = vperm.slane %v4125_v47, %v10322_v53 }
0x148e   :  { %v3985_v45 = vsel %vm147_vm1, %v3984_v1, %v3959_v33  ;;  %v4124_v19 = vperm.slane %v4120_v2, %v10322_v53  ;;  %v4135_v39 = vperm.slane %v4131_v8, %v10322_v53  ;;  %v4138_v38 = vrot.slane %v4118_v48, 4 }
0x148f   :  { %v3991_v26 = vperm.slane %v3985_v45, %v10327_v62  ;;  %v3998_v57 = vrot.slane %v3983_v60, 4  ;;  %v4002_v20 = vrot.slane %v3995_v46, 4  ;;  %v4150_v63 = vrot.slane %v4129_v15, 4 }
0x1490   :  { %v4139_v24 = vsel %vm147_vm1, %v4124_v19, %v4138_v38  ;;  %v4136_v30 = vrot.slane %v4124_v19, 4  ;;  %v4148_v50 = vrot.slane %v4135_v39, 4  ;;  %v3996_v11 = vrot.slane %v3979_v41, 4 }
0x1491   :  { %v3999_v13 = vsel %vm147_vm1, 0.0, %v3998_v57  ;;  %v4000_v56 = vrot.slane %v3991_v26, 4  ;;  %v4003_v42 = vsel %vm147_vm1, 0.0, %v4002_v20  ;;  %v4147_v7 = vperm.slane %v4139_v24, %v10327_v62 }
0x1492   :  { %v4151_v0 = vsel %vm147_vm1, %v4135_v39, %v4150_v63  ;;  %v4137_v51 = vsel %vm147_vm1, %v4136_v30, %v4118_v48  ;;  %v4149_v27 = vsel %vm147_vm1, %v4148_v50, %v4129_v15  ;;  %v3997_v6 = vsel %vm147_vm1, 0.0, %v3996_v11 }
0x1493   :  { %v4159_v33 = vperm.slane %v4151_v0, %v10327_v62  ;;  %v4143_v5 = vperm.slane %v4137_v51, %v10327_v62  ;;  %v4155_v49 = vperm.slane %v4149_v27, %v10327_v62  ;;  %v4166_v29 = vrot.slane %v4147_v7, 4  ;;  %v4846_v27 = vld [vmem:[#allocation2 + $0x388] sm:$0xff] }
0x1494   :  { %v4001_v16 = vsel %vm147_vm1, 0.0, %v4000_v56  ;;  %v4060_v35 = vsel %vm147_vm1, %v3998_v57, %v3979_v41  ;;  %v4065_v32 = vrot.slane %v3999_v13, 4  ;;  %v4071_v34 = vsel %vm147_vm1, %v4002_v20, %v3991_v26  ;;  %v4849_v56 = vld [vmem:[#allocation2 + $0x3a0] sm:$0xff] }
0x1495   :  { %v4164_v40 = vrot.slane %v4159_v33, 4  ;;  %v4160_v9 = vrot.slane %v4155_v49, 4  ;;  %v4167_v4 = vsel %vm147_vm1, %v4159_v33, %v4166_v29  ;;  %v4162_v52 = vrot.slane %v4143_v5, 4 }
0x1496   :  { %4503 = vmatpush.msra.mxu0 %v4167_v4  ;;  %v4064_v21 = vperm.slane %v4060_v35, %v10322_v53  ;;  %v4066_v10 = vsel %vm147_vm1, %v4065_v32, %v3997_v6  ;;  %v4075_v61 = vperm.slane %v4071_v34, %v10322_v53  ;;  %v4076_v25 = vrot.slane %v4003_v42, 4  ;;  %v4848_v42 = vld [vmem:[#allocation2 + $0x398] sm:$0xff] }
0x1497   :  { %v4165_v48 = vsel %vm147_vm1, %v4164_v40, %v4147_v7  ;;  %v4161_v37 = vsel %vm147_vm1, %v4160_v9, %v4143_v5  ;;  %v4163_v59 = vsel %vm147_vm1, %v4155_v49, %v4162_v52  ;;  %v4070_v47 = vperm.slane %v4066_v10, %v10322_v53  ;;  %v4847_v7 = vld [vmem:[#allocation2 + $0x390] sm:$0xff] }
0x1498   :  { %4474 = vmatpush.msra.mxu3 %v4165_v48  ;;  %4416 = vmatpush.msra.mxu2 %v4161_v37  ;;  %v4077_v8 = vsel %vm147_vm1, %v4076_v25, %v4001_v16  ;;  %v4084_v44 = vrot.slane %v4064_v21, 4  ;;  %v4096_v41 = vrot.slane %v4075_v61, 4 }
0x1499   :  { %4445 = vmatpush.msra.mxu1 %v4163_v59  ;;  %v4081_v1 = vperm.slane %v4077_v8, %v10322_v53  ;;  %v4082_v58 = vrot.slane %v4070_v47, 4 }
0x149a   :  { %v4085_v60 = vsel %vm147_vm1, %v4070_v47, %v4084_v44 }
0x149b   :  { %v4093_v46 = vperm.slane %v4085_v60, %v10327_v62  ;;  %v4097_v2 = vsel %vm147_vm1, %v4081_v1, %v4096_v41  ;;  %v4083_v15 = vsel %vm147_vm1, %v4082_v58, %v4064_v21  ;;  %v4094_v45 = vrot.slane %v4081_v1, 4 }
0x149c   :  { %v4105_v19 = vperm.slane %v4097_v2, %v10327_v62  ;;  %v4089_v39 = vperm.slane %v4083_v15, %v10327_v62 }
0x149d   :  { %v4095_v38 = vsel %vm147_vm1, %v4094_v45, %v4075_v61  ;;  %v4112_v26 = vrot.slane %v4093_v46, 4 }
0x149e   :  { %v4110_v57 = vrot.slane %v4105_v19, 4  ;;  %v4101_v20 = vperm.slane %v4095_v38, %v10327_v62  ;;  %v4108_v63 = vrot.slane %v4089_v39, 4 }
0x149f   :  { %v4113_v24 = vsel %vm147_vm1, %v4105_v19, %v4112_v26 }
0x14a0   :  { %v4111_v30 = vsel %vm147_vm1, %v4110_v57, %v4093_v46  ;;  %v4106_v50 = vrot.slane %v4101_v20, 4  ;;  %4504 = vmatpush.msra.mxu0 %v4113_v24  ;;  %v4109_v11 = vsel %vm147_vm1, %v4101_v20, %v4108_v63 }
0x14a1   :  { %4475 = vmatpush.msra.mxu3 %v4111_v30  ;;  %4446 = vmatpush.msra.mxu1 %v4109_v11 }
0x14a2   :  { %v4107_v13 = vsel %vm147_vm1, %v4106_v50, %v4089_v39 }
0x14a3   :  { %4417 = vmatpush.msra.mxu2 %v4107_v13  ;;  %4902 = vmatpush.msrb.mxu3 %v4849_v56 }
0x14a4   :  { %4875 = vmatpush.msrb.mxu1 %v4849_v56 }
0x14a5   :  { %4903 = vmatpush.msrb.mxu3 %v4848_v42 }
0x14a6   :  { %4876 = vmatpush.msrb.mxu1 %v4848_v42 }
0x14a7   :  { %4904 = vmatpush.msrb.mxu3 %v4847_v7 }
0x14a8   :  { %4877 = vmatpush.msrb.mxu1 %v4847_v7 }
0x14a9   :  { %4905 = vmatpush.msrb.mxu3 %v4846_v27 }
0x14aa   :  { %4878 = vmatpush.msrb.mxu1 %v4846_v27 }
0x14d9   :  { %v4358_v0 = vpop.xlane.xlu0 %4357 }
0x14da   :  { %10051 = vrcp.f32 %v4358_v0 }
0x14db   :  { %v4370_v51 = vpop.xlane.xlu2 %4369 }
0x14dc   :  { %10053 = vrcp.f32 %v4370_v51 }
0x14e0   :  { %v10052_v6 = vpop.eup %10051 }
0x14e1   :  { %v4388_v5 = vmul.f32 %v10052_v6, %v11774_v23  ;;  %v4361_v49 = vpop.xlane.xlu0 %4360 }
0x14e2   :  { %v10054_v33 = vpop.eup %10053  ;;  %10055 = vrcp.f32 %v4361_v49 }
0x14e3   :  { %v4392_v29 = vmul.f32 %v10054_v33, %v11776_v17  ;;  %9660 = vmatmul.msk.f32.vlgmr.msra.gmra.mxu2 %vm1010_vm3, %v4388_v5 }
0x14e5   :  { %9664 = vmatmul.msk.f32.vlgmr.msra.gmra.mxu3 %vm1010_vm3, %v4392_v29 }
0x14e7   :  { %v4373_v16 = vpop.xlane.xlu1 %4372 }
0x14e8   :  { %10057 = vrcp.f32 %v4373_v16  ;;  %v10056_v35 = vpop.eup %10055 }
0x14e9   :  { %v4376_v32 = vpop.xlane.xlu2 %4375  ;;  %v4389_v34 = vmul.f32 %v10056_v35, %v11782_v36 }
0x14ea   :  { %10059 = vrcp.f32 %v4376_v32  ;;  %v4367_v21 = vpop.xlane.xlu0 %4366 }
0x14eb   :  { %9661 = vmatmul.msk.f32.gmra.mxu2 %vm1010_vm3, %v4389_v34 }
0x14ee   :  { %v10058_v40 = vpop.eup %10057 }
0x14ef   :  { %v4364_v9 = vpop.xlane.xlu1 %4363  ;;  %v4393_v23 = vmul.f32 %v10058_v40, %v11786_v14 }
0x14f0   :  { %10061 = vrcp.f32 %v4364_v9  ;;  %v10060_v17 = vpop.eup %10059 }
0x14f1   :  { %9665 = vmatmul.msk.f32.gmra.mxu3 %vm1010_vm3, %v4393_v23  ;;  %v4394_v4 = vmul.f32 %v10060_v17, %v11790_v22  ;;  %v4379_v52 = vpop.xlane.xlu2 %4378 }
0x14f2   :  { %10063 = vrcp.f32 %v4379_v52 }
0x14f3   :  { %9666 = vmatmul.msk.f32.vlgmr.msra.gmra.mxu0 %vm1010_vm3, %v4394_v4  ;;  %10065 = vrcp.f32 %v4367_v21 }
0x14f6   :  { %v10062_v10 = vpop.eup %10061 }
0x14f7   :  { %v4390_v36 = vmul.f32 %v10062_v10, %v11799_v54 }
0x14f8   :  { %v10064_v61 = vpop.eup %10063 }
0x14f9   :  { %9662 = vmatmul.msk.f32.vlgmr.msra.gmra.mxu1 %vm1010_vm3, %v4390_v36  ;;  %9672 = vmatmul.msk.f32.vlgmr.msrb.gmra.mxu3 %vm94_vm0, %v11422_v43  ;;  %v4395_v14 = vmul.f32 %v10064_v61, %v11803_v12  ;;  %v10066_v25 = vpop.eup %10065 }
0x14fa   :  { %v4391_v22 = vmul.f32 %v10066_v25, %v11792_v18 }
0x14fb   :  { %9667 = vmatmul.msk.f32.gmra.mxu0 %vm1010_vm3, %v4395_v14 }
0x1501   :  { %9663 = vmatmul.msk.f32.gmra.mxu1 %vm1010_vm3, %v4391_v22  ;;  %9673 = vmatmul.msk.f32.gmra.mxu3 %vm94_vm0, %v11424_v31 }
0x1566   :  { %v4419_v48 = vpop.f32.mrf.mxu2 }
0x1567   :  { %v4514_v59 = vrot.slane %v4419_v48, 4 }
0x1568   :  { %v4477_v54 = vpop.f32.mrf.mxu3 }
0x1569   :  { %v4512_v37 = vrot.slane %v4477_v54, 4  ;;  %v4515_v12 = vsel %vm147_vm1, %v4477_v54, %v4514_v59 }
0x156a   :  { %v4523_v18 = vperm.slane %v4515_v12, %v10322_v53 }
0x156b   :  { %v4513_v47 = vsel %vm147_vm1, %v4512_v37, %v4419_v48 }
0x156c   :  { %v4519_v41 = vperm.slane %v4513_v47, %v10322_v53  ;;  %v4550_v57 = vrot.slane %v4523_v18, 4 }
0x156e   :  { %v4422_v8 = vpop.f32.mrf.mxu2  ;;  %v4538_v38 = vrot.slane %v4519_v41, 4 }
0x156f   :  { %v4570_v1 = vrot.slane %v4422_v8, 4 }
0x1570   :  { %v4506_v44 = vpop.f32.mrf.mxu0 }
0x1571   :  { %v4524_v60 = vrot.slane %v4506_v44, 4 }
0x1574   :  { %v4480_v58 = vpop.f32.mrf.mxu3 }
0x1575   :  { %v4568_v46 = vrot.slane %v4480_v58, 4  ;;  %v4571_v2 = vsel %vm147_vm1, %v4480_v58, %v4570_v1 }
0x1576   :  { %v4448_v15 = vpop.f32.mrf.mxu1  ;;  %v4579_v20 = vperm.slane %v4571_v2, %v10322_v53 }
0x1577   :  { %v4569_v45 = vsel %vm147_vm1, %v4568_v46, %v4422_v8  ;;  %v4525_v19 = vsel %vm147_vm1, %v4524_v60, %v4448_v15  ;;  %v4526_v39 = vrot.slane %v4448_v15, 4 }
0x1578   :  { %v4531_v26 = vperm.slane %v4525_v19, %v10322_v53  ;;  %v4575_v24 = vperm.slane %v4569_v45, %v10322_v53  ;;  %v4509_v56 = vpop.f32.mrf.mxu0  ;;  %v4606_v5 = vrot.slane %v4579_v20, 4 }
0x1579   :  { %v4527_v63 = vsel %vm147_vm1, %v4506_v44, %v4526_v39  ;;  %v4580_v29 = vrot.slane %v4509_v56, 4 }
0x157a   :  { %v4535_v30 = vperm.slane %v4527_v63, %v10322_v53  ;;  %v4536_v50 = vrot.slane %v4531_v26, 4  ;;  %v4539_v11 = vsel %vm147_vm1, %v4531_v26, %v4538_v38  ;;  %v4594_v33 = vrot.slane %v4575_v24, 4 }
0x157b   :  { %v4547_v13 = vperm.slane %v4539_v11, %v10327_v62 }
0x157c   :  { %v4537_v42 = vsel %vm147_vm1, %v4536_v50, %v4519_v41  ;;  %v4548_v7 = vrot.slane %v4535_v30, 4  ;;  %v4551_v0 = vsel %vm147_vm1, %v4535_v30, %v4550_v57 }
0x157d   :  { %v4543_v51 = vperm.slane %v4537_v42, %v10327_v62  ;;  %v4559_v27 = vperm.slane %v4551_v0, %v10327_v62  ;;  %v4562_v6 = vrot.slane %v4547_v13, 4 }
0x157e   :  { %v4549_v49 = vsel %vm147_vm1, %v4548_v7, %v4523_v18  ;;  %v4451_v16 = vpop.f32.mrf.mxu1 }
0x157f   :  { %v4555_v35 = vperm.slane %v4549_v49, %v10327_v62  ;;  %v4560_v32 = vrot.slane %v4543_v51, 4  ;;  %v4563_v34 = vsel %vm147_vm1, 0.0, %v4562_v6  ;;  %v4566_v40 = vrot.slane %v4559_v27, 4 }
0x1580   :  { %v4624_v9 = vsel %vm147_vm1, %v4562_v6, %v4543_v51  ;;  %v4629_v23 = vrot.slane %v4563_v34, 4  ;;  %v4581_v17 = vsel %vm147_vm1, %v4580_v29, %v4451_v16  ;;  %v4582_v4 = vrot.slane %v4451_v16, 4 }
0x1581   :  { %v4561_v52 = vsel %vm147_vm1, 0.0, %v4560_v32  ;;  %v4564_v21 = vrot.slane %v4555_v35, 4  ;;  %v4567_v10 = vsel %vm147_vm1, 0.0, %v4566_v40  ;;  %v4628_v36 = vperm.slane %v4624_v9, %v10322_v53 }
0x1582   :  { %v4630_v61 = vsel %vm147_vm1, %v4629_v23, %v4561_v52  ;;  %v4640_v14 = vrot.slane %v4567_v10, 4  ;;  %v4583_v25 = vsel %vm147_vm1, %v4509_v56, %v4582_v4  ;;  %v4587_v22 = vperm.slane %v4581_v17, %v10322_v53 }
0x1583   :  { %v4591_v48 = vperm.slane %v4583_v25, %v10322_v53  ;;  %v4565_v54 = vsel %vm147_vm1, 0.0, %v4564_v21  ;;  %v4634_v37 = vperm.slane %v4630_v61, %v10322_v53  ;;  %v4635_v59 = vsel %vm147_vm1, %v4566_v40, %v4555_v35 }
0x1584   :  { %v4592_v47 = vrot.slane %v4587_v22, 4  ;;  %v4595_v8 = vsel %vm147_vm1, %v4587_v22, %v4594_v33  ;;  %v4639_v44 = vperm.slane %v4635_v59, %v10322_v53  ;;  %v4641_v12 = vsel %vm147_vm1, %v4640_v14, %v4565_v54 }
0x1585   :  { %v4603_v41 = vperm.slane %v4595_v8, %v10327_v62  ;;  %v4604_v1 = vrot.slane %v4591_v48, 4  ;;  %v4607_v58 = vsel %vm147_vm1, %v4591_v48, %v4606_v5  ;;  %v4645_v46 = vperm.slane %v4641_v12, %v10322_v53 }
0x1586   :  { %v4593_v18 = vsel %vm147_vm1, %v4592_v47, %v4575_v24  ;;  %v4615_v60 = vperm.slane %v4607_v58, %v10327_v62  ;;  %v4648_v2 = vrot.slane %v4628_v36, 4  ;;  %v4660_v39 = vrot.slane %v4639_v44, 4 }
0x1587   :  { %v4599_v15 = vperm.slane %v4593_v18, %v10327_v62  ;;  %v4605_v45 = vsel %vm147_vm1, %v4604_v1, %v4579_v20  ;;  %v4618_v19 = vrot.slane %v4603_v41, 4  ;;  %v4646_v63 = vrot.slane %v4634_v37, 4 }
0x1588   :  { %v4611_v38 = vperm.slane %v4605_v45, %v10327_v62  ;;  %v4622_v26 = vrot.slane %v4615_v60, 4  ;;  %v4649_v57 = vsel %vm147_vm1, %v4634_v37, %v4648_v2  ;;  %v4661_v51 = vsel %vm147_vm1, %v4645_v46, %v4660_v39  ;;  %v3392_v39 = vld [vmem:[#allocation2 + $0x378] sm:$0xff] }
0x1589   :  { %v4616_v30 = vrot.slane %v4599_v15, 4  ;;  %v4619_v24 = vsel %vm147_vm1, 0.0, %v4618_v19  ;;  %v4678_v50 = vsel %vm147_vm1, %v4618_v19, %v4599_v15  ;;  %v4657_v11 = vperm.slane %v4649_v57, %v10327_v62  ;;  %4781 = vmatpush.msrb.mxu2 %v3392_v39  ;;  %v3389_v57 = vld [vmem:[#allocation2 + $0x360] sm:$0xff]  ;;  %v9929_v39 = vld [vmem:[#allocation2 + $0x3d8] ss:$0 sm:$0xff] }
0x158a   :  { %v4620_v13 = vrot.slane %v4611_v38, 4  ;;  %v4623_v56 = vsel %vm147_vm1, 0.0, %v4622_v26  ;;  %v4682_v20 = vperm.slane %v4678_v50, %v10322_v53  ;;  %v4683_v42 = vrot.slane %v4619_v24, 4 }
0x158b   :  { %v4617_v7 = vsel %vm147_vm1, 0.0, %v4616_v30  ;;  %v4694_v0 = vrot.slane %v4623_v56, 4  ;;  %v4676_v27 = vrot.slane %v4657_v11, 4  ;;  %v4669_v33 = vperm.slane %v4661_v51, %v10327_v62 }
0x158c   :  { %v4684_v6 = vsel %vm147_vm1, %v4683_v42, %v4617_v7  ;;  %v4647_v5 = vsel %vm147_vm1, %v4646_v63, %v4628_v36  ;;  %v4658_v49 = vrot.slane %v4645_v46, 4  ;;  %v4621_v16 = vsel %vm147_vm1, 0.0, %v4620_v13 }
0x158d   :  { %v4653_v29 = vperm.slane %v4647_v5, %v10327_v62  ;;  %v4688_v35 = vperm.slane %v4684_v6, %v10322_v53  ;;  %v4689_v32 = vsel %vm147_vm1, %v4622_v26, %v4611_v38  ;;  %v4677_v34 = vsel %vm147_vm1, %v4669_v33, %v4676_v27  ;;  %v3391_v38 = vld [vmem:[#allocation2 + $0x370] sm:$0xff]  ;;  %v3390_v26 = vld [vmem:[#allocation2 + $0x368] sm:$0xff]  ;;  %v9928_v27 = vld [vmem:[#allocation2 + $0x380] ss:$0 sm:$0xff] }
0x158e   :  { %v4674_v40 = vrot.slane %v4669_v33, 4  ;;  %v4659_v9 = vsel %vm147_vm1, %v4658_v49, %v4639_v44  ;;  %v4693_v23 = vperm.slane %v4689_v32, %v10322_v53  ;;  %4750 = vrot.lane.b32.xlu0 %v4677_v34, %s10234_s25  ;;  %v4695_v52 = vsel %vm147_vm1, %v4694_v0, %v4621_v16  ;;  %4782 = vmatpush.msrb.mxu2 %v3391_v38 }
0x158f   :  { %v4665_v17 = vperm.slane %v4659_v9, %v10327_v62  ;;  %v4672_v4 = vrot.slane %v4653_v29, 4  ;;  %v4702_v21 = vrot.slane %v4682_v20, 4  ;;  %v4699_v36 = vperm.slane %v4695_v52, %v10322_v53  ;;  %v12006_v9 = vld [vmem:[#allocation2 + $0x3a8] ss:$0 sm:$0xff] }
0x1590   :  { %v4675_v10 = vsel %vm147_vm1, %v4674_v40, %v4657_v11  ;;  %v4714_v61 = vrot.slane %v4693_v23, 4  ;;  %v4700_v14 = vrot.slane %v4688_v35, 4  ;;  %4783 = vmatpush.msrb.mxu2 %v3390_v26 }
0x1591   :  { %4742 = vrot.lane.b32.xlu2 %v4675_v10, %s10233_s24  ;;  %v4670_v25 = vrot.slane %v4665_v17, 4  ;;  %v4673_v22 = vsel %vm147_vm1, %v4665_v17, %v4672_v4  ;;  %v4703_v48 = vsel %vm147_vm1, %v4688_v35, %v4702_v21  ;;  %v4712_v47 = vrot.slane %v4699_v36, 4  ;;  %v4907_v35 = vpop.f32.mrf.mxu3 }
0x1592   :  { %4734 = vrot.lane.b32.xlu1 %v4673_v22, %s10225_s15  ;;  %v4711_v54 = vperm.slane %v4703_v48, %v10327_v62  ;;  %v4715_v37 = vsel %vm147_vm1, %v4699_v36, %v4714_v61  ;;  %v4701_v59 = vsel %vm147_vm1, %v4700_v14, %v4682_v20  ;;  %4784 = vmatpush.msrb.mxu2 %v3389_v57 }
0x1593   :  { %v4723_v8 = vperm.slane %v4715_v37, %v10327_v62  ;;  %v4707_v44 = vperm.slane %v4701_v59, %v10327_v62  ;;  %v4671_v12 = vsel %vm147_vm1, %v4670_v25, %v4653_v29  ;;  %v4713_v1 = vsel %vm147_vm1, %v4712_v47, %v4693_v23 }
0x1594   :  { %v4730_v41 = vrot.slane %v4711_v54, 4  ;;  %v4719_v18 = vperm.slane %v4713_v1, %v10327_v62 }
0x1595   :  { %v4728_v58 = vrot.slane %v4723_v8, 4  ;;  %v4726_v60 = vrot.slane %v4707_v44, 4 }
0x1596   :  { %v4724_v2 = vrot.slane %v4719_v18, 4  ;;  %v4731_v45 = vsel %vm147_vm1, %v4723_v8, %v4730_v41 }
0x1597   :  { %v4729_v46 = vsel %vm147_vm1, %v4728_v58, %v4711_v54  ;;  %v4727_v15 = vsel %vm147_vm1, %v4719_v18, %v4726_v60 }
0x1598   :  { %4736 = vrot.lane.b32.xlu0 %v4727_v15, %s10225_s15  ;;  %v4725_v19 = vsel %vm147_vm1, %v4724_v2, %v4707_v44 }
0x1599   :  { %4752 = vrot.lane.b32.xlu2 %v4731_v45, %s10234_s25  ;;  %v4910_v40 = vpop.f32.mrf.mxu3 }
0x159a   :  { %4744 = vrot.lane.b32.xlu1 %v4729_v46, %s10233_s24  ;;  %v12009_v23 = vadd.f32 %v12006_v9, %v4910_v40 }
0x15eb   :  { %v4743_v30 = vpop.permute.xlu2 %4742 }
0x15f3   :  { %v4753_v7 = vpop.permute.xlu2 %4752 }
0x1600   :  { %v4751_v63 = vpop.permute.xlu0 %4750 }
0x1604   :  { %v4735_v24 = vpop.permute.xlu1 %4734 }
0x1605   :  { %v4756_v50 = vsel %vm869_vm2, %v4671_v12, %v4735_v24 }
0x1606   :  { %v4758_v11 = vsel %vm1010_vm3, %v4756_v50, %v4743_v30 }
0x1607   :  { %v4760_v13 = vsel %vm1463_vm4, %v4758_v11, %v4751_v63  ;;  %v9930_v63 = vld [vmem:[#allocation2 + $0x3e0] ss:$0 sm:$0xff] }
0x1608   :  { %9668 = vmatmul.msk.f32.vlgmr.msrb.gmra.mxu2 %vm94_vm0, %v4760_v13 }
0x160a   :  { %v4737_v56 = vpop.permute.xlu0 %4736 }
0x160b   :  { %v4757_v20 = vsel %vm869_vm2, %v4725_v19, %v4737_v56 }
0x160c   :  { %v4745_v42 = vpop.permute.xlu1 %4744 }
0x160d   :  { %v4759_v0 = vsel %vm1010_vm3, %v4757_v20, %v4745_v42 }
0x160e   :  { %v4761_v51 = vsel %vm1463_vm4, %v4759_v0, %v4753_v7 }
0x1610   :  { %9669 = vmatmul.msk.f32.gmra.mxu2 %vm94_vm0, %v4761_v51 }
0x168b   :  { %v4786_v6 = vpop.f32.mrf.mxu2 }
0x168c   :  { %v4787_v33 = vadd.f32 %v9928_v27, %v4786_v6 }
0x168e   :  { %v4792_v5 = vadd.f32 %v4787_v33, %v11439_v28  ;;  %v12014_v28 = vadd.f32 %v12006_v9, %v4907_v35 }
0x1690   :  { %v4796_v49 = vsel %vm94_vm0, %v4792_v5, 0.0 }
0x1691   :  { %4797 = vadd.xlane.f32.xlu0 %v4796_v49 }
0x1693   :  { %v4789_v29 = vpop.f32.mrf.mxu2 }
0x1694   :  { %v4790_v16 = vadd.f32 %v9928_v27, %v4789_v29 }
0x1696   :  { %v4793_v32 = vadd.f32 %v4790_v16, %v11443_v55 }
0x1698   :  { %v4799_v34 = vsel %vm94_vm0, %v4793_v32, 0.0 }
0x1699   :  { %4800 = vadd.xlane.f32.xlu1 %v4799_v34 }
0x16a5   :  { %5163 = vrot.lane.b32.xlu0 %v12009_v23, %s10226_s19 }
0x16ad   :  { %5161 = vrot.lane.b32.xlu0 %v12014_v28, %s10226_s19 }
0x16b2   :  { %5167 = vrot.lane.b32.xlu1 %v12009_v23, %s10227_s20 }
0x16b5   :  { %5157 = vrot.lane.b32.xlu0 %v12014_v28, %s10228_s21 }
0x16ba   :  { %5165 = vrot.lane.b32.xlu1 %v12014_v28, %s10227_s20 }
0x16c2   :  { %5171 = vrot.lane.b32.xlu1 %v12009_v23, %s10229_s22 }
0x1704   :  { %v4798_v55 = vpop.xlane.xlu0 %4797 }
0x1705   :  { %v4802_v17 = vmul.f32 %v4798_v55, %v10809_v3 }
0x1707   :  { %v4804_v4 = vsub.f32 %v4792_v5, %v4802_v17 }
0x1709   :  { %v4806_v52 = vmul.f32 %v4804_v4, %v4804_v4 }
0x170b   :  { %v4808_v21 = vsel %vm94_vm0, %v4806_v52, 0.0 }
0x170c   :  { %4809 = vadd.xlane.f32.xlu2 %v4808_v21  ;;  %v4801_v10 = vpop.xlane.xlu1 %4800 }
0x170d   :  { %v4803_v36 = vmul.f32 %v4801_v10, %v10809_v3 }
0x170f   :  { %v4805_v61 = vsub.f32 %v4793_v32, %v4803_v36 }
0x1711   :  { %v4807_v14 = vmul.f32 %v4805_v61, %v4805_v61 }
0x1713   :  { %v4811_v25 = vsel %vm94_vm0, %v4807_v14, 0.0 }
0x1714   :  { %4812 = vadd.xlane.f32.xlu2 %v4811_v25 }
0x1717   :  { %v12030_v22 = vpop.permute.xlu0 %5163 }
0x171f   :  { %v12032_v48 = vpop.permute.xlu0 %5161 }
0x1720   :  { %5177 = vrot.lane.b32.xlu1 %v12032_v48, %s10229_s22 }
0x1724   :  { %v12036_v54 = vpop.permute.xlu1 %5167 }
0x1725   :  { %5183 = vrot.lane.b32.xlu0 %v12036_v54, %s10229_s22 }
0x1727   :  { %v12044_v37 = vpop.permute.xlu0 %5157 }
0x172c   :  { %5159 = vrot.lane.b32.xlu2 %v12009_v23, %s10228_s21  ;;  %v12056_v30 = vpop.permute.xlu1 %5165 }
0x172d   :  { %5169 = vrot.lane.b32.xlu0 %v12014_v28, %s10229_s22 }
0x1734   :  { %5179 = vrot.lane.b32.xlu2 %v12030_v22, %s10229_s22  ;;  %v5172_v27 = vpop.permute.xlu1 %5171 }
0x1735   :  { %5173 = vrot.lane.b32.xlu0 %v12044_v37, %s10229_s22  ;;  %v5251_v5 = vrot.slane %v5172_v27, 4 }
0x177f   :  { %v4810_v59 = vpop.xlane.xlu2 %4809 }
0x1780   :  { %v4814_v47 = vmul.f32 %v4810_v59, %v10809_v3 }
0x1782   :  { %v4816_v8 = vadd.f32 1e-05, %v4814_v47 }
0x1784   :  { %10067 = vrsqrt.f32 %v4816_v8  ;;  %vm4824_vm10 = vweird.f32 %v4816_v8 }
0x1787   :  { %v4813_v44 = vpop.xlane.xlu2 %4812 }
0x1788   :  { %v4815_v12 = vmul.f32 %v4813_v44, %v10809_v3 }
0x178a   :  { %v10068_v41 = vpop.eup %10067  ;;  %v4817_v1 = vadd.f32 1e-05, %v4815_v12 }
0x178b   :  { %v4819_v58 = vmul.f32 %v10068_v41, %v4816_v8  ;;  %vm4825_vm9 = vweird.f32 %v10068_v41 }
0x178c   :  { %10069 = vrsqrt.f32 %v4817_v1  ;;  %vm4826_vm11 = vmor %vm4824_vm10, %vm4825_vm9  ;;  %vm4834_vm13 = vweird.f32 %v4817_v1 }
0x178d   :  { %v4820_v18 = vmul.f32 %v10068_v41, %v4819_v58 }
0x178f   :  { %v4821_v60 = vmul.f32 0.5, %v4820_v18  ;;  %v12052_v46 = vpop.permute.xlu2 %5159 }
0x1790   :  { %5175 = vrot.lane.b32.xlu2 %v12052_v46, %s10229_s22 }
0x1791   :  { %v4822_v2 = vsub.f32 1.5, %v4821_v60 }
0x1792   :  { %v10070_v15 = vpop.eup %10069  ;;  %v5178_v29 = vpop.permute.xlu1 %5177 }
0x1793   :  { %v4823_v45 = vmul.f32 %v10068_v41, %v4822_v2  ;;  %v4829_v19 = vmul.f32 %v10070_v15, %v4817_v1  ;;  %vm4835_vm12 = vweird.f32 %v10070_v15  ;;  %v5193_v34 = vrot.slane %v5178_v29, 4 }
0x1794   :  { %vm4836_vm14 = vmor %vm4834_vm13, %vm4835_vm12 }
0x1795   :  { %v4827_v38 = vsel %vm4826_vm11, %v10068_v41, %v4823_v45  ;;  %v4830_v26 = vmul.f32 %v10070_v15, %v4829_v19 }
0x1796   :  { %v4838_v57 = vmul.f32 %v4827_v38, %v4804_v4 }
0x1797   :  { %v4831_v24 = vmul.f32 0.5, %v4830_v26  ;;  %v5184_v51 = vpop.permute.xlu0 %5183  ;;  %v5180_v6 = vpop.permute.xlu2 %5179 }
0x1798   :  { %v4841_v50 = vmul.f32 %v9929_v39, %v4838_v57  ;;  %5181 = vrot.lane.b32.xlu2 %v12056_v30, %s10229_s22  ;;  %v5249_v33 = vrot.slane %v5180_v6, 4  ;;  %v5252_v35 = vsel %vm147_vm1, %v5180_v6, %v5251_v5  ;;  %v5261_v17 = vrot.slane %v5184_v51, 4 }
0x1799   :  { %v4832_v11 = vsub.f32 1.5, %v4831_v24  ;;  %v5260_v55 = vperm.slane %v5252_v35, %v10322_v53 }
0x179a   :  { %v12060_v13 = vadd.f32 %v9930_v63, %v4841_v50  ;;  %v5250_v16 = vsel %vm147_vm1, %v5249_v33, %v5172_v27 }
0x179b   :  { %v4833_v56 = vmul.f32 %v10070_v15, %v4832_v11  ;;  %v5256_v40 = vperm.slane %v5250_v16, %v10322_v53  ;;  %v5287_v25 = vrot.slane %v5260_v55, 4 }
0x179c   :  { %9670 = vmatmul.msk.f32.vlgmr.msrb.gmra.mxu1 %vm94_vm0, %v12060_v13 }
0x179d   :  { %v4837_v20 = vsel %vm4836_vm14, %v10070_v15, %v4833_v56 }
0x179e   :  { %v4839_v42 = vmul.f32 %v4837_v20, %v4805_v61  ;;  %v5275_v61 = vrot.slane %v5256_v40, 4 }
0x179f   :  { %v5170_v49 = vpop.permute.xlu0 %5169 }
0x17a0   :  { %v4842_v7 = vmul.f32 %v9929_v39, %v4839_v42  ;;  %v5195_v32 = vrot.slane %v5170_v49, 4  ;;  %v5194_v4 = vsel %vm147_vm1, %v5193_v34, %v5170_v49 }
0x17a1   :  { %v5200_v59 = vperm.slane %v5194_v4, %v10322_v53 }
0x17a2   :  { %v12064_v0 = vadd.f32 %v9930_v63, %v4842_v7  ;;  %v5196_v21 = vsel %vm147_vm1, %v5178_v29, %v5195_v32 }
0x17a3   :  { %v5204_v8 = vperm.slane %v5196_v21, %v10322_v53  ;;  %v5219_v39 = vrot.slane %v5200_v59, 4 }
0x17a4   :  { %9671 = vmatmul.msk.f32.gmra.mxu1 %vm94_vm0, %v12064_v0 }
0x17a5   :  { %v5231_v38 = vrot.slane %v5204_v8, 4 }
0x17a7   :  { %v5174_v1 = vpop.permute.xlu0 %5173 }
0x17a8   :  { %v5207_v26 = vrot.slane %v5174_v1, 4 }
0x17ea   :  { %v5176_v52 = vpop.permute.xlu2 %5175 }
0x17eb   :  { %v5262_v10 = vsel %vm147_vm1, %v5261_v17, %v5176_v52  ;;  %v5263_v36 = vrot.slane %v5176_v52, 4 }
0x17ec   :  { %v5268_v14 = vperm.slane %v5262_v10, %v10322_v53 }
0x17ed   :  { %v5264_v47 = vsel %vm147_vm1, %v5184_v51, %v5263_v36 }
0x17ee   :  { %v5272_v44 = vperm.slane %v5264_v47, %v10322_v53  ;;  %v5273_v12 = vrot.slane %v5268_v14, 4  ;;  %v5276_v41 = vsel %vm147_vm1, %v5268_v14, %v5275_v61 }
0x17ef   :  { %v5284_v58 = vperm.slane %v5276_v41, %v10327_v62 }
0x17f0   :  { %v5274_v18 = vsel %vm147_vm1, %v5273_v12, %v5256_v40  ;;  %v5285_v60 = vrot.slane %v5272_v44, 4  ;;  %v5288_v2 = vsel %vm147_vm1, %v5272_v44, %v5287_v25 }
0x17f1   :  { %v5280_v15 = vperm.slane %v5274_v18, %v10327_v62  ;;  %v5296_v45 = vperm.slane %v5288_v2, %v10327_v62  ;;  %v5299_v19 = vrot.slane %v5284_v58, 4 }
0x17f2   :  { %v5286_v57 = vsel %vm147_vm1, %v5285_v60, %v5260_v55  ;;  %v5182_v63 = vpop.permute.xlu2 %5181 }
0x17f3   :  { %v5292_v24 = vperm.slane %v5286_v57, %v10327_v62  ;;  %v5297_v50 = vrot.slane %v5280_v15, 4  ;;  %v5300_v11 = vsel %vm147_vm1, 0.0, %v5299_v19  ;;  %v5303_v56 = vrot.slane %v5296_v45, 4 }
0x17f4   :  { %v5359_v20 = vsel %vm147_vm1, %v5299_v19, %v5280_v15  ;;  %v5364_v42 = vrot.slane %v5300_v11, 4  ;;  %v5205_v7 = vrot.slane %v5182_v63, 4  ;;  %v5208_v51 = vsel %vm147_vm1, %v5182_v63, %v5207_v26 }
0x17f5   :  { %v5298_v27 = vsel %vm147_vm1, 0.0, %v5297_v50  ;;  %v5301_v6 = vrot.slane %v5292_v24, 4  ;;  %v5304_v33 = vsel %vm147_vm1, 0.0, %v5303_v56  ;;  %v5363_v5 = vperm.slane %v5359_v20, %v10322_v53 }
0x17f6   :  { %v5365_v49 = vsel %vm147_vm1, %v5364_v42, %v5298_v27  ;;  %v5375_v29 = vrot.slane %v5304_v33, 4  ;;  %v5206_v16 = vsel %vm147_vm1, %v5205_v7, %v5174_v1  ;;  %v5216_v35 = vperm.slane %v5208_v51, %v10322_v53 }
0x17f7   :  { %v5212_v32 = vperm.slane %v5206_v16, %v10322_v53  ;;  %v5302_v34 = vsel %vm147_vm1, 0.0, %v5301_v6  ;;  %v5369_v40 = vperm.slane %v5365_v49, %v10322_v53  ;;  %v5370_v55 = vsel %vm147_vm1, %v5303_v56, %v5292_v24 }
0x17f8   :  { %v5229_v17 = vrot.slane %v5216_v35, 4  ;;  %v5232_v4 = vsel %vm147_vm1, %v5216_v35, %v5231_v38  ;;  %v5374_v52 = vperm.slane %v5370_v55, %v10322_v53  ;;  %v5376_v21 = vsel %vm147_vm1, %v5375_v29, %v5302_v34 }
0x17f9   :  { %v5217_v10 = vrot.slane %v5212_v32, 4  ;;  %v5220_v36 = vsel %vm147_vm1, %v5212_v32, %v5219_v39  ;;  %v5240_v61 = vperm.slane %v5232_v4, %v10327_v62  ;;  %v5380_v14 = vperm.slane %v5376_v21, %v10322_v53 }
0x17fa   :  { %v5228_v25 = vperm.slane %v5220_v36, %v10327_v62  ;;  %v5230_v47 = vsel %vm147_vm1, %v5229_v17, %v5204_v8  ;;  %v5383_v44 = vrot.slane %v5363_v5, 4  ;;  %v5395_v12 = vrot.slane %v5374_v52, 4 }
0x17fb   :  { %v5218_v41 = vsel %vm147_vm1, %v5217_v10, %v5200_v59  ;;  %v5236_v1 = vperm.slane %v5230_v47, %v10327_v62  ;;  %v5247_v58 = vrot.slane %v5240_v61, 4  ;;  %v5381_v18 = vrot.slane %v5369_v40, 4 }
0x17fc   :  { %v5224_v60 = vperm.slane %v5218_v41, %v10327_v62  ;;  %v5243_v2 = vrot.slane %v5228_v25, 4  ;;  %v5384_v15 = vsel %vm147_vm1, %v5369_v40, %v5383_v44  ;;  %v5396_v45 = vsel %vm147_vm1, %v5380_v14, %v5395_v12 }
0x17fd   :  { %v5245_v19 = vrot.slane %v5236_v1, 4  ;;  %v5248_v39 = vsel %vm147_vm1, 0.0, %v5247_v58  ;;  %v5316_v8 = vsel %vm147_vm1, %v5247_v58, %v5236_v1  ;;  %v5392_v38 = vperm.slane %v5384_v15, %v10327_v62 }
0x17fe   :  { %v5241_v26 = vrot.slane %v5224_v60, 4  ;;  %v5244_v59 = vsel %vm147_vm1, 0.0, %v5243_v2  ;;  %v5320_v57 = vperm.slane %v5316_v8, %v10322_v53  ;;  %v5321_v63 = vrot.slane %v5248_v39, 4 }
0x17ff   :  { %v5246_v24 = vsel %vm147_vm1, 0.0, %v5245_v19  ;;  %v5310_v50 = vrot.slane %v5244_v59, 4  ;;  %v5404_v11 = vperm.slane %v5396_v45, %v10327_v62  ;;  %v5411_v56 = vrot.slane %v5392_v38, 4 }
0x1800   :  { %v5322_v20 = vsel %vm147_vm1, %v5321_v63, %v5246_v24  ;;  %v5382_v42 = vsel %vm147_vm1, %v5381_v18, %v5363_v5  ;;  %v5393_v7 = vrot.slane %v5380_v14, 4  ;;  %v5242_v51 = vsel %vm147_vm1, 0.0, %v5241_v26 }
0x1801   :  { %v5412_v27 = vsel %vm147_vm1, %v5404_v11, %v5411_v56  ;;  %v5388_v6 = vperm.slane %v5382_v42, %v10327_v62  ;;  %v5409_v33 = vrot.slane %v5404_v11, 4  ;;  %v5305_v49 = vsel %vm147_vm1, %v5243_v2, %v5224_v60 }
0x1802   :  { %9686 = vmatpush.xpose.msk.msra.mxu3 %vm869_vm2, %v5412_v27  ;;  %v5394_v29 = vsel %vm147_vm1, %v5393_v7, %v5374_v52  ;;  %v5309_v16 = vperm.slane %v5305_v49, %v10322_v53  ;;  %v5311_v35 = vsel %vm147_vm1, %v5310_v50, %v5242_v51  ;;  %v5326_v5 = vperm.slane %v5322_v20, %v10322_v53 }
0x1803   :  { %v5400_v32 = vperm.slane %v5394_v29, %v10327_v62  ;;  %v5407_v34 = vrot.slane %v5388_v6, 4  ;;  %v5410_v40 = vsel %vm147_vm1, %v5409_v33, %v5392_v38  ;;  %v5315_v55 = vperm.slane %v5311_v35, %v10322_v53 }
0x1804   :  { %9682 = vmatpush.xpose.msk.msra.mxu1 %vm869_vm2, %v5410_v40  ;;  %v5329_v17 = vrot.slane %v5309_v16, 4  ;;  %v5341_v4 = vrot.slane %v5320_v57, 4  ;;  %v5339_v21 = vrot.slane %v5326_v5, 4 }
0x1805   :  { %v5408_v52 = vsel %vm147_vm1, %v5400_v32, %v5407_v34  ;;  %v5405_v10 = vrot.slane %v5400_v32, 4  ;;  %v5327_v36 = vrot.slane %v5315_v55, 4 }
0x1806   :  { %9678 = vmatpush.xpose.msk.msra.mxu2 %vm869_vm2, %v5408_v52  ;;  %v5330_v61 = vsel %vm147_vm1, %v5315_v55, %v5329_v17  ;;  %v5342_v14 = vsel %vm147_vm1, %v5326_v5, %v5341_v4  ;;  %v5340_v25 = vsel %vm147_vm1, %v5339_v21, %v5320_v57 }
0x1807   :  { %v5406_v47 = vsel %vm147_vm1, %v5405_v10, %v5388_v6  ;;  %v5338_v44 = vperm.slane %v5330_v61, %v10327_v62  ;;  %v5350_v12 = vperm.slane %v5342_v14, %v10327_v62  ;;  %v5328_v41 = vsel %vm147_vm1, %v5327_v36, %v5309_v16 }
0x1808   :  { %9674 = vmatpush.xpose.msk.msrb.mxu0 %vm869_vm2, %v5406_v47  ;;  %v5334_v1 = vperm.slane %v5328_v41, %v10327_v62  ;;  %v5346_v58 = vperm.slane %v5340_v25, %v10327_v62 }
0x1809   :  { %v5355_v18 = vrot.slane %v5350_v12, 4  ;;  %v5357_v60 = vrot.slane %v5338_v44, 4 }
0x180a   :  { %v5351_v2 = vrot.slane %v5346_v58, 4  ;;  %v5353_v15 = vrot.slane %v5334_v1, 4 }
0x180b   :  { %v5356_v45 = vsel %vm147_vm1, %v5355_v18, %v5338_v44  ;;  %v5358_v19 = vsel %vm147_vm1, %v5350_v12, %v5357_v60 }
0x180c   :  { %9683 = vmatpush.xpose.msk.msra.mxu1 %vm869_vm2, %v5356_v45  ;;  %v5352_v39 = vsel %vm147_vm1, %v5351_v2, %v5334_v1  ;;  %9687 = vmatpush.xpose.msk.msra.mxu3 %vm869_vm2, %v5358_v19  ;;  %v5354_v8 = vsel %vm147_vm1, %v5346_v58, %v5353_v15 }
0x180d   :  { %9675 = vmatpush.xpose.msk.msrb.mxu0 %vm869_vm2, %v5352_v39  ;;  %9679 = vmatpush.xpose.msk.msra.mxu2 %vm869_vm2, %v5354_v8 }
0x1819   :  { %v4880_v38 = vpop.f32.mrf.mxu1 }
0x181a   :  { %v4881_v26 = vadd.f32 %v12006_v9, %v4880_v38 }
0x181c   :  { %v4913_v59 = vmul.f32 0.35355338, %v4881_v26 }
0x181e   :  { %4923 = vrot.lane.b32.xlu1 %v4913_v59, %s10226_s19  ;;  %4929 = vrot.lane.b32.xlu2 %v4913_v59, %s10227_s20  ;;  %v4937_v20 = vrot.slane %v4913_v59, 4 }
0x1821   :  { %v4883_v57 = vpop.f32.mrf.mxu1 }
0x1822   :  { %v4884_v63 = vadd.f32 %v12006_v9, %v4883_v57 }
0x1824   :  { %v4914_v24 = vmul.f32 0.35355338, %v4884_v63 }
0x1826   :  { %4917 = vrot.lane.b32.xlu1 %v4913_v59, %s10228_s21  ;;  %4925 = vrot.lane.b32.xlu0 %v4914_v24, %s10226_s19  ;;  %v4993_v27 = vrot.slane %v4914_v24, 4 }
0x1827   :  { %4931 = vrot.lane.b32.xlu2 %v4914_v24, %s10227_s20 }
0x182e   :  { %4919 = vrot.lane.b32.xlu1 %v4914_v24, %s10228_s21 }
0x1878   :  { %v4930_v56 = vpop.permute.xlu2 %4929 }
0x1879   :  { %v4947_v51 = vrot.slane %v4930_v56, 4 }
0x1881   :  { %v4932_v4 = vpop.permute.xlu2 %4931 }
0x1882   :  { %v5003_v44 = vrot.slane %v4932_v4, 4 }
0x1890   :  { %v4924_v50 = vpop.permute.xlu1 %4923 }
0x1891   :  { %v4935_v11 = vrot.slane %v4924_v50, 4  ;;  %v4938_v7 = vsel %vm147_vm1, %v4924_v50, %v4937_v20 }
0x1892   :  { %v4946_v6 = vperm.slane %v4938_v7, %v10322_v53 }
0x1893   :  { %v4936_v42 = vsel %vm147_vm1, %v4935_v11, %v4913_v59 }
0x1894   :  { %v4942_v9 = vperm.slane %v4936_v42, %v10322_v53  ;;  %v4973_v36 = vrot.slane %v4946_v6, 4 }
0x1896   :  { %v4961_v34 = vrot.slane %v4942_v9, 4 }
0x1898   :  { %v4926_v33 = vpop.permute.xlu0 %4925  ;;  %v4918_v49 = vpop.permute.xlu1 %4917 }
0x1899   :  { %v4991_v29 = vrot.slane %v4926_v33, 4  ;;  %v4994_v16 = vsel %vm147_vm1, %v4926_v33, %v4993_v27  ;;  %v4948_v35 = vsel %vm147_vm1, %v4947_v51, %v4918_v49  ;;  %v4949_v5 = vrot.slane %v4918_v49, 4 }
0x189a   :  { %v4954_v32 = vperm.slane %v4948_v35, %v10322_v53  ;;  %v5002_v55 = vperm.slane %v4994_v16, %v10322_v53 }
0x189b   :  { %v4992_v40 = vsel %vm147_vm1, %v4991_v29, %v4914_v24  ;;  %v4950_v17 = vsel %vm147_vm1, %v4930_v56, %v4949_v5 }
0x189c   :  { %v4998_v21 = vperm.slane %v4992_v40, %v10322_v53  ;;  %v4958_v52 = vperm.slane %v4950_v17, %v10322_v53  ;;  %v4959_v10 = vrot.slane %v4954_v32, 4  ;;  %v4962_v61 = vsel %vm147_vm1, %v4954_v32, %v4961_v34 }
0x189d   :  { %v4970_v25 = vperm.slane %v4962_v61, %v10327_v62  ;;  %v5029_v12 = vrot.slane %v5002_v55, 4 }
0x189e   :  { %v4960_v14 = vsel %vm147_vm1, %v4959_v10, %v4942_v9  ;;  %v4971_v47 = vrot.slane %v4958_v52, 4  ;;  %v4974_v1 = vsel %vm147_vm1, %v4958_v52, %v4973_v36  ;;  %v5017_v58 = vrot.slane %v4998_v21, 4 }
0x189f   :  { %v4966_v41 = vperm.slane %v4960_v14, %v10327_v62  ;;  %v4982_v60 = vperm.slane %v4974_v1, %v10327_v62  ;;  %v4985_v2 = vrot.slane %v4970_v25, 4 }
0x18a0   :  { %v4972_v18 = vsel %vm147_vm1, %v4971_v47, %v4946_v6  ;;  %v4920_v15 = vpop.permute.xlu1 %4919 }
0x18a1   :  { %v4978_v45 = vperm.slane %v4972_v18, %v10327_v62  ;;  %v4983_v19 = vrot.slane %v4966_v41, 4  ;;  %v5004_v39 = vsel %vm147_vm1, %v5003_v44, %v4920_v15  ;;  %v5005_v8 = vrot.slane %v4920_v15, 4 }
0x18a2   :  { %v4986_v38 = vsel %vm147_vm1, 0.0, %v4985_v2  ;;  %v4989_v26 = vrot.slane %v4982_v60, 4  ;;  %v5047_v59 = vsel %vm147_vm1, %v4985_v2, %v4966_v41  ;;  %v5010_v57 = vperm.slane %v5004_v39, %v10322_v53 }
0x18a3   :  { %v4984_v63 = vsel %vm147_vm1, 0.0, %v4983_v19  ;;  %v4987_v24 = vrot.slane %v4978_v45, 4  ;;  %v5051_v50 = vperm.slane %v5047_v59, %v10322_v53  ;;  %v5052_v11 = vrot.slane %v4986_v38, 4 }
0x18a4   :  { %v4990_v56 = vsel %vm147_vm1, 0.0, %v4989_v26  ;;  %v5058_v20 = vsel %vm147_vm1, %v4989_v26, %v4978_v45  ;;  %v5006_v42 = vsel %vm147_vm1, %v4932_v4, %v5005_v8  ;;  %v5015_v7 = vrot.slane %v5010_v57, 4 }
0x18a5   :  { %v4988_v51 = vsel %vm147_vm1, 0.0, %v4987_v24  ;;  %v5053_v9 = vsel %vm147_vm1, %v5052_v11, %v4984_v63  ;;  %v5063_v27 = vrot.slane %v4990_v56, 4  ;;  %v5071_v6 = vrot.slane %v5051_v50, 4 }
0x18a6   :  { %v5057_v33 = vperm.slane %v5053_v9, %v10322_v53  ;;  %v5014_v49 = vperm.slane %v5006_v42, %v10322_v53  ;;  %v5016_v29 = vsel %vm147_vm1, %v5015_v7, %v4998_v21  ;;  %v5018_v16 = vsel %vm147_vm1, %v5010_v57, %v5017_v58 }
0x18a7   :  { %v5022_v35 = vperm.slane %v5016_v29, %v10327_v62  ;;  %v5026_v5 = vperm.slane %v5018_v16, %v10327_v62  ;;  %v5062_v32 = vperm.slane %v5058_v20, %v10322_v53  ;;  %v5064_v34 = vsel %vm147_vm1, %v5063_v27, %v4988_v51 }
0x18a8   :  { %v5027_v40 = vrot.slane %v5014_v49, 4  ;;  %v5030_v17 = vsel %vm147_vm1, %v5014_v49, %v5029_v12  ;;  %v5068_v4 = vperm.slane %v5064_v34, %v10322_v53  ;;  %v5072_v52 = vsel %vm147_vm1, %v5057_v33, %v5071_v6 }
0x18a9   :  { %v5038_v10 = vperm.slane %v5030_v17, %v10327_v62  ;;  %v5039_v21 = vrot.slane %v5022_v35, 4  ;;  %v5041_v36 = vrot.slane %v5026_v5, 4  ;;  %v5080_v61 = vperm.slane %v5072_v52, %v10327_v62 }
0x18aa   :  { %v5028_v14 = vsel %vm147_vm1, %v5027_v40, %v5002_v55  ;;  %v5083_v25 = vrot.slane %v5062_v32, 4  ;;  %v5069_v47 = vrot.slane %v5057_v33, 4  ;;  %v5081_v44 = vrot.slane %v5068_v4, 4 }
0x18ab   :  { %v5034_v41 = vperm.slane %v5028_v14, %v10327_v62  ;;  %v5040_v1 = vsel %vm147_vm1, 0.0, %v5039_v21  ;;  %v5042_v12 = vsel %vm147_vm1, 0.0, %v5041_v36  ;;  %v5045_v58 = vrot.slane %v5038_v10, 4 }
0x18ac   :  { %v5101_v18 = vsel %vm147_vm1, %v5041_v36, %v5022_v35  ;;  %v5106_v60 = vrot.slane %v5042_v12, 4  ;;  %v5084_v2 = vsel %vm147_vm1, %v5068_v4, %v5083_v25  ;;  %v5099_v15 = vrot.slane %v5080_v61, 4  ;;  %v35_v12 = vld [vmem:[#allocation2 + $0x20] sm:$0xff] }
0x18ad   :  { %v5043_v45 = vrot.slane %v5034_v41, 4  ;;  %v5046_v19 = vsel %vm147_vm1, 0.0, %v5045_v58  ;;  %v5105_v55 = vperm.slane %v5101_v18, %v10322_v53  ;;  %v5092_v39 = vperm.slane %v5084_v2, %v10327_v62 }
0x18ae   :  { %v5117_v8 = vrot.slane %v5046_v19, 4  ;;  %v5070_v38 = vsel %vm147_vm1, %v5069_v47, %v5051_v50  ;;  %v5082_v26 = vsel %vm147_vm1, %v5081_v44, %v5062_v32  ;;  %v5107_v59 = vsel %vm147_vm1, %v5106_v60, %v5040_v1 }
0x18af   :  { %v5100_v57 = vsel %vm147_vm1, %v5092_v39, %v5099_v15  ;;  %v5076_v63 = vperm.slane %v5070_v38, %v10327_v62  ;;  %v5088_v24 = vperm.slane %v5082_v26, %v10327_v62  ;;  %v5097_v11 = vrot.slane %v5092_v39, 4 }
0x18b0   :  { %9688 = vmatmul.msk.f32.vlgmr.msra.gmra.mxu3 %vm869_vm2, %v5100_v57  ;;  %v5044_v56 = vsel %vm147_vm1, 0.0, %v5043_v45  ;;  %v5111_v20 = vperm.slane %v5107_v59, %v10322_v53  ;;  %v5112_v42 = vsel %vm147_vm1, %v5045_v58, %v5034_v41  ;;  %v5125_v50 = vrot.slane %v5105_v55, 4  ;;  %v36_v57 = vld [vmem:[#allocation2 + $0x28] sm:$0xff] }
0x18b1   :  { %v5095_v7 = vrot.slane %v5076_v63, 4  ;;  %v5098_v51 = vsel %vm147_vm1, %v5097_v11, %v5080_v61  ;;  %v5093_v9 = vrot.slane %v5088_v24, 4  ;;  %v5116_v27 = vperm.slane %v5112_v42, %v10322_v53 }
0x18b2   :  { %9684 = vmatmul.msk.f32.vlgmr.msra.gmra.mxu1 %vm869_vm2, %v5098_v51  ;;  %v5118_v6 = vsel %vm147_vm1, %v5117_v8, %v5044_v56  ;;  %v5126_v33 = vsel %vm147_vm1, %v5111_v20, %v5125_v50  ;;  %v5123_v49 = vrot.slane %v5111_v20, 4 }
0x18b3   :  { %v5096_v29 = vsel %vm147_vm1, %v5088_v24, %v5095_v7  ;;  %v5094_v16 = vsel %vm147_vm1, %v5093_v9, %v5076_v63  ;;  %v5122_v35 = vperm.slane %v5118_v6, %v10322_v53  ;;  %v5134_v5 = vperm.slane %v5126_v33, %v10327_v62 }
0x18b4   :  { %9680 = vmatmul.msk.f32.vlgmr.msra.gmra.mxu2 %vm869_vm2, %v5096_v29  ;;  %9676 = vmatmul.msk.f32.vlgmr.msrb.gmra.mxu0 %vm869_vm2, %v5094_v16  ;;  %v5137_v32 = vrot.slane %v5116_v27, 4  ;;  %v5124_v34 = vsel %vm147_vm1, %v5123_v49, %v5105_v55  ;;  %v9851_v6 = vpack.i.bf16 %v12036_v54, %v12032_v48  ;;  %v9846_v33 = vpack.i.bf16 %v12009_v23, %v12030_v22 }
0x18b5   :  { %v5153_v40 = vrot.slane %v5134_v5, 4  ;;  %v5130_v17 = vperm.slane %v5124_v34, %v10327_v62  ;;  %v5135_v4 = vrot.slane %v5122_v35, 4  ;;  %v9861_v49 = vpack.i.bf16 %v12044_v37, %v12056_v30 }
0x18b6   :  { %v5138_v52 = vsel %vm147_vm1, %v5122_v35, %v5137_v32  ;;  %v9856_v29 = vpack.i.bf16 %v12052_v46, %v12014_v28 }
0x18b7   :  { %v5146_v10 = vperm.slane %v5138_v52, %v10327_v62  ;;  %v5136_v21 = vsel %vm147_vm1, %v5135_v4, %v5116_v27  ;;  %v5149_v36 = vrot.slane %v5130_v17, 4 }
0x18b8   :  { %v5142_v61 = vperm.slane %v5136_v21, %v10327_v62 }
0x18b9   :  { %v5154_v14 = vsel %vm147_vm1, %v5146_v10, %v5153_v40  ;;  %v5151_v25 = vrot.slane %v5146_v10, 4 }
0x18ba   :  { %9689 = vmatmul.msk.f32.gmra.mxu3 %vm869_vm2, %v5154_v14  ;;  %v5150_v47 = vsel %vm147_vm1, %v5142_v61, %v5149_v36  ;;  %v5147_v44 = vrot.slane %v5142_v61, 4 }
0x18bb   :  { %v5152_v41 = vsel %vm147_vm1, %v5151_v25, %v5134_v5 }
0x18bc   :  { %9681 = vmatmul.msk.f32.gmra.mxu2 %vm869_vm2, %v5150_v47  ;;  %9685 = vmatmul.msk.f32.gmra.mxu1 %vm869_vm2, %v5152_v41  ;;  %v5148_v1 = vsel %vm147_vm1, %v5147_v44, %v5130_v17 }
0x18bd   :  { %9677 = vmatmul.msk.f32.gmra.mxu0 %vm869_vm2, %v5148_v1 }
0x192f   :  { %v5756_v58 = vpop.f32.mrf.mxu1 }
0x1930   :  { %v5757_v18 = vadd.f32 %v5756_v58, %v35_v12 }
0x1931   :  { %v5686_v60 = vpop.f32.mrf.mxu0 }
0x1932   :  { %v5687_v2 = vadd.f32 %v5686_v60, %v35_v12  ;;  %v5809_v15 = vsel %vm1010_vm3, %v5757_v18, -inf }
0x1933   :  { %5810 = vmax.xlane.f32.xlu1 %v5809_v15  ;;  %v5791_v19 = vpop.f32.mrf.mxu3 }
0x1934   :  { %v5797_v45 = vsel %vm1010_vm3, %v5687_v2, -inf  ;;  %v5792_v39 = vadd.f32 %v5791_v19, %v35_v12 }
0x1935   :  { %5798 = vmax.xlane.f32.xlu0 %v5797_v45 }
0x1936   :  { %v5815_v59 = vsel %vm1010_vm3, %v5792_v39, -inf }
0x1937   :  { %v5721_v55 = vpop.f32.mrf.mxu2 }
0x1938   :  { %v5722_v8 = vadd.f32 %v5721_v55, %v35_v12 }
0x1939   :  { %v5759_v63 = vpop.f32.mrf.mxu1 }
0x193a   :  { %v5803_v38 = vsel %vm1010_vm3, %v5722_v8, -inf  ;;  %v5689_v26 = vpop.f32.mrf.mxu0  ;;  %v5760_v56 = vadd.f32 %v5759_v63, %v36_v57 }
0x193b   :  { %5804 = vmax.xlane.f32.xlu2 %v5803_v38  ;;  %v12256_v24 = vadd.f32 %v5689_v26, %v36_v57 }
0x193c   :  { %v5812_v51 = vsel %vm1010_vm3, %v5760_v56, -inf }
0x193d   :  { %5816 = vmax.xlane.f32.xlu0 %v5815_v59  ;;  %v5800_v50 = vsel %vm1010_vm3, %v12256_v24, -inf  ;;  %v5794_v7 = vpop.f32.mrf.mxu3 }
0x193e   :  { %v5795_v9 = vadd.f32 %v5794_v7, %v36_v57 }
0x193f   :  { %v5724_v11 = vpop.f32.mrf.mxu2 }
0x1940   :  { %v5725_v20 = vadd.f32 %v5724_v11, %v36_v57  ;;  %v5818_v27 = vsel %vm1010_vm3, %v5795_v9, -inf }
0x1942   :  { %v5806_v42 = vsel %vm1010_vm3, %v5725_v20, -inf }
0x1943   :  { %5807 = vmax.xlane.f32.xlu1 %v5806_v42  ;;  %5801 = vmax.xlane.f32.xlu2 %v5800_v50 }
0x1945   :  { %5813 = vmax.xlane.f32.xlu0 %v5812_v51 }
0x194b   :  { %5819 = vmax.xlane.f32.xlu2 %v5818_v27 }
0x1959   :  { %9852 = vrot.lane.b32.xlu0 %v9851_v6, %s10230_s23 }
0x195c   :  { %9847 = vrot.lane.b32.xlu1 %v9846_v33, %s10230_s23 }
0x1961   :  { %9862 = vrot.lane.b32.xlu0 %v9861_v49, %s10230_s23 }
0x1963   :  { %9857 = vrot.lane.b32.xlu2 %v9856_v29, %s10230_s23 }
0x19a6   :  { %v5811_v16 = vpop.xlane.xlu1 %5810 }
0x19a7   :  { %v5825_v35 = vsub.f32 %v5757_v18, %v5811_v16 }
0x19a8   :  { %v5799_v48 = vpop.xlane.xlu0 %5798 }
0x19a9   :  { %v5837_v54 = vmul.f32 1.442695, %v5825_v35  ;;  %v5821_v28 = vsub.f32 %v5687_v2, %v5799_v48 }
0x19ab   :  { %10071 = vpow2.f32 %v5837_v54  ;;  %v5829_v4 = vmul.f32 1.442695, %v5821_v28 }
0x19ae   :  { %v5805_v5 = vpop.xlane.xlu2 %5804 }
0x19af   :  { %v5823_v32 = vsub.f32 %v5722_v8, %v5805_v5 }
0x19b0   :  { %v5817_v23 = vpop.xlane.xlu0 %5816 }
0x19b1   :  { %v12275_v22 = vpop.eup %10071  ;;  %v5833_v34 = vmul.f32 1.442695, %v5823_v32  ;;  %v5827_v40 = vsub.f32 %v5792_v39, %v5817_v23 }
0x19b2   :  { %v5857_v37 = vsel %vm1010_vm3, %v12275_v22, 0.0 }
0x19b3   :  { %10073 = vpow2.f32 %v5833_v34  ;;  %v5841_v46 = vmul.f32 1.442695, %v5827_v40  ;;  %5858 = vadd.xlane.f32.xlu0 %v5857_v37 }
0x19b5   :  { %10075 = vpow2.f32 %v5841_v46 }
0x19b6   :  { %v5802_v30 = vpop.xlane.xlu2 %5801  ;;  %v5808_v17 = vpop.xlane.xlu1 %5807  ;;  %10077 = vpow2.f32 %v5829_v4 }
0x19b7   :  { %v5824_v52 = vsub.f32 %v5725_v20, %v5808_v17  ;;  %v5822_v12 = vsub.f32 %v12256_v24, %v5802_v30 }
0x19b8   :  { %v5814_v10 = vpop.xlane.xlu0 %5813 }
0x19b9   :  { %v12279_v21 = vpop.eup %10073  ;;  %v5835_v36 = vmul.f32 1.442695, %v5824_v52  ;;  %v5826_v61 = vsub.f32 %v5760_v56, %v5814_v10  ;;  %v5831_v15 = vmul.f32 1.442695, %v5822_v12 }
0x19ba   :  { %v5851_v14 = vsel %vm1010_vm3, %v12279_v21, 0.0 }
0x19bb   :  { %v12283_v25 = vpop.eup %10075  ;;  %5852 = vadd.xlane.f32.xlu2 %v5851_v14  ;;  %10079 = vpow2.f32 %v5835_v36  ;;  %v5839_v44 = vmul.f32 1.442695, %v5826_v61 }
0x19bc   :  { %v5863_v47 = vsel %vm1010_vm3, %v12283_v25, 0.0  ;;  %v12288_v58 = vpop.eup %10077 }
0x19bd   :  { %5864 = vadd.xlane.f32.xlu1 %v5863_v47  ;;  %10081 = vpow2.f32 %v5839_v44  ;;  %v5845_v45 = vsel %vm1010_vm3, %v12288_v58, 0.0 }
0x19be   :  { %v5820_v41 = vpop.xlane.xlu2 %5819 }
0x19bf   :  { %v5828_v1 = vsub.f32 %v5795_v9, %v5820_v41 }
0x19c1   :  { %v5843_v18 = vmul.f32 1.442695, %v5828_v1  ;;  %v12290_v60 = vpop.eup %10079 }
0x19c2   :  { %v5854_v2 = vsel %vm1010_vm3, %v12290_v60, 0.0 }
0x19c3   :  { %10083 = vpow2.f32 %v5843_v18  ;;  %5855 = vadd.xlane.f32.xlu0 %v5854_v2  ;;  %v12296_v55 = vpop.eup %10081 }
0x19c4   :  { %10085 = vpow2.f32 %v5831_v15  ;;  %v5860_v11 = vsel %vm1010_vm3, %v12296_v55, 0.0 }
0x19c5   :  { %5846 = vadd.xlane.f32.xlu1 %v5845_v45 }
0x19c6   :  { %v9858_v19 = vpop.permute.xlu2 %9857 }
0x19c7   :  { %v9860_v39 = vunpack.i.h.bf16 %v9858_v19  ;;  %v9859_v38 = vunpack.i.l.bf16 %v9858_v19 }
0x19c9   :  { %v12298_v8 = vpop.eup %10083  ;;  %v5507_v57 = vrot.slane %v9860_v39, 4  ;;  %v5439_v56 = vrot.slane %v9859_v38, 4 }
0x19ca   :  { %v5866_v26 = vsel %vm1010_vm3, %v12298_v8, 0.0  ;;  %v12304_v20 = vpop.eup %10085 }
0x19cb   :  { %5867 = vadd.xlane.f32.xlu2 %v5866_v26  ;;  %v9853_v59 = vpop.permute.xlu0 %9852  ;;  %v5848_v35 = vsel %vm1010_vm3, %v12304_v20, 0.0 }
0x19cc   :  { %v9855_v63 = vunpack.i.h.bf16 %v9853_v59  ;;  %v9854_v24 = vunpack.i.l.bf16 %v9853_v59 }
0x19cd   :  { %5861 = vadd.xlane.f32.xlu1 %v5860_v11 }
0x19ce   :  { %v5505_v42 = vrot.slane %v9855_v63, 4  ;;  %v5437_v50 = vrot.slane %v9854_v24, 4  ;;  %v5508_v7 = vsel %vm147_vm1, %v9855_v63, %v5507_v57  ;;  %v9848_v51 = vpop.permute.xlu1 %9847  ;;  %v5440_v9 = vsel %vm147_vm1, %v9854_v24, %v5439_v56 }
0x19cf   :  { %v5516_v27 = vperm.slane %v5508_v7, %v10322_v53  ;;  %v9850_v6 = vunpack.i.h.bf16 %v9848_v51  ;;  %v9849_v33 = vunpack.i.l.bf16 %v9848_v51  ;;  %v5448_v54 = vperm.slane %v5440_v9, %v10322_v53 }
0x19d0   :  { %v5438_v49 = vsel %vm147_vm1, %v5437_v50, %v9859_v38  ;;  %v5506_v29 = vsel %vm147_vm1, %v5505_v42, %v9860_v39 }
0x19d1   :  { %v5512_v16 = vperm.slane %v5506_v29, %v10322_v53  ;;  %v5444_v48 = vperm.slane %v5438_v49, %v10322_v53  ;;  %v5495_v5 = vrot.slane %v9850_v6, 4  ;;  %v5493_v32 = vrot.slane %v9849_v33, 4 }
0x19d2   :  { %v5529_v34 = vrot.slane %v5516_v27, 4  ;;  %v5475_v10 = vrot.slane %v5448_v54, 4 }
0x19d3   :  { %v5517_v23 = vrot.slane %v5512_v16, 4  ;;  %5849 = vadd.xlane.f32.xlu2 %v5848_v35  ;;  %v9863_v40 = vpop.permute.xlu0 %9862  ;;  %v5494_v37 = vsel %vm147_vm1, %v5493_v32, %v9850_v6  ;;  %v5496_v28 = vsel %vm147_vm1, %v9849_v33, %v5495_v5  ;;  %v5463_v52 = vrot.slane %v5444_v48, 4 }
0x19d4   :  { %v9865_v46 = vunpack.i.h.bf16 %v9863_v40  ;;  %v9864_v30 = vunpack.i.l.bf16 %v9863_v40  ;;  %v5500_v17 = vperm.slane %v5494_v37, %v10322_v53  ;;  %v5504_v4 = vperm.slane %v5496_v28, %v10322_v53 }
0x19d6   :  { %v5451_v36 = vrot.slane %v9865_v46, 4  ;;  %v5449_v61 = vrot.slane %v9864_v30, 4  ;;  %v5518_v14 = vsel %vm147_vm1, %v5517_v23, %v5500_v17  ;;  %v5519_v47 = vrot.slane %v5500_v17, 4 }
0x19d7   :  { %v5530_v44 = vsel %vm147_vm1, %v5529_v34, %v5504_v4  ;;  %v5531_v41 = vrot.slane %v5504_v4, 4  ;;  %v5524_v1 = vperm.slane %v5518_v14, %v10327_v62 }
0x19d8   :  { %v5536_v12 = vperm.slane %v5530_v44, %v10327_v62  ;;  %v5450_v18 = vsel %vm147_vm1, %v5449_v61, %v9865_v46  ;;  %v5452_v2 = vsel %vm147_vm1, %v9864_v30, %v5451_v36  ;;  %v5520_v15 = vsel %vm147_vm1, %v5512_v16, %v5519_v47 }
0x19d9   :  { %v5532_v45 = vsel %vm147_vm1, %v5516_v27, %v5531_v41  ;;  %v5456_v19 = vperm.slane %v5450_v18, %v10322_v53  ;;  %v5460_v39 = vperm.slane %v5452_v2, %v10322_v53  ;;  %v5528_v38 = vperm.slane %v5520_v15, %v10327_v62 }
0x19da   :  { %v5540_v26 = vperm.slane %v5532_v45, %v10327_v62  ;;  %v5541_v59 = vrot.slane %v5524_v1, 4  ;;  %v5545_v57 = vrot.slane %v5536_v12, 4 }
0x19db   :  { %v5461_v63 = vrot.slane %v5456_v19, 4  ;;  %v5464_v24 = vsel %vm147_vm1, %v5456_v19, %v5463_v52  ;;  %v5473_v11 = vrot.slane %v5460_v39, 4  ;;  %v5476_v56 = vsel %vm147_vm1, %v5460_v39, %v5475_v10 }
0x19dc   :  { %v5543_v42 = vrot.slane %v5528_v38, 4  ;;  %v5546_v50 = vsel %vm147_vm1, 0.0, %v5545_v57  ;;  %v5547_v7 = vrot.slane %v5540_v26, 4  ;;  %v5472_v51 = vperm.slane %v5464_v24, %v10327_v62 }
0x19dd   :  { %v5462_v9 = vsel %vm147_vm1, %v5461_v63, %v5444_v48  ;;  %v5474_v27 = vsel %vm147_vm1, %v5473_v11, %v5448_v54  ;;  %v5484_v6 = vperm.slane %v5476_v56, %v10327_v62  ;;  %v5542_v33 = vsel %vm147_vm1, 0.0, %v5541_v59 }
0x19de   :  { %v5544_v49 = vsel %vm147_vm1, 0.0, %v5543_v42  ;;  %v5548_v29 = vsel %vm147_vm1, 0.0, %v5547_v7  ;;  %v5614_v16 = vsel %vm147_vm1, %v5547_v7, %v5536_v12  ;;  %v5468_v35 = vperm.slane %v5462_v9, %v10327_v62 }
0x19df   :  { %v5608_v5 = vrot.slane %v5544_v49, 4  ;;  %v5619_v32 = vrot.slane %v5548_v29, 4  ;;  %v5480_v23 = vperm.slane %v5474_v27, %v10327_v62  ;;  %v5487_v34 = vrot.slane %v5472_v51, 4 }
0x19e0   :  { %v5485_v48 = vrot.slane %v5468_v35, 4  ;;  %v5491_v40 = vrot.slane %v5484_v6, 4  ;;  %v5603_v54 = vsel %vm147_vm1, %v5543_v42, %v5524_v1  ;;  %v5618_v37 = vperm.slane %v5614_v16, %v10322_v53 }
0x19e1   :  { %v5488_v28 = vsel %vm147_vm1, 0.0, %v5487_v34  ;;  %v5489_v46 = vrot.slane %v5480_v23, 4  ;;  %v5607_v30 = vperm.slane %v5603_v54, %v10322_v53  ;;  %v5609_v17 = vsel %vm147_vm1, %v5608_v5, %v5542_v33 }
0x19e2   :  { %v5492_v4 = vsel %vm147_vm1, 0.0, %v5491_v40  ;;  %v5554_v52 = vrot.slane %v5488_v28, 4  ;;  %v5613_v10 = vperm.slane %v5609_v17, %v10322_v53  ;;  %v5620_v36 = vsel %vm147_vm1, %v5619_v32, %v5546_v50 }
0x19e3   :  { %v5565_v61 = vrot.slane %v5492_v4, 4  ;;  %v5624_v14 = vperm.slane %v5620_v36, %v10322_v53  ;;  %v5627_v47 = vrot.slane %v5607_v30, 4  ;;  %v5639_v44 = vrot.slane %v5618_v37, 4 }
0x19e4   :  { %v5625_v41 = vrot.slane %v5613_v10, 4  ;;  %v5486_v1 = vsel %vm147_vm1, 0.0, %v5485_v48  ;;  %v5490_v12 = vsel %vm147_vm1, 0.0, %v5489_v46  ;;  %v5549_v18 = vsel %vm147_vm1, %v5487_v34, %v5468_v35 }
0x19e5   :  { %v5628_v2 = vsel %vm147_vm1, %v5613_v10, %v5627_v47  ;;  %v5640_v15 = vsel %vm147_vm1, %v5624_v14, %v5639_v44  ;;  %v5637_v45 = vrot.slane %v5624_v14, 4  ;;  %v5553_v19 = vperm.slane %v5549_v18, %v10322_v53 }
0x19e6   :  { %v5636_v39 = vperm.slane %v5628_v2, %v10327_v62  ;;  %v5648_v38 = vperm.slane %v5640_v15, %v10327_v62  ;;  %v5626_v26 = vsel %vm147_vm1, %v5625_v41, %v5607_v30  ;;  %v5555_v59 = vsel %vm147_vm1, %v5554_v52, %v5486_v1 }
0x19e7   :  { %v5632_v57 = vperm.slane %v5626_v26, %v10327_v62  ;;  %v5638_v63 = vsel %vm147_vm1, %v5637_v45, %v5618_v37  ;;  %v5559_v24 = vperm.slane %v5555_v59, %v10322_v53  ;;  %v5560_v11 = vsel %vm147_vm1, %v5491_v40, %v5480_v23 }
0x19e8   :  { %v5653_v56 = vrot.slane %v5648_v38, 4  ;;  %v5655_v42 = vrot.slane %v5636_v39, 4  ;;  %v5644_v50 = vperm.slane %v5638_v63, %v10327_v62  ;;  %v5564_v7 = vperm.slane %v5560_v11, %v10322_v53 }
0x19e9   :  { %v5651_v51 = vrot.slane %v5632_v57, 4  ;;  %v5566_v9 = vsel %vm147_vm1, %v5565_v61, %v5490_v12  ;;  %v5573_v27 = vrot.slane %v5553_v19, 4  ;;  %v5571_v6 = vrot.slane %v5559_v24, 4 }
0x19ea   :  { %v5654_v33 = vsel %vm147_vm1, %v5653_v56, %v5636_v39  ;;  %v5656_v49 = vsel %vm147_vm1, %v5648_v38, %v5655_v42  ;;  %v5649_v29 = vrot.slane %v5644_v50, 4  ;;  %v5570_v16 = vperm.slane %v5566_v9, %v10322_v53 }
0x19eb   :  { %5963 = vmatpush.msrb.mxu1 %v5654_v33  ;;  %5992 = vmatpush.msrb.mxu3 %v5656_v49  ;;  %v5652_v35 = vsel %vm147_vm1, %v5644_v50, %v5651_v51  ;;  %v5574_v5 = vsel %vm147_vm1, %v5559_v24, %v5573_v27  ;;  %v5585_v32 = vrot.slane %v5564_v7, 4  ;;  %v5572_v23 = vsel %vm147_vm1, %v5571_v6, %v5553_v19 }
0x19ec   :  { %v5650_v34 = vsel %vm147_vm1, %v5649_v29, %v5632_v57  ;;  %5934 = vmatpush.msrb.mxu2 %v5652_v35  ;;  %v5582_v48 = vperm.slane %v5574_v5, %v10327_v62  ;;  %v5578_v40 = vperm.slane %v5572_v23, %v10327_v62  ;;  %v5583_v54 = vrot.slane %v5570_v16, 4 }
0x19ed   :  { %5905 = vmatpush.msra.mxu0 %v5650_v34  ;;  %v5586_v37 = vsel %vm147_vm1, %v5570_v16, %v5585_v32 }
0x19ee   :  { %v5594_v28 = vperm.slane %v5586_v37, %v10327_v62  ;;  %v5601_v46 = vrot.slane %v5582_v48, 4  ;;  %v5584_v30 = vsel %vm147_vm1, %v5583_v54, %v5564_v7  ;;  %v5597_v17 = vrot.slane %v5578_v40, 4 }
0x19ef   :  { %v5590_v4 = vperm.slane %v5584_v30, %v10327_v62 }
0x19f0   :  { %v5599_v52 = vrot.slane %v5594_v28, 4  ;;  %v5602_v10 = vsel %vm147_vm1, %v5594_v28, %v5601_v46 }
0x19f1   :  { %5993 = vmatpush.msrb.mxu3 %v5602_v10  ;;  %v5595_v36 = vrot.slane %v5590_v4, 4  ;;  %v5598_v61 = vsel %vm147_vm1, %v5590_v4, %v5597_v17 }
0x19f2   :  { %v5600_v14 = vsel %vm147_vm1, %v5599_v52, %v5582_v48  ;;  %5935 = vmatpush.msrb.mxu2 %v5598_v61 }
0x19f3   :  { %5964 = vmatpush.msrb.mxu1 %v5600_v14  ;;  %v5596_v47 = vsel %vm147_vm1, %v5595_v36, %v5578_v40 }
0x19f4   :  { %5906 = vmatpush.msra.mxu0 %v5596_v47 }
0x1a26   :  { %v5859_v44 = vpop.xlane.xlu0 %5858 }
0x1a27   :  { %10087 = vrcp.f32 %v5859_v44 }
0x1a2d   :  { %v10088_v41 = vpop.eup %10087 }
0x1a2e   :  { %v5881_v1 = vmul.f32 %v10088_v41, %v12275_v22  ;;  %v5853_v12 = vpop.xlane.xlu2 %5852 }
0x1a2f   :  { %10089 = vrcp.f32 %v5853_v12 }
0x1a30   :  { %v5865_v18 = vpop.xlane.xlu1 %5864  ;;  %9694 = vmatmul.msk.f32.vlgmr.msrb.gmra.mxu1 %vm1010_vm3, %v5881_v1 }
0x1a31   :  { %10091 = vrcp.f32 %v5865_v18 }
0x1a35   :  { %v10090_v2 = vpop.eup %10089 }
0x1a36   :  { %v5879_v15 = vmul.f32 %v10090_v2, %v12279_v21  ;;  %v5856_v19 = vpop.xlane.xlu0 %5855 }
0x1a37   :  { %v10092_v45 = vpop.eup %10091  ;;  %10093 = vrcp.f32 %v5856_v19 }
0x1a38   :  { %v5883_v39 = vmul.f32 %v10092_v45, %v12283_v25  ;;  %9692 = vmatmul.msk.f32.vlgmr.msrb.gmra.mxu2 %vm1010_vm3, %v5879_v15  ;;  %v5847_v38 = vpop.xlane.xlu1 %5846 }
0x1a39   :  { %10095 = vrcp.f32 %v5847_v38 }
0x1a3a   :  { %9696 = vmatmul.msk.f32.vlgmr.msrb.gmra.mxu3 %vm1010_vm3, %v5883_v39 }
0x1a3d   :  { %v10094_v22 = vpop.eup %10093 }
0x1a3e   :  { %v5868_v26 = vpop.xlane.xlu2 %5867  ;;  %v5880_v57 = vmul.f32 %v10094_v22, %v12290_v60 }
0x1a3f   :  { %v10096_v59 = vpop.eup %10095  ;;  %10097 = vrcp.f32 %v5868_v26 }
0x1a40   :  { %v5877_v63 = vmul.f32 %v10096_v59, %v12288_v58  ;;  %v5862_v21 = vpop.xlane.xlu1 %5861  ;;  %9693 = vmatmul.msk.f32.gmra.mxu2 %vm1010_vm3, %v5880_v57 }
0x1a41   :  { %10099 = vrcp.f32 %v5862_v21 }
0x1a42   :  { %9690 = vmatmul.msk.f32.vlgmr.msra.gmra.mxu0 %vm1010_vm3, %v5877_v63 }
0x1a45   :  { %v10098_v25 = vpop.eup %10097 }
0x1a46   :  { %v5850_v24 = vpop.xlane.xlu2 %5849  ;;  %v5884_v11 = vmul.f32 %v10098_v25, %v12298_v8 }
0x1a47   :  { %v10100_v56 = vpop.eup %10099  ;;  %10101 = vrcp.f32 %v5850_v24 }
0x1a48   :  { %9697 = vmatmul.msk.f32.gmra.mxu3 %vm1010_vm3, %v5884_v11  ;;  %v5882_v42 = vmul.f32 %v10100_v56, %v12296_v55 }
0x1a4a   :  { %9695 = vmatmul.msk.f32.gmra.mxu1 %vm1010_vm3, %v5882_v42 }
0x1a4d   :  { %v10102_v60 = vpop.eup %10101 }
0x1a4e   :  { %v5878_v58 = vmul.f32 %v10102_v60, %v12304_v20 }
0x1a50   :  { %9691 = vmatmul.msk.f32.gmra.mxu0 %vm1010_vm3, %v5878_v58 }
0x1aad   :  { %v5966_v50 = vpop.f32.mrf.mxu1 }
0x1aae   :  { %v6001_v27 = vrot.slane %v5966_v50, 4 }
0x1abb   :  { %v5937_v7 = vpop.f32.mrf.mxu2 }
0x1abc   :  { %v6015_v51 = vrot.slane %v5937_v7, 4 }
0x1abd   :  { %v5995_v9 = vpop.f32.mrf.mxu3 }
0x1abe   :  { %v6013_v6 = vrot.slane %v5995_v9, 4  ;;  %v6016_v8 = vsel %vm147_vm1, %v5995_v9, %v6015_v51 }
0x1abf   :  { %v6024_v33 = vperm.slane %v6016_v8, %v10322_v53  ;;  %v5908_v49 = vpop.f32.mrf.mxu0 }
0x1ac0   :  { %v6014_v55 = vsel %vm147_vm1, %v6013_v6, %v5937_v7  ;;  %v6002_v29 = vsel %vm147_vm1, %v6001_v27, %v5908_v49  ;;  %v6003_v16 = vrot.slane %v5908_v49, 4 }
0x1ac1   :  { %v6020_v20 = vperm.slane %v6014_v55, %v10322_v53  ;;  %v6008_v35 = vperm.slane %v6002_v29, %v10322_v53  ;;  %v6037_v23 = vrot.slane %v6024_v33, 4 }
0x1ac2   :  { %v6004_v5 = vsel %vm147_vm1, %v5966_v50, %v6003_v16 }
0x1ac3   :  { %v6025_v32 = vrot.slane %v6020_v20, 4  ;;  %v6012_v34 = vperm.slane %v6004_v5, %v10322_v53  ;;  %v6027_v48 = vrot.slane %v6008_v35, 4  ;;  %v5940_v4 = vpop.f32.mrf.mxu2 }
0x1ac4   :  { %v6071_v44 = vrot.slane %v5940_v4, 4 }
0x1ac5   :  { %v6026_v40 = vsel %vm147_vm1, %v6025_v32, %v6008_v35  ;;  %v6028_v54 = vsel %vm147_vm1, %v6020_v20, %v6027_v48  ;;  %v6038_v37 = vsel %vm147_vm1, %v6037_v23, %v6012_v34  ;;  %v6039_v28 = vrot.slane %v6012_v34, 4 }
0x1ac6   :  { %v6032_v46 = vperm.slane %v6026_v40, %v10327_v62  ;;  %v6036_v30 = vperm.slane %v6028_v54, %v10327_v62  ;;  %v6044_v17 = vperm.slane %v6038_v37, %v10327_v62 }
0x1ac7   :  { %v6040_v52 = vsel %vm147_vm1, %v6024_v33, %v6039_v28  ;;  %v5969_v10 = vpop.f32.mrf.mxu1 }
0x1ac8   :  { %v6048_v36 = vperm.slane %v6040_v52, %v10327_v62  ;;  %v6049_v61 = vrot.slane %v6032_v46, 4  ;;  %v6051_v14 = vrot.slane %v6036_v30, 4  ;;  %v6053_v47 = vrot.slane %v6044_v17, 4 }
0x1ac9   :  { %v6057_v18 = vrot.slane %v5969_v10, 4 }
0x1aca   :  { %v6052_v41 = vsel %vm147_vm1, 0.0, %v6051_v14  ;;  %v6055_v1 = vrot.slane %v6048_v36, 4  ;;  %v6113_v12 = vsel %vm147_vm1, %v6051_v14, %v6032_v46  ;;  %v6050_v2 = vsel %vm147_vm1, 0.0, %v6049_v61 }
0x1acb   :  { %v6117_v15 = vperm.slane %v6113_v12, %v10322_v53  ;;  %v6118_v45 = vrot.slane %v6052_v41, 4  ;;  %v5998_v19 = vpop.f32.mrf.mxu3  ;;  %v6054_v39 = vsel %vm147_vm1, 0.0, %v6053_v47 }
0x1acc   :  { %v6056_v38 = vsel %vm147_vm1, 0.0, %v6055_v1  ;;  %v6069_v22 = vrot.slane %v5998_v19, 4  ;;  %v6072_v26 = vsel %vm147_vm1, %v5998_v19, %v6071_v44  ;;  %v6124_v59 = vsel %vm147_vm1, %v6055_v1, %v6044_v17 }
0x1acd   :  { %v6119_v57 = vsel %vm147_vm1, %v6118_v45, %v6050_v2  ;;  %v6129_v63 = vrot.slane %v6056_v38, 4  ;;  %v6080_v21 = vperm.slane %v6072_v26, %v10322_v53  ;;  %v5911_v25 = vpop.f32.mrf.mxu0  ;;  %v6128_v24 = vperm.slane %v6124_v59, %v10322_v53 }
0x1ace   :  { %v6070_v11 = vsel %vm147_vm1, %v6069_v22, %v5940_v4  ;;  %v6058_v56 = vsel %vm147_vm1, %v6057_v18, %v5911_v25  ;;  %v6059_v42 = vrot.slane %v5911_v25, 4  ;;  %v6123_v60 = vperm.slane %v6119_v57, %v10322_v53 }
0x1acf   :  { %v6076_v58 = vperm.slane %v6070_v11, %v10322_v53  ;;  %v6093_v50 = vrot.slane %v6080_v21, 4  ;;  %v6064_v7 = vperm.slane %v6058_v56, %v10322_v53  ;;  %v6130_v51 = vsel %vm147_vm1, %v6129_v63, %v6054_v39 }
0x1ad0   :  { %v6060_v9 = vsel %vm147_vm1, %v5969_v10, %v6059_v42  ;;  %v6134_v27 = vperm.slane %v6130_v51, %v10322_v53  ;;  %v6137_v6 = vrot.slane %v6117_v15, 4  ;;  %v6149_v8 = vrot.slane %v6128_v24, 4 }
0x1ad1   :  { %v6081_v33 = vrot.slane %v6076_v58, 4  ;;  %v6068_v49 = vperm.slane %v6060_v9, %v10322_v53  ;;  %v6083_v55 = vrot.slane %v6064_v7, 4  ;;  %v6135_v29 = vrot.slane %v6123_v60, 4 }
0x1ad2   :  { %v6138_v16 = vsel %vm147_vm1, %v6123_v60, %v6137_v6  ;;  %v6150_v20 = vsel %vm147_vm1, %v6134_v27, %v6149_v8  ;;  %v6147_v35 = vrot.slane %v6134_v27, 4 }
0x1ad3   :  { %v6082_v5 = vsel %vm147_vm1, %v6081_v33, %v6064_v7  ;;  %v6084_v32 = vsel %vm147_vm1, %v6076_v58, %v6083_v55  ;;  %v6094_v23 = vsel %vm147_vm1, %v6093_v50, %v6068_v49  ;;  %v6095_v34 = vrot.slane %v6068_v49, 4 }
0x1ad4   :  { %v6088_v48 = vperm.slane %v6082_v5, %v10327_v62  ;;  %v6092_v40 = vperm.slane %v6084_v32, %v10327_v62  ;;  %v6100_v54 = vperm.slane %v6094_v23, %v10327_v62  ;;  %v6146_v37 = vperm.slane %v6138_v16, %v10327_v62 }
0x1ad5   :  { %v6096_v28 = vsel %vm147_vm1, %v6080_v21, %v6095_v34  ;;  %v6158_v46 = vperm.slane %v6150_v20, %v10327_v62  ;;  %v6136_v30 = vsel %vm147_vm1, %v6135_v29, %v6117_v15  ;;  %v6148_v17 = vsel %vm147_vm1, %v6147_v35, %v6128_v24 }
0x1ad6   :  { %v6104_v4 = vperm.slane %v6096_v28, %v10327_v62  ;;  %v6105_v52 = vrot.slane %v6088_v48, 4  ;;  %v6107_v10 = vrot.slane %v6092_v40, 4  ;;  %v6165_v36 = vrot.slane %v6146_v37, 4  ;;  %v4853_v40 = vld [vmem:[#allocation2 + $0x3c0] sm:$0xff] }
0x1ad7   :  { %v6163_v61 = vrot.slane %v6158_v46, 4  ;;  %v6142_v14 = vperm.slane %v6136_v30, %v10327_v62  ;;  %v6154_v47 = vperm.slane %v6148_v17, %v10327_v62  ;;  %v6109_v1 = vrot.slane %v6100_v54, 4 }
0x1ad8   :  { %v6106_v44 = vsel %vm147_vm1, 0.0, %v6105_v52  ;;  %v6108_v41 = vsel %vm147_vm1, 0.0, %v6107_v10  ;;  %v6111_v12 = vrot.slane %v6104_v4, 4  ;;  %v6167_v18 = vsel %vm147_vm1, %v6107_v10, %v6088_v48  ;;  %v4854_v48 = vld [vmem:[#allocation2 + $0x3c8] sm:$0xff] }
0x1ad9   :  { %v6172_v2 = vrot.slane %v6108_v41, 4  ;;  %v6166_v15 = vsel %vm147_vm1, %v6158_v46, %v6165_v36  ;;  %v6164_v45 = vsel %vm147_vm1, %v6163_v61, %v6146_v37  ;;  %v6171_v39 = vperm.slane %v6167_v18, %v10322_v53  ;;  %6270 = vmatpush.msrb.mxu0 %v4854_v48  ;;  %v4851_v37 = vld [vmem:[#allocation2 + $0x3b0] sm:$0xff] }
0x1ada   :  { %v6112_v19 = vsel %vm147_vm1, 0.0, %v6111_v12  ;;  %v6178_v38 = vsel %vm147_vm1, %v6111_v12, %v6100_v54  ;;  %6239 = vrot.lane.b32.xlu2 %v6166_v15, %s10234_s25  ;;  %6231 = vrot.lane.b32.xlu1 %v6164_v45, %s10233_s24  ;;  %v6159_v22 = vrot.slane %v6154_v47, 4  ;;  %v6161_v59 = vrot.slane %v6142_v14, 4  ;;  %v4852_v54 = vld [vmem:[#allocation2 + $0x3b8] sm:$0xff]  ;;  %v9931_v41 = vld [vmem:[#allocation2 + $0x3d0] ss:$0 sm:$0xff] }
0x1adb   :  { %v6183_v26 = vrot.slane %v6112_v19, 4  ;;  %v6173_v57 = vsel %vm147_vm1, %v6172_v2, %v6106_v44  ;;  %v6182_v63 = vperm.slane %v6178_v38, %v10322_v53  ;;  %v6110_v21 = vsel %vm147_vm1, 0.0, %v6109_v1  ;;  %6271 = vmatpush.msrb.mxu0 %v4853_v40 }
0x1adc   :  { %v6177_v25 = vperm.slane %v6173_v57, %v10322_v53  ;;  %v6191_v24 = vrot.slane %v6171_v39, 4  ;;  %v6160_v11 = vsel %vm147_vm1, %v6159_v22, %v6142_v14  ;;  %v6162_v56 = vsel %vm147_vm1, %v6154_v47, %v6161_v59 }
0x1add   :  { %v6184_v42 = vsel %vm147_vm1, %v6183_v26, %v6110_v21  ;;  %v6203_v60 = vrot.slane %v6182_v63, 4  ;;  %6223 = vrot.lane.b32.xlu0 %v6162_v56, %s10225_s15  ;;  %6272 = vmatpush.msrb.mxu0 %v4852_v54  ;;  %v6336_v56 = vld [vmem:[#allocation2 + $0x410] sm:$0xff] }
0x1ade   :  { %v6188_v58 = vperm.slane %v6184_v42, %v10322_v53  ;;  %v6189_v50 = vrot.slane %v6177_v25, 4  ;;  %v6192_v7 = vsel %vm147_vm1, %v6177_v25, %v6191_v24  ;;  %v6335_v42 = vld [vmem:[#allocation2 + $0x408] sm:$0xff] }
0x1adf   :  { %v6200_v49 = vperm.slane %v6192_v7, %v10327_v62  ;;  %6273 = vmatpush.msrb.mxu0 %v4851_v37 }
0x1ae0   :  { %v6204_v51 = vsel %vm147_vm1, %v6188_v58, %v6203_v60  ;;  %v6190_v9 = vsel %vm147_vm1, %v6189_v50, %v6171_v39  ;;  %v6201_v27 = vrot.slane %v6188_v58, 4 }
0x1ae1   :  { %v6212_v6 = vperm.slane %v6204_v51, %v10327_v62  ;;  %v6196_v8 = vperm.slane %v6190_v9, %v10327_v62  ;;  %v6219_v23 = vrot.slane %v6200_v49, 4  ;;  %v6375_v51 = vld [vmem:[#allocation2 + $0x448] sm:$0xff] }
0x1ae2   :  { %v6202_v33 = vsel %vm147_vm1, %v6201_v27, %v6182_v63  ;;  %6396 = vmatpush.msra.mxu1 %v6375_v51 }
0x1ae3   :  { %v6217_v55 = vrot.slane %v6212_v6, 4  ;;  %v6208_v29 = vperm.slane %v6202_v33, %v10327_v62  ;;  %v6215_v16 = vrot.slane %v6196_v8, 4  ;;  %v6220_v34 = vsel %vm147_vm1, %v6212_v6, %v6219_v23 }
0x1ae5   :  { %v6218_v20 = vsel %vm147_vm1, %v6217_v55, %v6200_v49  ;;  %v6213_v35 = vrot.slane %v6208_v29, 4  ;;  %v6216_v5 = vsel %vm147_vm1, %v6208_v29, %v6215_v16  ;;  %v9932_v16 = vld [vmem:[#allocation2 + $0x3e8] ss:$0 sm:$0xff] }
0x1ae6   :  { %6233 = vrot.lane.b32.xlu1 %v6218_v20, %s10233_s24  ;;  %6225 = vrot.lane.b32.xlu0 %v6216_v5, %s10225_s15 }
0x1ae7   :  { %v6214_v32 = vsel %vm147_vm1, %v6213_v35, %v6196_v8  ;;  %v9933_v35 = vld [vmem:[#allocation2 + $0x3f0] ss:$0 sm:$0xff] }
0x1aee   :  { %6241 = vrot.lane.b32.xlu0 %v6220_v34, %s10234_s25 }
0x1b34   :  { %v6240_v17 = vpop.permute.xlu2 %6239 }
0x1b4c   :  { %v6232_v28 = vpop.permute.xlu1 %6231 }
0x1b4f   :  { %v6224_v46 = vpop.permute.xlu0 %6223 }
0x1b50   :  { %v6245_v30 = vsel %vm869_vm2, %v6160_v11, %v6224_v46  ;;  %v6337_v11 = vld [vmem:[#allocation2 + $0x418] sm:$0xff] }
0x1b51   :  { %v6247_v4 = vsel %vm1010_vm3, %v6245_v30, %v6232_v28 }
0x1b52   :  { %v6249_v52 = vsel %vm1463_vm4, %v6247_v4, %v6240_v17 }
0x1b53   :  { %9698 = vmatmul.msk.f32.vlgmr.msrb.gmra.mxu0 %vm94_vm0, %v6249_v52  ;;  %v6374_v52 = vld [vmem:[#allocation2 + $0x440] sm:$0xff] }
0x1b54   :  { %6397 = vmatpush.msra.mxu1 %v6374_v52 }
0x1b58   :  { %v6226_v10 = vpop.permute.xlu0 %6225  ;;  %v6234_v36 = vpop.permute.xlu1 %6233 }
0x1b59   :  { %v6246_v61 = vsel %vm869_vm2, %v6214_v32, %v6226_v10  ;;  %v6373_v10 = vld [vmem:[#allocation2 + $0x438] sm:$0xff] }
0x1b5a   :  { %v6248_v47 = vsel %vm1010_vm3, %v6246_v61, %v6234_v36  ;;  %v6372_v36 = vld [vmem:[#allocation2 + $0x430] sm:$0xff]  ;;  %6398 = vmatpush.msra.mxu1 %v6373_v10  ;;  %v9934_v61 = vld [vmem:[#allocation2 + $0x428] ss:$0 sm:$0xff] }
0x1b5c   :  { %6399 = vmatpush.msra.mxu1 %v6372_v36 }
0x1b60   :  { %v6242_v14 = vpop.permute.xlu0 %6241 }
0x1b61   :  { %v6250_v44 = vsel %vm1463_vm4, %v6248_v47, %v6242_v14 }
0x1b62   :  { %9699 = vmatmul.msk.f32.gmra.mxu0 %vm94_vm0, %v6250_v44 }
0x1bd0   :  { %v6275_v1 = vpop.f32.mrf.mxu0 }
0x1bd1   :  { %v6276_v12 = vadd.f32 %v9931_v41, %v6275_v1 }
0x1bd3   :  { %v6281_v18 = vadd.f32 %v6276_v12, %v12060_v13 }
0x1bd5   :  { %v6285_v2 = vsel %vm94_vm0, %v6281_v18, 0.0 }
0x1bd6   :  { %6286 = vadd.xlane.f32.xlu2 %v6285_v2 }
0x1bdf   :  { %v6278_v15 = vpop.f32.mrf.mxu0 }
0x1be0   :  { %v6279_v45 = vadd.f32 %v9931_v41, %v6278_v15 }
0x1be2   :  { %v6282_v19 = vadd.f32 %v6279_v45, %v12064_v0  ;;  %v6338_v0 = vld [vmem:[#allocation2 + $0x420] sm:$0xff] }
0x1be3   :  { %6359 = vmatpush.msra.mxu2 %v6338_v0 }
0x1be4   :  { %v6288_v39 = vsel %vm94_vm0, %v6282_v19, 0.0 }
0x1be5   :  { %6289 = vadd.xlane.f32.xlu1 %v6288_v39  ;;  %6360 = vmatpush.msra.mxu2 %v6337_v11 }
0x1be7   :  { %6361 = vmatpush.msra.mxu2 %v6336_v56 }
0x1be9   :  { %6362 = vmatpush.msra.mxu2 %v6335_v42  ;;  %v6464_v42 = vld [vmem:[#allocation2 + $0x470] sm:$0xff] }
0x1bea   :  { %6490 = vmatpush.msra.mxu3 %v6464_v42 }
0x1c49   :  { %v6287_v38 = vpop.xlane.xlu2 %6286 }
0x1c4a   :  { %v6291_v22 = vmul.f32 %v6287_v38, %v10809_v3 }
0x1c4c   :  { %v6293_v26 = vsub.f32 %v6281_v18, %v6291_v22  ;;  %v9935_v18 = vld [vmem:[#allocation2 + $0x450] ss:$0 sm:$0xff] }
0x1c4e   :  { %v6295_v59 = vmul.f32 %v6293_v26, %v6293_v26 }
0x1c50   :  { %v6297_v57 = vsel %vm94_vm0, %v6295_v59, 0.0 }
0x1c51   :  { %6298 = vadd.xlane.f32.xlu0 %v6297_v57 }
0x1c58   :  { %v6290_v63 = vpop.xlane.xlu1 %6289 }
0x1c59   :  { %v6292_v13 = vmul.f32 %v6290_v63, %v10809_v3 }
0x1c5b   :  { %v6294_v21 = vsub.f32 %v6282_v19, %v6292_v13 }
0x1c5d   :  { %v6296_v25 = vmul.f32 %v6294_v21, %v6294_v21 }
0x1c5f   :  { %v6300_v24 = vsel %vm94_vm0, %v6296_v25, 0.0 }
0x1c60   :  { %6301 = vadd.xlane.f32.xlu2 %v6300_v24 }
0x1cc4   :  { %v6299_v60 = vpop.xlane.xlu0 %6298 }
0x1cc5   :  { %v6303_v58 = vmul.f32 %v6299_v60, %v10809_v3  ;;  %v6463_v60 = vld [vmem:[#allocation2 + $0x468] sm:$0xff] }
0x1cc6   :  { %6491 = vmatpush.msra.mxu3 %v6463_v60 }
0x1cc7   :  { %v6305_v50 = vadd.f32 1e-05, %v6303_v58  ;;  %v6462_v58 = vld [vmem:[#allocation2 + $0x460] sm:$0xff] }
0x1cc8   :  { %6492 = vmatpush.msra.mxu3 %v6462_v58 }
0x1cc9   :  { %10103 = vrsqrt.f32 %v6305_v50  ;;  %vm6313_vm5 = vweird.f32 %v6305_v50 }
0x1ccf   :  { %v10104_v7 = vpop.eup %10103 }
0x1cd0   :  { %v6308_v9 = vmul.f32 %v10104_v7, %v6305_v50  ;;  %vm6314_vm15 = vweird.f32 %v10104_v7  ;;  %v6461_v50 = vld [vmem:[#allocation2 + $0x458] sm:$0xff] }
0x1cd1   :  { %vm6315_vm6 = vmor %vm6313_vm5, %vm6314_vm15  ;;  %6493 = vmatpush.msra.mxu3 %v6461_v50 }
0x1cd2   :  { %v6309_v27 = vmul.f32 %v10104_v7, %v6308_v9 }
0x1cd3   :  { %v6302_v6 = vpop.xlane.xlu2 %6301 }
0x1cd4   :  { %v6304_v8 = vmul.f32 %v6302_v6, %v10809_v3  ;;  %v6310_v33 = vmul.f32 0.5, %v6309_v27 }
0x1cd6   :  { %v6306_v49 = vadd.f32 1e-05, %v6304_v8  ;;  %v6311_v55 = vsub.f32 1.5, %v6310_v33 }
0x1cd8   :  { %10105 = vrsqrt.f32 %v6306_v49  ;;  %v6312_v29 = vmul.f32 %v10104_v7, %v6311_v55  ;;  %vm6323_vm8 = vweird.f32 %v6306_v49 }
0x1cda   :  { %v6316_v20 = vsel %vm6315_vm6, %v10104_v7, %v6312_v29 }
0x1cdb   :  { %v6327_v5 = vmul.f32 %v6316_v20, %v6293_v26 }
0x1cdd   :  { %v6330_v23 = vmul.f32 %v9932_v16, %v6327_v5 }
0x1cde   :  { %v10106_v32 = vpop.eup %10105 }
0x1cdf   :  { %v6318_v34 = vmul.f32 %v10106_v32, %v6306_v49  ;;  %v6333_v48 = vadd.f32 %v9933_v35, %v6330_v23  ;;  %vm6324_vm7 = vweird.f32 %v10106_v32 }
0x1ce0   :  { %vm6325_vm9 = vmor %vm6323_vm8, %vm6324_vm7 }
0x1ce1   :  { %v6319_v40 = vmul.f32 %v10106_v32, %v6318_v34  ;;  %9700 = vmatmul.msk.f32.vlgmr.msra.gmra.mxu2 %vm94_vm0, %v6333_v48 }
0x1ce3   :  { %v6320_v54 = vmul.f32 0.5, %v6319_v40 }
0x1ce5   :  { %v6321_v37 = vsub.f32 1.5, %v6320_v54 }
0x1ce7   :  { %v6322_v28 = vmul.f32 %v10106_v32, %v6321_v37 }
0x1ce9   :  { %v6326_v46 = vsel %vm6325_vm9, %v10106_v32, %v6322_v28  ;;  %v9937_v32 = vld [vmem:[#allocation2 + $0x400] ss:$0 sm:$0xff] }
0x1cea   :  { %v6328_v30 = vmul.f32 %v6326_v46, %v6294_v21 }
0x1cec   :  { %v6331_v17 = vmul.f32 %v9932_v16, %v6328_v30 }
0x1cee   :  { %v6334_v4 = vadd.f32 %v9933_v35, %v6331_v17  ;;  %v9936_v35 = vld [vmem:[#allocation2 + $0x3f8] ss:$0 sm:$0xff] }
0x1cf0   :  { %9701 = vmatmul.msk.f32.gmra.mxu2 %vm94_vm0, %v6334_v4 }
0x1d64   :  { %v6364_v14 = vpop.f32.mrf.mxu2 }
0x1d65   :  { %v6365_v47 = vadd.f32 %v9934_v61, %v6364_v14 }
0x1d67   :  { %v6370_v44 = vmax.f32 %v6365_v47, 0.0 }
0x1d69   :  { %9702 = vmatmul.msk.f32.vlgmr.msra.gmra.mxu1 %vm94_vm0, %v6370_v44 }
0x1d73   :  { %v6367_v41 = vpop.f32.mrf.mxu2 }
0x1d74   :  { %v6368_v1 = vadd.f32 %v9934_v61, %v6367_v41  ;;  %v9938_v61 = vld [vmem:[#allocation2 + $0x478] ss:$0 sm:$0xff] }
0x1d76   :  { %v6371_v12 = vmax.f32 %v6368_v1, 0.0 }
0x1d78   :  { %9703 = vmatmul.msk.f32.gmra.mxu1 %vm94_vm0, %v6371_v12 }
0x1de6   :  { %v6401_v2 = vpop.f32.mrf.mxu1 }
0x1de7   :  { %v6402_v15 = vadd.f32 %v9935_v18, %v6401_v2 }
0x1de9   :  { %v6407_v45 = vadd.f32 %v6402_v15, %v6333_v48 }
0x1deb   :  { %v6411_v19 = vsel %vm94_vm0, %v6407_v45, 0.0 }
0x1dec   :  { %6412 = vadd.xlane.f32.xlu1 %v6411_v19 }
0x1df5   :  { %v6404_v39 = vpop.f32.mrf.mxu1 }
0x1df6   :  { %v6405_v38 = vadd.f32 %v9935_v18, %v6404_v39 }
0x1df8   :  { %v6408_v22 = vadd.f32 %v6405_v38, %v6334_v4 }
0x1dfa   :  { %v6414_v26 = vsel %vm94_vm0, %v6408_v22, 0.0 }
0x1dfb   :  { %6415 = vadd.xlane.f32.xlu0 %v6414_v26 }
0x1e5f   :  { %v6413_v59 = vpop.xlane.xlu1 %6412 }
0x1e60   :  { %v6417_v57 = vmul.f32 %v6413_v59, %v10809_v3 }
0x1e62   :  { %v6419_v63 = vsub.f32 %v6407_v45, %v6417_v57 }
0x1e64   :  { %v6421_v13 = vmul.f32 %v6419_v63, %v6419_v63 }
0x1e66   :  { %v6423_v21 = vsel %vm94_vm0, %v6421_v13, 0.0 }
0x1e67   :  { %6424 = vadd.xlane.f32.xlu2 %v6423_v21 }
0x1e6e   :  { %v6416_v25 = vpop.xlane.xlu0 %6415 }
0x1e6f   :  { %v6418_v24 = vmul.f32 %v6416_v25, %v10809_v3 }
0x1e71   :  { %v6420_v0 = vsub.f32 %v6408_v22, %v6418_v24 }
0x1e73   :  { %v6422_v11 = vmul.f32 %v6420_v0, %v6420_v0 }
0x1e75   :  { %v6426_v56 = vsel %vm94_vm0, %v6422_v11, 0.0 }
0x1e76   :  { %6427 = vadd.xlane.f32.xlu1 %v6426_v56 }
0x1eda   :  { %v6425_v7 = vpop.xlane.xlu2 %6424 }
0x1edb   :  { %v6429_v51 = vmul.f32 %v6425_v7, %v10809_v3 }
0x1edd   :  { %v6431_v9 = vadd.f32 1e-05, %v6429_v51 }
0x1edf   :  { %10107 = vrsqrt.f32 %v6431_v9  ;;  %vm6439_vm11 = vweird.f32 %v6431_v9 }
0x1ee5   :  { %v10108_v27 = vpop.eup %10107 }
0x1ee6   :  { %v6434_v6 = vmul.f32 %v10108_v27, %v6431_v9  ;;  %vm6440_vm10 = vweird.f32 %v10108_v27 }
0x1ee7   :  { %vm6441_vm12 = vmor %vm6439_vm11, %vm6440_vm10 }
0x1ee8   :  { %v6435_v8 = vmul.f32 %v10108_v27, %v6434_v6 }
0x1ee9   :  { %v6428_v33 = vpop.xlane.xlu1 %6427 }
0x1eea   :  { %v6430_v49 = vmul.f32 %v6428_v33, %v10809_v3  ;;  %v6436_v55 = vmul.f32 0.5, %v6435_v8 }
0x1eec   :  { %v6432_v29 = vadd.f32 1e-05, %v6430_v49  ;;  %v6437_v16 = vsub.f32 1.5, %v6436_v55 }
0x1eee   :  { %10109 = vrsqrt.f32 %v6432_v29  ;;  %v6438_v20 = vmul.f32 %v10108_v27, %v6437_v16  ;;  %vm6449_vm14 = vweird.f32 %v6432_v29 }
0x1ef0   :  { %v6442_v5 = vsel %vm6441_vm12, %v10108_v27, %v6438_v20 }
0x1ef1   :  { %v6453_v23 = vmul.f32 %v6442_v5, %v6419_v63 }
0x1ef3   :  { %v6456_v48 = vmul.f32 %v9936_v35, %v6453_v23 }
0x1ef4   :  { %v10110_v34 = vpop.eup %10109 }
0x1ef5   :  { %v6444_v40 = vmul.f32 %v10110_v34, %v6432_v29  ;;  %v12520_v54 = vadd.f32 %v9937_v32, %v6456_v48  ;;  %vm6450_vm13 = vweird.f32 %v10110_v34 }
0x1ef6   :  { %vm6451_vm15 = vmor %vm6449_vm14, %vm6450_vm13 }
0x1ef7   :  { %v6445_v37 = vmul.f32 %v10110_v34, %v6444_v40  ;;  %9704 = vmatmul.msk.f32.vlgmr.msra.gmra.mxu3 %vm94_vm0, %v12520_v54 }
0x1ef9   :  { %v6446_v28 = vmul.f32 0.5, %v6445_v37 }
0x1efb   :  { %v6447_v46 = vsub.f32 1.5, %v6446_v28 }
0x1efd   :  { %v6448_v30 = vmul.f32 %v10110_v34, %v6447_v46 }
0x1eff   :  { %v6452_v17 = vsel %vm6451_vm15, %v10110_v34, %v6448_v30 }
0x1f00   :  { %v6454_v4 = vmul.f32 %v6452_v17, %v6420_v0 }
0x1f02   :  { %v6457_v52 = vmul.f32 %v9936_v35, %v6454_v4 }
0x1f04   :  { %v12524_v10 = vadd.f32 %v9937_v32, %v6457_v52 }
0x1f06   :  { %9705 = vmatmul.msk.f32.gmra.mxu3 %vm94_vm0, %v12524_v10 }
0x1f7a   :  { %v6495_v36 = vpop.f32.mrf.mxu3 }
0x1f7b   :  { %v12536_v44 = vadd.f32 %v9938_v61, %v6495_v36 }
0x1f7d   :  { %v6501_v41 = vmul.f32 0.35355338, %v12536_v44 }
0x1f7f   :  { %v6525_v56 = vrot.slane %v6501_v41, 4 }
0x1f89   :  { %v6498_v14 = vpop.f32.mrf.mxu3 }
0x1f8a   :  { %v12528_v47 = vadd.f32 %v9938_v61, %v6498_v14 }
0x1f8c   :  { %6747 = vrot.lane.b32.xlu1 %v12528_v47, %s10228_s21  ;;  %6755 = vrot.lane.b32.xlu2 %v12528_v47, %s10227_s20  ;;  %v12581_v38 = vmul.f32 0.35355338, %v12528_v47 }
0x1f8d   :  { %6751 = vrot.lane.b32.xlu0 %v12528_v47, %s10226_s19 }
0x1f8e   :  { %v6581_v52 = vrot.slane %v12581_v38, 4 }
0x1f94   :  { %6753 = vrot.lane.b32.xlu2 %v12536_v44, %s10227_s20 }
0x1f95   :  { %6749 = vrot.lane.b32.xlu0 %v12536_v44, %s10226_s19 }
0x1f9c   :  { %6511 = vrot.lane.b32.xlu2 %v6501_v41, %s10226_s19 }
0x1f9d   :  { %6745 = vrot.lane.b32.xlu0 %v12536_v44, %s10228_s21 }
0x1fa4   :  { %6759 = vrot.lane.b32.xlu2 %v12528_v47, %s10229_s22 }
0x1fa5   :  { %6757 = vrot.lane.b32.xlu0 %v12536_v44, %s10229_s22 }
0x1fe6   :  { %v12550_v1 = vpop.permute.xlu2 %6755 }
0x1fe7   :  { %6771 = vrot.lane.b32.xlu0 %v12550_v1, %s10229_s22 }
0x1fee   :  { %v12554_v12 = vpop.permute.xlu2 %6753 }
0x1fef   :  { %6769 = vrot.lane.b32.xlu1 %v12554_v12, %s10229_s22 }
0x1ff6   :  { %v6512_v22 = vpop.permute.xlu2 %6511 }
0x1ff7   :  { %v6523_v25 = vrot.slane %v6512_v22, 4  ;;  %v6526_v7 = vsel %vm147_vm1, %v6512_v22, %v6525_v56 }
0x1ff8   :  { %v12605_v29 = vperm.slane %v6526_v7, %v10322_v53 }
0x1ff9   :  { %v6524_v50 = vsel %vm147_vm1, %v6523_v25, %v6501_v41 }
0x1ffa   :  { %v12602_v55 = vperm.slane %v6524_v50, %v10322_v53  ;;  %v6561_v30 = vrot.slane %v12605_v29, 4 }
0x1ffc   :  { %v6549_v46 = vrot.slane %v12602_v55, 4 }
0x1ffe   :  { %v12562_v2 = vpop.permute.xlu1 %6747  ;;  %v6760_v26 = vpop.permute.xlu2 %6759 }
0x1fff   :  { %v12558_v18 = vpop.permute.xlu0 %6751  ;;  %v6839_v24 = vrot.slane %v6760_v26, 4 }
0x2000   :  { %6767 = vrot.lane.b32.xlu1 %v12558_v18, %s10229_s22 }
0x2007   :  { %v12564_v15 = vpop.permute.xlu0 %6749 }
0x2008   :  { %v9871_v45 = vpack.i.bf16 %v12550_v1, %v12564_v15  ;;  %6763 = vrot.lane.b32.xlu1 %v12562_v2, %s10229_s22  ;;  %6765 = vrot.lane.b32.xlu2 %v12564_v15, %s10229_s22 }
0x200f   :  { %v12572_v19 = vpop.permute.xlu0 %6745 }
0x2010   :  { %v9881_v39 = vpack.i.bf16 %v12572_v19, %v12554_v12  ;;  %6517 = vrot.lane.b32.xlu1 %v6501_v41, %s10227_s20  ;;  %6505 = vrot.lane.b32.xlu2 %v6501_v41, %s10228_s21 }
0x2011   :  { %6761 = vrot.lane.b32.xlu0 %v12572_v19, %s10229_s22 }
0x2017   :  { %v6758_v63 = vpop.permute.xlu0 %6757 }
0x2018   :  { %6507 = vrot.lane.b32.xlu2 %v12581_v38, %s10228_s21  ;;  %6519 = vrot.lane.b32.xlu1 %v12581_v38, %s10227_s20  ;;  %v6783_v51 = vrot.slane %v6758_v63, 4 }
0x2019   :  { %6513 = vrot.lane.b32.xlu0 %v12581_v38, %s10226_s19 }
0x2059   :  { %v6772_v42 = vpop.permute.xlu0 %6771 }
0x205a   :  { %v6849_v27 = vrot.slane %v6772_v42, 4 }
0x2061   :  { %v12589_v59 = vpop.permute.xlu1 %6769 }
0x2062   :  { %v6766_v57 = vpop.permute.xlu2 %6765  ;;  %v6793_v36 = vrot.slane %v12589_v59, 4 }
0x2063   :  { %v6781_v60 = vrot.slane %v6766_v57, 4  ;;  %v6784_v8 = vsel %vm147_vm1, %v6766_v57, %v6783_v51 }
0x2064   :  { %v12613_v23 = vperm.slane %v6784_v8, %v10322_v53 }
0x2065   :  { %v6782_v6 = vsel %vm147_vm1, %v6781_v60, %v6758_v63 }
0x2066   :  { %v12610_v32 = vperm.slane %v6782_v6, %v10322_v53  ;;  %v6819_v22 = vrot.slane %v12613_v23, 4 }
0x206a   :  { %v12591_v0 = vpop.permute.xlu2 %6505 }
0x2072   :  { %v6768_v13 = vpop.permute.xlu1 %6767  ;;  %v12620_v17 = vpop.permute.xlu2 %6507 }
0x2073   :  { %v6837_v21 = vrot.slane %v6768_v13, 4  ;;  %v6840_v58 = vsel %vm147_vm1, %v6768_v13, %v6839_v24  ;;  %v6807_v13 = vrot.slane %v12610_v32, 4  ;;  %v6593_v25 = vrot.slane %v12620_v17, 4 }
0x2074   :  { %v6848_v33 = vperm.slane %v6840_v58, %v10322_v53 }
0x2075   :  { %v6838_v11 = vsel %vm147_vm1, %v6837_v21, %v6760_v26  ;;  %v6537_v21 = vrot.slane %v12591_v0, 4 }
0x2076   :  { %v6844_v9 = vperm.slane %v6838_v11, %v10322_v53  ;;  %v6875_v48 = vrot.slane %v6848_v33, 4 }
0x2078   :  { %v6863_v35 = vrot.slane %v6844_v9, 4 }
0x207a   :  { %v6764_v49 = vpop.permute.xlu1 %6763 }
0x207b   :  { %v6850_v16 = vsel %vm147_vm1, %v6849_v27, %v6764_v49  ;;  %v6851_v20 = vrot.slane %v6764_v49, 4 }
0x207c   :  { %v6856_v5 = vperm.slane %v6850_v16, %v10322_v53 }
0x207d   :  { %v6852_v34 = vsel %vm147_vm1, %v6772_v42, %v6851_v20 }
0x207e   :  { %v6860_v40 = vperm.slane %v6852_v34, %v10322_v53  ;;  %v6861_v37 = vrot.slane %v6856_v5, 4  ;;  %v6864_v28 = vsel %vm147_vm1, %v6856_v5, %v6863_v35 }
0x207f   :  { %v6872_v4 = vperm.slane %v6864_v28, %v10327_v62 }
0x2080   :  { %v6862_v61 = vsel %vm147_vm1, %v6861_v37, %v6844_v9  ;;  %v6873_v14 = vrot.slane %v6860_v40, 4  ;;  %v6876_v41 = vsel %vm147_vm1, %v6860_v40, %v6875_v48 }
0x2081   :  { %v6868_v26 = vperm.slane %v6862_v61, %v10327_v62  ;;  %v6884_v57 = vperm.slane %v6876_v41, %v10327_v62  ;;  %v6887_v63 = vrot.slane %v6872_v4, 4 }
0x2082   :  { %v6874_v24 = vsel %vm147_vm1, %v6873_v14, %v6848_v33  ;;  %v6518_v11 = vpop.permute.xlu1 %6517 }
0x2083   :  { %v6880_v56 = vperm.slane %v6874_v24, %v10327_v62  ;;  %v6885_v42 = vrot.slane %v6868_v26, 4  ;;  %v6888_v60 = vsel %vm147_vm1, 0.0, %v6887_v63  ;;  %v6891_v58 = vrot.slane %v6884_v57, 4  ;;  %v6762_v49 = vpop.permute.xlu0 %6761 }
0x2084   :  { %v6947_v50 = vsel %vm147_vm1, %v6887_v63, %v6868_v26  ;;  %v6952_v7 = vrot.slane %v6888_v60, 4  ;;  %v6535_v51 = vrot.slane %v6518_v11, 4  ;;  %v6538_v9 = vsel %vm147_vm1, %v6518_v11, %v6537_v21 }
0x2085   :  { %v6886_v27 = vsel %vm147_vm1, 0.0, %v6885_v42  ;;  %v6889_v6 = vrot.slane %v6880_v56, 4  ;;  %v6892_v8 = vsel %vm147_vm1, 0.0, %v6891_v58  ;;  %v12641_v33 = vperm.slane %v6947_v50, %v10322_v53 }
0x2086   :  { %v6953_v16 = vsel %vm147_vm1, %v6952_v7, %v6886_v27  ;;  %v6958_v20 = vsel %vm147_vm1, %v6891_v58, %v6880_v56  ;;  %v6963_v35 = vrot.slane %v6892_v8, 4  ;;  %v6536_v5 = vsel %vm147_vm1, %v6535_v51, %v12591_v0 }
0x2087   :  { %v6890_v34 = vsel %vm147_vm1, 0.0, %v6889_v6  ;;  %v12649_v48 = vperm.slane %v6953_v16, %v10322_v53  ;;  %v6971_v40 = vrot.slane %v12641_v33, 4  ;;  %v6542_v37 = vperm.slane %v6536_v5, %v10322_v53 }
0x2088   :  { %v6546_v28 = vperm.slane %v6538_v9, %v10322_v53  ;;  %v6794_v4 = vsel %vm147_vm1, %v6793_v36, %v6762_v49  ;;  %v6795_v61 = vrot.slane %v6762_v49, 4  ;;  %v12656_v14 = vperm.slane %v6958_v20, %v10322_v53 }
0x2089   :  { %v6547_v41 = vrot.slane %v6542_v37, 4  ;;  %v6550_v0 = vsel %vm147_vm1, %v6542_v37, %v6549_v46  ;;  %v6800_v26 = vperm.slane %v6794_v4, %v10322_v53  ;;  %v6964_v57 = vsel %vm147_vm1, %v6963_v35, %v6890_v34 }
0x208a   :  { %v6558_v63 = vperm.slane %v6550_v0, %v10327_v62  ;;  %v6559_v21 = vrot.slane %v6546_v28, 4  ;;  %v6562_v24 = vsel %vm147_vm1, %v6546_v28, %v6561_v30  ;;  %v6796_v11 = vsel %vm147_vm1, %v12589_v59, %v6795_v61  ;;  %v6520_v61 = vpop.permute.xlu1 %6519 }
0x208b   :  { %v6548_v36 = vsel %vm147_vm1, %v6547_v41, %v12602_v55  ;;  %v6570_v56 = vperm.slane %v6562_v24, %v10327_v62  ;;  %v6804_v42 = vperm.slane %v6796_v11, %v10322_v53  ;;  %v6805_v46 = vrot.slane %v6800_v26, 4 }
0x208c   :  { %v6554_v60 = vperm.slane %v6548_v36, %v10327_v62  ;;  %v6560_v58 = vsel %vm147_vm1, %v6559_v21, %v12605_v29  ;;  %v6573_v50 = vrot.slane %v6558_v63, 4  ;;  %v6808_v7 = vsel %vm147_vm1, %v6800_v26, %v6807_v13 }
0x208d   :  { %v6566_v30 = vperm.slane %v6560_v58, %v10327_v62  ;;  %v6577_v51 = vrot.slane %v6570_v56, 4  ;;  %v6806_v59 = vsel %vm147_vm1, %v6805_v46, %v12610_v32  ;;  %v6816_v55 = vperm.slane %v6808_v7, %v10327_v62  ;;  %v6514_v46 = vpop.permute.xlu0 %6513 }
0x208e   :  { %v6571_v9 = vrot.slane %v6554_v60, 4  ;;  %v6574_v27 = vsel %vm147_vm1, 0.0, %v6573_v50  ;;  %v6635_v6 = vsel %vm147_vm1, %v6573_v50, %v6554_v60  ;;  %v6812_v8 = vperm.slane %v6806_v59, %v10327_v62 }
0x208f   :  { %v6575_v49 = vrot.slane %v6566_v30, 4  ;;  %v6578_v29 = vsel %vm147_vm1, 0.0, %v6577_v51  ;;  %v12682_v13 = vperm.slane %v6635_v6, %v10322_v53  ;;  %v6640_v16 = vrot.slane %v6574_v27, 4 }
0x2090   :  { %v6572_v20 = vsel %vm147_vm1, 0.0, %v6571_v9  ;;  %v6646_v32 = vsel %vm147_vm1, %v6577_v51, %v6566_v30  ;;  %v6651_v35 = vrot.slane %v6578_v29, 4  ;;  %v6817_v5 = vrot.slane %v6804_v42, 4 }
0x2091   :  { %v6576_v34 = vsel %vm147_vm1, 0.0, %v6575_v49  ;;  %v12688_v37 = vsel %vm147_vm1, %v6640_v16, %v6572_v20  ;;  %v12691_v28 = vperm.slane %v6646_v32, %v10322_v53  ;;  %v6820_v4 = vsel %vm147_vm1, %v6804_v42, %v6819_v22 }
0x2092   :  { %v6652_v41 = vsel %vm147_vm1, %v6651_v35, %v6576_v34  ;;  %v6818_v0 = vsel %vm147_vm1, %v6817_v5, %v12613_v23  ;;  %v6828_v26 = vperm.slane %v6820_v4, %v10327_v62  ;;  %v6829_v63 = vrot.slane %v6812_v8, 4 }
0x2093   :  { %v12701_v21 = vperm.slane %v6652_v41, %v10322_v53  ;;  %v6671_v24 = vrot.slane %v12691_v28, 4  ;;  %v12705_v11 = vperm.slane %v6818_v0, %v10327_v62  ;;  %v6831_v36 = vrot.slane %v6816_v55, 4 }
0x2094   :  { %v6830_v22 = vsel %vm147_vm1, 0.0, %v6829_v63  ;;  %v12708_v56 = vrot.slane %v6828_v26, 4  ;;  %v6591_v42 = vrot.slane %v6520_v61, 4  ;;  %v6594_v23 = vsel %vm147_vm1, %v6520_v61, %v6593_v25 }
0x2095   :  { %v6832_v60 = vsel %vm147_vm1, 0.0, %v6831_v36  ;;  %v6833_v58 = vrot.slane %v12705_v11, 4  ;;  %v6893_v50 = vsel %vm147_vm1, %v6831_v36, %v6812_v8  ;;  %v6602_v7 = vperm.slane %v6594_v23, %v10322_v53 }
0x2096   :  { %v12719_v30 = vsel %vm147_vm1, 0.0, %v12708_v56  ;;  %v12722_v51 = vperm.slane %v6893_v50, %v10322_v53  ;;  %v6898_v59 = vrot.slane %v6832_v60, 4  ;;  %v6592_v25 = vsel %vm147_vm1, %v6591_v42, %v12620_v17 }
0x2097   :  { %v6909_v55 = vrot.slane %v12719_v30, 4  ;;  %v6598_v9 = vperm.slane %v6592_v25, %v10322_v53  ;;  %v6615_v27 = vrot.slane %v6602_v7, 4  ;;  %v6579_v6 = vrot.slane %v6514_v46, 4 }
0x2098   :  { %v6899_v8 = vsel %vm147_vm1, %v6898_v59, %v6830_v22  ;;  %v6582_v49 = vsel %vm147_vm1, %v6514_v46, %v6581_v52  ;;  %v6968_v29 = vperm.slane %v6964_v57, %v10322_v53  ;;  %v6972_v16 = vsel %vm147_vm1, %v12649_v48, %v6971_v40 }
0x2099   :  { %v6603_v17 = vrot.slane %v6598_v9, 4  ;;  %v6580_v20 = vsel %vm147_vm1, %v6579_v6, %v12581_v38  ;;  %v6590_v32 = vperm.slane %v6582_v49, %v10322_v53  ;;  %v6980_v35 = vperm.slane %v6972_v16, %v10327_v62 }
0x209a   :  { %v6586_v5 = vperm.slane %v6580_v20, %v10322_v53  ;;  %v6983_v34 = vrot.slane %v12656_v14, 4  ;;  %v6969_v52 = vrot.slane %v12649_v48, 4  ;;  %v6981_v57 = vrot.slane %v6968_v29, 4 }
0x209b   :  { %v6616_v4 = vsel %vm147_vm1, %v6615_v27, %v6590_v32  ;;  %v6617_v61 = vrot.slane %v6590_v32, 4  ;;  %v6999_v41 = vrot.slane %v6980_v35, 4  ;;  %v6834_v40 = vsel %vm147_vm1, 0.0, %v6833_v58 }
0x209c   :  { %v6604_v0 = vsel %vm147_vm1, %v6603_v17, %v6586_v5  ;;  %v6605_v38 = vrot.slane %v6586_v5, 4  ;;  %v6622_v26 = vperm.slane %v6616_v4, %v10327_v62  ;;  %v6984_v63 = vsel %vm147_vm1, %v6968_v29, %v6983_v34 }
0x209d   :  { %v6610_v36 = vperm.slane %v6604_v0, %v10327_v62  ;;  %v6618_v22 = vsel %vm147_vm1, %v6602_v7, %v6617_v61  ;;  %v6992_v48 = vperm.slane %v6984_v63, %v10327_v62  ;;  %v6970_v42 = vsel %vm147_vm1, %v6969_v52, %v12641_v33 }
0x209e   :  { %v6606_v23 = vsel %vm147_vm1, %v6598_v9, %v6605_v38  ;;  %v6626_v46 = vperm.slane %v6618_v22, %v10327_v62  ;;  %v6631_v60 = vrot.slane %v6622_v26, 4  ;;  %v6976_v58 = vperm.slane %v6970_v42, %v10327_v62 }
0x209f   :  { %v6614_v50 = vperm.slane %v6606_v23, %v10327_v62  ;;  %v6627_v30 = vrot.slane %v6610_v36, 4  ;;  %v7000_v59 = vsel %vm147_vm1, %v6992_v48, %v6999_v41  ;;  %v6982_v7 = vsel %vm147_vm1, %v6981_v57, %v12656_v14 }
0x20a0   :  { %v12762_v25 = vsel %vm147_vm1, 0.0, %v6631_v60  ;;  %v6633_v27 = vrot.slane %v6626_v46, 4  ;;  %9718 = vmatpush.xpose.msk.msrb.mxu3 %vm869_vm2, %v7000_v59  ;;  %v6988_v33 = vperm.slane %v6982_v7, %v10327_v62  ;;  %v6995_v9 = vrot.slane %v6976_v58, 4 }
0x20a1   :  { %v12767_v6 = vsel %vm147_vm1, 0.0, %v6627_v30  ;;  %v6629_v49 = vrot.slane %v6614_v50, 4  ;;  %v6997_v29 = vrot.slane %v6992_v48, 4  ;;  %v6903_v16 = vperm.slane %v6899_v8, %v10322_v53 }
0x20a2   :  { %v6634_v17 = vsel %vm147_vm1, 0.0, %v6633_v27  ;;  %v6700_v14 = vsel %vm147_vm1, %v6633_v27, %v6622_v26  ;;  %v6996_v20 = vsel %vm147_vm1, %v6988_v33, %v6995_v9  ;;  %v6993_v32 = vrot.slane %v6988_v33, 4 }
0x20a3   :  { %v6630_v5 = vsel %vm147_vm1, 0.0, %v6629_v49  ;;  %v6689_v34 = vsel %vm147_vm1, %v6629_v49, %v6610_v36  ;;  %v12776_v52 = vperm.slane %v6700_v14, %v10322_v53  ;;  %v6705_v57 = vrot.slane %v6634_v17, 4  ;;  %9710 = vmatpush.xpose.msk.msrb.mxu2 %vm869_vm2, %v6996_v20 }
0x20a4   :  { %v6694_v4 = vrot.slane %v6630_v5, 4  ;;  %v6998_v8 = vsel %vm147_vm1, %v6997_v29, %v6980_v35  ;;  %v6994_v61 = vsel %vm147_vm1, %v6993_v32, %v6976_v58  ;;  %v6904_v41 = vsel %vm147_vm1, %v12708_v56, %v12705_v11 }
0x20a5   :  { %9714 = vmatpush.xpose.msk.msrb.mxu1 %vm869_vm2, %v6998_v8  ;;  %9706 = vmatpush.xpose.msk.msra.mxu0 %vm869_vm2, %v6994_v61  ;;  %v6908_v0 = vperm.slane %v6904_v41, %v10322_v53  ;;  %v6910_v38 = vsel %vm147_vm1, %v6909_v55, %v6834_v40  ;;  %v6917_v26 = vrot.slane %v12722_v51, 4  ;;  %v6915_v63 = vrot.slane %v6903_v16, 4 }
0x20a6   :  { %v6914_v36 = vperm.slane %v6910_v38, %v10322_v53  ;;  %v6645_v35 = vperm.slane %v12688_v37, %v10322_v53  ;;  %v6659_v22 = vrot.slane %v12682_v13, 4  ;;  %v6672_v11 = vsel %vm147_vm1, %v12701_v21, %v6671_v24 }
0x20a7   :  { %v6918_v56 = vsel %vm147_vm1, %v6903_v16, %v6917_v26  ;;  %v6929_v48 = vrot.slane %v6908_v0, 4  ;;  %v6916_v55 = vsel %vm147_vm1, %v6915_v63, %v12722_v51  ;;  %v6680_v40 = vperm.slane %v6672_v11, %v10327_v62 }
0x20a8   :  { %v6926_v42 = vperm.slane %v6918_v56, %v10327_v62  ;;  %v6922_v23 = vperm.slane %v6916_v55, %v10327_v62  ;;  %v6927_v37 = vrot.slane %v6914_v36, 4  ;;  %v6660_v46 = vsel %vm147_vm1, %v6645_v35, %v6659_v22 }
0x20a9   :  { %v6930_v60 = vsel %vm147_vm1, %v6914_v36, %v6929_v48  ;;  %v6668_v58 = vperm.slane %v6660_v46, %v10327_v62  ;;  %v6657_v24 = vrot.slane %v6645_v35, 4  ;;  %v6669_v50 = vrot.slane %v12701_v21, 4 }
0x20aa   :  { %v6938_v30 = vperm.slane %v6930_v60, %v10327_v62  ;;  %v6945_v59 = vrot.slane %v6926_v42, 4  ;;  %v6928_v51 = vsel %vm147_vm1, %v6927_v37, %v6908_v0  ;;  %v6941_v7 = vrot.slane %v6922_v23, 4 }
0x20ab   :  { %v6934_v27 = vperm.slane %v6928_v51, %v10327_v62  ;;  %v6687_v33 = vrot.slane %v6668_v58, 4  ;;  %v6658_v9 = vsel %vm147_vm1, %v6657_v24, %v12682_v13  ;;  %v6670_v49 = vsel %vm147_vm1, %v6669_v50, %v12691_v28  ;;  %v10193_v51 = vld [vmem:[#allocation2 + $0x10] sm:$0xff] }
0x20ac   :  { %v6946_v29 = vsel %vm147_vm1, %v6938_v30, %v6945_v59  ;;  %v6943_v16 = vrot.slane %v6938_v30, 4  ;;  %v6664_v21 = vperm.slane %v6658_v9, %v10327_v62  ;;  %v6676_v17 = vperm.slane %v6670_v49, %v10327_v62 }
0x20ad   :  { %9719 = vmatpush.xpose.msk.msrb.mxu3 %vm869_vm2, %v6946_v29  ;;  %v6942_v14 = vsel %vm147_vm1, %v6934_v27, %v6941_v7  ;;  %v6688_v20 = vsel %vm147_vm1, %v6680_v40, %v6687_v33  ;;  %v6939_v32 = vrot.slane %v6934_v27, 4  ;;  %v6685_v5 = vrot.slane %v6680_v40, 4 }
0x20ae   :  { %9711 = vmatpush.xpose.msk.msrb.mxu2 %vm869_vm2, %v6942_v14  ;;  %v6944_v13 = vsel %vm147_vm1, %v6943_v16, %v6926_v42  ;;  %v6683_v28 = vrot.slane %v6664_v21, 4  ;;  %v6681_v8 = vrot.slane %v6676_v17, 4  ;;  %v6693_v61 = vperm.slane %v6689_v34, %v10322_v53 }
0x20af   :  { %9715 = vmatpush.xpose.msk.msrb.mxu1 %vm869_vm2, %v6944_v13  ;;  %v6940_v41 = vsel %vm147_vm1, %v6939_v32, %v6922_v23  ;;  %v6695_v0 = vsel %vm147_vm1, %v6694_v4, %v12767_v6  ;;  %v6706_v38 = vsel %vm147_vm1, %v6705_v57, %v12762_v25  ;;  %v6686_v34 = vsel %vm147_vm1, %v6685_v5, %v6668_v58  ;;  %v10194_v32 = vld [vmem:[#allocation2 + $0x18] sm:$0xff] }
0x20b0   :  { %9720 = vmatmul.msk.f32.vlgmr.msrb.gmra.mxu3 %vm869_vm2, %v6688_v20  ;;  %9707 = vmatpush.xpose.msk.msra.mxu0 %vm869_vm2, %v6940_v41  ;;  %v6684_v26 = vsel %vm147_vm1, %v6676_v17, %v6683_v28  ;;  %v6699_v63 = vperm.slane %v6695_v0, %v10322_v53  ;;  %v6713_v36 = vrot.slane %v6693_v61, 4  ;;  %v6710_v35 = vperm.slane %v6706_v38, %v10322_v53 }
0x20b1   :  { %9712 = vmatmul.msk.f32.vlgmr.msrb.gmra.mxu2 %vm869_vm2, %v6684_v26  ;;  %v6725_v6 = vrot.slane %v12776_v52, 4  ;;  %v6682_v25 = vsel %vm147_vm1, %v6681_v8, %v6664_v21 }
0x20b2   :  { %9716 = vmatmul.msk.f32.vlgmr.msrb.gmra.mxu1 %vm869_vm2, %v6686_v34  ;;  %v6714_v57 = vsel %vm147_vm1, %v6699_v63, %v6713_v36  ;;  %v6711_v4 = vrot.slane %v6699_v63, 4  ;;  %v6723_v56 = vrot.slane %v6710_v35, 4 }
0x20b3   :  { %9708 = vmatmul.msk.f32.vlgmr.msra.gmra.mxu0 %vm869_vm2, %v6682_v25  ;;  %v6722_v22 = vperm.slane %v6714_v57, %v10327_v62  ;;  %v6726_v11 = vsel %vm147_vm1, %v6710_v35, %v6725_v6  ;;  %v9866_v35 = vpack.i.bf16 %v12528_v47, %v12558_v18  ;;  %v9876_v6 = vpack.i.bf16 %v12562_v2, %v12536_v44 }
0x20b4   :  { %v6734_v48 = vperm.slane %v6726_v11, %v10327_v62  ;;  %v6712_v55 = vsel %vm147_vm1, %v6711_v4, %v6693_v61  ;;  %v6724_v23 = vsel %vm147_vm1, %v6723_v56, %v12776_v52 }
0x20b5   :  { %v6741_v40 = vrot.slane %v6722_v22, 4  ;;  %v6718_v42 = vperm.slane %v6712_v55, %v10327_v62  ;;  %v6730_v46 = vperm.slane %v6724_v23, %v10327_v62 }
0x20b6   :  { %v6739_v37 = vrot.slane %v6734_v48, 4 }
0x20b7   :  { %v6742_v60 = vsel %vm147_vm1, %v6734_v48, %v6741_v40  ;;  %v6737_v58 = vrot.slane %v6718_v42, 4  ;;  %v6735_v24 = vrot.slane %v6730_v46, 4 }
0x20b8   :  { %9721 = vmatmul.msk.f32.gmra.mxu3 %vm869_vm2, %v6742_v60  ;;  %v6740_v50 = vsel %vm147_vm1, %v6739_v37, %v6722_v22 }
0x20b9   :  { %v6738_v30 = vsel %vm147_vm1, %v6730_v46, %v6737_v58  ;;  %v6736_v59 = vsel %vm147_vm1, %v6735_v24, %v6718_v42 }
0x20ba   :  { %9717 = vmatmul.msk.f32.gmra.mxu1 %vm869_vm2, %v6740_v50  ;;  %9713 = vmatmul.msk.f32.gmra.mxu2 %vm869_vm2, %v6738_v30 }
0x20bb   :  { %9709 = vmatmul.msk.f32.gmra.mxu0 %vm869_vm2, %v6736_v59 }
0x212f   :  { %v7344_v52 = vpop.f32.mrf.mxu1 }
0x2130   :  { %v7345_v7 = vadd.f32 %v10193_v51, %v7344_v52  ;;  %v7274_v27 = vpop.f32.mrf.mxu0 }
0x2131   :  { %v7275_v33 = vadd.f32 %v10193_v51, %v7274_v27 }
0x2132   :  { %v7397_v9 = vsel %vm1010_vm3, %v7345_v7, -inf }
0x2133   :  { %v7379_v49 = vpop.f32.mrf.mxu3  ;;  %7398 = vmax.xlane.f32.xlu2 %v7397_v9  ;;  %v7385_v29 = vsel %vm1010_vm3, %v7275_v33, -inf }
0x2134   :  { %v7309_v16 = vpop.f32.mrf.mxu2  ;;  %7386 = vmax.xlane.f32.xlu0 %v7385_v29  ;;  %v7380_v17 = vadd.f32 %v10193_v51, %v7379_v49 }
0x2135   :  { %v7310_v21 = vadd.f32 %v10193_v51, %v7309_v16 }
0x2136   :  { %v7403_v13 = vsel %vm1010_vm3, %v7380_v17, -inf }
0x2137   :  { %v7391_v14 = vsel %vm1010_vm3, %v7310_v21, -inf  ;;  %v7347_v8 = vpop.f32.mrf.mxu1 }
0x2138   :  { %7392 = vmax.xlane.f32.xlu1 %v7391_v14  ;;  %v7277_v20 = vpop.f32.mrf.mxu0  ;;  %v7348_v38 = vadd.f32 %v10194_v32, %v7347_v8 }
0x2139   :  { %v7278_v5 = vadd.f32 %v10194_v32, %v7277_v20 }
0x213a   :  { %v7400_v36 = vsel %vm1010_vm3, %v7348_v38, -inf }
0x213b   :  { %v7388_v28 = vsel %vm1010_vm3, %v7278_v5, -inf  ;;  %v7382_v61 = vpop.f32.mrf.mxu3 }
0x213c   :  { %7404 = vmax.xlane.f32.xlu0 %v7403_v13  ;;  %7389 = vmax.xlane.f32.xlu2 %v7388_v28  ;;  %v7383_v26 = vadd.f32 %v10194_v32, %v7382_v61 }
0x213d   :  { %v7312_v41 = vpop.f32.mrf.mxu2 }
0x213e   :  { %v7313_v0 = vadd.f32 %v10194_v32, %v7312_v41  ;;  %v7406_v34 = vsel %vm1010_vm3, %v7383_v26, -inf }
0x2140   :  { %v7394_v63 = vsel %vm1010_vm3, %v7313_v0, -inf }
0x2141   :  { %7395 = vmax.xlane.f32.xlu1 %v7394_v63 }
0x2144   :  { %7401 = vmax.xlane.f32.xlu0 %v7400_v36  ;;  %7407 = vmax.xlane.f32.xlu2 %v7406_v34 }
0x2158   :  { %9872 = vrot.lane.b32.xlu0 %v9871_v45, %s10230_s23 }
0x215a   :  { %9867 = vrot.lane.b32.xlu1 %v9866_v35, %s10230_s23 }
0x215c   :  { %9877 = vrot.lane.b32.xlu2 %v9876_v6, %s10230_s23 }
0x2160   :  { %9882 = vrot.lane.b32.xlu0 %v9881_v39, %s10230_s23 }
0x21a6   :  { %v7399_v25 = vpop.xlane.xlu2 %7398 }
0x21a7   :  { %v7413_v57 = vsub.f32 %v7345_v7, %v7399_v25  ;;  %v7387_v47 = vpop.xlane.xlu0 %7386 }
0x21a8   :  { %v7409_v11 = vsub.f32 %v7275_v33, %v7387_v47 }
0x21a9   :  { %v7425_v18 = vmul.f32 1.442695, %v7413_v57 }
0x21aa   :  { %v7417_v55 = vmul.f32 1.442695, %v7409_v11 }
0x21ab   :  { %10111 = vpow2.f32 %v7425_v18  ;;  %v7393_v4 = vpop.xlane.xlu1 %7392 }
0x21ac   :  { %v7411_v1 = vsub.f32 %v7310_v21, %v7393_v4 }
0x21ae   :  { %v7421_v15 = vmul.f32 1.442695, %v7411_v1 }
0x21af   :  { %v7405_v45 = vpop.xlane.xlu0 %7404  ;;  %v7390_v22 = vpop.xlane.xlu2 %7389 }
0x21b0   :  { %10113 = vpow2.f32 %v7421_v15  ;;  %v7415_v44 = vsub.f32 %v7380_v17, %v7405_v45  ;;  %v7410_v50 = vsub.f32 %v7278_v5, %v7390_v22 }
0x21b1   :  { %v12879_v2 = vpop.eup %10111 }
0x21b2   :  { %v7429_v56 = vmul.f32 1.442695, %v7415_v44  ;;  %v7445_v12 = vsel %vm1010_vm3, %v12879_v2, 0.0  ;;  %v7419_v51 = vmul.f32 1.442695, %v7410_v50 }
0x21b3   :  { %7446 = vadd.xlane.f32.xlu0 %v7445_v12 }
0x21b4   :  { %10115 = vpow2.f32 %v7429_v56  ;;  %v7396_v19 = vpop.xlane.xlu1 %7395 }
0x21b5   :  { %v7412_v39 = vsub.f32 %v7313_v0, %v7396_v19 }
0x21b6   :  { %v12883_v48 = vpop.eup %10113 }
0x21b7   :  { %v7423_v40 = vmul.f32 1.442695, %v7412_v39  ;;  %v7402_v42 = vpop.xlane.xlu0 %7401  ;;  %v7408_v23 = vpop.xlane.xlu2 %7407  ;;  %v7439_v37 = vsel %vm1010_vm3, %v12883_v48, 0.0 }
0x21b8   :  { %v7416_v46 = vsub.f32 %v7383_v26, %v7408_v23  ;;  %7440 = vadd.xlane.f32.xlu2 %v7439_v37  ;;  %v7414_v58 = vsub.f32 %v7348_v38, %v7402_v42 }
0x21b9   :  { %10117 = vpow2.f32 %v7423_v40 }
0x21ba   :  { %v12887_v60 = vpop.eup %10115  ;;  %10119 = vpow2.f32 %v7417_v55  ;;  %v7431_v24 = vmul.f32 1.442695, %v7416_v46  ;;  %v7427_v59 = vmul.f32 1.442695, %v7414_v58 }
0x21bb   :  { %v7451_v30 = vsel %vm1010_vm3, %v12887_v60, 0.0 }
0x21bc   :  { %7452 = vadd.xlane.f32.xlu1 %v7451_v30  ;;  %10121 = vpow2.f32 %v7431_v24 }
0x21bd   :  { %10123 = vpow2.f32 %v7427_v59 }
0x21be   :  { %10125 = vpow2.f32 %v7419_v51 }
0x21bf   :  { %v12891_v52 = vpop.eup %10117  ;;  %v9878_v49 = vpop.permute.xlu2 %9877 }
0x21c0   :  { %v12893_v7 = vpop.eup %10119  ;;  %v7442_v27 = vsel %vm1010_vm3, %v12891_v52, 0.0  ;;  %v9880_v16 = vunpack.i.h.bf16 %v9878_v49  ;;  %v9879_v17 = vunpack.i.l.bf16 %v9878_v49 }
0x21c1   :  { %7443 = vadd.xlane.f32.xlu0 %v7442_v27  ;;  %v7433_v9 = vsel %vm1010_vm3, %v12893_v7, 0.0 }
0x21c2   :  { %v12897_v33 = vpop.eup %10121  ;;  %v7095_v32 = vrot.slane %v9880_v16, 4  ;;  %v7027_v8 = vrot.slane %v9879_v17, 4 }
0x21c3   :  { %v7454_v29 = vsel %vm1010_vm3, %v12897_v33, 0.0  ;;  %v12903_v21 = vpop.eup %10123 }
0x21c4   :  { %7434 = vadd.xlane.f32.xlu1 %v7433_v9  ;;  %7455 = vadd.xlane.f32.xlu2 %v7454_v29  ;;  %v12905_v14 = vpop.eup %10125  ;;  %v7448_v28 = vsel %vm1010_vm3, %v12903_v21, 0.0 }
0x21c5   :  { %v7436_v41 = vsel %vm1010_vm3, %v12905_v14, 0.0 }
0x21ca   :  { %v9873_v20 = vpop.permute.xlu0 %9872 }
0x21cb   :  { %v9875_v5 = vunpack.i.h.bf16 %v9873_v20  ;;  %v9874_v13 = vunpack.i.l.bf16 %v9873_v20 }
0x21cc   :  { %7449 = vadd.xlane.f32.xlu1 %v7448_v28  ;;  %v9868_v61 = vpop.permute.xlu1 %9867  ;;  %7437 = vadd.xlane.f32.xlu2 %v7436_v41 }
0x21cd   :  { %v7093_v0 = vrot.slane %v9875_v5, 4  ;;  %v7025_v38 = vrot.slane %v9874_v13, 4  ;;  %v7096_v26 = vsel %vm147_vm1, %v9875_v5, %v7095_v32  ;;  %v7028_v63 = vsel %vm147_vm1, %v9874_v13, %v7027_v8 }
0x21ce   :  { %v9870_v36 = vunpack.i.h.bf16 %v9868_v61  ;;  %v9869_v34 = vunpack.i.l.bf16 %v9868_v61  ;;  %v7104_v57 = vperm.slane %v7096_v26, %v10322_v53  ;;  %v7036_v18 = vperm.slane %v7028_v63, %v10322_v53 }
0x21cf   :  { %v7026_v35 = vsel %vm147_vm1, %v7025_v38, %v9879_v17  ;;  %v7094_v6 = vsel %vm147_vm1, %v7093_v0, %v9880_v16 }
0x21d0   :  { %v7100_v25 = vperm.slane %v7094_v6, %v10322_v53  ;;  %v7032_v47 = vperm.slane %v7026_v35, %v10322_v53  ;;  %v7083_v4 = vrot.slane %v9870_v36, 4  ;;  %v7081_v1 = vrot.slane %v9869_v34, 4 }
0x21d1   :  { %v7117_v12 = vrot.slane %v7104_v57, 4  ;;  %v7063_v40 = vrot.slane %v7036_v18, 4 }
0x21d2   :  { %v7105_v15 = vrot.slane %v7100_v25, 4  ;;  %v9883_v45 = vpop.permute.xlu0 %9882  ;;  %v7082_v22 = vsel %vm147_vm1, %v7081_v1, %v9870_v36  ;;  %v7084_v44 = vsel %vm147_vm1, %v9869_v34, %v7083_v4  ;;  %v7051_v55 = vrot.slane %v7032_v47, 4 }
0x21d3   :  { %v9885_v11 = vunpack.i.h.bf16 %v9883_v45  ;;  %v9884_v56 = vunpack.i.l.bf16 %v9883_v45  ;;  %v7088_v19 = vperm.slane %v7082_v22, %v10322_v53  ;;  %v7092_v39 = vperm.slane %v7084_v44, %v10322_v53 }
0x21d5   :  { %v7039_v42 = vrot.slane %v9885_v11, 4  ;;  %v7037_v23 = vrot.slane %v9884_v56, 4  ;;  %v7106_v37 = vsel %vm147_vm1, %v7105_v15, %v7088_v19  ;;  %v7107_v46 = vrot.slane %v7088_v19, 4 }
0x21d6   :  { %v7118_v58 = vsel %vm147_vm1, %v7117_v12, %v7092_v39  ;;  %v7119_v24 = vrot.slane %v7092_v39, 4  ;;  %v7112_v50 = vperm.slane %v7106_v37, %v10327_v62 }
0x21d7   :  { %v7124_v30 = vperm.slane %v7118_v58, %v10327_v62  ;;  %v7038_v59 = vsel %vm147_vm1, %v7037_v23, %v9885_v11  ;;  %v7040_v51 = vsel %vm147_vm1, %v9884_v56, %v7039_v42  ;;  %v7108_v27 = vsel %vm147_vm1, %v7100_v25, %v7107_v46 }
0x21d8   :  { %v7120_v9 = vsel %vm147_vm1, %v7104_v57, %v7119_v24  ;;  %v7044_v49 = vperm.slane %v7038_v59, %v10322_v53  ;;  %v7048_v29 = vperm.slane %v7040_v51, %v10322_v53  ;;  %v7116_v16 = vperm.slane %v7108_v27, %v10327_v62 }
0x21d9   :  { %v7128_v17 = vperm.slane %v7120_v9, %v10327_v62  ;;  %v7129_v20 = vrot.slane %v7112_v50, 4  ;;  %v7133_v32 = vrot.slane %v7124_v30, 4 }
0x21da   :  { %v7049_v5 = vrot.slane %v7044_v49, 4  ;;  %v7052_v13 = vsel %vm147_vm1, %v7044_v49, %v7051_v55  ;;  %v7061_v28 = vrot.slane %v7048_v29, 4  ;;  %v7064_v8 = vsel %vm147_vm1, %v7048_v29, %v7063_v40 }
0x21db   :  { %v7131_v61 = vrot.slane %v7116_v16, 4  ;;  %v7134_v41 = vsel %vm147_vm1, 0.0, %v7133_v32  ;;  %v7135_v0 = vrot.slane %v7128_v17, 4  ;;  %v7060_v38 = vperm.slane %v7052_v13, %v10327_v62 }
0x21dc   :  { %v7050_v26 = vsel %vm147_vm1, %v7049_v5, %v7032_v47  ;;  %v7062_v63 = vsel %vm147_vm1, %v7061_v28, %v7036_v18  ;;  %v7072_v36 = vperm.slane %v7064_v8, %v10327_v62  ;;  %v7130_v34 = vsel %vm147_vm1, 0.0, %v7129_v20 }
0x21dd   :  { %v7132_v35 = vsel %vm147_vm1, 0.0, %v7131_v61  ;;  %v7136_v6 = vsel %vm147_vm1, 0.0, %v7135_v0  ;;  %v7202_v25 = vsel %vm147_vm1, %v7135_v0, %v7124_v30  ;;  %v7056_v57 = vperm.slane %v7050_v26, %v10327_v62 }
0x21de   :  { %v7196_v4 = vrot.slane %v7132_v35, 4  ;;  %v7207_v1 = vrot.slane %v7136_v6, 4  ;;  %v7068_v15 = vperm.slane %v7062_v63, %v10327_v62  ;;  %v7075_v45 = vrot.slane %v7060_v38, 4 }
0x21df   :  { %v7073_v47 = vrot.slane %v7056_v57, 4  ;;  %v7079_v22 = vrot.slane %v7072_v36, 4  ;;  %v7191_v18 = vsel %vm147_vm1, %v7131_v61, %v7112_v50  ;;  %v7206_v44 = vperm.slane %v7202_v25, %v10322_v53 }
0x21e0   :  { %v7076_v11 = vsel %vm147_vm1, 0.0, %v7075_v45  ;;  %v7077_v56 = vrot.slane %v7068_v15, 4  ;;  %v7195_v12 = vperm.slane %v7191_v18, %v10322_v53  ;;  %v7197_v19 = vsel %vm147_vm1, %v7196_v4, %v7130_v34 }
0x21e1   :  { %v7080_v39 = vsel %vm147_vm1, 0.0, %v7079_v22  ;;  %v7142_v55 = vrot.slane %v7076_v11, 4  ;;  %v7201_v40 = vperm.slane %v7197_v19, %v10322_v53  ;;  %v7208_v42 = vsel %vm147_vm1, %v7207_v1, %v7134_v41 }
0x21e2   :  { %v7153_v23 = vrot.slane %v7080_v39, 4  ;;  %v7212_v37 = vperm.slane %v7208_v42, %v10322_v53  ;;  %v7215_v46 = vrot.slane %v7195_v12, 4  ;;  %v7227_v58 = vrot.slane %v7206_v44, 4 }
0x21e3   :  { %v7213_v24 = vrot.slane %v7201_v40, 4  ;;  %v7074_v50 = vsel %vm147_vm1, 0.0, %v7073_v47  ;;  %v7078_v30 = vsel %vm147_vm1, 0.0, %v7077_v56  ;;  %v7137_v59 = vsel %vm147_vm1, %v7075_v45, %v7056_v57 }
0x21e4   :  { %v7216_v51 = vsel %vm147_vm1, %v7201_v40, %v7215_v46  ;;  %v7228_v27 = vsel %vm147_vm1, %v7212_v37, %v7227_v58  ;;  %v7225_v9 = vrot.slane %v7212_v37, 4  ;;  %v7141_v49 = vperm.slane %v7137_v59, %v10322_v53  ;;  %v7924_v59 = vld [vmem:[#allocation2 + $0x4b0] sm:$0xff] }
0x21e5   :  { %v7224_v29 = vperm.slane %v7216_v51, %v10327_v62  ;;  %v7236_v16 = vperm.slane %v7228_v27, %v10327_v62  ;;  %v7214_v17 = vsel %vm147_vm1, %v7213_v24, %v7195_v12  ;;  %v7143_v20 = vsel %vm147_vm1, %v7142_v55, %v7074_v50  ;;  %v7926_v24 = vld [vmem:[#allocation2 + $0x4c0] sm:$0xff]  ;;  %v7925_v50 = vld [vmem:[#allocation2 + $0x4b8] sm:$0xff] }
0x21e6   :  { %v7220_v32 = vperm.slane %v7214_v17, %v10327_v62  ;;  %v7226_v5 = vsel %vm147_vm1, %v7225_v9, %v7206_v44  ;;  %v7147_v13 = vperm.slane %v7143_v20, %v10322_v53  ;;  %v7148_v28 = vsel %vm147_vm1, %v7079_v22, %v7068_v15  ;;  %v7923_v9 = vld [vmem:[#allocation2 + $0x4a8] sm:$0xff] }
0x21e7   :  { %v7241_v8 = vrot.slane %v7236_v16, 4  ;;  %v7243_v61 = vrot.slane %v7224_v29, 4  ;;  %v7232_v41 = vperm.slane %v7226_v5, %v10327_v62  ;;  %v7152_v0 = vperm.slane %v7148_v28, %v10322_v53 }
0x21e8   :  { %v7239_v38 = vrot.slane %v7220_v32, 4  ;;  %v7154_v26 = vsel %vm147_vm1, %v7153_v23, %v7078_v30  ;;  %v7161_v63 = vrot.slane %v7141_v49, 4  ;;  %v7159_v36 = vrot.slane %v7147_v13, 4 }
0x21e9   :  { %v7242_v34 = vsel %vm147_vm1, %v7241_v8, %v7224_v29  ;;  %v7244_v35 = vsel %vm147_vm1, %v7236_v16, %v7243_v61  ;;  %v7237_v6 = vrot.slane %v7232_v41, 4  ;;  %v7158_v25 = vperm.slane %v7154_v26, %v10322_v53 }
0x21ea   :  { %7551 = vmatpush.msra.mxu1 %v7242_v34  ;;  %7580 = vmatpush.msra.mxu3 %v7244_v35  ;;  %v7240_v57 = vsel %vm147_vm1, %v7232_v41, %v7239_v38  ;;  %v7162_v4 = vsel %vm147_vm1, %v7147_v13, %v7161_v63  ;;  %v7173_v1 = vrot.slane %v7152_v0, 4  ;;  %v7160_v15 = vsel %vm147_vm1, %v7159_v36, %v7141_v49 }
0x21eb   :  { %v7238_v45 = vsel %vm147_vm1, %v7237_v6, %v7220_v32  ;;  %7522 = vmatpush.msra.mxu2 %v7240_v57  ;;  %v7170_v47 = vperm.slane %v7162_v4, %v10327_v62  ;;  %v7166_v22 = vperm.slane %v7160_v15, %v10327_v62  ;;  %v7171_v18 = vrot.slane %v7158_v25, 4 }
0x21ec   :  { %7493 = vmatpush.msrb.mxu0 %v7238_v45  ;;  %v7174_v44 = vsel %vm147_vm1, %v7158_v25, %v7173_v1 }
0x21ed   :  { %v7182_v11 = vperm.slane %v7174_v44, %v10327_v62  ;;  %v7189_v56 = vrot.slane %v7170_v47, 4  ;;  %v7172_v12 = vsel %vm147_vm1, %v7171_v18, %v7152_v0  ;;  %v7185_v19 = vrot.slane %v7166_v22, 4 }
0x21ee   :  { %v7178_v39 = vperm.slane %v7172_v12, %v10327_v62 }
0x21ef   :  { %v7187_v55 = vrot.slane %v7182_v11, 4  ;;  %v7190_v40 = vsel %vm147_vm1, %v7182_v11, %v7189_v56 }
0x21f0   :  { %7581 = vmatpush.msra.mxu3 %v7190_v40  ;;  %v7183_v42 = vrot.slane %v7178_v39, 4  ;;  %v7186_v23 = vsel %vm147_vm1, %v7178_v39, %v7185_v19 }
0x21f1   :  { %v7188_v37 = vsel %vm147_vm1, %v7187_v55, %v7170_v47  ;;  %7523 = vmatpush.msra.mxu2 %v7186_v23 }
0x21f2   :  { %7552 = vmatpush.msra.mxu1 %v7188_v37  ;;  %v7184_v46 = vsel %vm147_vm1, %v7183_v42, %v7166_v22 }
0x21f3   :  { %7494 = vmatpush.msrb.mxu0 %v7184_v46  ;;  %7952 = vmatpush.msrb.mxu2 %v7926_v24 }
0x21f4   :  { %7975 = vmatpush.msrb.mxu1 %v7926_v24 }
0x21f5   :  { %7953 = vmatpush.msrb.mxu2 %v7925_v50 }
0x21f6   :  { %7976 = vmatpush.msrb.mxu1 %v7925_v50 }
0x21f7   :  { %7954 = vmatpush.msrb.mxu2 %v7924_v59 }
0x21f8   :  { %7977 = vmatpush.msrb.mxu1 %v7924_v59 }
0x21f9   :  { %7955 = vmatpush.msrb.mxu2 %v7923_v9 }
0x21fa   :  { %7978 = vmatpush.msrb.mxu1 %v7923_v9 }
0x2226   :  { %v7447_v58 = vpop.xlane.xlu0 %7446 }
0x2227   :  { %10127 = vrcp.f32 %v7447_v58 }
0x222b   :  { %v7441_v30 = vpop.xlane.xlu2 %7440 }
0x222c   :  { %10129 = vrcp.f32 %v7441_v30 }
0x222d   :  { %v10128_v51 = vpop.eup %10127 }
0x222e   :  { %v7469_v27 = vmul.f32 %v10128_v51, %v12879_v2 }
0x222f   :  { %v7453_v49 = vpop.xlane.xlu1 %7452 }
0x2230   :  { %10131 = vrcp.f32 %v7453_v49  ;;  %9726 = vmatmul.msk.f32.vlgmr.msra.gmra.mxu1 %vm1010_vm3, %v7469_v27 }
0x2232   :  { %v10130_v29 = vpop.eup %10129 }
0x2233   :  { %v7467_v16 = vmul.f32 %v10130_v29, %v12883_v48 }
0x2234   :  { %v7444_v17 = vpop.xlane.xlu0 %7443 }
0x2235   :  { %10133 = vrcp.f32 %v7444_v17  ;;  %9724 = vmatmul.msk.f32.vlgmr.msra.gmra.mxu2 %vm1010_vm3, %v7467_v16 }
0x2236   :  { %v10132_v20 = vpop.eup %10131 }
0x2237   :  { %v7471_v32 = vmul.f32 %v10132_v20, %v12887_v60  ;;  %v7435_v2 = vpop.xlane.xlu1 %7434  ;;  %v7456_v5 = vpop.xlane.xlu2 %7455 }
0x2238   :  { %10135 = vrcp.f32 %v7435_v2 }
0x2239   :  { %10137 = vrcp.f32 %v7456_v5  ;;  %9728 = vmatmul.msk.f32.vlgmr.msra.gmra.mxu3 %vm1010_vm3, %v7471_v32 }
0x223b   :  { %v10134_v13 = vpop.eup %10133 }
0x223c   :  { %v7468_v28 = vmul.f32 %v10134_v13, %v12891_v52 }
0x223e   :  { %v10136_v8 = vpop.eup %10135  ;;  %9725 = vmatmul.msk.f32.gmra.mxu2 %vm1010_vm3, %v7468_v28 }
0x223f   :  { %v10138_v48 = vpop.eup %10137  ;;  %v7465_v61 = vmul.f32 %v10136_v8, %v12893_v7  ;;  %v7450_v41 = vpop.xlane.xlu1 %7449 }
0x2240   :  { %10139 = vrcp.f32 %v7450_v41  ;;  %v7438_v0 = vpop.xlane.xlu2 %7437  ;;  %v7472_v60 = vmul.f32 %v10138_v48, %v12897_v33 }
0x2241   :  { %10141 = vrcp.f32 %v7438_v0  ;;  %9722 = vmatmul.msk.f32.vlgmr.msrb.gmra.mxu0 %vm1010_vm3, %v7465_v61 }
0x2242   :  { %9729 = vmatmul.msk.f32.gmra.mxu3 %vm1010_vm3, %v7472_v60 }
0x2246   :  { %v10140_v38 = vpop.eup %10139 }
0x2247   :  { %v10142_v26 = vpop.eup %10141  ;;  %v7470_v52 = vmul.f32 %v10140_v38, %v12903_v21 }
0x2248   :  { %v7466_v63 = vmul.f32 %v10142_v26, %v12905_v14 }
0x2249   :  { %9727 = vmatmul.msk.f32.gmra.mxu1 %vm1010_vm3, %v7470_v52 }
0x224a   :  { %9723 = vmatmul.msk.f32.gmra.mxu0 %vm1010_vm3, %v7466_v63 }
0x2251   :  { %9734 = vmatmul.msk.f32.vlgmr.msrb.gmra.mxu1 %vm94_vm0, %v11422_v43 }
0x2259   :  { %9735 = vmatmul.msk.f32.gmra.mxu1 %vm94_vm0, %v11424_v31 }
0x22ad   :  { %v7554_v33 = vpop.f32.mrf.mxu1 }
0x22ae   :  { %v7589_v35 = vrot.slane %v7554_v33, 4 }
0x22b8   :  { %v7525_v7 = vpop.f32.mrf.mxu2 }
0x22b9   :  { %v7603_v36 = vrot.slane %v7525_v7, 4 }
0x22bc   :  { %v7583_v34 = vpop.f32.mrf.mxu3 }
0x22bd   :  { %v7601_v6 = vrot.slane %v7583_v34, 4  ;;  %v7604_v21 = vsel %vm147_vm1, %v7583_v34, %v7603_v36 }
0x22be   :  { %v7612_v14 = vperm.slane %v7604_v21, %v10322_v53  ;;  %v7496_v25 = vpop.f32.mrf.mxu0 }
0x22bf   :  { %v7602_v57 = vsel %vm147_vm1, %v7601_v6, %v7525_v7  ;;  %v7590_v4 = vsel %vm147_vm1, %v7589_v35, %v7496_v25  ;;  %v7591_v1 = vrot.slane %v7496_v25, 4 }
0x22c0   :  { %v7608_v43 = vperm.slane %v7602_v57, %v10322_v53  ;;  %v7596_v31 = vperm.slane %v7590_v4, %v10322_v53  ;;  %v7625_v15 = vrot.slane %v7612_v14, 4 }
0x22c1   :  { %v7592_v45 = vsel %vm147_vm1, %v7554_v33, %v7591_v1  ;;  %v7528_v47 = vpop.f32.mrf.mxu2 }
0x22c2   :  { %v7613_v22 = vrot.slane %v7608_v43, 4  ;;  %v7600_v18 = vperm.slane %v7592_v45, %v10322_v53  ;;  %v7615_v44 = vrot.slane %v7596_v31, 4  ;;  %v7659_v11 = vrot.slane %v7528_v47, 4 }
0x22c4   :  { %v7614_v56 = vsel %vm147_vm1, %v7613_v22, %v7596_v31  ;;  %v7616_v12 = vsel %vm147_vm1, %v7608_v43, %v7615_v44  ;;  %v7626_v19 = vsel %vm147_vm1, %v7625_v15, %v7600_v18  ;;  %v7627_v39 = vrot.slane %v7600_v18, 4 }
0x22c5   :  { %v7620_v55 = vperm.slane %v7614_v56, %v10327_v62  ;;  %v7624_v40 = vperm.slane %v7616_v12, %v10327_v62  ;;  %v7632_v42 = vperm.slane %v7626_v19, %v10327_v62  ;;  %v7586_v23 = vpop.f32.mrf.mxu3 }
0x22c6   :  { %v7628_v37 = vsel %vm147_vm1, %v7612_v14, %v7627_v39  ;;  %v7657_v46 = vrot.slane %v7586_v23, 4  ;;  %v7660_v58 = vsel %vm147_vm1, %v7586_v23, %v7659_v11  ;;  %v7557_v24 = vpop.f32.mrf.mxu1 }
0x22c7   :  { %v7636_v50 = vperm.slane %v7628_v37, %v10327_v62  ;;  %v7637_v30 = vrot.slane %v7620_v55, 4  ;;  %v7639_v59 = vrot.slane %v7624_v40, 4  ;;  %v7641_v51 = vrot.slane %v7632_v42, 4  ;;  %v7499_v27 = vpop.f32.mrf.mxu0 }
0x22c8   :  { %v7658_v9 = vsel %vm147_vm1, %v7657_v46, %v7528_v47  ;;  %v7668_v49 = vperm.slane %v7660_v58, %v10322_v53  ;;  %v7647_v29 = vrot.slane %v7499_v27, 4  ;;  %v7645_v16 = vrot.slane %v7557_v24, 4 }
0x22c9   :  { %v7638_v17 = vsel %vm147_vm1, 0.0, %v7637_v30  ;;  %v7640_v20 = vsel %vm147_vm1, 0.0, %v7639_v59  ;;  %v7643_v32 = vrot.slane %v7636_v50, 4  ;;  %v7701_v2 = vsel %vm147_vm1, %v7639_v59, %v7620_v55 }
0x22ca   :  { %v7705_v5 = vperm.slane %v7701_v2, %v10322_v53  ;;  %v7706_v13 = vrot.slane %v7640_v20, 4  ;;  %v7664_v28 = vperm.slane %v7658_v9, %v10322_v53  ;;  %v7681_v8 = vrot.slane %v7668_v49, 4 }
0x22cb   :  { %v7644_v48 = vsel %vm147_vm1, 0.0, %v7643_v32  ;;  %v7646_v61 = vsel %vm147_vm1, %v7645_v16, %v7499_v27  ;;  %v7648_v41 = vsel %vm147_vm1, %v7557_v24, %v7647_v29  ;;  %v7642_v0 = vsel %vm147_vm1, 0.0, %v7641_v51 }
0x22cc   :  { %v7707_v60 = vsel %vm147_vm1, %v7706_v13, %v7638_v17  ;;  %v7717_v38 = vrot.slane %v7644_v48, 4  ;;  %v7669_v26 = vrot.slane %v7664_v28, 4  ;;  %v7652_v52 = vperm.slane %v7646_v61, %v10322_v53 }
0x22cd   :  { %v7656_v63 = vperm.slane %v7648_v41, %v10322_v53  ;;  %v7711_v7 = vperm.slane %v7707_v60, %v10322_v53  ;;  %v7712_v33 = vsel %vm147_vm1, %v7643_v32, %v7632_v42  ;;  %v7725_v36 = vrot.slane %v7705_v5, 4 }
0x22ce   :  { %v7670_v34 = vsel %vm147_vm1, %v7669_v26, %v7652_v52  ;;  %v7671_v35 = vrot.slane %v7652_v52, 4  ;;  %v7716_v6 = vperm.slane %v7712_v33, %v10322_v53  ;;  %v7718_v21 = vsel %vm147_vm1, %v7717_v38, %v7642_v0 }
0x22cf   :  { %v7676_v14 = vperm.slane %v7670_v34, %v10327_v62  ;;  %v7682_v25 = vsel %vm147_vm1, %v7681_v8, %v7656_v63  ;;  %v7683_v57 = vrot.slane %v7656_v63, 4  ;;  %v7722_v43 = vperm.slane %v7718_v21, %v10322_v53 }
0x22d0   :  { %v7672_v4 = vsel %vm147_vm1, %v7664_v28, %v7671_v35  ;;  %v7688_v1 = vperm.slane %v7682_v25, %v10327_v62  ;;  %v7726_v31 = vsel %vm147_vm1, %v7711_v7, %v7725_v36  ;;  %v7737_v44 = vrot.slane %v7716_v6, 4 }
0x22d1   :  { %v7680_v15 = vperm.slane %v7672_v4, %v10327_v62  ;;  %v7684_v45 = vsel %vm147_vm1, %v7668_v49, %v7683_v57  ;;  %v7693_v47 = vrot.slane %v7676_v14, 4  ;;  %v7734_v22 = vperm.slane %v7726_v31, %v10327_v62 }
0x22d2   :  { %v7692_v18 = vperm.slane %v7684_v45, %v10327_v62  ;;  %v7723_v11 = vrot.slane %v7711_v7, 4  ;;  %v7697_v12 = vrot.slane %v7688_v1, 4  ;;  %v7735_v39 = vrot.slane %v7722_v43, 4  ;;  %v6468_v45 = vld [vmem:[#allocation2 + $0x490] sm:$0xff] }
0x22d3   :  { %v7695_v56 = vrot.slane %v7680_v15, 4  ;;  %v7753_v19 = vrot.slane %v7734_v22, 4  ;;  %v7738_v40 = vsel %vm147_vm1, %v7722_v43, %v7737_v44  ;;  %v7694_v23 = vsel %vm147_vm1, 0.0, %v7693_v47  ;;  %v6469_v15 = vld [vmem:[#allocation2 + $0x498] sm:$0xff]  ;;  %v6467_v47 = vld [vmem:[#allocation2 + $0x488] sm:$0xff] }
0x22d4   :  { %v7699_v55 = vrot.slane %v7692_v18, 4  ;;  %v7724_v42 = vsel %vm147_vm1, %v7723_v11, %v7705_v5  ;;  %v7746_v46 = vperm.slane %v7738_v40, %v10327_v62  ;;  %v7736_v24 = vsel %vm147_vm1, %v7735_v39, %v7716_v6  ;;  %7858 = vmatpush.msra.mxu0 %v6469_v15 }
0x22d5   :  { %v7696_v37 = vsel %vm147_vm1, 0.0, %v7695_v56  ;;  %v7730_v58 = vperm.slane %v7724_v42, %v10327_v62  ;;  %v7742_v51 = vperm.slane %v7736_v24, %v10327_v62  ;;  %v7698_v27 = vsel %vm147_vm1, 0.0, %v7697_v12 }
0x22d6   :  { %v7700_v50 = vsel %vm147_vm1, 0.0, %v7699_v55  ;;  %v7760_v30 = vrot.slane %v7696_v37, 4  ;;  %v7766_v59 = vsel %vm147_vm1, %v7699_v55, %v7688_v1  ;;  %v7754_v29 = vsel %vm147_vm1, %v7746_v46, %v7753_v19  ;;  %7859 = vmatpush.msra.mxu0 %v6468_v45 }
0x22d7   :  { %v7770_v9 = vperm.slane %v7766_v59, %v10322_v53  ;;  %v7771_v49 = vrot.slane %v7700_v50, 4  ;;  %7827 = vrot.lane.b32.xlu2 %v7754_v29, %s10234_s25  ;;  %v7751_v16 = vrot.slane %v7746_v46, 4  ;;  %v7747_v17 = vrot.slane %v7742_v51, 4  ;;  %v9940_v46 = vld [vmem:[#allocation2 + $0x4a0] ss:$0 sm:$0xff] }
0x22d8   :  { %v7749_v20 = vrot.slane %v7730_v58, 4  ;;  %v7755_v32 = vsel %vm147_vm1, %v7695_v56, %v7676_v14  ;;  %v7761_v13 = vsel %vm147_vm1, %v7760_v30, %v7694_v23  ;;  %7860 = vmatpush.msra.mxu0 %v6467_v47 }
0x22d9   :  { %v7772_v2 = vsel %vm147_vm1, %v7771_v49, %v7698_v27  ;;  %v7759_v5 = vperm.slane %v7755_v32, %v10322_v53  ;;  %v7791_v28 = vrot.slane %v7770_v9, 4  ;;  %v7752_v8 = vsel %vm147_vm1, %v7751_v16, %v7734_v22  ;;  %v6466_v22 = vld [vmem:[#allocation2 + $0x480] sm:$0xff]  ;;  %v7980_v49 = vpop.f32.mrf.mxu1  ;;  %v13109_v16 = vld [vmem:[#allocation2 + $0x4c8] ss:$0 sm:$0xff] }
0x22da   :  { %v7750_v48 = vsel %vm147_vm1, %v7742_v51, %v7749_v20  ;;  %v7765_v61 = vperm.slane %v7761_v13, %v10322_v53  ;;  %v7776_v41 = vperm.slane %v7772_v2, %v10322_v53  ;;  %7819 = vrot.lane.b32.xlu1 %v7752_v8, %s10233_s24  ;;  %v7748_v60 = vsel %vm147_vm1, %v7747_v17, %v7730_v58 }
0x22db   :  { %7811 = vrot.lane.b32.xlu0 %v7750_v48, %s10225_s15  ;;  %v7779_v0 = vrot.slane %v7759_v5, 4  ;;  %7861 = vmatpush.msra.mxu0 %v6466_v22 }
0x22dc   :  { %v7792_v38 = vsel %vm147_vm1, %v7776_v41, %v7791_v28  ;;  %v7777_v26 = vrot.slane %v7765_v61, 4  ;;  %v7789_v52 = vrot.slane %v7776_v41, 4 }
0x22dd   :  { %v7780_v63 = vsel %vm147_vm1, %v7765_v61, %v7779_v0  ;;  %v7800_v7 = vperm.slane %v7792_v38, %v10327_v62 }
0x22de   :  { %v7778_v33 = vsel %vm147_vm1, %v7777_v26, %v7759_v5  ;;  %v7790_v36 = vsel %vm147_vm1, %v7789_v52, %v7770_v9  ;;  %v7788_v34 = vperm.slane %v7780_v63, %v10327_v62 }
0x22df   :  { %v7805_v35 = vrot.slane %v7800_v7, 4  ;;  %v7784_v6 = vperm.slane %v7778_v33, %v10327_v62  ;;  %v7796_v21 = vperm.slane %v7790_v36, %v10327_v62 }
0x22e0   :  { %v7807_v43 = vrot.slane %v7788_v34, 4 }
0x22e1   :  { %v7806_v14 = vsel %vm147_vm1, %v7805_v35, %v7788_v34  ;;  %v7801_v25 = vrot.slane %v7796_v21, 4  ;;  %v7803_v57 = vrot.slane %v7784_v6, 4  ;;  %v7983_v29 = vpop.f32.mrf.mxu1 }
0x22e2   :  { %7821 = vrot.lane.b32.xlu1 %v7806_v14, %s10233_s24  ;;  %v7808_v31 = vsel %vm147_vm1, %v7800_v7, %v7807_v43  ;;  %v13112_v17 = vadd.f32 %v13109_v16, %v7983_v29 }
0x22e3   :  { %v7804_v4 = vsel %vm147_vm1, %v7796_v21, %v7803_v57  ;;  %v7802_v1 = vsel %vm147_vm1, %v7801_v25, %v7784_v6  ;;  %v9941_v25 = vld [vmem:[#allocation2 + $0x4f8] ss:$0 sm:$0xff] }
0x22e4   :  { %7813 = vrot.lane.b32.xlu0 %v7804_v4, %s10225_s15  ;;  %v9942_v4 = vld [vmem:[#allocation2 + $0x500] ss:$0 sm:$0xff] }
0x22ec   :  { %7829 = vrot.lane.b32.xlu0 %v7808_v31, %s10234_s25 }
0x2331   :  { %v7828_v56 = vpop.permute.xlu2 %7827 }
0x234c   :  { %v7820_v18 = vpop.permute.xlu1 %7819 }
0x234d   :  { %v7812_v44 = vpop.permute.xlu0 %7811 }
0x234e   :  { %v7833_v11 = vsel %vm869_vm2, %v7748_v60, %v7812_v44 }
0x234f   :  { %v7835_v12 = vsel %vm1010_vm3, %v7833_v11, %v7820_v18 }
0x2350   :  { %v7837_v19 = vsel %vm1463_vm4, %v7835_v12, %v7828_v56 }
0x2351   :  { %9730 = vmatmul.msk.f32.vlgmr.msra.gmra.mxu0 %vm94_vm0, %v7837_v19 }
0x2354   :  { %v7822_v40 = vpop.permute.xlu1 %7821 }
0x2356   :  { %v7814_v39 = vpop.permute.xlu0 %7813 }
0x2357   :  { %v7834_v55 = vsel %vm869_vm2, %v7802_v1, %v7814_v39 }
0x2358   :  { %v7836_v23 = vsel %vm1010_vm3, %v7834_v55, %v7822_v40 }
0x235e   :  { %v7830_v42 = vpop.permute.xlu0 %7829 }
0x235f   :  { %v7838_v37 = vsel %vm1463_vm4, %v7836_v23, %v7830_v42 }
0x2360   :  { %9731 = vmatmul.msk.f32.gmra.mxu0 %vm94_vm0, %v7838_v37 }
0x23ce   :  { %v7863_v58 = vpop.f32.mrf.mxu0 }
0x23cf   :  { %v7864_v24 = vadd.f32 %v9940_v46, %v7863_v58 }
0x23d1   :  { %v7869_v50 = vadd.f32 %v7864_v24, %v12520_v54  ;;  %v13117_v54 = vadd.f32 %v13109_v16, %v7980_v49 }
0x23d3   :  { %v7873_v30 = vsel %vm94_vm0, %v7869_v50, 0.0 }
0x23d4   :  { %7874 = vadd.xlane.f32.xlu2 %v7873_v30 }
0x23dd   :  { %v7866_v59 = vpop.f32.mrf.mxu0 }
0x23de   :  { %v7867_v51 = vadd.f32 %v9940_v46, %v7866_v59 }
0x23e0   :  { %v7870_v27 = vadd.f32 %v7867_v51, %v12524_v10 }
0x23e2   :  { %v7876_v9 = vsel %vm94_vm0, %v7870_v27, 0.0 }
0x23e3   :  { %7877 = vadd.xlane.f32.xlu1 %v7876_v9 }
0x23fc   :  { %8232 = vrot.lane.b32.xlu1 %v13112_v17, %s10228_s21 }
0x2404   :  { %8234 = vrot.lane.b32.xlu1 %v13117_v54, %s10226_s19 }
0x2447   :  { %v7875_v10 = vpop.xlane.xlu2 %7874 }
0x2448   :  { %v7879_v20 = vmul.f32 %v7875_v10, %v10809_v3 }
0x244a   :  { %v7881_v32 = vsub.f32 %v7869_v50, %v7879_v20 }
0x244c   :  { %v7883_v2 = vmul.f32 %v7881_v32, %v7881_v32 }
0x244e   :  { %v7885_v5 = vsel %vm94_vm0, %v7883_v2, 0.0 }
0x244f   :  { %7886 = vadd.xlane.f32.xlu0 %v7885_v5 }
0x2456   :  { %v7878_v13 = vpop.xlane.xlu1 %7877 }
0x2457   :  { %v7880_v28 = vmul.f32 %v7878_v13, %v10809_v3 }
0x2459   :  { %v7882_v8 = vsub.f32 %v7870_v27, %v7880_v28 }
0x245b   :  { %v7884_v48 = vmul.f32 %v7882_v8, %v7882_v8 }
0x245d   :  { %v7888_v61 = vsel %vm94_vm0, %v7884_v48, 0.0 }
0x245e   :  { %7889 = vadd.xlane.f32.xlu2 %v7888_v61 }
0x2463   :  { %8236 = vrot.lane.b32.xlu0 %v13112_v17, %s10226_s19 }
0x246b   :  { %8230 = vrot.lane.b32.xlu0 %v13117_v54, %s10228_s21 }
0x246e   :  { %v13129_v41 = vpop.permute.xlu1 %8232 }
0x246f   :  { %8248 = vrot.lane.b32.xlu1 %v13129_v41, %s10229_s22 }
0x2473   :  { %8244 = vrot.lane.b32.xlu0 %v13112_v17, %s10229_s22 }
0x2476   :  { %8240 = vrot.lane.b32.xlu2 %v13112_v17, %s10227_s20  ;;  %v13141_v0 = vpop.permute.xlu1 %8234 }
0x247b   :  { %8242 = vrot.lane.b32.xlu0 %v13117_v54, %s10229_s22 }
0x247e   :  { %8238 = vrot.lane.b32.xlu2 %v13117_v54, %s10227_s20 }
0x2483   :  { %8250 = vrot.lane.b32.xlu0 %v13141_v0, %s10229_s22 }
0x24c2   :  { %v7887_v60 = vpop.xlane.xlu0 %7886 }
0x24c3   :  { %v7891_v38 = vmul.f32 %v7887_v60, %v10809_v3 }
0x24c5   :  { %v7893_v26 = vadd.f32 1e-05, %v7891_v38 }
0x24c7   :  { %10143 = vrsqrt.f32 %v7893_v26  ;;  %vm7901_vm6 = vweird.f32 %v7893_v26 }
0x24cd   :  { %v10144_v52 = vpop.eup %10143 }
0x24ce   :  { %v7896_v63 = vmul.f32 %v10144_v52, %v7893_v26  ;;  %vm7902_vm5 = vweird.f32 %v10144_v52 }
0x24cf   :  { %vm7903_vm7 = vmor %vm7901_vm6, %vm7902_vm5 }
0x24d0   :  { %v7897_v7 = vmul.f32 %v10144_v52, %v7896_v63 }
0x24d1   :  { %v7890_v33 = vpop.xlane.xlu2 %7889 }
0x24d2   :  { %v7898_v36 = vmul.f32 0.5, %v7897_v7  ;;  %v7892_v34 = vmul.f32 %v7890_v33, %v10809_v3 }
0x24d4   :  { %v7899_v35 = vsub.f32 1.5, %v7898_v36  ;;  %v7894_v6 = vadd.f32 1e-05, %v7892_v34 }
0x24d5   :  { %v13147_v21 = vpop.permute.xlu0 %8236 }
0x24d6   :  { %v7900_v14 = vmul.f32 %v10144_v52, %v7899_v35  ;;  %10145 = vrsqrt.f32 %v7894_v6  ;;  %8252 = vrot.lane.b32.xlu2 %v13147_v21, %s10229_s22  ;;  %vm7911_vm9 = vweird.f32 %v7894_v6 }
0x24d8   :  { %v7904_v57 = vsel %vm7903_vm7, %v10144_v52, %v7900_v14 }
0x24d9   :  { %v7915_v1 = vmul.f32 %v7904_v57, %v7881_v32  ;;  %v13151_v43 = vpop.permute.xlu2 %8240 }
0x24da   :  { %8256 = vrot.lane.b32.xlu1 %v13151_v43, %s10229_s22 }
0x24db   :  { %v7918_v31 = vmul.f32 %v9941_v25, %v7915_v1 }
0x24dc   :  { %v10146_v15 = vpop.eup %10145 }
0x24dd   :  { %v13155_v45 = vadd.f32 %v9942_v4, %v7918_v31  ;;  %v7906_v47 = vmul.f32 %v10146_v15, %v7894_v6  ;;  %v13157_v22 = vpop.permute.xlu0 %8230  ;;  %vm7912_vm8 = vweird.f32 %v10146_v15 }
0x24de   :  { %8246 = vrot.lane.b32.xlu2 %v13157_v22, %s10229_s22  ;;  %vm7913_vm10 = vmor %vm7911_vm9, %vm7912_vm8 }
0x24df   :  { %v7907_v18 = vmul.f32 %v10146_v15, %v7906_v47  ;;  %9732 = vmatmul.msk.f32.vlgmr.msrb.gmra.mxu2 %vm94_vm0, %v13155_v45 }
0x24e1   :  { %v7908_v44 = vmul.f32 0.5, %v7907_v18  ;;  %v13163_v11 = vpop.permute.xlu2 %8238  ;;  %v8249_v46 = vpop.permute.xlu1 %8248 }
0x24e2   :  { %8254 = vrot.lane.b32.xlu1 %v13163_v11, %s10229_s22  ;;  %v8336_v49 = vrot.slane %v8249_v46, 4 }
0x24e3   :  { %v7909_v56 = vsub.f32 1.5, %v7908_v44 }
0x24e5   :  { %v7910_v12 = vmul.f32 %v10146_v15, %v7909_v56  ;;  %v8245_v42 = vpop.permute.xlu0 %8244 }
0x24e6   :  { %v8324_v58 = vrot.slane %v8245_v42, 4 }
0x24e7   :  { %v7914_v19 = vsel %vm7913_vm10, %v10146_v15, %v7910_v12 }
0x24e8   :  { %v7916_v39 = vmul.f32 %v7914_v19, %v7882_v8 }
0x24ea   :  { %v7919_v55 = vmul.f32 %v9941_v25, %v7916_v39 }
0x24ec   :  { %v13167_v40 = vadd.f32 %v9942_v4, %v7919_v55 }
0x24ed   :  { %v8243_v23 = vpop.permute.xlu0 %8242 }
0x24ee   :  { %9733 = vmatmul.msk.f32.gmra.mxu2 %vm94_vm0, %v13167_v40  ;;  %v8268_v27 = vrot.slane %v8243_v23, 4 }
0x24f5   :  { %v8251_v24 = vpop.permute.xlu0 %8250 }
0x24f6   :  { %v8266_v59 = vrot.slane %v8251_v24, 4  ;;  %v8269_v10 = vsel %vm147_vm1, %v8251_v24, %v8268_v27 }
0x24f7   :  { %v8277_v48 = vperm.slane %v8269_v10, %v10322_v53 }
0x24f8   :  { %v8267_v29 = vsel %vm147_vm1, %v8266_v59, %v8243_v23 }
0x24f9   :  { %v8273_v8 = vperm.slane %v8267_v29, %v10322_v53  ;;  %v8304_v57 = vrot.slane %v8277_v48, 4 }
0x24fb   :  { %v8292_v25 = vrot.slane %v8273_v8, 4 }
0x2530   :  { %v8253_v37 = vpop.permute.xlu2 %8252 }
0x2531   :  { %v8322_v50 = vrot.slane %v8253_v37, 4  ;;  %v8325_v30 = vsel %vm147_vm1, %v8253_v37, %v8324_v58 }
0x2532   :  { %v8333_v9 = vperm.slane %v8325_v30, %v10322_v53 }
0x2533   :  { %v8323_v51 = vsel %vm147_vm1, %v8322_v50, %v8245_v42 }
0x2534   :  { %v8329_v20 = vperm.slane %v8323_v51, %v10322_v53  ;;  %v8360_v13 = vrot.slane %v8333_v9, 4 }
0x2536   :  { %v8348_v60 = vrot.slane %v8329_v20, 4 }
0x2538   :  { %v8247_v63 = vpop.permute.xlu2 %8246 }
0x2539   :  { %v8280_v4 = vrot.slane %v8247_v63, 4 }
0x254c   :  { %v8257_v32 = vpop.permute.xlu1 %8256 }
0x254d   :  { %v8334_v2 = vrot.slane %v8257_v32, 4  ;;  %v8337_v5 = vsel %vm147_vm1, %v8257_v32, %v8336_v49 }
0x254e   :  { %v8345_v28 = vperm.slane %v8337_v5, %v10322_v53 }
0x254f   :  { %v8335_v61 = vsel %vm147_vm1, %v8334_v2, %v8249_v46 }
0x2550   :  { %v8341_v38 = vperm.slane %v8335_v61, %v10322_v53  ;;  %v8358_v26 = vrot.slane %v8345_v28, 4  ;;  %v8361_v52 = vsel %vm147_vm1, %v8345_v28, %v8360_v13 }
0x2551   :  { %v8369_v7 = vperm.slane %v8361_v52, %v10327_v62 }
0x2552   :  { %v8346_v33 = vrot.slane %v8341_v38, 4  ;;  %v8349_v36 = vsel %vm147_vm1, %v8341_v38, %v8348_v60  ;;  %v8359_v34 = vsel %vm147_vm1, %v8358_v26, %v8333_v9 }
0x2553   :  { %v8357_v35 = vperm.slane %v8349_v36, %v10327_v62  ;;  %v8365_v6 = vperm.slane %v8359_v34, %v10327_v62  ;;  %v8376_v14 = vrot.slane %v8369_v7, 4 }
0x2554   :  { %v8347_v1 = vsel %vm147_vm1, %v8346_v33, %v8329_v20  ;;  %v8255_v31 = vpop.permute.xlu1 %8254 }
0x2555   :  { %v8353_v15 = vperm.slane %v8347_v1, %v10327_v62  ;;  %v8372_v47 = vrot.slane %v8357_v35, 4  ;;  %v8374_v18 = vrot.slane %v8365_v6, 4  ;;  %v8377_v44 = vsel %vm147_vm1, 0.0, %v8376_v14 }
0x2556   :  { %v8443_v56 = vsel %vm147_vm1, %v8376_v14, %v8365_v6  ;;  %v8448_v12 = vrot.slane %v8377_v44, 4  ;;  %v8278_v19 = vrot.slane %v8255_v31, 4  ;;  %v8281_v39 = vsel %vm147_vm1, %v8255_v31, %v8280_v4 }
0x2557   :  { %v8370_v55 = vrot.slane %v8353_v15, 4  ;;  %v8373_v42 = vsel %vm147_vm1, 0.0, %v8372_v47  ;;  %v8375_v23 = vsel %vm147_vm1, 0.0, %v8374_v18  ;;  %v8432_v37 = vsel %vm147_vm1, %v8372_v47, %v8353_v15 }
0x2558   :  { %v8437_v46 = vrot.slane %v8373_v42, 4  ;;  %v8447_v58 = vperm.slane %v8443_v56, %v10322_v53  ;;  %v8449_v24 = vsel %vm147_vm1, %v8448_v12, %v8375_v23  ;;  %v8279_v50 = vsel %vm147_vm1, %v8278_v19, %v8247_v63 }
0x2559   :  { %v8371_v30 = vsel %vm147_vm1, 0.0, %v8370_v55  ;;  %v8453_v59 = vperm.slane %v8449_v24, %v10322_v53  ;;  %v8285_v51 = vperm.slane %v8279_v50, %v10322_v53  ;;  %v8289_v27 = vperm.slane %v8281_v39, %v10322_v53 }
0x255a   :  { %v8468_v9 = vrot.slane %v8447_v58, 4  ;;  %v8436_v49 = vperm.slane %v8432_v37, %v10322_v53  ;;  %v8438_v29 = vsel %vm147_vm1, %v8437_v46, %v8371_v30 }
0x255b   :  { %v8290_v10 = vrot.slane %v8285_v51, 4  ;;  %v8293_v20 = vsel %vm147_vm1, %v8285_v51, %v8292_v25  ;;  %v8302_v32 = vrot.slane %v8289_v27, 4  ;;  %v8305_v2 = vsel %vm147_vm1, %v8289_v27, %v8304_v57 }
0x255c   :  { %v8301_v5 = vperm.slane %v8293_v20, %v10327_v62  ;;  %v8313_v13 = vperm.slane %v8305_v2, %v10327_v62  ;;  %v8442_v28 = vperm.slane %v8438_v29, %v10322_v53  ;;  %v8456_v61 = vrot.slane %v8436_v49, 4 }
0x255d   :  { %v8291_v60 = vsel %vm147_vm1, %v8290_v10, %v8273_v8  ;;  %v8303_v38 = vsel %vm147_vm1, %v8302_v32, %v8277_v48  ;;  %v8469_v26 = vsel %vm147_vm1, %v8453_v59, %v8468_v9  ;;  %v8466_v52 = vrot.slane %v8453_v59, 4 }
0x255e   :  { %v8297_v63 = vperm.slane %v8291_v60, %v10327_v62  ;;  %v8309_v7 = vperm.slane %v8303_v38, %v10327_v62  ;;  %v8316_v33 = vrot.slane %v8301_v5, 4  ;;  %v8320_v36 = vrot.slane %v8313_v13, 4 }
0x255f   :  { %v8457_v34 = vsel %vm147_vm1, %v8442_v28, %v8456_v61  ;;  %v8477_v35 = vperm.slane %v8469_v26, %v10327_v62  ;;  %v8454_v6 = vrot.slane %v8442_v28, 4  ;;  %v8467_v14 = vsel %vm147_vm1, %v8466_v52, %v8447_v58 }
0x2560   :  { %v8314_v25 = vrot.slane %v8297_v63, 4  ;;  %v8317_v8 = vsel %vm147_vm1, 0.0, %v8316_v33  ;;  %v8318_v48 = vrot.slane %v8309_v7, 4  ;;  %v8321_v57 = vsel %vm147_vm1, 0.0, %v8320_v36 }
0x2561   :  { %v8383_v4 = vrot.slane %v8317_v8, 4  ;;  %v8389_v1 = vsel %vm147_vm1, %v8320_v36, %v8309_v7  ;;  %v8394_v31 = vrot.slane %v8321_v57, 4  ;;  %v8465_v15 = vperm.slane %v8457_v34, %v10327_v62 }
0x2562   :  { %v8319_v47 = vsel %vm147_vm1, 0.0, %v8318_v48  ;;  %v8393_v18 = vperm.slane %v8389_v1, %v10322_v53  ;;  %v7957_v44 = vpop.f32.mrf.mxu2  ;;  %v8482_v56 = vrot.slane %v8477_v35, 4  ;;  %v8455_v12 = vsel %vm147_vm1, %v8454_v6, %v8436_v49 }
0x2563   :  { %v8395_v19 = vsel %vm147_vm1, %v8394_v31, %v8319_v47  ;;  %v7958_v39 = vadd.f32 %v13109_v16, %v7957_v44  ;;  %v8461_v55 = vperm.slane %v8455_v12, %v10327_v62  ;;  %v8473_v42 = vperm.slane %v8467_v14, %v10327_v62 }
0x2564   :  { %v8483_v23 = vsel %vm147_vm1, %v8482_v56, %v8465_v15  ;;  %v8484_v37 = vrot.slane %v8465_v15, 4  ;;  %v8315_v46 = vsel %vm147_vm1, 0.0, %v8314_v25  ;;  %v8378_v58 = vsel %vm147_vm1, %v8316_v33, %v8297_v63 }
0x2565   :  { %v7986_v24 = vmul.f32 0.35355338, %v7958_v39  ;;  %9744 = vmatpush.xpose.msk.msra.mxu2 %vm869_vm2, %v8483_v23  ;;  %v8478_v50 = vrot.slane %v8473_v42, 4  ;;  %v8480_v30 = vrot.slane %v8461_v55, 4  ;;  %v8382_v59 = vperm.slane %v8378_v58, %v10322_v53 }
0x2566   :  { %v8485_v51 = vsel %vm147_vm1, %v8477_v35, %v8484_v37  ;;  %v8384_v27 = vsel %vm147_vm1, %v8383_v4, %v8315_v46  ;;  %v8399_v9 = vperm.slane %v8395_v19, %v10322_v53  ;;  %v8414_v49 = vrot.slane %v8393_v18, 4 }
0x2567   :  { %v8479_v29 = vsel %vm147_vm1, %v8478_v50, %v8461_v55  ;;  %9748 = vmatpush.xpose.msk.msra.mxu1 %vm869_vm2, %v8485_v51  ;;  %v8481_v10 = vsel %vm147_vm1, %v8473_v42, %v8480_v30  ;;  %7990 = vrot.lane.b32.xlu2 %v7986_v24, %s10228_s21  ;;  %v8388_v20 = vperm.slane %v8384_v27, %v10322_v53  ;;  %v8402_v32 = vrot.slane %v8382_v59, 4 }
0x2568   :  { %9736 = vmatpush.xpose.msk.msrb.mxu3 %vm869_vm2, %v8479_v29  ;;  %9740 = vmatpush.xpose.msk.msrb.mxu0 %vm869_vm2, %v8481_v10  ;;  %v8415_v2 = vsel %vm147_vm1, %v8399_v9, %v8414_v49  ;;  %v8412_v5 = vrot.slane %v8399_v9, 4  ;;  %v8010_v31 = vrot.slane %v7986_v24, 4 }
0x2569   :  { %8002 = vrot.lane.b32.xlu1 %v7986_v24, %s10227_s20  ;;  %7996 = vrot.lane.b32.xlu0 %v7986_v24, %s10226_s19  ;;  %v8403_v13 = vsel %vm147_vm1, %v8388_v20, %v8402_v32  ;;  %v8423_v28 = vperm.slane %v8415_v2, %v10327_v62  ;;  %v8400_v61 = vrot.slane %v8388_v20, 4 }
0x256a   :  { %v8411_v60 = vperm.slane %v8403_v13, %v10327_v62  ;;  %v8413_v38 = vsel %vm147_vm1, %v8412_v5, %v8393_v18 }
0x256b   :  { %v8428_v26 = vrot.slane %v8423_v28, 4  ;;  %v8401_v52 = vsel %vm147_vm1, %v8400_v61, %v8382_v59  ;;  %v8419_v63 = vperm.slane %v8413_v38, %v10327_v62 }
0x256c   :  { %v8407_v7 = vperm.slane %v8401_v52, %v10327_v62  ;;  %v8430_v33 = vrot.slane %v8411_v60, 4 }
0x256d   :  { %v8429_v36 = vsel %vm147_vm1, %v8428_v26, %v8411_v60  ;;  %v8424_v34 = vrot.slane %v8419_v63, 4 }
0x256e   :  { %9745 = vmatpush.xpose.msk.msra.mxu2 %vm869_vm2, %v8429_v36  ;;  %v8431_v35 = vsel %vm147_vm1, %v8423_v28, %v8430_v33  ;;  %v8426_v6 = vrot.slane %v8407_v7, 4 }
0x256f   :  { %v8425_v14 = vsel %vm147_vm1, %v8424_v34, %v8407_v7  ;;  %9749 = vmatpush.xpose.msk.msra.mxu1 %vm869_vm2, %v8431_v35 }
0x2570   :  { %9737 = vmatpush.xpose.msk.msrb.mxu3 %vm869_vm2, %v8425_v14  ;;  %v8427_v25 = vsel %vm147_vm1, %v8419_v63, %v8426_v6 }
0x2571   :  { %9741 = vmatpush.xpose.msk.msrb.mxu0 %vm869_vm2, %v8427_v25  ;;  %v7960_v8 = vpop.f32.mrf.mxu2 }
0x2572   :  { %v7961_v48 = vadd.f32 %v13109_v16, %v7960_v8 }
0x2574   :  { %v7987_v57 = vmul.f32 0.35355338, %v7961_v48 }
0x2576   :  { %7992 = vrot.lane.b32.xlu2 %v7987_v57, %s10228_s21  ;;  %8004 = vrot.lane.b32.xlu1 %v7987_v57, %s10227_s20  ;;  %v8066_v28 = vrot.slane %v7987_v57, 4 }
0x2577   :  { %7998 = vrot.lane.b32.xlu0 %v7987_v57, %s10226_s19 }
0x25c1   :  { %v7991_v4 = vpop.permute.xlu2 %7990 }
0x25c2   :  { %v8022_v1 = vrot.slane %v7991_v4, 4 }
0x25d0   :  { %v7993_v49 = vpop.permute.xlu2 %7992 }
0x25d1   :  { %v8078_v61 = vrot.slane %v7993_v49, 4 }
0x25db   :  { %v7997_v15 = vpop.permute.xlu0 %7996  ;;  %v8003_v47 = vpop.permute.xlu1 %8002 }
0x25dc   :  { %v8008_v18 = vrot.slane %v7997_v15, 4  ;;  %v8011_v44 = vsel %vm147_vm1, %v7997_v15, %v8010_v31  ;;  %v8020_v56 = vrot.slane %v8003_v47, 4  ;;  %v8023_v12 = vsel %vm147_vm1, %v8003_v47, %v8022_v1 }
0x25dd   :  { %v8019_v16 = vperm.slane %v8011_v44, %v10322_v53  ;;  %v8031_v19 = vperm.slane %v8023_v12, %v10322_v53 }
0x25de   :  { %v8009_v39 = vsel %vm147_vm1, %v8008_v18, %v7986_v24  ;;  %v8021_v55 = vsel %vm147_vm1, %v8020_v56, %v7991_v4 }
0x25df   :  { %v8015_v42 = vperm.slane %v8009_v39, %v10322_v53  ;;  %v8046_v23 = vrot.slane %v8019_v16, 4  ;;  %v8027_v37 = vperm.slane %v8021_v55, %v10322_v53  ;;  %v8044_v46 = vrot.slane %v8031_v19, 4 }
0x25e1   :  { %v8034_v58 = vrot.slane %v8015_v42, 4  ;;  %v8032_v50 = vrot.slane %v8027_v37, 4  ;;  %v8045_v30 = vsel %vm147_vm1, %v8044_v46, %v8019_v16  ;;  %v8047_v59 = vsel %vm147_vm1, %v8031_v19, %v8046_v23 }
0x25e2   :  { %v8051_v51 = vperm.slane %v8045_v30, %v10327_v62  ;;  %v8055_v27 = vperm.slane %v8047_v59, %v10327_v62 }
0x25e3   :  { %v8033_v24 = vsel %vm147_vm1, %v8032_v50, %v8015_v42  ;;  %v8035_v9 = vsel %vm147_vm1, %v8027_v37, %v8034_v58 }
0x25e4   :  { %v8039_v29 = vperm.slane %v8033_v24, %v10327_v62  ;;  %v8043_v10 = vperm.slane %v8035_v9, %v10327_v62  ;;  %v8060_v20 = vrot.slane %v8051_v51, 4  ;;  %v8062_v32 = vrot.slane %v8055_v27, 4 }
0x25e6   :  { %v8056_v2 = vrot.slane %v8039_v29, 4  ;;  %v8058_v5 = vrot.slane %v8043_v10, 4  ;;  %v8063_v13 = vsel %vm147_vm1, 0.0, %v8062_v32  ;;  %v8061_v60 = vsel %vm147_vm1, 0.0, %v8060_v20 }
0x25e7   :  { %v8131_v38 = vsel %vm147_vm1, %v8062_v32, %v8051_v51  ;;  %v8136_v26 = vrot.slane %v8063_v13, 4 }
0x25e8   :  { %v8057_v52 = vsel %vm147_vm1, 0.0, %v8056_v2  ;;  %v8059_v63 = vsel %vm147_vm1, 0.0, %v8058_v5  ;;  %v8120_v7 = vsel %vm147_vm1, %v8058_v5, %v8039_v29  ;;  %v8135_v33 = vperm.slane %v8131_v38, %v10322_v53  ;;  %v8005_v36 = vpop.permute.xlu1 %8004 }
0x25e9   :  { %v8124_v34 = vperm.slane %v8120_v7, %v10322_v53  ;;  %v8125_v35 = vrot.slane %v8059_v63, 4  ;;  %v8137_v6 = vsel %vm147_vm1, %v8136_v26, %v8061_v60  ;;  %v7999_v14 = vpop.permute.xlu0 %7998  ;;  %v8076_v25 = vrot.slane %v8005_v36, 4 }
0x25ea   :  { %v8141_v8 = vperm.slane %v8137_v6, %v10322_v53  ;;  %v8156_v48 = vrot.slane %v8135_v33, 4  ;;  %v8064_v4 = vrot.slane %v7999_v14, 4  ;;  %v8067_v1 = vsel %vm147_vm1, %v7999_v14, %v8066_v28 }
0x25eb   :  { %v8075_v31 = vperm.slane %v8067_v1, %v10322_v53  ;;  %v8077_v15 = vsel %vm147_vm1, %v8076_v25, %v7993_v49  ;;  %v8079_v47 = vsel %vm147_vm1, %v8005_v36, %v8078_v61  ;;  %v8126_v18 = vsel %vm147_vm1, %v8125_v35, %v8057_v52 }
0x25ec   :  { %v8154_v44 = vrot.slane %v8141_v8, 4  ;;  %v8065_v56 = vsel %vm147_vm1, %v8064_v4, %v7987_v57  ;;  %v8083_v12 = vperm.slane %v8077_v15, %v10322_v53  ;;  %v8087_v16 = vperm.slane %v8079_v47, %v10322_v53 }
0x25ed   :  { %v8071_v19 = vperm.slane %v8065_v56, %v10322_v53  ;;  %v8102_v39 = vrot.slane %v8075_v31, 4  ;;  %v8130_v55 = vperm.slane %v8126_v18, %v10322_v53  ;;  %v8144_v42 = vrot.slane %v8124_v34, 4 }
0x25ee   :  { %v8088_v23 = vrot.slane %v8083_v12, 4  ;;  %v8100_v37 = vrot.slane %v8087_v16, 4  ;;  %v8157_v46 = vsel %vm147_vm1, %v8141_v8, %v8156_v48  ;;  %v8155_v58 = vsel %vm147_vm1, %v8154_v44, %v8135_v33 }
0x25ef   :  { %v8090_v50 = vrot.slane %v8071_v19, 4  ;;  %v8103_v30 = vsel %vm147_vm1, %v8087_v16, %v8102_v39  ;;  %v8145_v57 = vsel %vm147_vm1, %v8130_v55, %v8144_v42  ;;  %v8165_v59 = vperm.slane %v8157_v46, %v10327_v62 }
0x25f0   :  { %v8089_v51 = vsel %vm147_vm1, %v8088_v23, %v8071_v19  ;;  %v8101_v27 = vsel %vm147_vm1, %v8100_v37, %v8075_v31  ;;  %v8111_v24 = vperm.slane %v8103_v30, %v10327_v62  ;;  %v8153_v9 = vperm.slane %v8145_v57, %v10327_v62 }
0x25f1   :  { %v8091_v49 = vsel %vm147_vm1, %v8083_v12, %v8090_v50  ;;  %v8095_v29 = vperm.slane %v8089_v51, %v10327_v62  ;;  %v8107_v10 = vperm.slane %v8101_v27, %v10327_v62  ;;  %v8170_v20 = vrot.slane %v8165_v59, 4 }
0x25f2   :  { %v8099_v32 = vperm.slane %v8091_v49, %v10327_v62  ;;  %v8118_v2 = vrot.slane %v8111_v24, 4  ;;  %v8142_v5 = vrot.slane %v8130_v55, 4  ;;  %v8161_v13 = vperm.slane %v8155_v58, %v10327_v62 }
0x25f3   :  { %v8112_v28 = vrot.slane %v8095_v29, 4  ;;  %v8116_v61 = vrot.slane %v8107_v10, 4  ;;  %v8171_v60 = vsel %vm147_vm1, %v8170_v20, %v8153_v9  ;;  %v8172_v38 = vrot.slane %v8153_v9, 4 }
0x25f4   :  { %v8114_v26 = vrot.slane %v8099_v32, 4  ;;  %v8119_v52 = vsel %vm147_vm1, 0.0, %v8118_v2  ;;  %v8185_v63 = vsel %vm147_vm1, %v8118_v2, %v8107_v10  ;;  %9746 = vmatmul.msk.f32.vlgmr.msra.gmra.mxu2 %vm869_vm2, %v8171_v60  ;;  %v8143_v7 = vsel %vm147_vm1, %v8142_v5, %v8124_v34  ;;  %v10195_v32 = vld [vmem:[#allocation2 + $0x20] sm:$0xff] }
0x25f5   :  { %v8117_v33 = vsel %vm147_vm1, 0.0, %v8116_v61  ;;  %v8189_v36 = vperm.slane %v8185_v63, %v10322_v53  ;;  %v8190_v35 = vrot.slane %v8119_v52, 4  ;;  %v8149_v6 = vperm.slane %v8143_v7, %v10327_v62 }
0x25f6   :  { %v8115_v14 = vsel %vm147_vm1, 0.0, %v8114_v26  ;;  %v8166_v25 = vrot.slane %v8161_v13, 4  ;;  %v8173_v8 = vsel %vm147_vm1, %v8165_v59, %v8172_v38  ;;  %v8113_v48 = vsel %vm147_vm1, 0.0, %v8112_v28 }
0x25f7   :  { %v8179_v4 = vrot.slane %v8115_v14, 4  ;;  %v8191_v1 = vsel %vm147_vm1, %v8190_v35, %v8117_v33  ;;  %9750 = vmatmul.msk.f32.vlgmr.msra.gmra.mxu1 %vm869_vm2, %v8173_v8  ;;  %v8168_v34 = vrot.slane %v8149_v6, 4  ;;  %v8174_v31 = vsel %vm147_vm1, %v8114_v26, %v8095_v29 }
0x25f8   :  { %v8167_v15 = vsel %vm147_vm1, %v8166_v25, %v8149_v6  ;;  %v8178_v47 = vperm.slane %v8174_v31, %v10322_v53  ;;  %v8195_v18 = vperm.slane %v8191_v1, %v10322_v53  ;;  %v8210_v44 = vrot.slane %v8189_v36, 4 }
0x25f9   :  { %9738 = vmatmul.msk.f32.vlgmr.msrb.gmra.mxu3 %vm869_vm2, %v8167_v15  ;;  %v8169_v56 = vsel %vm147_vm1, %v8161_v13, %v8168_v34  ;;  %v8180_v12 = vsel %vm147_vm1, %v8179_v4, %v8113_v48  ;;  %v9896_v34 = vpack.i.bf16 %v13141_v0, %v13157_v22  ;;  %v9891_v31 = vpack.i.bf16 %v13147_v21, %v13129_v41 }
0x25fa   :  { %9742 = vmatmul.msk.f32.vlgmr.msrb.gmra.mxu0 %vm869_vm2, %v8169_v56  ;;  %v8184_v16 = vperm.slane %v8180_v12, %v10322_v53  ;;  %v8198_v19 = vrot.slane %v8178_v47, 4  ;;  %v8211_v39 = vsel %vm147_vm1, %v8195_v18, %v8210_v44  ;;  %v8208_v55 = vrot.slane %v8195_v18, 4 }
0x25fb   :  { %v8219_v42 = vperm.slane %v8211_v39, %v10327_v62  ;;  %v9886_v15 = vpack.i.bf16 %v13117_v54, %v13112_v17  ;;  %v9901_v0 = vpack.i.bf16 %v13163_v11, %v13151_v43 }
0x25fc   :  { %v8199_v23 = vsel %vm147_vm1, %v8184_v16, %v8198_v19  ;;  %v8196_v37 = vrot.slane %v8184_v16, 4  ;;  %v8209_v46 = vsel %vm147_vm1, %v8208_v55, %v8189_v36  ;;  %v10196_v36 = vld [vmem:[#allocation2 + $0x28] sm:$0xff] }
0x25fd   :  { %v8207_v58 = vperm.slane %v8199_v23, %v10327_v62  ;;  %v8224_v50 = vrot.slane %v8219_v42, 4  ;;  %v8215_v30 = vperm.slane %v8209_v46, %v10327_v62 }
0x25fe   :  { %v8197_v57 = vsel %vm147_vm1, %v8196_v37, %v8178_v47 }
0x25ff   :  { %v8225_v59 = vsel %vm147_vm1, %v8224_v50, %v8207_v58  ;;  %v8203_v51 = vperm.slane %v8197_v57, %v10327_v62  ;;  %v8220_v27 = vrot.slane %v8215_v30, 4  ;;  %v8226_v24 = vrot.slane %v8207_v58, 4 }
0x2600   :  { %9747 = vmatmul.msk.f32.gmra.mxu2 %vm869_vm2, %v8225_v59 }
0x2601   :  { %v8221_v9 = vsel %vm147_vm1, %v8220_v27, %v8203_v51  ;;  %v8227_v49 = vsel %vm147_vm1, %v8219_v42, %v8226_v24  ;;  %v8222_v29 = vrot.slane %v8203_v51, 4 }
0x2602   :  { %9739 = vmatmul.msk.f32.gmra.mxu3 %vm869_vm2, %v8221_v9  ;;  %9751 = vmatmul.msk.f32.gmra.mxu1 %vm869_vm2, %v8227_v49 }
0x2603   :  { %v8223_v10 = vsel %vm147_vm1, %v8215_v30, %v8222_v29 }
0x2604   :  { %9743 = vmatmul.msk.f32.gmra.mxu0 %vm869_vm2, %v8223_v10 }
0x2674   :  { %v8864_v20 = vpop.f32.mrf.mxu1 }
0x2675   :  { %v8865_v2 = vadd.f32 %v10195_v32, %v8864_v20 }
0x2677   :  { %v8794_v5 = vpop.f32.mrf.mxu0  ;;  %v8888_v13 = vsel %vm1010_vm3, %v8865_v2, -inf  ;;  %v8829_v61 = vpop.f32.mrf.mxu2 }
0x2678   :  { %v8795_v28 = vadd.f32 %v10195_v32, %v8794_v5  ;;  %8889 = vmax.xlane.f32.xlu2 %v8888_v13  ;;  %v8830_v38 = vadd.f32 %v10195_v32, %v8829_v61 }
0x267a   :  { %v8876_v60 = vsel %vm1010_vm3, %v8795_v28, -inf  ;;  %v8882_v7 = vsel %vm1010_vm3, %v8830_v38, -inf }
0x267b   :  { %8877 = vmax.xlane.f32.xlu1 %v8876_v60 }
0x267c   :  { %v8759_v26 = vpop.f32.mrf.mxu3 }
0x267d   :  { %v8760_v52 = vadd.f32 %v10195_v32, %v8759_v26 }
0x267f   :  { %v8870_v63 = vsel %vm1010_vm3, %v8760_v52, -inf  ;;  %v8867_v33 = vpop.f32.mrf.mxu1 }
0x2680   :  { %8871 = vmax.xlane.f32.xlu0 %v8870_v63  ;;  %8883 = vmax.xlane.f32.xlu2 %v8882_v7  ;;  %v8868_v35 = vadd.f32 %v10196_v36, %v8867_v33 }
0x2681   :  { %v8797_v6 = vpop.f32.mrf.mxu0 }
0x2682   :  { %v13359_v14 = vadd.f32 %v10196_v36, %v8797_v6  ;;  %v8891_v48 = vsel %vm1010_vm3, %v8868_v35, -inf }
0x2683   :  { %v8832_v25 = vpop.f32.mrf.mxu2 }
0x2684   :  { %v8833_v8 = vadd.f32 %v10196_v36, %v8832_v25  ;;  %v8879_v4 = vsel %vm1010_vm3, %v13359_v14, -inf }
0x2685   :  { %v8762_v47 = vpop.f32.mrf.mxu3 }
0x2686   :  { %v8885_v1 = vsel %vm1010_vm3, %v8833_v8, -inf  ;;  %v8763_v18 = vadd.f32 %v10196_v36, %v8762_v47 }
0x2687   :  { %8886 = vmax.xlane.f32.xlu1 %v8885_v1 }
0x2688   :  { %8892 = vmax.xlane.f32.xlu2 %v8891_v48  ;;  %8880 = vmax.xlane.f32.xlu0 %v8879_v4  ;;  %v8873_v44 = vsel %vm1010_vm3, %v8763_v18, -inf }
0x269c   :  { %9897 = vrot.lane.b32.xlu0 %v9896_v34, %s10230_s23 }
0x26a0   :  { %9892 = vrot.lane.b32.xlu2 %v9891_v31, %s10230_s23  ;;  %9887 = vrot.lane.b32.xlu1 %v9886_v15, %s10230_s23 }
0x26c6   :  { %8874 = vmax.xlane.f32.xlu0 %v8873_v44 }
0x26da   :  { %9902 = vrot.lane.b32.xlu0 %v9901_v0, %s10230_s23 }
0x26eb   :  { %v8890_v22 = vpop.xlane.xlu2 %8889 }
0x26ec   :  { %v8900_v56 = vsub.f32 %v8865_v2, %v8890_v22 }
0x26ee   :  { %v8914_v41 = vmul.f32 1.442695, %v8900_v56  ;;  %v8878_v21 = vpop.xlane.xlu1 %8877 }
0x26ef   :  { %v8896_v39 = vsub.f32 %v8795_v28, %v8878_v21 }
0x26f0   :  { %10147 = vpow2.f32 %v8914_v41 }
0x26f1   :  { %v8906_v43 = vmul.f32 1.442695, %v8896_v39 }
0x26f3   :  { %v8872_v17 = vpop.xlane.xlu0 %8871  ;;  %v8884_v54 = vpop.xlane.xlu2 %8883 }
0x26f4   :  { %v8894_v12 = vsub.f32 %v8760_v52, %v8872_v17  ;;  %v8898_v16 = vsub.f32 %v8830_v38, %v8884_v54 }
0x26f6   :  { %v13378_v19 = vpop.eup %10147  ;;  %v8902_v55 = vmul.f32 1.442695, %v8894_v12  ;;  %v8910_v42 = vmul.f32 1.442695, %v8898_v16 }
0x26f7   :  { %v8936_v23 = vsel %vm1010_vm3, %v13378_v19, 0.0 }
0x26f8   :  { %10149 = vpow2.f32 %v8902_v55  ;;  %8937 = vadd.xlane.f32.xlu2 %v8936_v23 }
0x26f9   :  { %10151 = vpow2.f32 %v8910_v42 }
0x26fa   :  { %v8887_v11 = vpop.xlane.xlu1 %8886  ;;  %10153 = vpow2.f32 %v8906_v43 }
0x26fb   :  { %v8893_v37 = vpop.xlane.xlu2 %8892  ;;  %v8899_v46 = vsub.f32 %v8833_v8, %v8887_v11  ;;  %v8881_v32 = vpop.xlane.xlu0 %8880 }
0x26fc   :  { %v8901_v58 = vsub.f32 %v8868_v35, %v8893_v37  ;;  %v8897_v28 = vsub.f32 %v13359_v14, %v8881_v32 }
0x26fd   :  { %v8912_v50 = vmul.f32 1.442695, %v8899_v46 }
0x26fe   :  { %v13382_v30 = vpop.eup %10149  ;;  %v8916_v27 = vmul.f32 1.442695, %v8901_v58  ;;  %v8908_v38 = vmul.f32 1.442695, %v8897_v28 }
0x26ff   :  { %v13384_v57 = vpop.eup %10151  ;;  %10155 = vpow2.f32 %v8912_v50  ;;  %v8918_v59 = vsel %vm1010_vm3, %v13382_v30, 0.0 }
0x2700   :  { %8919 = vadd.xlane.f32.xlu2 %v8918_v59  ;;  %v8930_v51 = vsel %vm1010_vm3, %v13384_v57, 0.0  ;;  %v13390_v24 = vpop.eup %10153  ;;  %10157 = vpow2.f32 %v8916_v27 }
0x2701   :  { %8931 = vadd.xlane.f32.xlu1 %v8930_v51  ;;  %v8924_v29 = vsel %vm1010_vm3, %v13390_v24, 0.0 }
0x2703   :  { %v9893_v52 = vpop.permute.xlu2 %9892 }
0x2704   :  { %v9895_v36 = vunpack.i.h.bf16 %v9893_v52  ;;  %v9894_v8 = vunpack.i.l.bf16 %v9893_v52 }
0x2705   :  { %v13392_v9 = vpop.eup %10155 }
0x2706   :  { %v8933_v49 = vsel %vm1010_vm3, %v13392_v9, 0.0  ;;  %v13398_v10 = vpop.eup %10157  ;;  %v8566_v1 = vrot.slane %v9895_v36, 4 }
0x2707   :  { %8934 = vadd.xlane.f32.xlu0 %v8933_v49  ;;  %v8939_v20 = vsel %vm1010_vm3, %v13398_v10, 0.0 }
0x2708   :  { %8925 = vadd.xlane.f32.xlu2 %v8924_v29 }
0x270e   :  { %v9898_v2 = vpop.permute.xlu0 %9897 }
0x270f   :  { %8940 = vadd.xlane.f32.xlu0 %v8939_v20  ;;  %v9900_v33 = vunpack.i.h.bf16 %v9898_v2  ;;  %v9899_v48 = vunpack.i.l.bf16 %v9898_v2 }
0x2711   :  { %v8510_v14 = vrot.slane %v9900_v33, 4  ;;  %v8524_v44 = vrot.slane %v9899_v48, 4 }
0x2712   :  { %v9888_v60 = vpop.permute.xlu1 %9887 }
0x2713   :  { %v9890_v26 = vunpack.i.h.bf16 %v9888_v60  ;;  %v9889_v63 = vunpack.i.l.bf16 %v9888_v60 }
0x2715   :  { %v8512_v35 = vrot.slane %v9890_v26, 4  ;;  %v8568_v25 = vrot.slane %v9889_v63, 4  ;;  %v8511_v31 = vsel %vm147_vm1, %v8510_v14, %v9890_v26  ;;  %v8567_v47 = vsel %vm147_vm1, %v8566_v1, %v9889_v63 }
0x2716   :  { %v8517_v41 = vperm.slane %v8511_v31, %v10322_v53  ;;  %v8573_v12 = vperm.slane %v8567_v47, %v10322_v53 }
0x2717   :  { %v8513_v34 = vsel %vm147_vm1, %v9900_v33, %v8512_v35  ;;  %v8569_v15 = vsel %vm147_vm1, %v9895_v36, %v8568_v25 }
0x2718   :  { %v8521_v0 = vperm.slane %v8513_v34, %v10322_v53  ;;  %v8577_v21 = vperm.slane %v8569_v15, %v10322_v53  ;;  %v8536_v37 = vrot.slane %v8517_v41, 4  ;;  %v8592_v29 = vrot.slane %v8573_v12, 4 }
0x271a   :  { %v8548_v23 = vrot.slane %v8521_v0, 4  ;;  %v8604_v46 = vrot.slane %v8577_v21, 4 }
0x2739   :  { %v8875_v5 = vpop.xlane.xlu0 %8874 }
0x273a   :  { %v8895_v13 = vsub.f32 %v8763_v18, %v8875_v5  ;;  %v8580_v18 = vrot.slane %v9894_v8, 4 }
0x273c   :  { %v8904_v61 = vmul.f32 1.442695, %v8895_v13 }
0x273e   :  { %10159 = vpow2.f32 %v8904_v61 }
0x273f   :  { %10161 = vpow2.f32 %v8908_v38 }
0x2744   :  { %v13403_v7 = vpop.eup %10159 }
0x2745   :  { %v8921_v6 = vsel %vm1010_vm3, %v13403_v7, 0.0  ;;  %v13407_v4 = vpop.eup %10161 }
0x2746   :  { %8922 = vadd.xlane.f32.xlu1 %v8921_v6  ;;  %v8927_v56 = vsel %vm1010_vm3, %v13407_v4, 0.0 }
0x274c   :  { %v9903_v22 = vpop.permute.xlu0 %9902 }
0x274d   :  { %v9905_v17 = vunpack.i.h.bf16 %v9903_v22  ;;  %v9904_v54 = vunpack.i.l.bf16 %v9903_v22 }
0x274e   :  { %8928 = vadd.xlane.f32.xlu1 %v8927_v56 }
0x274f   :  { %v8522_v16 = vrot.slane %v9905_v17, 4  ;;  %v8525_v39 = vsel %vm147_vm1, %v9905_v17, %v8524_v44  ;;  %v8578_v55 = vrot.slane %v9904_v54, 4  ;;  %v8581_v42 = vsel %vm147_vm1, %v9904_v54, %v8580_v18 }
0x2750   :  { %v8533_v43 = vperm.slane %v8525_v39, %v10322_v53  ;;  %v8589_v11 = vperm.slane %v8581_v42, %v10322_v53 }
0x2751   :  { %v8523_v58 = vsel %vm147_vm1, %v8522_v16, %v9899_v48  ;;  %v8579_v50 = vsel %vm147_vm1, %v8578_v55, %v9894_v8 }
0x2752   :  { %v8529_v59 = vperm.slane %v8523_v58, %v10322_v53  ;;  %v8546_v51 = vrot.slane %v8533_v43, 4  ;;  %v8549_v27 = vsel %vm147_vm1, %v8533_v43, %v8548_v23  ;;  %v8585_v49 = vperm.slane %v8579_v50, %v10322_v53 }
0x2753   :  { %v8557_v20 = vperm.slane %v8549_v27, %v10327_v62  ;;  %v8602_v32 = vrot.slane %v8589_v11, 4  ;;  %v8605_v2 = vsel %vm147_vm1, %v8589_v11, %v8604_v46 }
0x2754   :  { %v8534_v5 = vrot.slane %v8529_v59, 4  ;;  %v8537_v13 = vsel %vm147_vm1, %v8529_v59, %v8536_v37  ;;  %v8547_v28 = vsel %vm147_vm1, %v8546_v51, %v8521_v0  ;;  %v8590_v61 = vrot.slane %v8585_v49, 4 }
0x2755   :  { %v8545_v60 = vperm.slane %v8537_v13, %v10327_v62  ;;  %v8553_v38 = vperm.slane %v8547_v28, %v10327_v62  ;;  %v8564_v26 = vrot.slane %v8557_v20, 4  ;;  %v8593_v52 = vsel %vm147_vm1, %v8585_v49, %v8592_v29 }
0x2756   :  { %v8535_v63 = vsel %vm147_vm1, %v8534_v5, %v8517_v41  ;;  %v8591_v33 = vsel %vm147_vm1, %v8590_v61, %v8573_v12  ;;  %v8601_v36 = vperm.slane %v8593_v52, %v10327_v62  ;;  %v8603_v35 = vsel %vm147_vm1, %v8602_v32, %v8577_v21 }
0x2757   :  { %v8541_v6 = vperm.slane %v8535_v63, %v10327_v62  ;;  %v8560_v25 = vrot.slane %v8545_v60, 4  ;;  %v8562_v8 = vrot.slane %v8553_v38, 4  ;;  %v8565_v14 = vsel %vm147_vm1, 0.0, %v8564_v26 }
0x2758   :  { %v8597_v48 = vperm.slane %v8591_v33, %v10327_v62  ;;  %v8609_v1 = vperm.slane %v8603_v35, %v10327_v62  ;;  %v8613_v34 = vperm.slane %v8605_v2, %v10327_v62  ;;  %v8616_v31 = vrot.slane %v8601_v36, 4 }
0x2759   :  { %v8561_v15 = vsel %vm147_vm1, 0.0, %v8560_v25  ;;  %v8638_v47 = vrot.slane %v8565_v14, 4  ;;  %v8558_v18 = vrot.slane %v8541_v6, 4  ;;  %v8563_v44 = vsel %vm147_vm1, 0.0, %v8562_v8 }
0x275a   :  { %v8617_v0 = vsel %vm147_vm1, 0.0, %v8616_v31  ;;  %v8618_v22 = vrot.slane %v8609_v1, 4  ;;  %v8620_v56 = vrot.slane %v8613_v34, 4  ;;  %v8614_v41 = vrot.slane %v8597_v48, 4 }
0x275b   :  { %v8681_v21 = vrot.slane %v8617_v0, 4  ;;  %v8676_v17 = vsel %vm147_vm1, %v8616_v31, %v8597_v48  ;;  %v8559_v54 = vsel %vm147_vm1, 0.0, %v8558_v18  ;;  %v8622_v12 = vsel %vm147_vm1, %v8560_v25, %v8541_v6 }
0x275c   :  { %v8621_v16 = vsel %vm147_vm1, 0.0, %v8620_v56  ;;  %v8687_v39 = vsel %vm147_vm1, %v8620_v56, %v8609_v1  ;;  %v8615_v55 = vsel %vm147_vm1, 0.0, %v8614_v41  ;;  %v8619_v42 = vsel %vm147_vm1, 0.0, %v8618_v22 }
0x275d   :  { %v8692_v23 = vrot.slane %v8621_v16, 4  ;;  %v8680_v43 = vperm.slane %v8676_v17, %v10322_v53  ;;  %v8682_v11 = vsel %vm147_vm1, %v8681_v21, %v8615_v55  ;;  %v8691_v37 = vperm.slane %v8687_v39, %v10322_v53 }
0x275e   :  { %v8686_v46 = vperm.slane %v8682_v11, %v10322_v53  ;;  %v8626_v58 = vperm.slane %v8622_v12, %v10322_v53  ;;  %v8627_v50 = vrot.slane %v8561_v15, 4  ;;  %v8633_v59 = vsel %vm147_vm1, %v8564_v26, %v8553_v38 }
0x275f   :  { %v8693_v51 = vsel %vm147_vm1, %v8692_v23, %v8619_v42  ;;  %v8700_v27 = vrot.slane %v8680_v43, 4  ;;  %v8712_v49 = vrot.slane %v8691_v37, 4  ;;  %v8637_v29 = vperm.slane %v8633_v59, %v10322_v53 }
0x2760   :  { %v8697_v20 = vperm.slane %v8693_v51, %v10322_v53  ;;  %v8698_v32 = vrot.slane %v8686_v46, 4  ;;  %v8628_v2 = vsel %vm147_vm1, %v8627_v50, %v8559_v54  ;;  %v8639_v5 = vsel %vm147_vm1, %v8638_v47, %v8563_v44 }
0x2761   :  { %v8701_v13 = vsel %vm147_vm1, %v8686_v46, %v8700_v27  ;;  %v8632_v28 = vperm.slane %v8628_v2, %v10322_v53  ;;  %v8643_v61 = vperm.slane %v8639_v5, %v10322_v53  ;;  %v8646_v60 = vrot.slane %v8626_v58, 4 }
0x2762   :  { %v8709_v38 = vperm.slane %v8701_v13, %v10327_v62  ;;  %v8713_v26 = vsel %vm147_vm1, %v8697_v20, %v8712_v49  ;;  %v8699_v52 = vsel %vm147_vm1, %v8698_v32, %v8680_v43  ;;  %v8710_v63 = vrot.slane %v8697_v20, 4 }
0x2763   :  { %v8721_v33 = vperm.slane %v8713_v26, %v10327_v62  ;;  %v8705_v36 = vperm.slane %v8699_v52, %v10327_v62  ;;  %v8647_v35 = vsel %vm147_vm1, %v8632_v28, %v8646_v60  ;;  %v8658_v6 = vrot.slane %v8637_v29, 4 }
0x2764   :  { %v8711_v25 = vsel %vm147_vm1, %v8710_v63, %v8691_v37  ;;  %v8655_v8 = vperm.slane %v8647_v35, %v10327_v62  ;;  %v8728_v14 = vrot.slane %v8709_v38, 4  ;;  %v8644_v48 = vrot.slane %v8632_v28, 4 }
0x2765   :  { %v8726_v1 = vrot.slane %v8721_v33, 4  ;;  %v8717_v34 = vperm.slane %v8711_v25, %v10327_v62  ;;  %v8659_v31 = vsel %vm147_vm1, %v8643_v61, %v8658_v6  ;;  %v8656_v15 = vrot.slane %v8643_v61, 4 }
0x2766   :  { %v8667_v47 = vperm.slane %v8659_v31, %v10327_v62  ;;  %v8729_v18 = vsel %vm147_vm1, %v8721_v33, %v8728_v14  ;;  %v8645_v44 = vsel %vm147_vm1, %v8644_v48, %v8626_v58  ;;  %v8724_v0 = vrot.slane %v8705_v36, 4 }
0x2767   :  { %v8727_v22 = vsel %vm147_vm1, %v8726_v1, %v8709_v38  ;;  %v8722_v56 = vrot.slane %v8717_v34, 4  ;;  %9065 = vmatpush.msrb.mxu1 %v8729_v18  ;;  %v8651_v41 = vperm.slane %v8645_v44, %v10327_v62  ;;  %v8657_v21 = vsel %vm147_vm1, %v8656_v15, %v8637_v29 }
0x2768   :  { %9036 = vmatpush.msrb.mxu2 %v8727_v22  ;;  %v8672_v17 = vrot.slane %v8667_v47, 4  ;;  %v8663_v54 = vperm.slane %v8657_v21, %v10327_v62  ;;  %v8725_v12 = vsel %vm147_vm1, %v8717_v34, %v8724_v0  ;;  %v8674_v16 = vrot.slane %v8655_v8, 4 }
0x2769   :  { %v8723_v39 = vsel %vm147_vm1, %v8722_v56, %v8705_v36  ;;  %9007 = vmatpush.msra.mxu0 %v8725_v12  ;;  %v8670_v55 = vrot.slane %v8651_v41, 4 }
0x276a   :  { %8978 = vmatpush.msra.mxu3 %v8723_v39  ;;  %v8673_v42 = vsel %vm147_vm1, %v8672_v17, %v8655_v8  ;;  %v8668_v23 = vrot.slane %v8663_v54, 4  ;;  %v8675_v43 = vsel %vm147_vm1, %v8667_v47, %v8674_v16 }
0x276b   :  { %9037 = vmatpush.msrb.mxu2 %v8673_v42  ;;  %9066 = vmatpush.msrb.mxu1 %v8675_v43  ;;  %v8938_v11 = vpop.xlane.xlu2 %8937  ;;  %v8671_v37 = vsel %vm147_vm1, %v8663_v54, %v8670_v55 }
0x276c   :  { %v8669_v46 = vsel %vm147_vm1, %v8668_v23, %v8651_v41  ;;  %10163 = vrcp.f32 %v8938_v11  ;;  %9008 = vmatpush.msra.mxu0 %v8671_v37 }
0x276d   :  { %8979 = vmatpush.msra.mxu3 %v8669_v46 }
0x2772   :  { %v10164_v58 = vpop.eup %10163 }
0x2773   :  { %v8956_v50 = vmul.f32 %v10164_v58, %v13378_v19  ;;  %v8920_v59 = vpop.xlane.xlu2 %8919 }
0x2774   :  { %10165 = vrcp.f32 %v8920_v59  ;;  %v8932_v51 = vpop.xlane.xlu1 %8931 }
0x2775   :  { %10167 = vrcp.f32 %v8932_v51  ;;  %9758 = vmatmul.msk.f32.vlgmr.msrb.gmra.mxu1 %vm1010_vm3, %v8956_v50 }
0x277a   :  { %v10166_v27 = vpop.eup %10165  ;;  %v8935_v49 = vpop.xlane.xlu0 %8934 }
0x277b   :  { %v10168_v29 = vpop.eup %10167  ;;  %v8950_v20 = vmul.f32 %v10166_v27, %v13382_v30  ;;  %v8926_v32 = vpop.xlane.xlu2 %8925  ;;  %10169 = vrcp.f32 %v8935_v49 }
0x277c   :  { %v8954_v2 = vmul.f32 %v10168_v29, %v13384_v57  ;;  %10171 = vrcp.f32 %v8926_v32 }
0x277d   :  { %9752 = vmatmul.msk.f32.vlgmr.msra.gmra.mxu3 %vm1010_vm3, %v8950_v20 }
0x277e   :  { %9756 = vmatmul.msk.f32.vlgmr.msrb.gmra.mxu2 %vm1010_vm3, %v8954_v2 }
0x2781   :  { %v10170_v19 = vpop.eup %10169 }
0x2782   :  { %v10172_v5 = vpop.eup %10171  ;;  %v8941_v13 = vpop.xlane.xlu0 %8940  ;;  %v8955_v28 = vmul.f32 %v10170_v19, %v13392_v9 }
0x2783   :  { %v8952_v61 = vmul.f32 %v10172_v5, %v13390_v24  ;;  %10173 = vrcp.f32 %v8941_v13 }
0x2785   :  { %9754 = vmatmul.msk.f32.vlgmr.msra.gmra.mxu0 %vm1010_vm3, %v8952_v61 }
0x2786   :  { %9757 = vmatmul.msk.f32.gmra.mxu2 %vm1010_vm3, %v8955_v28 }
0x2789   :  { %v10174_v30 = vpop.eup %10173 }
0x278a   :  { %v8957_v57 = vmul.f32 %v10174_v30, %v13398_v10 }
0x278c   :  { %9759 = vmatmul.msk.f32.gmra.mxu1 %vm1010_vm3, %v8957_v57 }
0x27b9   :  { %v8923_v60 = vpop.xlane.xlu1 %8922 }
0x27ba   :  { %10175 = vrcp.f32 %v8923_v60 }
0x27c0   :  { %v10176_v38 = vpop.eup %10175 }
0x27c1   :  { %v8929_v26 = vpop.xlane.xlu1 %8928  ;;  %v8951_v52 = vmul.f32 %v10176_v38, %v13403_v7 }
0x27c2   :  { %10177 = vrcp.f32 %v8929_v26 }
0x27c3   :  { %9753 = vmatmul.msk.f32.gmra.mxu3 %vm1010_vm3, %v8951_v52 }
0x27c8   :  { %v10178_v24 = vpop.eup %10177 }
0x27c9   :  { %v8953_v9 = vmul.f32 %v10178_v24, %v13407_v4 }
0x27cb   :  { %9755 = vmatmul.msk.f32.gmra.mxu0 %vm1010_vm3, %v8953_v9 }
0x27f2   :  { %v9068_v63 = vpop.f32.mrf.mxu1 }
0x27f3   :  { %v9086_v36 = vrot.slane %v9068_v63, 4 }
0x2800   :  { %v8981_v33 = vpop.f32.mrf.mxu3 }
0x2801   :  { %v9076_v10 = vrot.slane %v8981_v33, 4  ;;  %v9039_v35 = vpop.f32.mrf.mxu2 }
0x2802   :  { %v9074_v6 = vrot.slane %v9039_v35, 4  ;;  %v9010_v25 = vpop.f32.mrf.mxu0 }
0x2803   :  { %v9077_v8 = vsel %vm147_vm1, %v9039_v35, %v9076_v10  ;;  %v9087_v14 = vsel %vm147_vm1, %v9086_v36, %v9010_v25  ;;  %v9088_v7 = vrot.slane %v9010_v25, 4 }
0x2804   :  { %v9075_v48 = vsel %vm147_vm1, %v9074_v6, %v8981_v33  ;;  %v9085_v1 = vperm.slane %v9077_v8, %v10322_v53  ;;  %v9093_v4 = vperm.slane %v9087_v14, %v10322_v53 }
0x2805   :  { %v9081_v34 = vperm.slane %v9075_v48, %v10322_v53  ;;  %v9089_v31 = vsel %vm147_vm1, %v9068_v63, %v9088_v7 }
0x2806   :  { %v9112_v15 = vrot.slane %v9085_v1, 4  ;;  %v9097_v47 = vperm.slane %v9089_v31, %v10322_v53  ;;  %v9098_v18 = vrot.slane %v9093_v4, 4 }
0x2807   :  { %v9100_v44 = vrot.slane %v9081_v34, 4 }
0x2808   :  { %v9099_v0 = vsel %vm147_vm1, %v9098_v18, %v9081_v34  ;;  %v9110_v22 = vrot.slane %v9097_v47, 4  ;;  %v9113_v56 = vsel %vm147_vm1, %v9097_v47, %v9112_v15 }
0x2809   :  { %v9101_v41 = vsel %vm147_vm1, %v9093_v4, %v9100_v44  ;;  %v9105_v21 = vperm.slane %v9099_v0, %v10327_v62  ;;  %v9121_v17 = vperm.slane %v9113_v56, %v10327_v62  ;;  %v9042_v8 = vpop.f32.mrf.mxu2  ;;  %v9071_v14 = vpop.f32.mrf.mxu1 }
0x280a   :  { %v9109_v54 = vperm.slane %v9101_v41, %v10327_v62  ;;  %v9111_v12 = vsel %vm147_vm1, %v9110_v22, %v9085_v1  ;;  %v9130_v7 = vrot.slane %v9042_v8, 4  ;;  %v9142_v1 = vrot.slane %v9071_v14, 4 }
0x280b   :  { %v9117_v16 = vperm.slane %v9111_v12, %v10327_v62  ;;  %v9128_v39 = vrot.slane %v9121_v17, 4  ;;  %v9122_v55 = vrot.slane %v9105_v21, 4 }
0x280c   :  { %v9124_v42 = vrot.slane %v9109_v54, 4 }
0x280d   :  { %v9126_v23 = vrot.slane %v9117_v16, 4  ;;  %v9129_v43 = vsel %vm147_vm1, 0.0, %v9128_v39  ;;  %v9197_v11 = vsel %vm147_vm1, %v9128_v39, %v9117_v16  ;;  %v9123_v49 = vsel %vm147_vm1, 0.0, %v9122_v55 }
0x280e   :  { %v9125_v37 = vsel %vm147_vm1, 0.0, %v9124_v42  ;;  %v9186_v46 = vsel %vm147_vm1, %v9124_v42, %v9105_v21  ;;  %v9202_v58 = vrot.slane %v9129_v43, 4  ;;  %v9201_v50 = vperm.slane %v9197_v11, %v10322_v53 }
0x280f   :  { %v9190_v59 = vperm.slane %v9186_v46, %v10322_v53  ;;  %v9191_v51 = vrot.slane %v9125_v37, 4  ;;  %v9127_v27 = vsel %vm147_vm1, 0.0, %v9126_v23 }
0x2810   :  { %v9203_v29 = vsel %vm147_vm1, %v9202_v58, %v9127_v27  ;;  %v9222_v20 = vrot.slane %v9201_v50, 4 }
0x2811   :  { %v9192_v32 = vsel %vm147_vm1, %v9191_v51, %v9123_v49  ;;  %v9207_v2 = vperm.slane %v9203_v29, %v10322_v53  ;;  %v9210_v19 = vrot.slane %v9190_v59, 4 }
0x2812   :  { %v9196_v5 = vperm.slane %v9192_v32, %v10322_v53 }
0x2813   :  { %v9223_v13 = vsel %vm147_vm1, %v9207_v2, %v9222_v20  ;;  %v9220_v28 = vrot.slane %v9207_v2, 4 }
0x2814   :  { %v9211_v61 = vsel %vm147_vm1, %v9196_v5, %v9210_v19  ;;  %v9231_v30 = vperm.slane %v9223_v13, %v10327_v62  ;;  %v9208_v57 = vrot.slane %v9196_v5, 4 }
0x2815   :  { %v9219_v60 = vperm.slane %v9211_v61, %v10327_v62  ;;  %v9221_v38 = vsel %vm147_vm1, %v9220_v28, %v9201_v50 }
0x2816   :  { %v9236_v26 = vrot.slane %v9231_v30, 4  ;;  %v9209_v52 = vsel %vm147_vm1, %v9208_v57, %v9190_v59  ;;  %v9227_v24 = vperm.slane %v9221_v38, %v10327_v62 }
0x2817   :  { %v9238_v9 = vrot.slane %v9219_v60, 4  ;;  %v9215_v63 = vperm.slane %v9209_v52, %v10327_v62 }
0x2818   :  { %v9237_v33 = vsel %vm147_vm1, %v9236_v26, %v9219_v60  ;;  %v9232_v36 = vrot.slane %v9227_v24, 4 }
0x2819   :  { %v9239_v10 = vsel %vm147_vm1, %v9231_v30, %v9238_v9  ;;  %9304 = vrot.lane.b32.xlu0 %v9237_v33, %s10233_s24  ;;  %v9234_v35 = vrot.slane %v9215_v63, 4  ;;  %v7930_v9 = vld [vmem:[#allocation2 + $0x4e0] sm:$0xff] }
0x281a   :  { %9312 = vrot.lane.b32.xlu1 %v9239_v10, %s10234_s25  ;;  %v13548_v6 = vsel %vm147_vm1, %v9232_v36, %v9215_v63 }
0x281b   :  { %v9235_v25 = vsel %vm147_vm1, %v9227_v24, %v9234_v35  ;;  %v7931_v24 = vld [vmem:[#allocation2 + $0x4e8] sm:$0xff]  ;;  %v7929_v35 = vld [vmem:[#allocation2 + $0x4d8] sm:$0xff] }
0x281c   :  { %9296 = vrot.lane.b32.xlu2 %v9235_v25, %s10225_s15  ;;  %9343 = vmatpush.msrb.mxu3 %v7931_v24 }
0x281e   :  { %9344 = vmatpush.msrb.mxu3 %v7930_v9  ;;  %v9944_v9 = vld [vmem:[#allocation2 + $0x508] ss:$0 sm:$0xff] }
0x2820   :  { %9345 = vmatpush.msrb.mxu3 %v7929_v35 }
0x2846   :  { %v8984_v48 = vpop.f32.mrf.mxu3 }
0x2847   :  { %v9131_v4 = vsel %vm147_vm1, %v9130_v7, %v8984_v48  ;;  %v9132_v34 = vrot.slane %v8984_v48, 4 }
0x2848   :  { %v9137_v31 = vperm.slane %v9131_v4, %v10322_v53  ;;  %v9013_v15 = vpop.f32.mrf.mxu0 }
0x2849   :  { %v9133_v47 = vsel %vm147_vm1, %v9042_v8, %v9132_v34  ;;  %v9143_v18 = vsel %vm147_vm1, %v9142_v1, %v9013_v15  ;;  %v9144_v44 = vrot.slane %v9013_v15, 4 }
0x284a   :  { %v9141_v0 = vperm.slane %v9133_v47, %v10322_v53  ;;  %v9156_v22 = vrot.slane %v9137_v31, 4  ;;  %v9149_v56 = vperm.slane %v9143_v18, %v10322_v53  ;;  %v7928_v18 = vld [vmem:[#allocation2 + $0x4d0] sm:$0xff] }
0x284b   :  { %v9145_v41 = vsel %vm147_vm1, %v9071_v14, %v9144_v44  ;;  %9346 = vmatpush.msrb.mxu3 %v7928_v18 }
0x284c   :  { %v9168_v21 = vrot.slane %v9141_v0, 4  ;;  %v9153_v17 = vperm.slane %v9145_v41, %v10322_v53  ;;  %v9154_v54 = vrot.slane %v9149_v56, 4  ;;  %v9157_v12 = vsel %vm147_vm1, %v9149_v56, %v9156_v22 }
0x284d   :  { %v9165_v16 = vperm.slane %v9157_v12, %v10327_v62 }
0x284e   :  { %v9155_v39 = vsel %vm147_vm1, %v9154_v54, %v9137_v31  ;;  %v9166_v55 = vrot.slane %v9153_v17, 4  ;;  %v9169_v42 = vsel %vm147_vm1, %v9153_v17, %v9168_v21 }
0x284f   :  { %v9161_v23 = vperm.slane %v9155_v39, %v10327_v62  ;;  %v9177_v43 = vperm.slane %v9169_v42, %v10327_v62  ;;  %v9180_v11 = vrot.slane %v9165_v16, 4 }
0x2850   :  { %v9167_v37 = vsel %vm147_vm1, %v9166_v55, %v9141_v0 }
0x2851   :  { %v9173_v46 = vperm.slane %v9167_v37, %v10327_v62  ;;  %v9178_v58 = vrot.slane %v9161_v23, 4  ;;  %v9181_v50 = vsel %vm147_vm1, 0.0, %v9180_v11  ;;  %v9184_v59 = vrot.slane %v9177_v43, 4 }
0x2852   :  { %v9240_v51 = vsel %vm147_vm1, %v9180_v11, %v9161_v23  ;;  %v9245_v27 = vrot.slane %v9181_v50, 4 }
0x2853   :  { %v9179_v49 = vsel %vm147_vm1, 0.0, %v9178_v58  ;;  %v9182_v29 = vrot.slane %v9173_v46, 4  ;;  %v9185_v20 = vsel %vm147_vm1, 0.0, %v9184_v59  ;;  %v9244_v32 = vperm.slane %v9240_v51, %v10322_v53 }
0x2854   :  { %v9246_v2 = vsel %vm147_vm1, %v9245_v27, %v9179_v49  ;;  %v9256_v19 = vrot.slane %v9185_v20, 4  ;;  %v9251_v5 = vsel %vm147_vm1, %v9184_v59, %v9173_v46 }
0x2855   :  { %v9183_v13 = vsel %vm147_vm1, 0.0, %v9182_v29  ;;  %v9250_v28 = vperm.slane %v9246_v2, %v10322_v53  ;;  %v9255_v61 = vperm.slane %v9251_v5, %v10322_v53  ;;  %v9264_v30 = vrot.slane %v9244_v32, 4  ;;  %v9409_v5 = vld [vmem:[#allocation2 + $0x530] sm:$0xff] }
0x2856   :  { %v9257_v57 = vsel %vm147_vm1, %v9256_v19, %v9183_v13  ;;  %v9410_v19 = vld [vmem:[#allocation2 + $0x538] sm:$0xff]  ;;  %v9408_v13 = vld [vmem:[#allocation2 + $0x528] sm:$0xff] }
0x2857   :  { %v9261_v60 = vperm.slane %v9257_v57, %v10322_v53  ;;  %v9265_v38 = vsel %vm147_vm1, %v9250_v28, %v9264_v30  ;;  %v9276_v26 = vrot.slane %v9255_v61, 4  ;;  %v9262_v52 = vrot.slane %v9250_v28, 4 }
0x2858   :  { %v9273_v63 = vperm.slane %v9265_v38, %v10327_v62 }
0x2859   :  { %v9277_v33 = vsel %vm147_vm1, %v9261_v60, %v9276_v26  ;;  %v9263_v36 = vsel %vm147_vm1, %v9262_v52, %v9244_v32  ;;  %v9274_v10 = vrot.slane %v9261_v60, 4 }
0x285a   :  { %v9285_v25 = vperm.slane %v9277_v33, %v10327_v62  ;;  %v9292_v8 = vrot.slane %v9273_v63, 4  ;;  %v9269_v53 = vperm.slane %v9263_v36, %v10327_v62  ;;  %v9945_v33 = vld [vmem:[#allocation2 + $0x510] ss:$0 sm:$0xff] }
0x285b   :  { %v9275_v14 = vsel %vm147_vm1, %v9274_v10, %v9255_v61 }
0x285c   :  { %v9293_v7 = vsel %vm147_vm1, %v9285_v25, %v9292_v8  ;;  %v9290_v48 = vrot.slane %v9285_v25, 4  ;;  %v9281_v1 = vperm.slane %v9275_v14, %v10327_v62  ;;  %v9288_v4 = vrot.slane %v9269_v53, 4  ;;  %v9448_v25 = vld [vmem:[#allocation2 + $0x568] sm:$0xff] }
0x285d   :  { %9314 = vrot.lane.b32.xlu1 %v9293_v7, %s10234_s25  ;;  %9469 = vmatpush.msra.mxu2 %v9448_v25 }
0x285e   :  { %v9291_v34 = vsel %vm147_vm1, %v9290_v48, %v9273_v63  ;;  %v9286_v31 = vrot.slane %v9281_v1, 4  ;;  %v9289_v15 = vsel %vm147_vm1, %v9281_v1, %v9288_v4 }
0x285f   :  { %9306 = vrot.lane.b32.xlu2 %v9291_v34, %s10233_s24  ;;  %9298 = vrot.lane.b32.xlu0 %v9289_v15, %s10225_s15 }
0x2860   :  { %v9287_v47 = vsel %vm147_vm1, %v9286_v31, %v9269_v53 }
0x2876   :  { %v9297_v44 = vpop.permute.xlu2 %9296 }
0x2877   :  { %v9318_v62 = vsel %vm869_vm2, %v13548_v6, %v9297_v44  ;;  %v9943_v6 = vld [vmem:[#allocation2 + $0x4f0] ss:$0 sm:$0xff] }
0x288b   :  { %v9305_v0 = vpop.permute.xlu0 %9304 }
0x288c   :  { %v9313_v22 = vpop.permute.xlu1 %9312  ;;  %v9320_v56 = vsel %vm1010_vm3, %v9318_v62, %v9305_v0  ;;  %v9447_v62 = vld [vmem:[#allocation2 + $0x560] sm:$0xff]  ;;  %v9446_v0 = vld [vmem:[#allocation2 + $0x558] sm:$0xff] }
0x288d   :  { %v9322_v41 = vsel %vm1463_vm4, %v9320_v56, %v9313_v22  ;;  %9470 = vmatpush.msra.mxu2 %v9447_v62  ;;  %v9445_v22 = vld [vmem:[#allocation2 + $0x550] sm:$0xff]  ;;  %v9946_v56 = vld [vmem:[#allocation2 + $0x548] ss:$0 sm:$0xff] }
0x288e   :  { %9760 = vmatmul.msk.f32.vlgmr.msrb.gmra.mxu3 %vm94_vm0, %v9322_v41 }
0x288f   :  { %9471 = vmatpush.msra.mxu2 %v9446_v0 }
0x2891   :  { %9472 = vmatpush.msra.mxu2 %v9445_v22 }
0x28b9   :  { %v9307_v17 = vpop.permute.xlu2 %9306 }
0x28cf   :  { %v9315_v12 = vpop.permute.xlu1 %9314 }
0x28d1   :  { %v9299_v21 = vpop.permute.xlu0 %9298 }
0x28d2   :  { %v9319_v54 = vsel %vm869_vm2, %v9287_v47, %v9299_v21 }
0x28d3   :  { %v9321_v16 = vsel %vm1010_vm3, %v9319_v54, %v9307_v17 }
0x28d4   :  { %v9323_v39 = vsel %vm1463_vm4, %v9321_v16, %v9315_v12 }
0x28d5   :  { %9761 = vmatmul.msk.f32.gmra.mxu3 %vm94_vm0, %v9323_v39  ;;  %v9947_v39 = vld [vmem:[#allocation2 + $0x570] ss:$0 sm:$0xff] }
0x2911   :  { %v9348_v55 = vpop.f32.mrf.mxu3 }
0x2912   :  { %v9349_v42 = vadd.f32 %v9943_v6, %v9348_v55 }
0x2914   :  { %v9354_v23 = vadd.f32 %v9349_v42, %v13155_v45 }
0x2916   :  { %v9358_v43 = vsel %vm94_vm0, %v9354_v23, 0.0 }
0x2917   :  { %9359 = vadd.xlane.f32.xlu0 %v9358_v43 }
0x2958   :  { %v9351_v11 = vpop.f32.mrf.mxu3 }
0x2959   :  { %v9352_v37 = vadd.f32 %v9943_v6, %v9351_v11 }
0x295b   :  { %v9355_v46 = vadd.f32 %v9352_v37, %v13167_v40  ;;  %v9411_v40 = vld [vmem:[#allocation2 + $0x540] sm:$0xff] }
0x295c   :  { %9432 = vmatpush.msrb.mxu0 %v9411_v40  ;;  %v9536_v40 = vld [vmem:[#allocation2 + $0x1a0] sm:$0xff] }
0x295d   :  { %v9361_v58 = vsel %vm94_vm0, %v9355_v46, 0.0 }
0x295e   :  { %9362 = vadd.xlane.f32.xlu2 %v9361_v58  ;;  %9433 = vmatpush.msrb.mxu0 %v9410_v19  ;;  %v9535_v19 = vld [vmem:[#allocation2 + $0x198] sm:$0xff] }
0x2960   :  { %9434 = vmatpush.msrb.mxu0 %v9409_v5  ;;  %v9534_v5 = vld [vmem:[#allocation2 + $0x190] sm:$0xff] }
0x2962   :  { %9435 = vmatpush.msrb.mxu0 %v9408_v13 }
0x298a   :  { %v9360_v50 = vpop.xlane.xlu0 %9359 }
0x298b   :  { %v9364_v59 = vmul.f32 %v9360_v50, %v10809_v3 }
0x298d   :  { %v9366_v51 = vsub.f32 %v9354_v23, %v9364_v59 }
0x298f   :  { %v9368_v27 = vmul.f32 %v9366_v51, %v9366_v51 }
0x2991   :  { %v9370_v49 = vsel %vm94_vm0, %v9368_v27, 0.0 }
0x2992   :  { %9371 = vadd.xlane.f32.xlu1 %v9370_v49 }
0x29d1   :  { %v9363_v29 = vpop.xlane.xlu2 %9362 }
0x29d2   :  { %v9365_v45 = vmul.f32 %v9363_v29, %v10809_v3 }
0x29d4   :  { %v9367_v20 = vsub.f32 %v9355_v46, %v9365_v45 }
0x29d6   :  { %v9369_v32 = vmul.f32 %v9367_v20, %v9367_v20 }
0x29d8   :  { %v9373_v2 = vsel %vm94_vm0, %v9369_v32, 0.0 }
0x29d9   :  { %9374 = vadd.xlane.f32.xlu0 %v9373_v2  ;;  %v9537_v2 = vld [vmem:[#allocation2 + $0x1a8] sm:$0xff] }
0x29da   :  { %9558 = vmatpush.msra.mxu1 %v9537_v2 }
0x29dc   :  { %9559 = vmatpush.msra.mxu1 %v9536_v40 }
0x29de   :  { %9560 = vmatpush.msra.mxu1 %v9535_v19 }
0x29e0   :  { %9561 = vmatpush.msra.mxu1 %v9534_v5 }
0x2a05   :  { %v9372_v28 = vpop.xlane.xlu1 %9371 }
0x2a06   :  { %v9376_v61 = vmul.f32 %v9372_v28, %v10809_v3 }
0x2a08   :  { %v9378_v30 = vadd.f32 1e-05, %v9376_v61 }
0x2a0a   :  { %10179 = vrsqrt.f32 %v9378_v30  ;;  %vm9386_vm2 = vweird.f32 %v9378_v30 }
0x2a10   :  { %v10180_v57 = vpop.eup %10179 }
0x2a11   :  { %v9381_v60 = vmul.f32 %v10180_v57, %v9378_v30  ;;  %vm9387_vm1 = vweird.f32 %v10180_v57 }
0x2a12   :  { %vm9388_vm3 = vmor %vm9386_vm2, %vm9387_vm1 }
0x2a13   :  { %v9382_v38 = vmul.f32 %v10180_v57, %v9381_v60 }
0x2a15   :  { %v9383_v26 = vmul.f32 0.5, %v9382_v38 }
0x2a17   :  { %v9384_v52 = vsub.f32 1.5, %v9383_v26 }
0x2a19   :  { %v9385_v24 = vmul.f32 %v10180_v57, %v9384_v52 }
0x2a1b   :  { %v9389_v63 = vsel %vm9388_vm3, %v10180_v57, %v9385_v24  ;;  %v9948_v24 = vld [vmem:[#allocation2 + $0x518] ss:$0 sm:$0xff] }
0x2a1c   :  { %v9400_v36 = vmul.f32 %v9389_v63, %v9366_v51  ;;  %v9949_v63 = vld [vmem:[#allocation2 + $0x520] ss:$0 sm:$0xff] }
0x2a1e   :  { %v9403_v10 = vmul.f32 %v9944_v9, %v9400_v36 }
0x2a20   :  { %v9406_v35 = vadd.f32 %v9945_v33, %v9403_v10 }
0x2a22   :  { %9762 = vmatmul.msk.f32.vlgmr.msrb.gmra.mxu0 %vm94_vm0, %v9406_v35 }
0x2a4c   :  { %v9375_v8 = vpop.xlane.xlu0 %9374 }
0x2a4d   :  { %v9377_v53 = vmul.f32 %v9375_v8, %v10809_v3 }
0x2a4f   :  { %v9379_v14 = vadd.f32 1e-05, %v9377_v53 }
0x2a51   :  { %10181 = vrsqrt.f32 %v9379_v14  ;;  %vm9396_vm11 = vweird.f32 %v9379_v14 }
0x2a57   :  { %v10182_v7 = vpop.eup %10181 }
0x2a58   :  { %v9391_v48 = vmul.f32 %v10182_v7, %v9379_v14  ;;  %vm9397_vm4 = vweird.f32 %v10182_v7 }
0x2a59   :  { %vm9398_vm12 = vmor %vm9396_vm11, %vm9397_vm4 }
0x2a5a   :  { %v9392_v1 = vmul.f32 %v10182_v7, %v9391_v48 }
0x2a5c   :  { %v9393_v4 = vmul.f32 0.5, %v9392_v1 }
0x2a5e   :  { %v9394_v34 = vsub.f32 1.5, %v9393_v4 }
0x2a60   :  { %v9395_v31 = vmul.f32 %v10182_v7, %v9394_v34 }
0x2a62   :  { %v9399_v15 = vsel %vm9398_vm12, %v10182_v7, %v9395_v31 }
0x2a63   :  { %v9401_v47 = vmul.f32 %v9399_v15, %v9367_v20 }
0x2a65   :  { %v9404_v18 = vmul.f32 %v9944_v9, %v9401_v47 }
0x2a67   :  { %v9407_v44 = vadd.f32 %v9945_v33, %v9404_v18  ;;  %v9950_v18 = vld [vmem:[#allocation2 + $0x1b0] ss:$0 sm:$0xff] }
0x2a69   :  { %9763 = vmatmul.msk.f32.gmra.mxu0 %vm94_vm0, %v9407_v44 }
0x2a9f   :  { %v9437_v41 = vpop.f32.mrf.mxu0 }
0x2aa0   :  { %v9438_v21 = vadd.f32 %v9946_v56, %v9437_v41 }
0x2aa2   :  { %v9443_v17 = vmax.f32 %v9438_v21, 0.0 }
0x2aa4   :  { %9764 = vmatmul.msk.f32.vlgmr.msra.gmra.mxu2 %vm94_vm0, %v9443_v17 }
0x2ae6   :  { %v9440_v54 = vpop.f32.mrf.mxu0 }
0x2ae7   :  { %v9441_v12 = vadd.f32 %v9946_v56, %v9440_v54 }
0x2ae9   :  { %v9444_v16 = vmax.f32 %v9441_v12, 0.0 }
0x2aeb   :  { %9765 = vmatmul.msk.f32.gmra.mxu2 %vm94_vm0, %v9444_v16 }
0x2b27   :  { %v9474_v6 = vpop.f32.mrf.mxu2 }
0x2b28   :  { %v9475_v55 = vadd.f32 %v9947_v39, %v9474_v6 }
0x2b2a   :  { %v9480_v42 = vadd.f32 %v9475_v55, %v9406_v35 }
0x2b2c   :  { %v9484_v23 = vsel %vm94_vm0, %v9480_v42, 0.0 }
0x2b2d   :  { %9485 = vadd.xlane.f32.xlu2 %v9484_v23 }
0x2b6e   :  { %v9477_v43 = vpop.f32.mrf.mxu2 }
0x2b6f   :  { %v9478_v11 = vadd.f32 %v9947_v39, %v9477_v43 }
0x2b71   :  { %v9481_v37 = vadd.f32 %v9478_v11, %v9407_v44 }
0x2b73   :  { %v9487_v46 = vsel %vm94_vm0, %v9481_v37, 0.0 }
0x2b74   :  { %9488 = vadd.xlane.f32.xlu1 %v9487_v46 }
0x2ba0   :  { %v9486_v58 = vpop.xlane.xlu2 %9485 }
0x2ba1   :  { %v9490_v50 = vmul.f32 %v9486_v58, %v10809_v3 }
0x2ba3   :  { %v9492_v59 = vsub.f32 %v9480_v42, %v9490_v50 }
0x2ba5   :  { %v9494_v51 = vmul.f32 %v9492_v59, %v9492_v59 }
0x2ba7   :  { %v9496_v27 = vsel %vm94_vm0, %v9494_v51, 0.0 }
0x2ba8   :  { %9497 = vadd.xlane.f32.xlu0 %v9496_v27 }
0x2be7   :  { %v9489_v49 = vpop.xlane.xlu1 %9488 }
0x2be8   :  { %v9491_v29 = vmul.f32 %v9489_v49, %v10809_v3 }
0x2bea   :  { %v9493_v45 = vsub.f32 %v9481_v37, %v9491_v29 }
0x2bec   :  { %v9495_v20 = vmul.f32 %v9493_v45, %v9493_v45 }
0x2bee   :  { %v9499_v32 = vsel %vm94_vm0, %v9495_v20, 0.0 }
0x2bef   :  { %9500 = vadd.xlane.f32.xlu2 %v9499_v32 }
0x2c1b   :  { %v9498_v13 = vpop.xlane.xlu0 %9497 }
0x2c1c   :  { %v9502_v28 = vmul.f32 %v9498_v13, %v10809_v3 }
0x2c1e   :  { %v9504_v61 = vadd.f32 1e-05, %v9502_v28 }
0x2c20   :  { %10183 = vrsqrt.f32 %v9504_v61  ;;  %vm9512_vm14 = vweird.f32 %v9504_v61 }
0x2c26   :  { %v10184_v30 = vpop.eup %10183 }
0x2c27   :  { %v9507_v57 = vmul.f32 %v10184_v30, %v9504_v61  ;;  %vm9513_vm13 = vweird.f32 %v10184_v30 }
0x2c28   :  { %vm9514_vm15 = vmor %vm9512_vm14, %vm9513_vm13 }
0x2c29   :  { %v9508_v60 = vmul.f32 %v10184_v30, %v9507_v57 }
0x2c2b   :  { %v9509_v38 = vmul.f32 0.5, %v9508_v60 }
0x2c2d   :  { %v9510_v26 = vsub.f32 1.5, %v9509_v38 }
0x2c2f   :  { %v9511_v52 = vmul.f32 %v10184_v30, %v9510_v26 }
0x2c31   :  { %v9515_v9 = vsel %vm9514_vm15, %v10184_v30, %v9511_v52 }
0x2c32   :  { %v9526_v33 = vmul.f32 %v9515_v9, %v9492_v59 }
0x2c34   :  { %v9529_v36 = vmul.f32 %v9948_v24, %v9526_v33 }
0x2c36   :  { %v9532_v10 = vadd.f32 %v9949_v63, %v9529_v36 }
0x2c38   :  { %9766 = vmatmul.msk.f32.vlgmr.msra.gmra.mxu1 %vm94_vm0, %v9532_v10 }
0x2c62   :  { %v9501_v35 = vpop.xlane.xlu2 %9500 }
0x2c63   :  { %v9503_v25 = vmul.f32 %v9501_v35, %v10809_v3 }
0x2c65   :  { %v9505_v8 = vadd.f32 1e-05, %v9503_v25 }
0x2c67   :  { %10185 = vrsqrt.f32 %v9505_v8  ;;  %vm9522_vm6 = vweird.f32 %v9505_v8 }
0x2c6d   :  { %v10186_v53 = vpop.eup %10185 }
0x2c6e   :  { %v9517_v14 = vmul.f32 %v10186_v53, %v9505_v8  ;;  %vm9523_vm5 = vweird.f32 %v10186_v53 }
0x2c6f   :  { %vm9524_vm7 = vmor %vm9522_vm6, %vm9523_vm5 }
0x2c70   :  { %v9518_v7 = vmul.f32 %v10186_v53, %v9517_v14 }
0x2c72   :  { %v9519_v48 = vmul.f32 0.5, %v9518_v7 }
0x2c74   :  { %v9520_v1 = vsub.f32 1.5, %v9519_v48 }
0x2c76   :  { %v9521_v4 = vmul.f32 %v10186_v53, %v9520_v1 }
0x2c78   :  { %v9525_v34 = vsel %vm9524_vm7, %v10186_v53, %v9521_v4 }
0x2c79   :  { %v9527_v31 = vmul.f32 %v9525_v34, %v9493_v45 }
0x2c7b   :  { %v9530_v15 = vmul.f32 %v9948_v24, %v9527_v31 }
0x2c7d   :  { %v9533_v47 = vadd.f32 %v9949_v63, %v9530_v15 }
0x2c7f   :  { %9767 = vmatmul.msk.f32.gmra.mxu1 %vm94_vm0, %v9533_v47 }
0x2cb5   :  { %v9563_v44 = vpop.f32.mrf.mxu1 }
0x2cb6   :  { %v9564_v3 = vadd.f32 %v9950_v18, %v9563_v44 }
0x2cb8   :  { %9569 = vst [vmem:[%s13636_s2] sm:$0xff] %v9564_v3 }
0x2cfc   :  { %v9566_v62 = vpop.f32.mrf.mxu1 }
0x2cfd   :  { %v9567_v0 = vadd.f32 %v9950_v18, %v9566_v62 }
0x2cff   :  { %9570 = vst [vmem:[%s13636_s2 + $0x8] sm:$0xff] %v9567_v0 }
0x2d00   :  { %9575 = vsyncpa [#allocation3], 1 }

</bundles_post_ra>
